<compile_context>
chip_gen: v7x
topology: tpu7x:2x2x1
jax: 0.10.0
libtpu: 0.0.40
codegen_flags: <defaults>
</compile_context>

<pallas_src>
import inspect

import jax
import jax.numpy as jnp
from jax.experimental import pallas as pl
from jax.experimental.pallas import tpu as pltpu

KH = KW = 5
STRIDE = 2
PAD = 2
C_BLK = 128   # lane tile
C_SUB = 128   # per-accumulator channel sub-tile inside the kernel


def _dwconv_kernel(x_ref, w_ref, o_ref):
    # x_ref: (2, 2, Hp//2, Wp//2, c_chunk)   indexed [r2, c2, r1, c1, ch]
    #        where padded input row = 2*r1 + r2, padded col = 2*c1 + c2
    # w_ref: (KH*KW, c_chunk)
    # o_ref: (OH, OW, c_chunk)
    oh, ow, c_chunk = o_ref.shape
    n_sub = c_chunk // C_SUB

    for cs in range(n_sub):                      # unrolled; acc stays ~7 vregs
        c0 = cs * C_SUB
        acc = jnp.zeros((oh, ow, C_SUB), jnp.float32)
        for kh in range(KH):
            ah, bh = kh // 2, kh % 2
            for kw in range(KW):
                aw, bw = kw // 2, kw % 2
                # contiguous (OH, OW, C_SUB) tap slice (static offsets, no strided loads)
                patch = x_ref[bh, bw, ah:ah + oh, aw:aw + ow, c0:c0 + C_SUB]
                tap = kh * KW + kw
                # static (1, C_SUB) weight-row load; broadcast over (OH, OW) is a
                # cheap lane-preserving VPU broadcast.
                w_b = w_ref[tap:tap + 1, c0:c0 + C_SUB]
                acc = acc + patch * w_b
        o_ref[:, :, c0:c0 + C_SUB] = acc.astype(o_ref.dtype)


def _num_channel_steps(c_pad):
    """2-way channel split only where a second TensorCore exists (v7x)."""
    try:
        kind = jax.devices()[0].device_kind.lower()
    except Exception:
        kind = ""
    if "v7" in kind and c_pad >= 2 * C_BLK and c_pad % (2 * C_BLK) == 0:
        return 2
    return 1


def depthwise_conv2d_s2(x_nchw, w_oihw):
    """Depthwise 5x5 / stride 2 / pad 2 conv (groups == channels, no bias).

    x_nchw: (N, C, H, W) float32
    w_oihw: (C, 1, KH, KW) float32  (PyTorch depthwise weight layout)
    returns: (N, C, OH, OW) float32
    """
    n, c, h, w = x_nchw.shape
    oh = (h + 2 * PAD - KH) // STRIDE + 1
    ow = (w + 2 * PAD - KW) // STRIDE + 1
    hp, wp = h + 2 * PAD, w + 2 * PAD
    assert hp % 2 == 0 and wp % 2 == 0

    c_pad = pl.cdiv(c, C_BLK) * C_BLK
    n_c_steps = _num_channel_steps(c_pad)
    c_chunk = c_pad // n_c_steps
    assert c_chunk % C_SUB == 0

    # One fused pre-copy: channel-pad + spatial-pad in NCHW, phase-split the stride
    # (pure reshape), then a single transpose that both moves channels to lanes and
    # brings the stride phases to the front.  Kernel blocks then have dense trailing
    # dims (Wp//2, c_chunk) and every 5x5/stride-2 tap is a contiguous slice.
    xp = jnp.pad(x_nchw, ((0, 0), (0, c_pad - c), (PAD, PAD), (PAD, PAD)))
    xp = xp.reshape(n, c_pad, hp // 2, 2, wp // 2, 2)          # (N,Cp,r1,r2,c1,c2)
    xp = jnp.transpose(xp, (0, 3, 5, 2, 4, 1))                 # (N,r2,c2,r1,c1,Cp)

    # (C, 1, KH, KW) -> (KH*KW, Cpad)
    wk = jnp.transpose(w_oihw[:, 0, :, :], (1, 2, 0)).reshape(KH * KW, c)
    wk = jnp.pad(wk, ((0, 0), (0, c_pad - c)))

    # Channel axis: CORE_PARALLEL on v7x (2 TensorCores) so the 2 channel steps
    # actually shard; plain "parallel" everywhere else.
    if n_c_steps == 2:
        chan_sem = getattr(pltpu, "CORE_PARALLEL", "parallel")
    else:
        chan_sem = "parallel"

    # Advisory cost hint (guarded: older jax may not accept the kwarg).
    extra_kwargs = {}
    try:
        if (hasattr(pl, "CostEstimate")
                and "cost_estimate" in inspect.signature(pl.pallas_call).parameters):
            bytes_accessed = (xp.size + wk.size + n * oh * ow * c_pad) * 4
            extra_kwargs["cost_estimate"] = pl.CostEstimate(
                flops=2 * n * c * oh * ow * KH * KW,
                transcendentals=0,
                bytes_accessed=bytes_accessed)
    except Exception:
        pass

    out = pl.pallas_call(
        _dwconv_kernel,
        out_shape=jax.ShapeDtypeStruct((n, oh, ow, c_pad), x_nchw.dtype),
        grid_spec=pltpu.PrefetchScalarGridSpec(
            num_scalar_prefetch=0,
            # channel axis outer, batch inner: weight block index is constant across
            # the inner batch axis, so weights stay VMEM-resident for N > 1.
            grid=(n_c_steps, n),
            in_specs=[
                pl.BlockSpec((None, 2, 2, hp // 2, wp // 2, c_chunk),
                             lambda ci, b: (b, 0, 0, 0, 0, ci)),
                pl.BlockSpec((KH * KW, c_chunk), lambda ci, b: (0, ci)),
            ],
            out_specs=pl.BlockSpec((None, oh, ow, c_chunk),
                                   lambda ci, b: (b, 0, 0, ci)),
        ),
        compiler_params=pltpu.CompilerParams(
            dimension_semantics=(chan_sem, "parallel")),
        **extra_kwargs,
    )(xp, wk)

    out = out[..., :c]                       # drop channel padding
    # Module contract is NCHW; a channels-last consumer could skip this transpose.
    return jnp.transpose(out, (0, 3, 1, 2))


if __name__ == "__main__":
    key = jax.random.PRNGKey(0)
    kx, kw_key = jax.random.split(key)

    # Shapes implied by the module's forward: x169 = (1, 672, 14, 14)
    x = jax.random.normal(kx, (1, 672, 14, 14), dtype=jnp.float32)
    # Conv2d(672, 672, k=5, groups=672, bias=False) weight: (672, 1, 5, 5)
    w = jax.random.normal(kw_key, (672, 1, 5, 5), dtype=jnp.float32) * 0.1

    y = depthwise_conv2d_s2(x, w)
    y = jax.block_until_ready(y)

    # Reference: XLA grouped convolution (same semantics as the PyTorch module)
    y_ref = jax.lax.conv_general_dilated(
        x, w,
        window_strides=(STRIDE, STRIDE),
        padding=((PAD, PAD), (PAD, PAD)),
        dimension_numbers=("NCHW", "OIHW", "NCHW"),
        feature_group_count=672,
    )
    y_ref = jax.block_until_ready(y_ref)

    assert y.shape == (1, 672, 7, 7), y.shape
    assert jnp.allclose(y, y_ref, atol=1e-4, rtol=1e-4), float(
        jnp.max(jnp.abs(y - y_ref)))

    print("KERNEL_OK")
</pallas_src>

<mosaic_0001>
module attributes {stable_mosaic.version = 11 : i64} {
  func.func @_dwconv_kernel(%arg0: i32, %arg1: i32, %arg2: memref<1x2x2x9x9x768xf32, #tpu.memory_space<vmem>>, %arg3: memref<25x768xf32, #tpu.memory_space<vmem>>, %arg4: memref<1x7x7x768xf32, #tpu.memory_space<vmem>>) attributes {dimension_semantics = [#tpu.dimension_semantics<parallel>, #tpu.dimension_semantics<parallel>], iteration_bounds = array<i64: 1, 1>, scalar_prefetch = 0 : i64, scratch_operands = 0 : i64, tpu.core_type = #tpu.core_type<tc>, window_params = [{transform_indices = @transform_0, window_bounds = array<i64: 1, 2, 2, 9, 9, 768>}, {transform_indices = @transform_1, window_bounds = array<i64: 25, 768>}, {transform_indices = @transform_2, window_bounds = array<i64: 1, 7, 7, 768>}]} {
    %cst = arith.constant 0.000000e+00 : f32
    %0 = vector.broadcast %cst : f32 to vector<7x7x128xf32>
    %c0 = arith.constant 0 : index
    %c0_0 = arith.constant 0 : index
    %c0_1 = arith.constant 0 : index
    %c0_2 = arith.constant 0 : index
    %c0_3 = arith.constant 0 : index
    %c0_4 = arith.constant 0 : index
    %1 = vector.load %arg2[%c0, %c0_0, %c0_1, %c0_2, %c0_3, %c0_4] : memref<1x2x2x9x9x768xf32, #tpu.memory_space<vmem>>, vector<1x1x1x7x7x128xf32>
    %2 = vector.shape_cast %1 : vector<1x1x1x7x7x128xf32> to vector<7x7x128xf32>
    %c0_5 = arith.constant 0 : index
    %c0_6 = arith.constant 0 : index
    %3 = vector.load %arg3[%c0_5, %c0_6] : memref<25x768xf32, #tpu.memory_space<vmem>>, vector<1x128xf32>
    %4 = vector.shape_cast %3 : vector<1x128xf32> to vector<1x1x128xf32>
    %5 = vector.broadcast %4 : vector<1x1x128xf32> to vector<7x7x128xf32>
    %6 = arith.mulf %2, %5 : vector<7x7x128xf32>
    %7 = arith.addf %0, %6 : vector<7x7x128xf32>
    %c0_7 = arith.constant 0 : index
    %c0_8 = arith.constant 0 : index
    %c1 = arith.constant 1 : index
    %c0_9 = arith.constant 0 : index
    %c0_10 = arith.constant 0 : index
    %c0_11 = arith.constant 0 : index
    %8 = vector.load %arg2[%c0_7, %c0_8, %c1, %c0_9, %c0_10, %c0_11] : memref<1x2x2x9x9x768xf32, #tpu.memory_space<vmem>>, vector<1x1x1x7x7x128xf32>
    %9 = vector.shape_cast %8 : vector<1x1x1x7x7x128xf32> to vector<7x7x128xf32>
    %c1_12 = arith.constant 1 : index
    %c0_13 = arith.constant 0 : index
    %10 = vector.load %arg3[%c1_12, %c0_13] : memref<25x768xf32, #tpu.memory_space<vmem>>, vector<1x128xf32>
    %11 = vector.shape_cast %10 : vector<1x128xf32> to vector<1x1x128xf32>
    %12 = vector.broadcast %11 : vector<1x1x128xf32> to vector<7x7x128xf32>
    %13 = arith.mulf %9, %12 : vector<7x7x128xf32>
    %14 = arith.addf %7, %13 : vector<7x7x128xf32>
    %c0_14 = arith.constant 0 : index
    %c0_15 = arith.constant 0 : index
    %c0_16 = arith.constant 0 : index
    %c0_17 = arith.constant 0 : index
    %c1_18 = arith.constant 1 : index
    %c0_19 = arith.constant 0 : index
    %15 = vector.load %arg2[%c0_14, %c0_15, %c0_16, %c0_17, %c1_18, %c0_19] : memref<1x2x2x9x9x768xf32, #tpu.memory_space<vmem>>, vector<1x1x1x7x7x128xf32>
    %16 = vector.shape_cast %15 : vector<1x1x1x7x7x128xf32> to vector<7x7x128xf32>
    %c2 = arith.constant 2 : index
    %c0_20 = arith.constant 0 : index
    %17 = vector.load %arg3[%c2, %c0_20] : memref<25x768xf32, #tpu.memory_space<vmem>>, vector<1x128xf32>
    %18 = vector.shape_cast %17 : vector<1x128xf32> to vector<1x1x128xf32>
    %19 = vector.broadcast %18 : vector<1x1x128xf32> to vector<7x7x128xf32>
    %20 = arith.mulf %16, %19 : vector<7x7x128xf32>
    %21 = arith.addf %14, %20 : vector<7x7x128xf32>
    %c0_21 = arith.constant 0 : index
    %c0_22 = arith.constant 0 : index
    %c1_23 = arith.constant 1 : index
    %c0_24 = arith.constant 0 : index
    %c1_25 = arith.constant 1 : index
    %c0_26 = arith.constant 0 : index
    %22 = vector.load %arg2[%c0_21, %c0_22, %c1_23, %c0_24, %c1_25, %c0_26] : memref<1x2x2x9x9x768xf32, #tpu.memory_space<vmem>>, vector<1x1x1x7x7x128xf32>
    %23 = vector.shape_cast %22 : vector<1x1x1x7x7x128xf32> to vector<7x7x128xf32>
    %c3 = arith.constant 3 : index
    %c0_27 = arith.constant 0 : index
    %24 = vector.load %arg3[%c3, %c0_27] : memref<25x768xf32, #tpu.memory_space<vmem>>, vector<1x128xf32>
    %25 = vector.shape_cast %24 : vector<1x128xf32> to vector<1x1x128xf32>
    %26 = vector.broadcast %25 : vector<1x1x128xf32> to vector<7x7x128xf32>
    %27 = arith.mulf %23, %26 : vector<7x7x128xf32>
    %28 = arith.addf %21, %27 : vector<7x7x128xf32>
    %c0_28 = arith.constant 0 : index
    %c0_29 = arith.constant 0 : index
    %c0_30 = arith.constant 0 : index
    %c0_31 = arith.constant 0 : index
    %c2_32 = arith.constant 2 : index
    %c0_33 = arith.constant 0 : index
    %29 = vector.load %arg2[%c0_28, %c0_29, %c0_30, %c0_31, %c2_32, %c0_33] : memref<1x2x2x9x9x768xf32, #tpu.memory_space<vmem>>, vector<1x1x1x7x7x128xf32>
    %30 = vector.shape_cast %29 : vector<1x1x1x7x7x128xf32> to vector<7x7x128xf32>
    %c4 = arith.constant 4 : index
    %c0_34 = arith.constant 0 : index
    %31 = vector.load %arg3[%c4, %c0_34] : memref<25x768xf32, #tpu.memory_space<vmem>>, vector<1x128xf32>
    %32 = vector.shape_cast %31 : vector<1x128xf32> to vector<1x1x128xf32>
    %33 = vector.broadcast %32 : vector<1x1x128xf32> to vector<7x7x128xf32>
    %34 = arith.mulf %30, %33 : vector<7x7x128xf32>
    %35 = arith.addf %28, %34 : vector<7x7x128xf32>
    %c0_35 = arith.constant 0 : index
    %c1_36 = arith.constant 1 : index
    %c0_37 = arith.constant 0 : index
    %c0_38 = arith.constant 0 : index
    %c0_39 = arith.constant 0 : index
    %c0_40 = arith.constant 0 : index
    %36 = vector.load %arg2[%c0_35, %c1_36, %c0_37, %c0_38, %c0_39, %c0_40] : memref<1x2x2x9x9x768xf32, #tpu.memory_space<vmem>>, vector<1x1x1x7x7x128xf32>
    %37 = vector.shape_cast %36 : vector<1x1x1x7x7x128xf32> to vector<7x7x128xf32>
    %c5 = arith.constant 5 : index
    %c0_41 = arith.constant 0 : index
    %38 = vector.load %arg3[%c5, %c0_41] : memref<25x768xf32, #tpu.memory_space<vmem>>, vector<1x128xf32>
    %39 = vector.shape_cast %38 : vector<1x128xf32> to vector<1x1x128xf32>
    %40 = vector.broadcast %39 : vector<1x1x128xf32> to vector<7x7x128xf32>
    %41 = arith.mulf %37, %40 : vector<7x7x128xf32>
    %42 = arith.addf %35, %41 : vector<7x7x128xf32>
    %c0_42 = arith.constant 0 : index
    %c1_43 = arith.constant 1 : index
    %c1_44 = arith.constant 1 : index
    %c0_45 = arith.constant 0 : index
    %c0_46 = arith.constant 0 : index
    %c0_47 = arith.constant 0 : index
    %43 = vector.load %arg2[%c0_42, %c1_43, %c1_44, %c0_45, %c0_46, %c0_47] : memref<1x2x2x9x9x768xf32, #tpu.memory_space<vmem>>, vector<1x1x1x7x7x128xf32>
    %44 = vector.shape_cast %43 : vector<1x1x1x7x7x128xf32> to vector<7x7x128xf32>
    %c6 = arith.constant 6 : index
    %c0_48 = arith.constant 0 : index
    %45 = vector.load %arg3[%c6, %c0_48] : memref<25x768xf32, #tpu.memory_space<vmem>>, vector<1x128xf32>
    %46 = vector.shape_cast %45 : vector<1x128xf32> to vector<1x1x128xf32>
    %47 = vector.broadcast %46 : vector<1x1x128xf32> to vector<7x7x128xf32>
    %48 = arith.mulf %44, %47 : vector<7x7x128xf32>
    %49 = arith.addf %42, %48 : vector<7x7x128xf32>
    %c0_49 = arith.constant 0 : index
    %c1_50 = arith.constant 1 : index
    %c0_51 = arith.constant 0 : index
    %c0_52 = arith.constant 0 : index
    %c1_53 = arith.constant 1 : index
    %c0_54 = arith.constant 0 : index
    %50 = vector.load %arg2[%c0_49, %c1_50, %c0_51, %c0_52, %c1_53, %c0_54] : memref<1x2x2x9x9x768xf32, #tpu.memory_space<vmem>>, vector<1x1x1x7x7x128xf32>
    %51 = vector.shape_cast %50 : vector<1x1x1x7x7x128xf32> to vector<7x7x128xf32>
    %c7 = arith.constant 7 : index
    %c0_55 = arith.constant 0 : index
    %52 = vector.load %arg3[%c7, %c0_55] : memref<25x768xf32, #tpu.memory_space<vmem>>, vector<1x128xf32>
    %53 = vector.shape_cast %52 : vector<1x128xf32> to vector<1x1x128xf32>
    %54 = vector.broadcast %53 : vector<1x1x128xf32> to vector<7x7x128xf32>
    %55 = arith.mulf %51, %54 : vector<7x7x128xf32>
    %56 = arith.addf %49, %55 : vector<7x7x128xf32>
    %c0_56 = arith.constant 0 : index
    %c1_57 = arith.constant 1 : index
    %c1_58 = arith.constant 1 : index
    %c0_59 = arith.constant 0 : index
    %c1_60 = arith.constant 1 : index
    %c0_61 = arith.constant 0 : index
    %57 = vector.load %arg2[%c0_56, %c1_57, %c1_58, %c0_59, %c1_60, %c0_61] : memref<1x2x2x9x9x768xf32, #tpu.memory_space<vmem>>, vector<1x1x1x7x7x128xf32>
    %58 = vector.shape_cast %57 : vector<1x1x1x7x7x128xf32> to vector<7x7x128xf32>
    %c8 = arith.constant 8 : index
    %c0_62 = arith.constant 0 : index
    %59 = vector.load %arg3[%c8, %c0_62] : memref<25x768xf32, #tpu.memory_space<vmem>>, vector<1x128xf32>
    %60 = vector.shape_cast %59 : vector<1x128xf32> to vector<1x1x128xf32>
    %61 = vector.broadcast %60 : vector<1x1x128xf32> to vector<7x7x128xf32>
    %62 = arith.mulf %58, %61 : vector<7x7x128xf32>
    %63 = arith.addf %56, %62 : vector<7x7x128xf32>
    %c0_63 = arith.constant 0 : index
    %c1_64 = arith.constant 1 : index
    %c0_65 = arith.constant 0 : index
    %c0_66 = arith.constant 0 : index
    %c2_67 = arith.constant 2 : index
    %c0_68 = arith.constant 0 : index
    %64 = vector.load %arg2[%c0_63, %c1_64, %c0_65, %c0_66, %c2_67, %c0_68] : memref<1x2x2x9x9x768xf32, #tpu.memory_space<vmem>>, vector<1x1x1x7x7x128xf32>
    %65 = vector.shape_cast %64 : vector<1x1x1x7x7x128xf32> to vector<7x7x128xf32>
    %c9 = arith.constant 9 : index
    %c0_69 = arith.constant 0 : index
    %66 = vector.load %arg3[%c9, %c0_69] : memref<25x768xf32, #tpu.memory_space<vmem>>, vector<1x128xf32>
    %67 = vector.shape_cast %66 : vector<1x128xf32> to vector<1x1x128xf32>
    %68 = vector.broadcast %67 : vector<1x1x128xf32> to vector<7x7x128xf32>
    %69 = arith.mulf %65, %68 : vector<7x7x128xf32>
    %70 = arith.addf %63, %69 : vector<7x7x128xf32>
    %c0_70 = arith.constant 0 : index
    %c0_71 = arith.constant 0 : index
    %c0_72 = arith.constant 0 : index
    %c1_73 = arith.constant 1 : index
    %c0_74 = arith.constant 0 : index
    %c0_75 = arith.constant 0 : index
    %71 = vector.load %arg2[%c0_70, %c0_71, %c0_72, %c1_73, %c0_74, %c0_75] : memref<1x2x2x9x9x768xf32, #tpu.memory_space<vmem>>, vector<1x1x1x7x7x128xf32>
    %72 = vector.shape_cast %71 : vector<1x1x1x7x7x128xf32> to vector<7x7x128xf32>
    %c10 = arith.constant 10 : index
    %c0_76 = arith.constant 0 : index
    %73 = vector.load %arg3[%c10, %c0_76] : memref<25x768xf32, #tpu.memory_space<vmem>>, vector<1x128xf32>
    %74 = vector.shape_cast %73 : vector<1x128xf32> to vector<1x1x128xf32>
    %75 = vector.broadcast %74 : vector<1x1x128xf32> to vector<7x7x128xf32>
    %76 = arith.mulf %72, %75 : vector<7x7x128xf32>
    %77 = arith.addf %70, %76 : vector<7x7x128xf32>
    %c0_77 = arith.constant 0 : index
    %c0_78 = arith.constant 0 : index
    %c1_79 = arith.constant 1 : index
    %c1_80 = arith.constant 1 : index
    %c0_81 = arith.constant 0 : index
    %c0_82 = arith.constant 0 : index
    %78 = vector.load %arg2[%c0_77, %c0_78, %c1_79, %c1_80, %c0_81, %c0_82] : memref<1x2x2x9x9x768xf32, #tpu.memory_space<vmem>>, vector<1x1x1x7x7x128xf32>
    %79 = vector.shape_cast %78 : vector<1x1x1x7x7x128xf32> to vector<7x7x128xf32>
    %c11 = arith.constant 11 : index
    %c0_83 = arith.constant 0 : index
    %80 = vector.load %arg3[%c11, %c0_83] : memref<25x768xf32, #tpu.memory_space<vmem>>, vector<1x128xf32>
    %81 = vector.shape_cast %80 : vector<1x128xf32> to vector<1x1x128xf32>
    %82 = vector.broadcast %81 : vector<1x1x128xf32> to vector<7x7x128xf32>
    %83 = arith.mulf %79, %82 : vector<7x7x128xf32>
    %84 = arith.addf %77, %83 : vector<7x7x128xf32>
    %c0_84 = arith.constant 0 : index
    %c0_85 = arith.constant 0 : index
    %c0_86 = arith.constant 0 : index
    %c1_87 = arith.constant 1 : index
    %c1_88 = arith.constant 1 : index
    %c0_89 = arith.constant 0 : index
    %85 = vector.load %arg2[%c0_84, %c0_85, %c0_86, %c1_87, %c1_88, %c0_89] : memref<1x2x2x9x9x768xf32, #tpu.memory_space<vmem>>, vector<1x1x1x7x7x128xf32>
    %86 = vector.shape_cast %85 : vector<1x1x1x7x7x128xf32> to vector<7x7x128xf32>
    %c12 = arith.constant 12 : index
    %c0_90 = arith.constant 0 : index
    %87 = vector.load %arg3[%c12, %c0_90] : memref<25x768xf32, #tpu.memory_space<vmem>>, vector<1x128xf32>
    %88 = vector.shape_cast %87 : vector<1x128xf32> to vector<1x1x128xf32>
    %89 = vector.broadcast %88 : vector<1x1x128xf32> to vector<7x7x128xf32>
    %90 = arith.mulf %86, %89 : vector<7x7x128xf32>
    %91 = arith.addf %84, %90 : vector<7x7x128xf32>
    %c0_91 = arith.constant 0 : index
    %c0_92 = arith.constant 0 : index
    %c1_93 = arith.constant 1 : index
    %c1_94 = arith.constant 1 : index
    %c1_95 = arith.constant 1 : index
    %c0_96 = arith.constant 0 : index
    %92 = vector.load %arg2[%c0_91, %c0_92, %c1_93, %c1_94, %c1_95, %c0_96] : memref<1x2x2x9x9x768xf32, #tpu.memory_space<vmem>>, vector<1x1x1x7x7x128xf32>
    %93 = vector.shape_cast %92 : vector<1x1x1x7x7x128xf32> to vector<7x7x128xf32>
    %c13 = arith.constant 13 : index
    %c0_97 = arith.constant 0 : index
    %94 = vector.load %arg3[%c13, %c0_97] : memref<25x768xf32, #tpu.memory_space<vmem>>, vector<1x128xf32>
    %95 = vector.shape_cast %94 : vector<1x128xf32> to vector<1x1x128xf32>
    %96 = vector.broadcast %95 : vector<1x1x128xf32> to vector<7x7x128xf32>
    %97 = arith.mulf %93, %96 : vector<7x7x128xf32>
    %98 = arith.addf %91, %97 : vector<7x7x128xf32>
    %c0_98 = arith.constant 0 : index
    %c0_99 = arith.constant 0 : index
    %c0_100 = arith.constant 0 : index
    %c1_101 = arith.constant 1 : index
    %c2_102 = arith.constant 2 : index
    %c0_103 = arith.constant 0 : index
    %99 = vector.load %arg2[%c0_98, %c0_99, %c0_100, %c1_101, %c2_102, %c0_103] : memref<1x2x2x9x9x768xf32, #tpu.memory_space<vmem>>, vector<1x1x1x7x7x128xf32>
    %100 = vector.shape_cast %99 : vector<1x1x1x7x7x128xf32> to vector<7x7x128xf32>
    %c14 = arith.constant 14 : index
    %c0_104 = arith.constant 0 : index
    %101 = vector.load %arg3[%c14, %c0_104] : memref<25x768xf32, #tpu.memory_space<vmem>>, vector<1x128xf32>
    %102 = vector.shape_cast %101 : vector<1x128xf32> to vector<1x1x128xf32>
    %103 = vector.broadcast %102 : vector<1x1x128xf32> to vector<7x7x128xf32>
    %104 = arith.mulf %100, %103 : vector<7x7x128xf32>
    %105 = arith.addf %98, %104 : vector<7x7x128xf32>
    %c0_105 = arith.constant 0 : index
    %c1_106 = arith.constant 1 : index
    %c0_107 = arith.constant 0 : index
    %c1_108 = arith.constant 1 : index
    %c0_109 = arith.constant 0 : index
    %c0_110 = arith.constant 0 : index
    %106 = vector.load %arg2[%c0_105, %c1_106, %c0_107, %c1_108, %c0_109, %c0_110] : memref<1x2x2x9x9x768xf32, #tpu.memory_space<vmem>>, vector<1x1x1x7x7x128xf32>
    %107 = vector.shape_cast %106 : vector<1x1x1x7x7x128xf32> to vector<7x7x128xf32>
    %c15 = arith.constant 15 : index
    %c0_111 = arith.constant 0 : index
    %108 = vector.load %arg3[%c15, %c0_111] : memref<25x768xf32, #tpu.memory_space<vmem>>, vector<1x128xf32>
    %109 = vector.shape_cast %108 : vector<1x128xf32> to vector<1x1x128xf32>
    %110 = vector.broadcast %109 : vector<1x1x128xf32> to vector<7x7x128xf32>
    %111 = arith.mulf %107, %110 : vector<7x7x128xf32>
    %112 = arith.addf %105, %111 : vector<7x7x128xf32>
    %c0_112 = arith.constant 0 : index
    %c1_113 = arith.constant 1 : index
    %c1_114 = arith.constant 1 : index
    %c1_115 = arith.constant 1 : index
    %c0_116 = arith.constant 0 : index
    %c0_117 = arith.constant 0 : index
    %113 = vector.load %arg2[%c0_112, %c1_113, %c1_114, %c1_115, %c0_116, %c0_117] : memref<1x2x2x9x9x768xf32, #tpu.memory_space<vmem>>, vector<1x1x1x7x7x128xf32>
    %114 = vector.shape_cast %113 : vector<1x1x1x7x7x128xf32> to vector<7x7x128xf32>
    %c16 = arith.constant 16 : index
    %c0_118 = arith.constant 0 : index
    %115 = vector.load %arg3[%c16, %c0_118] : memref<25x768xf32, #tpu.memory_space<vmem>>, vector<1x128xf32>
    %116 = vector.shape_cast %115 : vector<1x128xf32> to vector<1x1x128xf32>
    %117 = vector.broadcast %116 : vector<1x1x128xf32> to vector<7x7x128xf32>
    %118 = arith.mulf %114, %117 : vector<7x7x128xf32>
    %119 = arith.addf %112, %118 : vector<7x7x128xf32>
    %c0_119 = arith.constant 0 : index
    %c1_120 = arith.constant 1 : index
    %c0_121 = arith.constant 0 : index
    %c1_122 = arith.constant 1 : index
    %c1_123 = arith.constant 1 : index
    %c0_124 = arith.constant 0 : index
    %120 = vector.load %arg2[%c0_119, %c1_120, %c0_121, %c1_122, %c1_123, %c0_124] : memref<1x2x2x9x9x768xf32, #tpu.memory_space<vmem>>, vector<1x1x1x7x7x128xf32>
    %121 = vector.shape_cast %120 : vector<1x1x1x7x7x128xf32> to vector<7x7x128xf32>
    %c17 = arith.constant 17 : index
    %c0_125 = arith.constant 0 : index
    %122 = vector.load %arg3[%c17, %c0_125] : memref<25x768xf32, #tpu.memory_space<vmem>>, vector<1x128xf32>
    %123 = vector.shape_cast %122 : vector<1x128xf32> to vector<1x1x128xf32>
    %124 = vector.broadcast %123 : vector<1x1x128xf32> to vector<7x7x128xf32>
    %125 = arith.mulf %121, %124 : vector<7x7x128xf32>
    %126 = arith.addf %119, %125 : vector<7x7x128xf32>
    %c0_126 = arith.constant 0 : index
    %c1_127 = arith.constant 1 : index
    %c1_128 = arith.constant 1 : index
    %c1_129 = arith.constant 1 : index
    %c1_130 = arith.constant 1 : index
    %c0_131 = arith.constant 0 : index
    %127 = vector.load %arg2[%c0_126, %c1_127, %c1_128, %c1_129, %c1_130, %c0_131] : memref<1x2x2x9x9x768xf32, #tpu.memory_space<vmem>>, vector<1x1x1x7x7x128xf32>
    %128 = vector.shape_cast %127 : vector<1x1x1x7x7x128xf32> to vector<7x7x128xf32>
    %c18 = arith.constant 18 : index
    %c0_132 = arith.constant 0 : index
    %129 = vector.load %arg3[%c18, %c0_132] : memref<25x768xf32, #tpu.memory_space<vmem>>, vector<1x128xf32>
    %130 = vector.shape_cast %129 : vector<1x128xf32> to vector<1x1x128xf32>
    %131 = vector.broadcast %130 : vector<1x1x128xf32> to vector<7x7x128xf32>
    %132 = arith.mulf %128, %131 : vector<7x7x128xf32>
    %133 = arith.addf %126, %132 : vector<7x7x128xf32>
    %c0_133 = arith.constant 0 : index
    %c1_134 = arith.constant 1 : index
    %c0_135 = arith.constant 0 : index
    %c1_136 = arith.constant 1 : index
    %c2_137 = arith.constant 2 : index
    %c0_138 = arith.constant 0 : index
    %134 = vector.load %arg2[%c0_133, %c1_134, %c0_135, %c1_136, %c2_137, %c0_138] : memref<1x2x2x9x9x768xf32, #tpu.memory_space<vmem>>, vector<1x1x1x7x7x128xf32>
    %135 = vector.shape_cast %134 : vector<1x1x1x7x7x128xf32> to vector<7x7x128xf32>
    %c19 = arith.constant 19 : index
    %c0_139 = arith.constant 0 : index
    %136 = vector.load %arg3[%c19, %c0_139] : memref<25x768xf32, #tpu.memory_space<vmem>>, vector<1x128xf32>
    %137 = vector.shape_cast %136 : vector<1x128xf32> to vector<1x1x128xf32>
    %138 = vector.broadcast %137 : vector<1x1x128xf32> to vector<7x7x128xf32>
    %139 = arith.mulf %135, %138 : vector<7x7x128xf32>
    %140 = arith.addf %133, %139 : vector<7x7x128xf32>
    %c0_140 = arith.constant 0 : index
    %c0_141 = arith.constant 0 : index
    %c0_142 = arith.constant 0 : index
    %c2_143 = arith.constant 2 : index
    %c0_144 = arith.constant 0 : index
    %c0_145 = arith.constant 0 : index
    %141 = vector.load %arg2[%c0_140, %c0_141, %c0_142, %c2_143, %c0_144, %c0_145] : memref<1x2x2x9x9x768xf32, #tpu.memory_space<vmem>>, vector<1x1x1x7x7x128xf32>
    %142 = vector.shape_cast %141 : vector<1x1x1x7x7x128xf32> to vector<7x7x128xf32>
    %c20 = arith.constant 20 : index
    %c0_146 = arith.constant 0 : index
    %143 = vector.load %arg3[%c20, %c0_146] : memref<25x768xf32, #tpu.memory_space<vmem>>, vector<1x128xf32>
    %144 = vector.shape_cast %143 : vector<1x128xf32> to vector<1x1x128xf32>
    %145 = vector.broadcast %144 : vector<1x1x128xf32> to vector<7x7x128xf32>
    %146 = arith.mulf %142, %145 : vector<7x7x128xf32>
    %147 = arith.addf %140, %146 : vector<7x7x128xf32>
    %c0_147 = arith.constant 0 : index
    %c0_148 = arith.constant 0 : index
    %c1_149 = arith.constant 1 : index
    %c2_150 = arith.constant 2 : index
    %c0_151 = arith.constant 0 : index
    %c0_152 = arith.constant 0 : index
    %148 = vector.load %arg2[%c0_147, %c0_148, %c1_149, %c2_150, %c0_151, %c0_152] : memref<1x2x2x9x9x768xf32, #tpu.memory_space<vmem>>, vector<1x1x1x7x7x128xf32>
    %149 = vector.shape_cast %148 : vector<1x1x1x7x7x128xf32> to vector<7x7x128xf32>
    %c21 = arith.constant 21 : index
    %c0_153 = arith.constant 0 : index
    %150 = vector.load %arg3[%c21, %c0_153] : memref<25x768xf32, #tpu.memory_space<vmem>>, vector<1x128xf32>
    %151 = vector.shape_cast %150 : vector<1x128xf32> to vector<1x1x128xf32>
    %152 = vector.broadcast %151 : vector<1x1x128xf32> to vector<7x7x128xf32>
    %153 = arith.mulf %149, %152 : vector<7x7x128xf32>
    %154 = arith.addf %147, %153 : vector<7x7x128xf32>
    %c0_154 = arith.constant 0 : index
    %c0_155 = arith.constant 0 : index
    %c0_156 = arith.constant 0 : index
    %c2_157 = arith.constant 2 : index
    %c1_158 = arith.constant 1 : index
    %c0_159 = arith.constant 0 : index
    %155 = vector.load %arg2[%c0_154, %c0_155, %c0_156, %c2_157, %c1_158, %c0_159] : memref<1x2x2x9x9x768xf32, #tpu.memory_space<vmem>>, vector<1x1x1x7x7x128xf32>
    %156 = vector.shape_cast %155 : vector<1x1x1x7x7x128xf32> to vector<7x7x128xf32>
    %c22 = arith.constant 22 : index
    %c0_160 = arith.constant 0 : index
    %157 = vector.load %arg3[%c22, %c0_160] : memref<25x768xf32, #tpu.memory_space<vmem>>, vector<1x128xf32>
    %158 = vector.shape_cast %157 : vector<1x128xf32> to vector<1x1x128xf32>
    %159 = vector.broadcast %158 : vector<1x1x128xf32> to vector<7x7x128xf32>
    %160 = arith.mulf %156, %159 : vector<7x7x128xf32>
    %161 = arith.addf %154, %160 : vector<7x7x128xf32>
    %c0_161 = arith.constant 0 : index
    %c0_162 = arith.constant 0 : index
    %c1_163 = arith.constant 1 : index
    %c2_164 = arith.constant 2 : index
    %c1_165 = arith.constant 1 : index
    %c0_166 = arith.constant 0 : index
    %162 = vector.load %arg2[%c0_161, %c0_162, %c1_163, %c2_164, %c1_165, %c0_166] : memref<1x2x2x9x9x768xf32, #tpu.memory_space<vmem>>, vector<1x1x1x7x7x128xf32>
    %163 = vector.shape_cast %162 : vector<1x1x1x7x7x128xf32> to vector<7x7x128xf32>
    %c23 = arith.constant 23 : index
    %c0_167 = arith.constant 0 : index
    %164 = vector.load %arg3[%c23, %c0_167] : memref<25x768xf32, #tpu.memory_space<vmem>>, vector<1x128xf32>
    %165 = vector.shape_cast %164 : vector<1x128xf32> to vector<1x1x128xf32>
    %166 = vector.broadcast %165 : vector<1x1x128xf32> to vector<7x7x128xf32>
    %167 = arith.mulf %163, %166 : vector<7x7x128xf32>
    %168 = arith.addf %161, %167 : vector<7x7x128xf32>
    %c0_168 = arith.constant 0 : index
    %c0_169 = arith.constant 0 : index
    %c0_170 = arith.constant 0 : index
    %c2_171 = arith.constant 2 : index
    %c2_172 = arith.constant 2 : index
    %c0_173 = arith.constant 0 : index
    %169 = vector.load %arg2[%c0_168, %c0_169, %c0_170, %c2_171, %c2_172, %c0_173] : memref<1x2x2x9x9x768xf32, #tpu.memory_space<vmem>>, vector<1x1x1x7x7x128xf32>
    %170 = vector.shape_cast %169 : vector<1x1x1x7x7x128xf32> to vector<7x7x128xf32>
    %c24 = arith.constant 24 : index
    %c0_174 = arith.constant 0 : index
    %171 = vector.load %arg3[%c24, %c0_174] : memref<25x768xf32, #tpu.memory_space<vmem>>, vector<1x128xf32>
    %172 = vector.shape_cast %171 : vector<1x128xf32> to vector<1x1x128xf32>
    %173 = vector.broadcast %172 : vector<1x1x128xf32> to vector<7x7x128xf32>
    %174 = arith.mulf %170, %173 : vector<7x7x128xf32>
    %175 = arith.addf %168, %174 : vector<7x7x128xf32>
    %c0_175 = arith.constant 0 : index
    %c0_176 = arith.constant 0 : index
    %c0_177 = arith.constant 0 : index
    %c0_178 = arith.constant 0 : index
    %176 = vector.load %arg4[%c0_175, %c0_176, %c0_177, %c0_178] : memref<1x7x7x768xf32, #tpu.memory_space<vmem>>, vector<1x7x7x128xf32>
    %177 = vector.shape_cast %176 : vector<1x7x7x128xf32> to vector<7x7x128xf32>
    %178 = vector.shape_cast %175 : vector<7x7x128xf32> to vector<1x7x7x128xf32>
    tpu.vector_store %arg4[%c0_175, %c0_176, %c0_177, %c0_178], %178 {strides = array<i32>} : memref<1x7x7x768xf32, #tpu.memory_space<vmem>>, vector<1x7x7x128xf32>,
    %cst_179 = arith.constant 0.000000e+00 : f32
    %179 = vector.broadcast %cst_179 : f32 to vector<7x7x128xf32>
    %c0_180 = arith.constant 0 : index
    %c0_181 = arith.constant 0 : index
    %c0_182 = arith.constant 0 : index
    %c0_183 = arith.constant 0 : index
    %c0_184 = arith.constant 0 : index
    %c128 = arith.constant 128 : index
    %180 = vector.load %arg2[%c0_180, %c0_181, %c0_182, %c0_183, %c0_184, %c128] : memref<1x2x2x9x9x768xf32, #tpu.memory_space<vmem>>, vector<1x1x1x7x7x128xf32>
    %181 = vector.shape_cast %180 : vector<1x1x1x7x7x128xf32> to vector<7x7x128xf32>
    %c0_185 = arith.constant 0 : index
    %c128_186 = arith.constant 128 : index
    %182 = vector.load %arg3[%c0_185, %c128_186] : memref<25x768xf32, #tpu.memory_space<vmem>>, vector<1x128xf32>
    %183 = vector.shape_cast %182 : vector<1x128xf32> to vector<1x1x128xf32>
    %184 = vector.broadcast %183 : vector<1x1x128xf32> to vector<7x7x128xf32>
    %185 = arith.mulf %181, %184 : vector<7x7x128xf32>
    %186 = arith.addf %179, %185 : vector<7x7x128xf32>
    %c0_187 = arith.constant 0 : index
    %c0_188 = arith.constant 0 : index
    %c1_189 = arith.constant 1 : index
    %c0_190 = arith.constant 0 : index
    %c0_191 = arith.constant 0 : index
    %c128_192 = arith.constant 128 : index
    %187 = vector.load %arg2[%c0_187, %c0_188, %c1_189, %c0_190, %c0_191, %c128_192] : memref<1x2x2x9x9x768xf32, #tpu.memory_space<vmem>>, vector<1x1x1x7x7x128xf32>
    %188 = vector.shape_cast %187 : vector<1x1x1x7x7x128xf32> to vector<7x7x128xf32>
    %c1_193 = arith.constant 1 : index
    %c128_194 = arith.constant 128 : index
    %189 = vector.load %arg3[%c1_193, %c128_194] : memref<25x768xf32, #tpu.memory_space<vmem>>, vector<1x128xf32>
    %190 = vector.shape_cast %189 : vector<1x128xf32> to vector<1x1x128xf32>
    %191 = vector.broadcast %190 : vector<1x1x128xf32> to vector<7x7x128xf32>
    %192 = arith.mulf %188, %191 : vector<7x7x128xf32>
    %193 = arith.addf %186, %192 : vector<7x7x128xf32>
    %c0_195 = arith.constant 0 : index
    %c0_196 = arith.constant 0 : index
    %c0_197 = arith.constant 0 : index
    %c0_198 = arith.constant 0 : index
    %c1_199 = arith.constant 1 : index
    %c128_200 = arith.constant 128 : index
    %194 = vector.load %arg2[%c0_195, %c0_196, %c0_197, %c0_198, %c1_199, %c128_200] : memref<1x2x2x9x9x768xf32, #tpu.memory_space<vmem>>, vector<1x1x1x7x7x128xf32>
    %195 = vector.shape_cast %194 : vector<1x1x1x7x7x128xf32> to vector<7x7x128xf32>
    %c2_201 = arith.constant 2 : index
    %c128_202 = arith.constant 128 : index
    %196 = vector.load %arg3[%c2_201, %c128_202] : memref<25x768xf32, #tpu.memory_space<vmem>>, vector<1x128xf32>
    %197 = vector.shape_cast %196 : vector<1x128xf32> to vector<1x1x128xf32>
    %198 = vector.broadcast %197 : vector<1x1x128xf32> to vector<7x7x128xf32>
    %199 = arith.mulf %195, %198 : vector<7x7x128xf32>
    %200 = arith.addf %193, %199 : vector<7x7x128xf32>
    %c0_203 = arith.constant 0 : index
    %c0_204 = arith.constant 0 : index
    %c1_205 = arith.constant 1 : index
    %c0_206 = arith.constant 0 : index
    %c1_207 = arith.constant 1 : index
    %c128_208 = arith.constant 128 : index
    %201 = vector.load %arg2[%c0_203, %c0_204, %c1_205, %c0_206, %c1_207, %c128_208] : memref<1x2x2x9x9x768xf32, #tpu.memory_space<vmem>>, vector<1x1x1x7x7x128xf32>
    %202 = vector.shape_cast %201 : vector<1x1x1x7x7x128xf32> to vector<7x7x128xf32>
    %c3_209 = arith.constant 3 : index
    %c128_210 = arith.constant 128 : index
    %203 = vector.load %arg3[%c3_209, %c128_210] : memref<25x768xf32, #tpu.memory_space<vmem>>, vector<1x128xf32>
    %204 = vector.shape_cast %203 : vector<1x128xf32> to vector<1x1x128xf32>
    %205 = vector.broadcast %204 : vector<1x1x128xf32> to vector<7x7x128xf32>
    %206 = arith.mulf %202, %205 : vector<7x7x128xf32>
    %207 = arith.addf %200, %206 : vector<7x7x128xf32>
    %c0_211 = arith.constant 0 : index
    %c0_212 = arith.constant 0 : index
    %c0_213 = arith.constant 0 : index
    %c0_214 = arith.constant 0 : index
    %c2_215 = arith.constant 2 : index
    %c128_216 = arith.constant 128 : index
    %208 = vector.load %arg2[%c0_211, %c0_212, %c0_213, %c0_214, %c2_215, %c128_216] : memref<1x2x2x9x9x768xf32, #tpu.memory_space<vmem>>, vector<1x1x1x7x7x128xf32>
    %209 = vector.shape_cast %208 : vector<1x1x1x7x7x128xf32> to vector<7x7x128xf32>
    %c4_217 = arith.constant 4 : index
    %c128_218 = arith.constant 128 : index
    %210 = vector.load %arg3[%c4_217, %c128_218] : memref<25x768xf32, #tpu.memory_space<vmem>>, vector<1x128xf32>
    %211 = vector.shape_cast %210 : vector<1x128xf32> to vector<1x1x128xf32>
    %212 = vector.broadcast %211 : vector<1x1x128xf32> to vector<7x7x128xf32>
    %213 = arith.mulf %209, %212 : vector<7x7x128xf32>
    %214 = arith.addf %207, %213 : vector<7x7x128xf32>
    %c0_219 = arith.constant 0 : index
    %c1_220 = arith.constant 1 : index
    %c0_221 = arith.constant 0 : index
    %c0_222 = arith.constant 0 : index
    %c0_223 = arith.constant 0 : index
    %c128_224 = arith.constant 128 : index
    %215 = vector.load %arg2[%c0_219, %c1_220, %c0_221, %c0_222, %c0_223, %c128_224] : memref<1x2x2x9x9x768xf32, #tpu.memory_space<vmem>>, vector<1x1x1x7x7x128xf32>
    %216 = vector.shape_cast %215 : vector<1x1x1x7x7x128xf32> to vector<7x7x128xf32>
    %c5_225 = arith.constant 5 : index
    %c128_226 = arith.constant 128 : index
    %217 = vector.load %arg3[%c5_225, %c128_226] : memref<25x768xf32, #tpu.memory_space<vmem>>, vector<1x128xf32>
    %218 = vector.shape_cast %217 : vector<1x128xf32> to vector<1x1x128xf32>
    %219 = vector.broadcast %218 : vector<1x1x128xf32> to vector<7x7x128xf32>
    %220 = arith.mulf %216, %219 : vector<7x7x128xf32>
    %221 = arith.addf %214, %220 : vector<7x7x128xf32>
    %c0_227 = arith.constant 0 : index
    %c1_228 = arith.constant 1 : index
    %c1_229 = arith.constant 1 : index
    %c0_230 = arith.constant 0 : index
    %c0_231 = arith.constant 0 : index
    %c128_232 = arith.constant 128 : index
    %222 = vector.load %arg2[%c0_227, %c1_228, %c1_229, %c0_230, %c0_231, %c128_232] : memref<1x2x2x9x9x768xf32, #tpu.memory_space<vmem>>, vector<1x1x1x7x7x128xf32>
    %223 = vector.shape_cast %222 : vector<1x1x1x7x7x128xf32> to vector<7x7x128xf32>
    %c6_233 = arith.constant 6 : index
    %c128_234 = arith.constant 128 : index
    %224 = vector.load %arg3[%c6_233, %c128_234] : memref<25x768xf32, #tpu.memory_space<vmem>>, vector<1x128xf32>
    %225 = vector.shape_cast %224 : vector<1x128xf32> to vector<1x1x128xf32>
    %226 = vector.broadcast %225 : vector<1x1x128xf32> to vector<7x7x128xf32>
    %227 = arith.mulf %223, %226 : vector<7x7x128xf32>
    %228 = arith.addf %221, %227 : vector<7x7x128xf32>
    %c0_235 = arith.constant 0 : index
    %c1_236 = arith.constant 1 : index
    %c0_237 = arith.constant 0 : index
    %c0_238 = arith.constant 0 : index
    %c1_239 = arith.constant 1 : index
    %c128_240 = arith.constant 128 : index
    %229 = vector.load %arg2[%c0_235, %c1_236, %c0_237, %c0_238, %c1_239, %c128_240] : memref<1x2x2x9x9x768xf32, #tpu.memory_space<vmem>>, vector<1x1x1x7x7x128xf32>
    %230 = vector.shape_cast %229 : vector<1x1x1x7x7x128xf32> to vector<7x7x128xf32>
    %c7_241 = arith.constant 7 : index
    %c128_242 = arith.constant 128 : index
    %231 = vector.load %arg3[%c7_241, %c128_242] : memref<25x768xf32, #tpu.memory_space<vmem>>, vector<1x128xf32>
    %232 = vector.shape_cast %231 : vector<1x128xf32> to vector<1x1x128xf32>
    %233 = vector.broadcast %232 : vector<1x1x128xf32> to vector<7x7x128xf32>
    %234 = arith.mulf %230, %233 : vector<7x7x128xf32>
    %235 = arith.addf %228, %234 : vector<7x7x128xf32>
    %c0_243 = arith.constant 0 : index
    %c1_244 = arith.constant 1 : index
    %c1_245 = arith.constant 1 : index
    %c0_246 = arith.constant 0 : index
    %c1_247 = arith.constant 1 : index
    %c128_248 = arith.constant 128 : index
    %236 = vector.load %arg2[%c0_243, %c1_244, %c1_245, %c0_246, %c1_247, %c128_248] : memref<1x2x2x9x9x768xf32, #tpu.memory_space<vmem>>, vector<1x1x1x7x7x128xf32>
    %237 = vector.shape_cast %236 : vector<1x1x1x7x7x128xf32> to vector<7x7x128xf32>
    %c8_249 = arith.constant 8 : index
    %c128_250 = arith.constant 128 : index
    %238 = vector.load %arg3[%c8_249, %c128_250] : memref<25x768xf32, #tpu.memory_space<vmem>>, vector<1x128xf32>
    %239 = vector.shape_cast %238 : vector<1x128xf32> to vector<1x1x128xf32>
    %240 = vector.broadcast %239 : vector<1x1x128xf32> to vector<7x7x128xf32>
    %241 = arith.mulf %237, %240 : vector<7x7x128xf32>
    %242 = arith.addf %235, %241 : vector<7x7x128xf32>
    %c0_251 = arith.constant 0 : index
    %c1_252 = arith.constant 1 : index
    %c0_253 = arith.constant 0 : index
    %c0_254 = arith.constant 0 : index
    %c2_255 = arith.constant 2 : index
    %c128_256 = arith.constant 128 : index
    %243 = vector.load %arg2[%c0_251, %c1_252, %c0_253, %c0_254, %c2_255, %c128_256] : memref<1x2x2x9x9x768xf32, #tpu.memory_space<vmem>>, vector<1x1x1x7x7x128xf32>
    %244 = vector.shape_cast %243 : vector<1x1x1x7x7x128xf32> to vector<7x7x128xf32>
    %c9_257 = arith.constant 9 : index
    %c128_258 = arith.constant 128 : index
    %245 = vector.load %arg3[%c9_257, %c128_258] : memref<25x768xf32, #tpu.memory_space<vmem>>, vector<1x128xf32>
    %246 = vector.shape_cast %245 : vector<1x128xf32> to vector<1x1x128xf32>
    %247 = vector.broadcast %246 : vector<1x1x128xf32> to vector<7x7x128xf32>
    %248 = arith.mulf %244, %247 : vector<7x7x128xf32>
    %249 = arith.addf %242, %248 : vector<7x7x128xf32>
    %c0_259 = arith.constant 0 : index
    %c0_260 = arith.constant 0 : index
    %c0_261 = arith.constant 0 : index
    %c1_262 = arith.constant 1 : index
    %c0_263 = arith.constant 0 : index
    %c128_264 = arith.constant 128 : index
    %250 = vector.load %arg2[%c0_259, %c0_260, %c0_261, %c1_262, %c0_263, %c128_264] : memref<1x2x2x9x9x768xf32, #tpu.memory_space<vmem>>, vector<1x1x1x7x7x128xf32>
    %251 = vector.shape_cast %250 : vector<1x1x1x7x7x128xf32> to vector<7x7x128xf32>
    %c10_265 = arith.constant 10 : index
    %c128_266 = arith.constant 128 : index
    %252 = vector.load %arg3[%c10_265, %c128_266] : memref<25x768xf32, #tpu.memory_space<vmem>>, vector<1x128xf32>
    %253 = vector.shape_cast %252 : vector<1x128xf32> to vector<1x1x128xf32>
    %254 = vector.broadcast %253 : vector<1x1x128xf32> to vector<7x7x128xf32>
    %255 = arith.mulf %251, %254 : vector<7x7x128xf32>
    %256 = arith.addf %249, %255 : vector<7x7x128xf32>
    %c0_267 = arith.constant 0 : index
    %c0_268 = arith.constant 0 : index
    %c1_269 = arith.constant 1 : index
    %c1_270 = arith.constant 1 : index
    %c0_271 = arith.constant 0 : index
    %c128_272 = arith.constant 128 : index
    %257 = vector.load %arg2[%c0_267, %c0_268, %c1_269, %c1_270, %c0_271, %c128_272] : memref<1x2x2x9x9x768xf32, #tpu.memory_space<vmem>>, vector<1x1x1x7x7x128xf32>
    %258 = vector.shape_cast %257 : vector<1x1x1x7x7x128xf32> to vector<7x7x128xf32>
    %c11_273 = arith.constant 11 : index
    %c128_274 = arith.constant 128 : index
    %259 = vector.load %arg3[%c11_273, %c128_274] : memref<25x768xf32, #tpu.memory_space<vmem>>, vector<1x128xf32>
    %260 = vector.shape_cast %259 : vector<1x128xf32> to vector<1x1x128xf32>
    %261 = vector.broadcast %260 : vector<1x1x128xf32> to vector<7x7x128xf32>
    %262 = arith.mulf %258, %261 : vector<7x7x128xf32>
    %263 = arith.addf %256, %262 : vector<7x7x128xf32>
    %c0_275 = arith.constant 0 : index
    %c0_276 = arith.constant 0 : index
    %c0_277 = arith.constant 0 : index
    %c1_278 = arith.constant 1 : index
    %c1_279 = arith.constant 1 : index
    %c128_280 = arith.constant 128 : index
    %264 = vector.load %arg2[%c0_275, %c0_276, %c0_277, %c1_278, %c1_279, %c128_280] : memref<1x2x2x9x9x768xf32, #tpu.memory_space<vmem>>, vector<1x1x1x7x7x128xf32>
    %265 = vector.shape_cast %264 : vector<1x1x1x7x7x128xf32> to vector<7x7x128xf32>
    %c12_281 = arith.constant 12 : index
    %c128_282 = arith.constant 128 : index
    %266 = vector.load %arg3[%c12_281, %c128_282] : memref<25x768xf32, #tpu.memory_space<vmem>>, vector<1x128xf32>
    %267 = vector.shape_cast %266 : vector<1x128xf32> to vector<1x1x128xf32>
    %268 = vector.broadcast %267 : vector<1x1x128xf32> to vector<7x7x128xf32>
    %269 = arith.mulf %265, %268 : vector<7x7x128xf32>
    %270 = arith.addf %263, %269 : vector<7x7x128xf32>
    %c0_283 = arith.constant 0 : index
    %c0_284 = arith.constant 0 : index
    %c1_285 = arith.constant 1 : index
    %c1_286 = arith.constant 1 : index
    %c1_287 = arith.constant 1 : index
    %c128_288 = arith.constant 128 : index
    %271 = vector.load %arg2[%c0_283, %c0_284, %c1_285, %c1_286, %c1_287, %c128_288] : memref<1x2x2x9x9x768xf32, #tpu.memory_space<vmem>>, vector<1x1x1x7x7x128xf32>
    %272 = vector.shape_cast %271 : vector<1x1x1x7x7x128xf32> to vector<7x7x128xf32>
    %c13_289 = arith.constant 13 : index
    %c128_290 = arith.constant 128 : index
    %273 = vector.load %arg3[%c13_289, %c128_290] : memref<25x768xf32, #tpu.memory_space<vmem>>, vector<1x128xf32>
    %274 = vector.shape_cast %273 : vector<1x128xf32> to vector<1x1x128xf32>
    %275 = vector.broadcast %274 : vector<1x1x128xf32> to vector<7x7x128xf32>
    %276 = arith.mulf %272, %275 : vector<7x7x128xf32>
    %277 = arith.addf %270, %276 : vector<7x7x128xf32>
    %c0_291 = arith.constant 0 : index
    %c0_292 = arith.constant 0 : index
    %c0_293 = arith.constant 0 : index
    %c1_294 = arith.constant 1 : index
    %c2_295 = arith.constant 2 : index
    %c128_296 = arith.constant 128 : index
    %278 = vector.load %arg2[%c0_291, %c0_292, %c0_293, %c1_294, %c2_295, %c128_296] : memref<1x2x2x9x9x768xf32, #tpu.memory_space<vmem>>, vector<1x1x1x7x7x128xf32>
    %279 = vector.shape_cast %278 : vector<1x1x1x7x7x128xf32> to vector<7x7x128xf32>
    %c14_297 = arith.constant 14 : index
    %c128_298 = arith.constant 128 : index
    %280 = vector.load %arg3[%c14_297, %c128_298] : memref<25x768xf32, #tpu.memory_space<vmem>>, vector<1x128xf32>
    %281 = vector.shape_cast %280 : vector<1x128xf32> to vector<1x1x128xf32>
    %282 = vector.broadcast %281 : vector<1x1x128xf32> to vector<7x7x128xf32>
    %283 = arith.mulf %279, %282 : vector<7x7x128xf32>
    %284 = arith.addf %277, %283 : vector<7x7x128xf32>
    %c0_299 = arith.constant 0 : index
    %c1_300 = arith.constant 1 : index
    %c0_301 = arith.constant 0 : index
    %c1_302 = arith.constant 1 : index
    %c0_303 = arith.constant 0 : index
    %c128_304 = arith.constant 128 : index
    %285 = vector.load %arg2[%c0_299, %c1_300, %c0_301, %c1_302, %c0_303, %c128_304] : memref<1x2x2x9x9x768xf32, #tpu.memory_space<vmem>>, vector<1x1x1x7x7x128xf32>
    %286 = vector.shape_cast %285 : vector<1x1x1x7x7x128xf32> to vector<7x7x128xf32>
    %c15_305 = arith.constant 15 : index
    %c128_306 = arith.constant 128 : index
    %287 = vector.load %arg3[%c15_305, %c128_306] : memref<25x768xf32, #tpu.memory_space<vmem>>, vector<1x128xf32>
    %288 = vector.shape_cast %287 : vector<1x128xf32> to vector<1x1x128xf32>
    %289 = vector.broadcast %288 : vector<1x1x128xf32> to vector<7x7x128xf32>
    %290 = arith.mulf %286, %289 : vector<7x7x128xf32>
    %291 = arith.addf %284, %290 : vector<7x7x128xf32>
    %c0_307 = arith.constant 0 : index
    %c1_308 = arith.constant 1 : index
    %c1_309 = arith.constant 1 : index
    %c1_310 = arith.constant 1 : index
    %c0_311 = arith.constant 0 : index
    %c128_312 = arith.constant 128 : index
    %292 = vector.load %arg2[%c0_307, %c1_308, %c1_309, %c1_310, %c0_311, %c128_312] : memref<1x2x2x9x9x768xf32, #tpu.memory_space<vmem>>, vector<1x1x1x7x7x128xf32>
    %293 = vector.shape_cast %292 : vector<1x1x1x7x7x128xf32> to vector<7x7x128xf32>
    %c16_313 = arith.constant 16 : index
    %c128_314 = arith.constant 128 : index
    %294 = vector.load %arg3[%c16_313, %c128_314] : memref<25x768xf32, #tpu.memory_space<vmem>>, vector<1x128xf32>
    %295 = vector.shape_cast %294 : vector<1x128xf32> to vector<1x1x128xf32>
    %296 = vector.broadcast %295 : vector<1x1x128xf32> to vector<7x7x128xf32>
    %297 = arith.mulf %293, %296 : vector<7x7x128xf32>
    %298 = arith.addf %291, %297 : vector<7x7x128xf32>
    %c0_315 = arith.constant 0 : index
    %c1_316 = arith.constant 1 : index
    %c0_317 = arith.constant 0 : index
    %c1_318 = arith.constant 1 : index
    %c1_319 = arith.constant 1 : index
    %c128_320 = arith.constant 128 : index
    %299 = vector.load %arg2[%c0_315, %c1_316, %c0_317, %c1_318, %c1_319, %c128_320] : memref<1x2x2x9x9x768xf32, #tpu.memory_space<vmem>>, vector<1x1x1x7x7x128xf32>
    %300 = vector.shape_cast %299 : vector<1x1x1x7x7x128xf32> to vector<7x7x128xf32>
    %c17_321 = arith.constant 17 : index
    %c128_322 = arith.constant 128 : index
    %301 = vector.load %arg3[%c17_321, %c128_322] : memref<25x768xf32, #tpu.memory_space<vmem>>, vector<1x128xf32>
    %302 = vector.shape_cast %301 : vector<1x128xf32> to vector<1x1x128xf32>
    %303 = vector.broadcast %302 : vector<1x1x128xf32> to vector<7x7x128xf32>
    %304 = arith.mulf %300, %303 : vector<7x7x128xf32>
    %305 = arith.addf %298, %304 : vector<7x7x128xf32>
    %c0_323 = arith.constant 0 : index
    %c1_324 = arith.constant 1 : index
    %c1_325 = arith.constant 1 : index
    %c1_326 = arith.constant 1 : index
    %c1_327 = arith.constant 1 : index
    %c128_328 = arith.constant 128 : index
    %306 = vector.load %arg2[%c0_323, %c1_324, %c1_325, %c1_326, %c1_327, %c128_328] : memref<1x2x2x9x9x768xf32, #tpu.memory_space<vmem>>, vector<1x1x1x7x7x128xf32>
    %307 = vector.shape_cast %306 : vector<1x1x1x7x7x128xf32> to vector<7x7x128xf32>
    %c18_329 = arith.constant 18 : index
    %c128_330 = arith.constant 128 : index
    %308 = vector.load %arg3[%c18_329, %c128_330] : memref<25x768xf32, #tpu.memory_space<vmem>>, vector<1x128xf32>
    %309 = vector.shape_cast %308 : vector<1x128xf32> to vector<1x1x128xf32>
    %310 = vector.broadcast %309 : vector<1x1x128xf32> to vector<7x7x128xf32>
    %311 = arith.mulf %307, %310 : vector<7x7x128xf32>
    %312 = arith.addf %305, %311 : vector<7x7x128xf32>
    %c0_331 = arith.constant 0 : index
    %c1_332 = arith.constant 1 : index
    %c0_333 = arith.constant 0 : index
    %c1_334 = arith.constant 1 : index
    %c2_335 = arith.constant 2 : index
    %c128_336 = arith.constant 128 : index
    %313 = vector.load %arg2[%c0_331, %c1_332, %c0_333, %c1_334, %c2_335, %c128_336] : memref<1x2x2x9x9x768xf32, #tpu.memory_space<vmem>>, vector<1x1x1x7x7x128xf32>
    %314 = vector.shape_cast %313 : vector<1x1x1x7x7x128xf32> to vector<7x7x128xf32>
    %c19_337 = arith.constant 19 : index
    %c128_338 = arith.constant 128 : index
    %315 = vector.load %arg3[%c19_337, %c128_338] : memref<25x768xf32, #tpu.memory_space<vmem>>, vector<1x128xf32>
    %316 = vector.shape_cast %315 : vector<1x128xf32> to vector<1x1x128xf32>
    %317 = vector.broadcast %316 : vector<1x1x128xf32> to vector<7x7x128xf32>
    %318 = arith.mulf %314, %317 : vector<7x7x128xf32>
    %319 = arith.addf %312, %318 : vector<7x7x128xf32>
    %c0_339 = arith.constant 0 : index
    %c0_340 = arith.constant 0 : index
    %c0_341 = arith.constant 0 : index
    %c2_342 = arith.constant 2 : index
    %c0_343 = arith.constant 0 : index
    %c128_344 = arith.constant 128 : index
    %320 = vector.load %arg2[%c0_339, %c0_340, %c0_341, %c2_342, %c0_343, %c128_344] : memref<1x2x2x9x9x768xf32, #tpu.memory_space<vmem>>, vector<1x1x1x7x7x128xf32>
    %321 = vector.shape_cast %320 : vector<1x1x1x7x7x128xf32> to vector<7x7x128xf32>
    %c20_345 = arith.constant 20 : index
    %c128_346 = arith.constant 128 : index
    %322 = vector.load %arg3[%c20_345, %c128_346] : memref<25x768xf32, #tpu.memory_space<vmem>>, vector<1x128xf32>
    %323 = vector.shape_cast %322 : vector<1x128xf32> to vector<1x1x128xf32>
    %324 = vector.broadcast %323 : vector<1x1x128xf32> to vector<7x7x128xf32>
    %325 = arith.mulf %321, %324 : vector<7x7x128xf32>
    %326 = arith.addf %319, %325 : vector<7x7x128xf32>
    %c0_347 = arith.constant 0 : index
    %c0_348 = arith.constant 0 : index
    %c1_349 = arith.constant 1 : index
    %c2_350 = arith.constant 2 : index
    %c0_351 = arith.constant 0 : index
    %c128_352 = arith.constant 128 : index
    %327 = vector.load %arg2[%c0_347, %c0_348, %c1_349, %c2_350, %c0_351, %c128_352] : memref<1x2x2x9x9x768xf32, #tpu.memory_space<vmem>>, vector<1x1x1x7x7x128xf32>
    %328 = vector.shape_cast %327 : vector<1x1x1x7x7x128xf32> to vector<7x7x128xf32>
    %c21_353 = arith.constant 21 : index
    %c128_354 = arith.constant 128 : index
    %329 = vector.load %arg3[%c21_353, %c128_354] : memref<25x768xf32, #tpu.memory_space<vmem>>, vector<1x128xf32>
    %330 = vector.shape_cast %329 : vector<1x128xf32> to vector<1x1x128xf32>
    %331 = vector.broadcast %330 : vector<1x1x128xf32> to vector<7x7x128xf32>
    %332 = arith.mulf %328, %331 : vector<7x7x128xf32>
    %333 = arith.addf %326, %332 : vector<7x7x128xf32>
    %c0_355 = arith.constant 0 : index
    %c0_356 = arith.constant 0 : index
    %c0_357 = arith.constant 0 : index
    %c2_358 = arith.constant 2 : index
    %c1_359 = arith.constant 1 : index
    %c128_360 = arith.constant 128 : index
    %334 = vector.load %arg2[%c0_355, %c0_356, %c0_357, %c2_358, %c1_359, %c128_360] : memref<1x2x2x9x9x768xf32, #tpu.memory_space<vmem>>, vector<1x1x1x7x7x128xf32>
    %335 = vector.shape_cast %334 : vector<1x1x1x7x7x128xf32> to vector<7x7x128xf32>
    %c22_361 = arith.constant 22 : index
    %c128_362 = arith.constant 128 : index
    %336 = vector.load %arg3[%c22_361, %c128_362] : memref<25x768xf32, #tpu.memory_space<vmem>>, vector<1x128xf32>
    %337 = vector.shape_cast %336 : vector<1x128xf32> to vector<1x1x128xf32>
    %338 = vector.broadcast %337 : vector<1x1x128xf32> to vector<7x7x128xf32>
    %339 = arith.mulf %335, %338 : vector<7x7x128xf32>
    %340 = arith.addf %333, %339 : vector<7x7x128xf32>
    %c0_363 = arith.constant 0 : index
    %c0_364 = arith.constant 0 : index
    %c1_365 = arith.constant 1 : index
    %c2_366 = arith.constant 2 : index
    %c1_367 = arith.constant 1 : index
    %c128_368 = arith.constant 128 : index
    %341 = vector.load %arg2[%c0_363, %c0_364, %c1_365, %c2_366, %c1_367, %c128_368] : memref<1x2x2x9x9x768xf32, #tpu.memory_space<vmem>>, vector<1x1x1x7x7x128xf32>
    %342 = vector.shape_cast %341 : vector<1x1x1x7x7x128xf32> to vector<7x7x128xf32>
    %c23_369 = arith.constant 23 : index
    %c128_370 = arith.constant 128 : index
    %343 = vector.load %arg3[%c23_369, %c128_370] : memref<25x768xf32, #tpu.memory_space<vmem>>, vector<1x128xf32>
    %344 = vector.shape_cast %343 : vector<1x128xf32> to vector<1x1x128xf32>
    %345 = vector.broadcast %344 : vector<1x1x128xf32> to vector<7x7x128xf32>
    %346 = arith.mulf %342, %345 : vector<7x7x128xf32>
    %347 = arith.addf %340, %346 : vector<7x7x128xf32>
    %c0_371 = arith.constant 0 : index
    %c0_372 = arith.constant 0 : index
    %c0_373 = arith.constant 0 : index
    %c2_374 = arith.constant 2 : index
    %c2_375 = arith.constant 2 : index
    %c128_376 = arith.constant 128 : index
    %348 = vector.load %arg2[%c0_371, %c0_372, %c0_373, %c2_374, %c2_375, %c128_376] : memref<1x2x2x9x9x768xf32, #tpu.memory_space<vmem>>, vector<1x1x1x7x7x128xf32>
    %349 = vector.shape_cast %348 : vector<1x1x1x7x7x128xf32> to vector<7x7x128xf32>
    %c24_377 = arith.constant 24 : index
    %c128_378 = arith.constant 128 : index
    %350 = vector.load %arg3[%c24_377, %c128_378] : memref<25x768xf32, #tpu.memory_space<vmem>>, vector<1x128xf32>
    %351 = vector.shape_cast %350 : vector<1x128xf32> to vector<1x1x128xf32>
    %352 = vector.broadcast %351 : vector<1x1x128xf32> to vector<7x7x128xf32>
    %353 = arith.mulf %349, %352 : vector<7x7x128xf32>
    %354 = arith.addf %347, %353 : vector<7x7x128xf32>
    %c0_379 = arith.constant 0 : index
    %c0_380 = arith.constant 0 : index
    %c0_381 = arith.constant 0 : index
    %c128_382 = arith.constant 128 : index
    %355 = vector.load %arg4[%c0_379, %c0_380, %c0_381, %c128_382] : memref<1x7x7x768xf32, #tpu.memory_space<vmem>>, vector<1x7x7x128xf32>
    %356 = vector.shape_cast %355 : vector<1x7x7x128xf32> to vector<7x7x128xf32>
    %357 = vector.shape_cast %354 : vector<7x7x128xf32> to vector<1x7x7x128xf32>
    tpu.vector_store %arg4[%c0_379, %c0_380, %c0_381, %c128_382], %357 {strides = array<i32>} : memref<1x7x7x768xf32, #tpu.memory_space<vmem>>, vector<1x7x7x128xf32>,
    %cst_383 = arith.constant 0.000000e+00 : f32
    %358 = vector.broadcast %cst_383 : f32 to vector<7x7x128xf32>
    %c0_384 = arith.constant 0 : index
    %c0_385 = arith.constant 0 : index
    %c0_386 = arith.constant 0 : index
    %c0_387 = arith.constant 0 : index
    %c0_388 = arith.constant 0 : index
    %c256 = arith.constant 256 : index
    %359 = vector.load %arg2[%c0_384, %c0_385, %c0_386, %c0_387, %c0_388, %c256] : memref<1x2x2x9x9x768xf32, #tpu.memory_space<vmem>>, vector<1x1x1x7x7x128xf32>
    %360 = vector.shape_cast %359 : vector<1x1x1x7x7x128xf32> to vector<7x7x128xf32>
    %c0_389 = arith.constant 0 : index
    %c256_390 = arith.constant 256 : index
    %361 = vector.load %arg3[%c0_389, %c256_390] : memref<25x768xf32, #tpu.memory_space<vmem>>, vector<1x128xf32>
    %362 = vector.shape_cast %361 : vector<1x128xf32> to vector<1x1x128xf32>
    %363 = vector.broadcast %362 : vector<1x1x128xf32> to vector<7x7x128xf32>
    %364 = arith.mulf %360, %363 : vector<7x7x128xf32>
    %365 = arith.addf %358, %364 : vector<7x7x128xf32>
    %c0_391 = arith.constant 0 : index
    %c0_392 = arith.constant 0 : index
    %c1_393 = arith.constant 1 : index
    %c0_394 = arith.constant 0 : index
    %c0_395 = arith.constant 0 : index
    %c256_396 = arith.constant 256 : index
    %366 = vector.load %arg2[%c0_391, %c0_392, %c1_393, %c0_394, %c0_395, %c256_396] : memref<1x2x2x9x9x768xf32, #tpu.memory_space<vmem>>, vector<1x1x1x7x7x128xf32>
    %367 = vector.shape_cast %366 : vector<1x1x1x7x7x128xf32> to vector<7x7x128xf32>
    %c1_397 = arith.constant 1 : index
    %c256_398 = arith.constant 256 : index
    %368 = vector.load %arg3[%c1_397, %c256_398] : memref<25x768xf32, #tpu.memory_space<vmem>>, vector<1x128xf32>
    %369 = vector.shape_cast %368 : vector<1x128xf32> to vector<1x1x128xf32>
    %370 = vector.broadcast %369 : vector<1x1x128xf32> to vector<7x7x128xf32>
    %371 = arith.mulf %367, %370 : vector<7x7x128xf32>
    %372 = arith.addf %365, %371 : vector<7x7x128xf32>
    %c0_399 = arith.constant 0 : index
    %c0_400 = arith.constant 0 : index
    %c0_401 = arith.constant 0 : index
    %c0_402 = arith.constant 0 : index
    %c1_403 = arith.constant 1 : index
    %c256_404 = arith.constant 256 : index
    %373 = vector.load %arg2[%c0_399, %c0_400, %c0_401, %c0_402, %c1_403, %c256_404] : memref<1x2x2x9x9x768xf32, #tpu.memory_space<vmem>>, vector<1x1x1x7x7x128xf32>
    %374 = vector.shape_cast %373 : vector<1x1x1x7x7x128xf32> to vector<7x7x128xf32>
    %c2_405 = arith.constant 2 : index
    %c256_406 = arith.constant 256 : index
    %375 = vector.load %arg3[%c2_405, %c256_406] : memref<25x768xf32, #tpu.memory_space<vmem>>, vector<1x128xf32>
    %376 = vector.shape_cast %375 : vector<1x128xf32> to vector<1x1x128xf32>
    %377 = vector.broadcast %376 : vector<1x1x128xf32> to vector<7x7x128xf32>
    %378 = arith.mulf %374, %377 : vector<7x7x128xf32>
    %379 = arith.addf %372, %378 : vector<7x7x128xf32>
    %c0_407 = arith.constant 0 : index
    %c0_408 = arith.constant 0 : index
    %c1_409 = arith.constant 1 : index
    %c0_410 = arith.constant 0 : index
    %c1_411 = arith.constant 1 : index
    %c256_412 = arith.constant 256 : index
    %380 = vector.load %arg2[%c0_407, %c0_408, %c1_409, %c0_410, %c1_411, %c256_412] : memref<1x2x2x9x9x768xf32, #tpu.memory_space<vmem>>, vector<1x1x1x7x7x128xf32>
    %381 = vector.shape_cast %380 : vector<1x1x1x7x7x128xf32> to vector<7x7x128xf32>
    %c3_413 = arith.constant 3 : index
    %c256_414 = arith.constant 256 : index
    %382 = vector.load %arg3[%c3_413, %c256_414] : memref<25x768xf32, #tpu.memory_space<vmem>>, vector<1x128xf32>
    %383 = vector.shape_cast %382 : vector<1x128xf32> to vector<1x1x128xf32>
    %384 = vector.broadcast %383 : vector<1x1x128xf32> to vector<7x7x128xf32>
    %385 = arith.mulf %381, %384 : vector<7x7x128xf32>
    %386 = arith.addf %379, %385 : vector<7x7x128xf32>
    %c0_415 = arith.constant 0 : index
    %c0_416 = arith.constant 0 : index
    %c0_417 = arith.constant 0 : index
    %c0_418 = arith.constant 0 : index
    %c2_419 = arith.constant 2 : index
    %c256_420 = arith.constant 256 : index
    %387 = vector.load %arg2[%c0_415, %c0_416, %c0_417, %c0_418, %c2_419, %c256_420] : memref<1x2x2x9x9x768xf32, #tpu.memory_space<vmem>>, vector<1x1x1x7x7x128xf32>
    %388 = vector.shape_cast %387 : vector<1x1x1x7x7x128xf32> to vector<7x7x128xf32>
    %c4_421 = arith.constant 4 : index
    %c256_422 = arith.constant 256 : index
    %389 = vector.load %arg3[%c4_421, %c256_422] : memref<25x768xf32, #tpu.memory_space<vmem>>, vector<1x128xf32>
    %390 = vector.shape_cast %389 : vector<1x128xf32> to vector<1x1x128xf32>
    %391 = vector.broadcast %390 : vector<1x1x128xf32> to vector<7x7x128xf32>
    %392 = arith.mulf %388, %391 : vector<7x7x128xf32>
    %393 = arith.addf %386, %392 : vector<7x7x128xf32>
    %c0_423 = arith.constant 0 : index
    %c1_424 = arith.constant 1 : index
    %c0_425 = arith.constant 0 : index
    %c0_426 = arith.constant 0 : index
    %c0_427 = arith.constant 0 : index
    %c256_428 = arith.constant 256 : index
    %394 = vector.load %arg2[%c0_423, %c1_424, %c0_425, %c0_426, %c0_427, %c256_428] : memref<1x2x2x9x9x768xf32, #tpu.memory_space<vmem>>, vector<1x1x1x7x7x128xf32>
    %395 = vector.shape_cast %394 : vector<1x1x1x7x7x128xf32> to vector<7x7x128xf32>
    %c5_429 = arith.constant 5 : index
    %c256_430 = arith.constant 256 : index
    %396 = vector.load %arg3[%c5_429, %c256_430] : memref<25x768xf32, #tpu.memory_space<vmem>>, vector<1x128xf32>
    %397 = vector.shape_cast %396 : vector<1x128xf32> to vector<1x1x128xf32>
    %398 = vector.broadcast %397 : vector<1x1x128xf32> to vector<7x7x128xf32>
    %399 = arith.mulf %395, %398 : vector<7x7x128xf32>
    %400 = arith.addf %393, %399 : vector<7x7x128xf32>
    %c0_431 = arith.constant 0 : index
    %c1_432 = arith.constant 1 : index
    %c1_433 = arith.constant 1 : index
    %c0_434 = arith.constant 0 : index
    %c0_435 = arith.constant 0 : index
    %c256_436 = arith.constant 256 : index
    %401 = vector.load %arg2[%c0_431, %c1_432, %c1_433, %c0_434, %c0_435, %c256_436] : memref<1x2x2x9x9x768xf32, #tpu.memory_space<vmem>>, vector<1x1x1x7x7x128xf32>
    %402 = vector.shape_cast %401 : vector<1x1x1x7x7x128xf32> to vector<7x7x128xf32>
    %c6_437 = arith.constant 6 : index
    %c256_438 = arith.constant 256 : index
    %403 = vector.load %arg3[%c6_437, %c256_438] : memref<25x768xf32, #tpu.memory_space<vmem>>, vector<1x128xf32>
    %404 = vector.shape_cast %403 : vector<1x128xf32> to vector<1x1x128xf32>
    %405 = vector.broadcast %404 : vector<1x1x128xf32> to vector<7x7x128xf32>
    %406 = arith.mulf %402, %405 : vector<7x7x128xf32>
    %407 = arith.addf %400, %406 : vector<7x7x128xf32>
    %c0_439 = arith.constant 0 : index
    %c1_440 = arith.constant 1 : index
    %c0_441 = arith.constant 0 : index
    %c0_442 = arith.constant 0 : index
    %c1_443 = arith.constant 1 : index
    %c256_444 = arith.constant 256 : index
    %408 = vector.load %arg2[%c0_439, %c1_440, %c0_441, %c0_442, %c1_443, %c256_444] : memref<1x2x2x9x9x768xf32, #tpu.memory_space<vmem>>, vector<1x1x1x7x7x128xf32>
    %409 = vector.shape_cast %408 : vector<1x1x1x7x7x128xf32> to vector<7x7x128xf32>
    %c7_445 = arith.constant 7 : index
    %c256_446 = arith.constant 256 : index
    %410 = vector.load %arg3[%c7_445, %c256_446] : memref<25x768xf32, #tpu.memory_space<vmem>>, vector<1x128xf32>
    %411 = vector.shape_cast %410 : vector<1x128xf32> to vector<1x1x128xf32>
    %412 = vector.broadcast %411 : vector<1x1x128xf32> to vector<7x7x128xf32>
    %413 = arith.mulf %409, %412 : vector<7x7x128xf32>
    %414 = arith.addf %407, %413 : vector<7x7x128xf32>
    %c0_447 = arith.constant 0 : index
    %c1_448 = arith.constant 1 : index
    %c1_449 = arith.constant 1 : index
    %c0_450 = arith.constant 0 : index
    %c1_451 = arith.constant 1 : index
    %c256_452 = arith.constant 256 : index
    %415 = vector.load %arg2[%c0_447, %c1_448, %c1_449, %c0_450, %c1_451, %c256_452] : memref<1x2x2x9x9x768xf32, #tpu.memory_space<vmem>>, vector<1x1x1x7x7x128xf32>
    %416 = vector.shape_cast %415 : vector<1x1x1x7x7x128xf32> to vector<7x7x128xf32>
    %c8_453 = arith.constant 8 : index
    %c256_454 = arith.constant 256 : index
    %417 = vector.load %arg3[%c8_453, %c256_454] : memref<25x768xf32, #tpu.memory_space<vmem>>, vector<1x128xf32>
    %418 = vector.shape_cast %417 : vector<1x128xf32> to vector<1x1x128xf32>
    %419 = vector.broadcast %418 : vector<1x1x128xf32> to vector<7x7x128xf32>
    %420 = arith.mulf %416, %419 : vector<7x7x128xf32>
    %421 = arith.addf %414, %420 : vector<7x7x128xf32>
    %c0_455 = arith.constant 0 : index
    %c1_456 = arith.constant 1 : index
    %c0_457 = arith.constant 0 : index
    %c0_458 = arith.constant 0 : index
    %c2_459 = arith.constant 2 : index
    %c256_460 = arith.constant 256 : index
    %422 = vector.load %arg2[%c0_455, %c1_456, %c0_457, %c0_458, %c2_459, %c256_460] : memref<1x2x2x9x9x768xf32, #tpu.memory_space<vmem>>, vector<1x1x1x7x7x128xf32>
    %423 = vector.shape_cast %422 : vector<1x1x1x7x7x128xf32> to vector<7x7x128xf32>
    %c9_461 = arith.constant 9 : index
    %c256_462 = arith.constant 256 : index
    %424 = vector.load %arg3[%c9_461, %c256_462] : memref<25x768xf32, #tpu.memory_space<vmem>>, vector<1x128xf32>
    %425 = vector.shape_cast %424 : vector<1x128xf32> to vector<1x1x128xf32>
    %426 = vector.broadcast %425 : vector<1x1x128xf32> to vector<7x7x128xf32>
    %427 = arith.mulf %423, %426 : vector<7x7x128xf32>
    %428 = arith.addf %421, %427 : vector<7x7x128xf32>
    %c0_463 = arith.constant 0 : index
    %c0_464 = arith.constant 0 : index
    %c0_465 = arith.constant 0 : index
    %c1_466 = arith.constant 1 : index
    %c0_467 = arith.constant 0 : index
    %c256_468 = arith.constant 256 : index
    %429 = vector.load %arg2[%c0_463, %c0_464, %c0_465, %c1_466, %c0_467, %c256_468] : memref<1x2x2x9x9x768xf32, #tpu.memory_space<vmem>>, vector<1x1x1x7x7x128xf32>
    %430 = vector.shape_cast %429 : vector<1x1x1x7x7x128xf32> to vector<7x7x128xf32>
    %c10_469 = arith.constant 10 : index
    %c256_470 = arith.constant 256 : index
    %431 = vector.load %arg3[%c10_469, %c256_470] : memref<25x768xf32, #tpu.memory_space<vmem>>, vector<1x128xf32>
    %432 = vector.shape_cast %431 : vector<1x128xf32> to vector<1x1x128xf32>
    %433 = vector.broadcast %432 : vector<1x1x128xf32> to vector<7x7x128xf32>
    %434 = arith.mulf %430, %433 : vector<7x7x128xf32>
    %435 = arith.addf %428, %434 : vector<7x7x128xf32>
    %c0_471 = arith.constant 0 : index
    %c0_472 = arith.constant 0 : index
    %c1_473 = arith.constant 1 : index
    %c1_474 = arith.constant 1 : index
    %c0_475 = arith.constant 0 : index
    %c256_476 = arith.constant 256 : index
    %436 = vector.load %arg2[%c0_471, %c0_472, %c1_473, %c1_474, %c0_475, %c256_476] : memref<1x2x2x9x9x768xf32, #tpu.memory_space<vmem>>, vector<1x1x1x7x7x128xf32>
    %437 = vector.shape_cast %436 : vector<1x1x1x7x7x128xf32> to vector<7x7x128xf32>
    %c11_477 = arith.constant 11 : index
    %c256_478 = arith.constant 256 : index
    %438 = vector.load %arg3[%c11_477, %c256_478] : memref<25x768xf32, #tpu.memory_space<vmem>>, vector<1x128xf32>
    %439 = vector.shape_cast %438 : vector<1x128xf32> to vector<1x1x128xf32>
    %440 = vector.broadcast %439 : vector<1x1x128xf32> to vector<7x7x128xf32>
    %441 = arith.mulf %437, %440 : vector<7x7x128xf32>
    %442 = arith.addf %435, %441 : vector<7x7x128xf32>
    %c0_479 = arith.constant 0 : index
    %c0_480 = arith.constant 0 : index
    %c0_481 = arith.constant 0 : index
    %c1_482 = arith.constant 1 : index
    %c1_483 = arith.constant 1 : index
    %c256_484 = arith.constant 256 : index
    %443 = vector.load %arg2[%c0_479, %c0_480, %c0_481, %c1_482, %c1_483, %c256_484] : memref<1x2x2x9x9x768xf32, #tpu.memory_space<vmem>>, vector<1x1x1x7x7x128xf32>
    %444 = vector.shape_cast %443 : vector<1x1x1x7x7x128xf32> to vector<7x7x128xf32>
    %c12_485 = arith.constant 12 : index
    %c256_486 = arith.constant 256 : index
    %445 = vector.load %arg3[%c12_485, %c256_486] : memref<25x768xf32, #tpu.memory_space<vmem>>, vector<1x128xf32>
    %446 = vector.shape_cast %445 : vector<1x128xf32> to vector<1x1x128xf32>
    %447 = vector.broadcast %446 : vector<1x1x128xf32> to vector<7x7x128xf32>
    %448 = arith.mulf %444, %447 : vector<7x7x128xf32>
    %449 = arith.addf %442, %448 : vector<7x7x128xf32>
    %c0_487 = arith.constant 0 : index
    %c0_488 = arith.constant 0 : index
    %c1_489 = arith.constant 1 : index
    %c1_490 = arith.constant 1 : index
    %c1_491 = arith.constant 1 : index
    %c256_492 = arith.constant 256 : index
    %450 = vector.load %arg2[%c0_487, %c0_488, %c1_489, %c1_490, %c1_491, %c256_492] : memref<1x2x2x9x9x768xf32, #tpu.memory_space<vmem>>, vector<1x1x1x7x7x128xf32>
    %451 = vector.shape_cast %450 : vector<1x1x1x7x7x128xf32> to vector<7x7x128xf32>
    %c13_493 = arith.constant 13 : index
    %c256_494 = arith.constant 256 : index
    %452 = vector.load %arg3[%c13_493, %c256_494] : memref<25x768xf32, #tpu.memory_space<vmem>>, vector<1x128xf32>
    %453 = vector.shape_cast %452 : vector<1x128xf32> to vector<1x1x128xf32>
    %454 = vector.broadcast %453 : vector<1x1x128xf32> to vector<7x7x128xf32>
    %455 = arith.mulf %451, %454 : vector<7x7x128xf32>
    %456 = arith.addf %449, %455 : vector<7x7x128xf32>
    %c0_495 = arith.constant 0 : index
    %c0_496 = arith.constant 0 : index
    %c0_497 = arith.constant 0 : index
    %c1_498 = arith.constant 1 : index
    %c2_499 = arith.constant 2 : index
    %c256_500 = arith.constant 256 : index
    %457 = vector.load %arg2[%c0_495, %c0_496, %c0_497, %c1_498, %c2_499, %c256_500] : memref<1x2x2x9x9x768xf32, #tpu.memory_space<vmem>>, vector<1x1x1x7x7x128xf32>
    %458 = vector.shape_cast %457 : vector<1x1x1x7x7x128xf32> to vector<7x7x128xf32>
    %c14_501 = arith.constant 14 : index
    %c256_502 = arith.constant 256 : index
    %459 = vector.load %arg3[%c14_501, %c256_502] : memref<25x768xf32, #tpu.memory_space<vmem>>, vector<1x128xf32>
    %460 = vector.shape_cast %459 : vector<1x128xf32> to vector<1x1x128xf32>
    %461 = vector.broadcast %460 : vector<1x1x128xf32> to vector<7x7x128xf32>
    %462 = arith.mulf %458, %461 : vector<7x7x128xf32>
    %463 = arith.addf %456, %462 : vector<7x7x128xf32>
    %c0_503 = arith.constant 0 : index
    %c1_504 = arith.constant 1 : index
    %c0_505 = arith.constant 0 : index
    %c1_506 = arith.constant 1 : index
    %c0_507 = arith.constant 0 : index
    %c256_508 = arith.constant 256 : index
    %464 = vector.load %arg2[%c0_503, %c1_504, %c0_505, %c1_506, %c0_507, %c256_508] : memref<1x2x2x9x9x768xf32, #tpu.memory_space<vmem>>, vector<1x1x1x7x7x128xf32>
    %465 = vector.shape_cast %464 : vector<1x1x1x7x7x128xf32> to vector<7x7x128xf32>
    %c15_509 = arith.constant 15 : index
    %c256_510 = arith.constant 256 : index
    %466 = vector.load %arg3[%c15_509, %c256_510] : memref<25x768xf32, #tpu.memory_space<vmem>>, vector<1x128xf32>
    %467 = vector.shape_cast %466 : vector<1x128xf32> to vector<1x1x128xf32>
    %468 = vector.broadcast %467 : vector<1x1x128xf32> to vector<7x7x128xf32>
    %469 = arith.mulf %465, %468 : vector<7x7x128xf32>
    %470 = arith.addf %463, %469 : vector<7x7x128xf32>
    %c0_511 = arith.constant 0 : index
    %c1_512 = arith.constant 1 : index
    %c1_513 = arith.constant 1 : index
    %c1_514 = arith.constant 1 : index
    %c0_515 = arith.constant 0 : index
    %c256_516 = arith.constant 256 : index
    %471 = vector.load %arg2[%c0_511, %c1_512, %c1_513, %c1_514, %c0_515, %c256_516] : memref<1x2x2x9x9x768xf32, #tpu.memory_space<vmem>>, vector<1x1x1x7x7x128xf32>
    %472 = vector.shape_cast %471 : vector<1x1x1x7x7x128xf32> to vector<7x7x128xf32>
    %c16_517 = arith.constant 16 : index
    %c256_518 = arith.constant 256 : index
    %473 = vector.load %arg3[%c16_517, %c256_518] : memref<25x768xf32, #tpu.memory_space<vmem>>, vector<1x128xf32>
    %474 = vector.shape_cast %473 : vector<1x128xf32> to vector<1x1x128xf32>
    %475 = vector.broadcast %474 : vector<1x1x128xf32> to vector<7x7x128xf32>
    %476 = arith.mulf %472, %475 : vector<7x7x128xf32>
    %477 = arith.addf %470, %476 : vector<7x7x128xf32>
    %c0_519 = arith.constant 0 : index
    %c1_520 = arith.constant 1 : index
    %c0_521 = arith.constant 0 : index
    %c1_522 = arith.constant 1 : index
    %c1_523 = arith.constant 1 : index
    %c256_524 = arith.constant 256 : index
    %478 = vector.load %arg2[%c0_519, %c1_520, %c0_521, %c1_522, %c1_523, %c256_524] : memref<1x2x2x9x9x768xf32, #tpu.memory_space<vmem>>, vector<1x1x1x7x7x128xf32>
    %479 = vector.shape_cast %478 : vector<1x1x1x7x7x128xf32> to vector<7x7x128xf32>
    %c17_525 = arith.constant 17 : index
    %c256_526 = arith.constant 256 : index
    %480 = vector.load %arg3[%c17_525, %c256_526] : memref<25x768xf32, #tpu.memory_space<vmem>>, vector<1x128xf32>
    %481 = vector.shape_cast %480 : vector<1x128xf32> to vector<1x1x128xf32>
    %482 = vector.broadcast %481 : vector<1x1x128xf32> to vector<7x7x128xf32>
    %483 = arith.mulf %479, %482 : vector<7x7x128xf32>
    %484 = arith.addf %477, %483 : vector<7x7x128xf32>
    %c0_527 = arith.constant 0 : index
    %c1_528 = arith.constant 1 : index
    %c1_529 = arith.constant 1 : index
    %c1_530 = arith.constant 1 : index
    %c1_531 = arith.constant 1 : index
    %c256_532 = arith.constant 256 : index
    %485 = vector.load %arg2[%c0_527, %c1_528, %c1_529, %c1_530, %c1_531, %c256_532] : memref<1x2x2x9x9x768xf32, #tpu.memory_space<vmem>>, vector<1x1x1x7x7x128xf32>
    %486 = vector.shape_cast %485 : vector<1x1x1x7x7x128xf32> to vector<7x7x128xf32>
    %c18_533 = arith.constant 18 : index
    %c256_534 = arith.constant 256 : index
    %487 = vector.load %arg3[%c18_533, %c256_534] : memref<25x768xf32, #tpu.memory_space<vmem>>, vector<1x128xf32>
    %488 = vector.shape_cast %487 : vector<1x128xf32> to vector<1x1x128xf32>
    %489 = vector.broadcast %488 : vector<1x1x128xf32> to vector<7x7x128xf32>
    %490 = arith.mulf %486, %489 : vector<7x7x128xf32>
    %491 = arith.addf %484, %490 : vector<7x7x128xf32>
    %c0_535 = arith.constant 0 : index
    %c1_536 = arith.constant 1 : index
    %c0_537 = arith.constant 0 : index
    %c1_538 = arith.constant 1 : index
    %c2_539 = arith.constant 2 : index
    %c256_540 = arith.constant 256 : index
    %492 = vector.load %arg2[%c0_535, %c1_536, %c0_537, %c1_538, %c2_539, %c256_540] : memref<1x2x2x9x9x768xf32, #tpu.memory_space<vmem>>, vector<1x1x1x7x7x128xf32>
    %493 = vector.shape_cast %492 : vector<1x1x1x7x7x128xf32> to vector<7x7x128xf32>
    %c19_541 = arith.constant 19 : index
    %c256_542 = arith.constant 256 : index
    %494 = vector.load %arg3[%c19_541, %c256_542] : memref<25x768xf32, #tpu.memory_space<vmem>>, vector<1x128xf32>
    %495 = vector.shape_cast %494 : vector<1x128xf32> to vector<1x1x128xf32>
    %496 = vector.broadcast %495 : vector<1x1x128xf32> to vector<7x7x128xf32>
    %497 = arith.mulf %493, %496 : vector<7x7x128xf32>
    %498 = arith.addf %491, %497 : vector<7x7x128xf32>
    %c0_543 = arith.constant 0 : index
    %c0_544 = arith.constant 0 : index
    %c0_545 = arith.constant 0 : index
    %c2_546 = arith.constant 2 : index
    %c0_547 = arith.constant 0 : index
    %c256_548 = arith.constant 256 : index
    %499 = vector.load %arg2[%c0_543, %c0_544, %c0_545, %c2_546, %c0_547, %c256_548] : memref<1x2x2x9x9x768xf32, #tpu.memory_space<vmem>>, vector<1x1x1x7x7x128xf32>
    %500 = vector.shape_cast %499 : vector<1x1x1x7x7x128xf32> to vector<7x7x128xf32>
    %c20_549 = arith.constant 20 : index
    %c256_550 = arith.constant 256 : index
    %501 = vector.load %arg3[%c20_549, %c256_550] : memref<25x768xf32, #tpu.memory_space<vmem>>, vector<1x128xf32>
    %502 = vector.shape_cast %501 : vector<1x128xf32> to vector<1x1x128xf32>
    %503 = vector.broadcast %502 : vector<1x1x128xf32> to vector<7x7x128xf32>
    %504 = arith.mulf %500, %503 : vector<7x7x128xf32>
    %505 = arith.addf %498, %504 : vector<7x7x128xf32>
    %c0_551 = arith.constant 0 : index
    %c0_552 = arith.constant 0 : index
    %c1_553 = arith.constant 1 : index
    %c2_554 = arith.constant 2 : index
    %c0_555 = arith.constant 0 : index
    %c256_556 = arith.constant 256 : index
    %506 = vector.load %arg2[%c0_551, %c0_552, %c1_553, %c2_554, %c0_555, %c256_556] : memref<1x2x2x9x9x768xf32, #tpu.memory_space<vmem>>, vector<1x1x1x7x7x128xf32>
    %507 = vector.shape_cast %506 : vector<1x1x1x7x7x128xf32> to vector<7x7x128xf32>
    %c21_557 = arith.constant 21 : index
    %c256_558 = arith.constant 256 : index
    %508 = vector.load %arg3[%c21_557, %c256_558] : memref<25x768xf32, #tpu.memory_space<vmem>>, vector<1x128xf32>
    %509 = vector.shape_cast %508 : vector<1x128xf32> to vector<1x1x128xf32>
    %510 = vector.broadcast %509 : vector<1x1x128xf32> to vector<7x7x128xf32>
    %511 = arith.mulf %507, %510 : vector<7x7x128xf32>
    %512 = arith.addf %505, %511 : vector<7x7x128xf32>
    %c0_559 = arith.constant 0 : index
    %c0_560 = arith.constant 0 : index
    %c0_561 = arith.constant 0 : index
    %c2_562 = arith.constant 2 : index
    %c1_563 = arith.constant 1 : index
    %c256_564 = arith.constant 256 : index
    %513 = vector.load %arg2[%c0_559, %c0_560, %c0_561, %c2_562, %c1_563, %c256_564] : memref<1x2x2x9x9x768xf32, #tpu.memory_space<vmem>>, vector<1x1x1x7x7x128xf32>
    %514 = vector.shape_cast %513 : vector<1x1x1x7x7x128xf32> to vector<7x7x128xf32>
    %c22_565 = arith.constant 22 : index
    %c256_566 = arith.constant 256 : index
    %515 = vector.load %arg3[%c22_565, %c256_566] : memref<25x768xf32, #tpu.memory_space<vmem>>, vector<1x128xf32>
    %516 = vector.shape_cast %515 : vector<1x128xf32> to vector<1x1x128xf32>
    %517 = vector.broadcast %516 : vector<1x1x128xf32> to vector<7x7x128xf32>
    %518 = arith.mulf %514, %517 : vector<7x7x128xf32>
    %519 = arith.addf %512, %518 : vector<7x7x128xf32>
    %c0_567 = arith.constant 0 : index
    %c0_568 = arith.constant 0 : index
    %c1_569 = arith.constant 1 : index
    %c2_570 = arith.constant 2 : index
    %c1_571 = arith.constant 1 : index
    %c256_572 = arith.constant 256 : index
    %520 = vector.load %arg2[%c0_567, %c0_568, %c1_569, %c2_570, %c1_571, %c256_572] : memref<1x2x2x9x9x768xf32, #tpu.memory_space<vmem>>, vector<1x1x1x7x7x128xf32>
    %521 = vector.shape_cast %520 : vector<1x1x1x7x7x128xf32> to vector<7x7x128xf32>
    %c23_573 = arith.constant 23 : index
    %c256_574 = arith.constant 256 : index
    %522 = vector.load %arg3[%c23_573, %c256_574] : memref<25x768xf32, #tpu.memory_space<vmem>>, vector<1x128xf32>
    %523 = vector.shape_cast %522 : vector<1x128xf32> to vector<1x1x128xf32>
    %524 = vector.broadcast %523 : vector<1x1x128xf32> to vector<7x7x128xf32>
    %525 = arith.mulf %521, %524 : vector<7x7x128xf32>
    %526 = arith.addf %519, %525 : vector<7x7x128xf32>
    %c0_575 = arith.constant 0 : index
    %c0_576 = arith.constant 0 : index
    %c0_577 = arith.constant 0 : index
    %c2_578 = arith.constant 2 : index
    %c2_579 = arith.constant 2 : index
    %c256_580 = arith.constant 256 : index
    %527 = vector.load %arg2[%c0_575, %c0_576, %c0_577, %c2_578, %c2_579, %c256_580] : memref<1x2x2x9x9x768xf32, #tpu.memory_space<vmem>>, vector<1x1x1x7x7x128xf32>
    %528 = vector.shape_cast %527 : vector<1x1x1x7x7x128xf32> to vector<7x7x128xf32>
    %c24_581 = arith.constant 24 : index
    %c256_582 = arith.constant 256 : index
    %529 = vector.load %arg3[%c24_581, %c256_582] : memref<25x768xf32, #tpu.memory_space<vmem>>, vector<1x128xf32>
    %530 = vector.shape_cast %529 : vector<1x128xf32> to vector<1x1x128xf32>
    %531 = vector.broadcast %530 : vector<1x1x128xf32> to vector<7x7x128xf32>
    %532 = arith.mulf %528, %531 : vector<7x7x128xf32>
    %533 = arith.addf %526, %532 : vector<7x7x128xf32>
    %c0_583 = arith.constant 0 : index
    %c0_584 = arith.constant 0 : index
    %c0_585 = arith.constant 0 : index
    %c256_586 = arith.constant 256 : index
    %534 = vector.load %arg4[%c0_583, %c0_584, %c0_585, %c256_586] : memref<1x7x7x768xf32, #tpu.memory_space<vmem>>, vector<1x7x7x128xf32>
    %535 = vector.shape_cast %534 : vector<1x7x7x128xf32> to vector<7x7x128xf32>
    %536 = vector.shape_cast %533 : vector<7x7x128xf32> to vector<1x7x7x128xf32>
    tpu.vector_store %arg4[%c0_583, %c0_584, %c0_585, %c256_586], %536 {strides = array<i32>} : memref<1x7x7x768xf32, #tpu.memory_space<vmem>>, vector<1x7x7x128xf32>,
    %cst_587 = arith.constant 0.000000e+00 : f32
    %537 = vector.broadcast %cst_587 : f32 to vector<7x7x128xf32>
    %c0_588 = arith.constant 0 : index
    %c0_589 = arith.constant 0 : index
    %c0_590 = arith.constant 0 : index
    %c0_591 = arith.constant 0 : index
    %c0_592 = arith.constant 0 : index
    %c384 = arith.constant 384 : index
    %538 = vector.load %arg2[%c0_588, %c0_589, %c0_590, %c0_591, %c0_592, %c384] : memref<1x2x2x9x9x768xf32, #tpu.memory_space<vmem>>, vector<1x1x1x7x7x128xf32>
    %539 = vector.shape_cast %538 : vector<1x1x1x7x7x128xf32> to vector<7x7x128xf32>
    %c0_593 = arith.constant 0 : index
    %c384_594 = arith.constant 384 : index
    %540 = vector.load %arg3[%c0_593, %c384_594] : memref<25x768xf32, #tpu.memory_space<vmem>>, vector<1x128xf32>
    %541 = vector.shape_cast %540 : vector<1x128xf32> to vector<1x1x128xf32>
    %542 = vector.broadcast %541 : vector<1x1x128xf32> to vector<7x7x128xf32>
    %543 = arith.mulf %539, %542 : vector<7x7x128xf32>
    %544 = arith.addf %537, %543 : vector<7x7x128xf32>
    %c0_595 = arith.constant 0 : index
    %c0_596 = arith.constant 0 : index
    %c1_597 = arith.constant 1 : index
    %c0_598 = arith.constant 0 : index
    %c0_599 = arith.constant 0 : index
    %c384_600 = arith.constant 384 : index
    %545 = vector.load %arg2[%c0_595, %c0_596, %c1_597, %c0_598, %c0_599, %c384_600] : memref<1x2x2x9x9x768xf32, #tpu.memory_space<vmem>>, vector<1x1x1x7x7x128xf32>
    %546 = vector.shape_cast %545 : vector<1x1x1x7x7x128xf32> to vector<7x7x128xf32>
    %c1_601 = arith.constant 1 : index
    %c384_602 = arith.constant 384 : index
    %547 = vector.load %arg3[%c1_601, %c384_602] : memref<25x768xf32, #tpu.memory_space<vmem>>, vector<1x128xf32>
    %548 = vector.shape_cast %547 : vector<1x128xf32> to vector<1x1x128xf32>
    %549 = vector.broadcast %548 : vector<1x1x128xf32> to vector<7x7x128xf32>
    %550 = arith.mulf %546, %549 : vector<7x7x128xf32>
    %551 = arith.addf %544, %550 : vector<7x7x128xf32>
    %c0_603 = arith.constant 0 : index
    %c0_604 = arith.constant 0 : index
    %c0_605 = arith.constant 0 : index
    %c0_606 = arith.constant 0 : index
    %c1_607 = arith.constant 1 : index
    %c384_608 = arith.constant 384 : index
    %552 = vector.load %arg2[%c0_603, %c0_604, %c0_605, %c0_606, %c1_607, %c384_608] : memref<1x2x2x9x9x768xf32, #tpu.memory_space<vmem>>, vector<1x1x1x7x7x128xf32>
    %553 = vector.shape_cast %552 : vector<1x1x1x7x7x128xf32> to vector<7x7x128xf32>
    %c2_609 = arith.constant 2 : index
    %c384_610 = arith.constant 384 : index
    %554 = vector.load %arg3[%c2_609, %c384_610] : memref<25x768xf32, #tpu.memory_space<vmem>>, vector<1x128xf32>
    %555 = vector.shape_cast %554 : vector<1x128xf32> to vector<1x1x128xf32>
    %556 = vector.broadcast %555 : vector<1x1x128xf32> to vector<7x7x128xf32>
    %557 = arith.mulf %553, %556 : vector<7x7x128xf32>
    %558 = arith.addf %551, %557 : vector<7x7x128xf32>
    %c0_611 = arith.constant 0 : index
    %c0_612 = arith.constant 0 : index
    %c1_613 = arith.constant 1 : index
    %c0_614 = arith.constant 0 : index
    %c1_615 = arith.constant 1 : index
    %c384_616 = arith.constant 384 : index
    %559 = vector.load %arg2[%c0_611, %c0_612, %c1_613, %c0_614, %c1_615, %c384_616] : memref<1x2x2x9x9x768xf32, #tpu.memory_space<vmem>>, vector<1x1x1x7x7x128xf32>
    %560 = vector.shape_cast %559 : vector<1x1x1x7x7x128xf32> to vector<7x7x128xf32>
    %c3_617 = arith.constant 3 : index
    %c384_618 = arith.constant 384 : index
    %561 = vector.load %arg3[%c3_617, %c384_618] : memref<25x768xf32, #tpu.memory_space<vmem>>, vector<1x128xf32>
    %562 = vector.shape_cast %561 : vector<1x128xf32> to vector<1x1x128xf32>
    %563 = vector.broadcast %562 : vector<1x1x128xf32> to vector<7x7x128xf32>
    %564 = arith.mulf %560, %563 : vector<7x7x128xf32>
    %565 = arith.addf %558, %564 : vector<7x7x128xf32>
    %c0_619 = arith.constant 0 : index
    %c0_620 = arith.constant 0 : index
    %c0_621 = arith.constant 0 : index
    %c0_622 = arith.constant 0 : index
    %c2_623 = arith.constant 2 : index
    %c384_624 = arith.constant 384 : index
    %566 = vector.load %arg2[%c0_619, %c0_620, %c0_621, %c0_622, %c2_623, %c384_624] : memref<1x2x2x9x9x768xf32, #tpu.memory_space<vmem>>, vector<1x1x1x7x7x128xf32>
    %567 = vector.shape_cast %566 : vector<1x1x1x7x7x128xf32> to vector<7x7x128xf32>
    %c4_625 = arith.constant 4 : index
    %c384_626 = arith.constant 384 : index
    %568 = vector.load %arg3[%c4_625, %c384_626] : memref<25x768xf32, #tpu.memory_space<vmem>>, vector<1x128xf32>
    %569 = vector.shape_cast %568 : vector<1x128xf32> to vector<1x1x128xf32>
    %570 = vector.broadcast %569 : vector<1x1x128xf32> to vector<7x7x128xf32>
    %571 = arith.mulf %567, %570 : vector<7x7x128xf32>
    %572 = arith.addf %565, %571 : vector<7x7x128xf32>
    %c0_627 = arith.constant 0 : index
    %c1_628 = arith.constant 1 : index
    %c0_629 = arith.constant 0 : index
    %c0_630 = arith.constant 0 : index
    %c0_631 = arith.constant 0 : index
    %c384_632 = arith.constant 384 : index
    %573 = vector.load %arg2[%c0_627, %c1_628, %c0_629, %c0_630, %c0_631, %c384_632] : memref<1x2x2x9x9x768xf32, #tpu.memory_space<vmem>>, vector<1x1x1x7x7x128xf32>
    %574 = vector.shape_cast %573 : vector<1x1x1x7x7x128xf32> to vector<7x7x128xf32>
    %c5_633 = arith.constant 5 : index
    %c384_634 = arith.constant 384 : index
    %575 = vector.load %arg3[%c5_633, %c384_634] : memref<25x768xf32, #tpu.memory_space<vmem>>, vector<1x128xf32>
    %576 = vector.shape_cast %575 : vector<1x128xf32> to vector<1x1x128xf32>
    %577 = vector.broadcast %576 : vector<1x1x128xf32> to vector<7x7x128xf32>
    %578 = arith.mulf %574, %577 : vector<7x7x128xf32>
    %579 = arith.addf %572, %578 : vector<7x7x128xf32>
    %c0_635 = arith.constant 0 : index
    %c1_636 = arith.constant 1 : index
    %c1_637 = arith.constant 1 : index
    %c0_638 = arith.constant 0 : index
    %c0_639 = arith.constant 0 : index
    %c384_640 = arith.constant 384 : index
    %580 = vector.load %arg2[%c0_635, %c1_636, %c1_637, %c0_638, %c0_639, %c384_640] : memref<1x2x2x9x9x768xf32, #tpu.memory_space<vmem>>, vector<1x1x1x7x7x128xf32>
    %581 = vector.shape_cast %580 : vector<1x1x1x7x7x128xf32> to vector<7x7x128xf32>
    %c6_641 = arith.constant 6 : index
    %c384_642 = arith.constant 384 : index
    %582 = vector.load %arg3[%c6_641, %c384_642] : memref<25x768xf32, #tpu.memory_space<vmem>>, vector<1x128xf32>
    %583 = vector.shape_cast %582 : vector<1x128xf32> to vector<1x1x128xf32>
    %584 = vector.broadcast %583 : vector<1x1x128xf32> to vector<7x7x128xf32>
    %585 = arith.mulf %581, %584 : vector<7x7x128xf32>
    %586 = arith.addf %579, %585 : vector<7x7x128xf32>
    %c0_643 = arith.constant 0 : index
    %c1_644 = arith.constant 1 : index
    %c0_645 = arith.constant 0 : index
    %c0_646 = arith.constant 0 : index
    %c1_647 = arith.constant 1 : index
    %c384_648 = arith.constant 384 : index
    %587 = vector.load %arg2[%c0_643, %c1_644, %c0_645, %c0_646, %c1_647, %c384_648] : memref<1x2x2x9x9x768xf32, #tpu.memory_space<vmem>>, vector<1x1x1x7x7x128xf32>
    %588 = vector.shape_cast %587 : vector<1x1x1x7x7x128xf32> to vector<7x7x128xf32>
    %c7_649 = arith.constant 7 : index
    %c384_650 = arith.constant 384 : index
    %589 = vector.load %arg3[%c7_649, %c384_650] : memref<25x768xf32, #tpu.memory_space<vmem>>, vector<1x128xf32>
    %590 = vector.shape_cast %589 : vector<1x128xf32> to vector<1x1x128xf32>
    %591 = vector.broadcast %590 : vector<1x1x128xf32> to vector<7x7x128xf32>
    %592 = arith.mulf %588, %591 : vector<7x7x128xf32>
    %593 = arith.addf %586, %592 : vector<7x7x128xf32>
    %c0_651 = arith.constant 0 : index
    %c1_652 = arith.constant 1 : index
    %c1_653 = arith.constant 1 : index
    %c0_654 = arith.constant 0 : index
    %c1_655 = arith.constant 1 : index
    %c384_656 = arith.constant 384 : index
    %594 = vector.load %arg2[%c0_651, %c1_652, %c1_653, %c0_654, %c1_655, %c384_656] : memref<1x2x2x9x9x768xf32, #tpu.memory_space<vmem>>, vector<1x1x1x7x7x128xf32>
    %595 = vector.shape_cast %594 : vector<1x1x1x7x7x128xf32> to vector<7x7x128xf32>
    %c8_657 = arith.constant 8 : index
    %c384_658 = arith.constant 384 : index
    %596 = vector.load %arg3[%c8_657, %c384_658] : memref<25x768xf32, #tpu.memory_space<vmem>>, vector<1x128xf32>
    %597 = vector.shape_cast %596 : vector<1x128xf32> to vector<1x1x128xf32>
    %598 = vector.broadcast %597 : vector<1x1x128xf32> to vector<7x7x128xf32>
    %599 = arith.mulf %595, %598 : vector<7x7x128xf32>
    %600 = arith.addf %593, %599 : vector<7x7x128xf32>
    %c0_659 = arith.constant 0 : index
    %c1_660 = arith.constant 1 : index
    %c0_661 = arith.constant 0 : index
    %c0_662 = arith.constant 0 : index
    %c2_663 = arith.constant 2 : index
    %c384_664 = arith.constant 384 : index
    %601 = vector.load %arg2[%c0_659, %c1_660, %c0_661, %c0_662, %c2_663, %c384_664] : memref<1x2x2x9x9x768xf32, #tpu.memory_space<vmem>>, vector<1x1x1x7x7x128xf32>
    %602 = vector.shape_cast %601 : vector<1x1x1x7x7x128xf32> to vector<7x7x128xf32>
    %c9_665 = arith.constant 9 : index
    %c384_666 = arith.constant 384 : index
    %603 = vector.load %arg3[%c9_665, %c384_666] : memref<25x768xf32, #tpu.memory_space<vmem>>, vector<1x128xf32>
    %604 = vector.shape_cast %603 : vector<1x128xf32> to vector<1x1x128xf32>
    %605 = vector.broadcast %604 : vector<1x1x128xf32> to vector<7x7x128xf32>
    %606 = arith.mulf %602, %605 : vector<7x7x128xf32>
    %607 = arith.addf %600, %606 : vector<7x7x128xf32>
    %c0_667 = arith.constant 0 : index
    %c0_668 = arith.constant 0 : index
    %c0_669 = arith.constant 0 : index
    %c1_670 = arith.constant 1 : index
    %c0_671 = arith.constant 0 : index
    %c384_672 = arith.constant 384 : index
    %608 = vector.load %arg2[%c0_667, %c0_668, %c0_669, %c1_670, %c0_671, %c384_672] : memref<1x2x2x9x9x768xf32, #tpu.memory_space<vmem>>, vector<1x1x1x7x7x128xf32>
    %609 = vector.shape_cast %608 : vector<1x1x1x7x7x128xf32> to vector<7x7x128xf32>
    %c10_673 = arith.constant 10 : index
    %c384_674 = arith.constant 384 : index
    %610 = vector.load %arg3[%c10_673, %c384_674] : memref<25x768xf32, #tpu.memory_space<vmem>>, vector<1x128xf32>
    %611 = vector.shape_cast %610 : vector<1x128xf32> to vector<1x1x128xf32>
    %612 = vector.broadcast %611 : vector<1x1x128xf32> to vector<7x7x128xf32>
    %613 = arith.mulf %609, %612 : vector<7x7x128xf32>
    %614 = arith.addf %607, %613 : vector<7x7x128xf32>
    %c0_675 = arith.constant 0 : index
    %c0_676 = arith.constant 0 : index
    %c1_677 = arith.constant 1 : index
    %c1_678 = arith.constant 1 : index
    %c0_679 = arith.constant 0 : index
    %c384_680 = arith.constant 384 : index
    %615 = vector.load %arg2[%c0_675, %c0_676, %c1_677, %c1_678, %c0_679, %c384_680] : memref<1x2x2x9x9x768xf32, #tpu.memory_space<vmem>>, vector<1x1x1x7x7x128xf32>
    %616 = vector.shape_cast %615 : vector<1x1x1x7x7x128xf32> to vector<7x7x128xf32>
    %c11_681 = arith.constant 11 : index
    %c384_682 = arith.constant 384 : index
    %617 = vector.load %arg3[%c11_681, %c384_682] : memref<25x768xf32, #tpu.memory_space<vmem>>, vector<1x128xf32>
    %618 = vector.shape_cast %617 : vector<1x128xf32> to vector<1x1x128xf32>
    %619 = vector.broadcast %618 : vector<1x1x128xf32> to vector<7x7x128xf32>
    %620 = arith.mulf %616, %619 : vector<7x7x128xf32>
    %621 = arith.addf %614, %620 : vector<7x7x128xf32>
    %c0_683 = arith.constant 0 : index
    %c0_684 = arith.constant 0 : index
    %c0_685 = arith.constant 0 : index
    %c1_686 = arith.constant 1 : index
    %c1_687 = arith.constant 1 : index
    %c384_688 = arith.constant 384 : index
    %622 = vector.load %arg2[%c0_683, %c0_684, %c0_685, %c1_686, %c1_687, %c384_688] : memref<1x2x2x9x9x768xf32, #tpu.memory_space<vmem>>, vector<1x1x1x7x7x128xf32>
    %623 = vector.shape_cast %622 : vector<1x1x1x7x7x128xf32> to vector<7x7x128xf32>
    %c12_689 = arith.constant 12 : index
    %c384_690 = arith.constant 384 : index
    %624 = vector.load %arg3[%c12_689, %c384_690] : memref<25x768xf32, #tpu.memory_space<vmem>>, vector<1x128xf32>
    %625 = vector.shape_cast %624 : vector<1x128xf32> to vector<1x1x128xf32>
    %626 = vector.broadcast %625 : vector<1x1x128xf32> to vector<7x7x128xf32>
    %627 = arith.mulf %623, %626 : vector<7x7x128xf32>
    %628 = arith.addf %621, %627 : vector<7x7x128xf32>
    %c0_691 = arith.constant 0 : index
    %c0_692 = arith.constant 0 : index
    %c1_693 = arith.constant 1 : index
    %c1_694 = arith.constant 1 : index
    %c1_695 = arith.constant 1 : index
    %c384_696 = arith.constant 384 : index
    %629 = vector.load %arg2[%c0_691, %c0_692, %c1_693, %c1_694, %c1_695, %c384_696] : memref<1x2x2x9x9x768xf32, #tpu.memory_space<vmem>>, vector<1x1x1x7x7x128xf32>
    %630 = vector.shape_cast %629 : vector<1x1x1x7x7x128xf32> to vector<7x7x128xf32>
    %c13_697 = arith.constant 13 : index
    %c384_698 = arith.constant 384 : index
    %631 = vector.load %arg3[%c13_697, %c384_698] : memref<25x768xf32, #tpu.memory_space<vmem>>, vector<1x128xf32>
    %632 = vector.shape_cast %631 : vector<1x128xf32> to vector<1x1x128xf32>
    %633 = vector.broadcast %632 : vector<1x1x128xf32> to vector<7x7x128xf32>
    %634 = arith.mulf %630, %633 : vector<7x7x128xf32>
    %635 = arith.addf %628, %634 : vector<7x7x128xf32>
    %c0_699 = arith.constant 0 : index
    %c0_700 = arith.constant 0 : index
    %c0_701 = arith.constant 0 : index
    %c1_702 = arith.constant 1 : index
    %c2_703 = arith.constant 2 : index
    %c384_704 = arith.constant 384 : index
    %636 = vector.load %arg2[%c0_699, %c0_700, %c0_701, %c1_702, %c2_703, %c384_704] : memref<1x2x2x9x9x768xf32, #tpu.memory_space<vmem>>, vector<1x1x1x7x7x128xf32>
    %637 = vector.shape_cast %636 : vector<1x1x1x7x7x128xf32> to vector<7x7x128xf32>
    %c14_705 = arith.constant 14 : index
    %c384_706 = arith.constant 384 : index
    %638 = vector.load %arg3[%c14_705, %c384_706] : memref<25x768xf32, #tpu.memory_space<vmem>>, vector<1x128xf32>
    %639 = vector.shape_cast %638 : vector<1x128xf32> to vector<1x1x128xf32>
    %640 = vector.broadcast %639 : vector<1x1x128xf32> to vector<7x7x128xf32>
    %641 = arith.mulf %637, %640 : vector<7x7x128xf32>
    %642 = arith.addf %635, %641 : vector<7x7x128xf32>
    %c0_707 = arith.constant 0 : index
    %c1_708 = arith.constant 1 : index
    %c0_709 = arith.constant 0 : index
    %c1_710 = arith.constant 1 : index
    %c0_711 = arith.constant 0 : index
    %c384_712 = arith.constant 384 : index
    %643 = vector.load %arg2[%c0_707, %c1_708, %c0_709, %c1_710, %c0_711, %c384_712] : memref<1x2x2x9x9x768xf32, #tpu.memory_space<vmem>>, vector<1x1x1x7x7x128xf32>
    %644 = vector.shape_cast %643 : vector<1x1x1x7x7x128xf32> to vector<7x7x128xf32>
    %c15_713 = arith.constant 15 : index
    %c384_714 = arith.constant 384 : index
    %645 = vector.load %arg3[%c15_713, %c384_714] : memref<25x768xf32, #tpu.memory_space<vmem>>, vector<1x128xf32>
    %646 = vector.shape_cast %645 : vector<1x128xf32> to vector<1x1x128xf32>
    %647 = vector.broadcast %646 : vector<1x1x128xf32> to vector<7x7x128xf32>
    %648 = arith.mulf %644, %647 : vector<7x7x128xf32>
    %649 = arith.addf %642, %648 : vector<7x7x128xf32>
    %c0_715 = arith.constant 0 : index
    %c1_716 = arith.constant 1 : index
    %c1_717 = arith.constant 1 : index
    %c1_718 = arith.constant 1 : index
    %c0_719 = arith.constant 0 : index
    %c384_720 = arith.constant 384 : index
    %650 = vector.load %arg2[%c0_715, %c1_716, %c1_717, %c1_718, %c0_719, %c384_720] : memref<1x2x2x9x9x768xf32, #tpu.memory_space<vmem>>, vector<1x1x1x7x7x128xf32>
    %651 = vector.shape_cast %650 : vector<1x1x1x7x7x128xf32> to vector<7x7x128xf32>
    %c16_721 = arith.constant 16 : index
    %c384_722 = arith.constant 384 : index
    %652 = vector.load %arg3[%c16_721, %c384_722] : memref<25x768xf32, #tpu.memory_space<vmem>>, vector<1x128xf32>
    %653 = vector.shape_cast %652 : vector<1x128xf32> to vector<1x1x128xf32>
    %654 = vector.broadcast %653 : vector<1x1x128xf32> to vector<7x7x128xf32>
    %655 = arith.mulf %651, %654 : vector<7x7x128xf32>
    %656 = arith.addf %649, %655 : vector<7x7x128xf32>
    %c0_723 = arith.constant 0 : index
    %c1_724 = arith.constant 1 : index
    %c0_725 = arith.constant 0 : index
    %c1_726 = arith.constant 1 : index
    %c1_727 = arith.constant 1 : index
    %c384_728 = arith.constant 384 : index
    %657 = vector.load %arg2[%c0_723, %c1_724, %c0_725, %c1_726, %c1_727, %c384_728] : memref<1x2x2x9x9x768xf32, #tpu.memory_space<vmem>>, vector<1x1x1x7x7x128xf32>
    %658 = vector.shape_cast %657 : vector<1x1x1x7x7x128xf32> to vector<7x7x128xf32>
    %c17_729 = arith.constant 17 : index
    %c384_730 = arith.constant 384 : index
    %659 = vector.load %arg3[%c17_729, %c384_730] : memref<25x768xf32, #tpu.memory_space<vmem>>, vector<1x128xf32>
    %660 = vector.shape_cast %659 : vector<1x128xf32> to vector<1x1x128xf32>
    %661 = vector.broadcast %660 : vector<1x1x128xf32> to vector<7x7x128xf32>
    %662 = arith.mulf %658, %661 : vector<7x7x128xf32>
    %663 = arith.addf %656, %662 : vector<7x7x128xf32>
    %c0_731 = arith.constant 0 : index
    %c1_732 = arith.constant 1 : index
    %c1_733 = arith.constant 1 : index
    %c1_734 = arith.constant 1 : index
    %c1_735 = arith.constant 1 : index
    %c384_736 = arith.constant 384 : index
    %664 = vector.load %arg2[%c0_731, %c1_732, %c1_733, %c1_734, %c1_735, %c384_736] : memref<1x2x2x9x9x768xf32, #tpu.memory_space<vmem>>, vector<1x1x1x7x7x128xf32>
    %665 = vector.shape_cast %664 : vector<1x1x1x7x7x128xf32> to vector<7x7x128xf32>
    %c18_737 = arith.constant 18 : index
    %c384_738 = arith.constant 384 : index
    %666 = vector.load %arg3[%c18_737, %c384_738] : memref<25x768xf32, #tpu.memory_space<vmem>>, vector<1x128xf32>
    %667 = vector.shape_cast %666 : vector<1x128xf32> to vector<1x1x128xf32>
    %668 = vector.broadcast %667 : vector<1x1x128xf32> to vector<7x7x128xf32>
    %669 = arith.mulf %665, %668 : vector<7x7x128xf32>
    %670 = arith.addf %663, %669 : vector<7x7x128xf32>
    %c0_739 = arith.constant 0 : index
    %c1_740 = arith.constant 1 : index
    %c0_741 = arith.constant 0 : index
    %c1_742 = arith.constant 1 : index
    %c2_743 = arith.constant 2 : index
    %c384_744 = arith.constant 384 : index
    %671 = vector.load %arg2[%c0_739, %c1_740, %c0_741, %c1_742, %c2_743, %c384_744] : memref<1x2x2x9x9x768xf32, #tpu.memory_space<vmem>>, vector<1x1x1x7x7x128xf32>
    %672 = vector.shape_cast %671 : vector<1x1x1x7x7x128xf32> to vector<7x7x128xf32>
    %c19_745 = arith.constant 19 : index
    %c384_746 = arith.constant 384 : index
    %673 = vector.load %arg3[%c19_745, %c384_746] : memref<25x768xf32, #tpu.memory_space<vmem>>, vector<1x128xf32>
    %674 = vector.shape_cast %673 : vector<1x128xf32> to vector<1x1x128xf32>
    %675 = vector.broadcast %674 : vector<1x1x128xf32> to vector<7x7x128xf32>
    %676 = arith.mulf %672, %675 : vector<7x7x128xf32>
    %677 = arith.addf %670, %676 : vector<7x7x128xf32>
    %c0_747 = arith.constant 0 : index
    %c0_748 = arith.constant 0 : index
    %c0_749 = arith.constant 0 : index
    %c2_750 = arith.constant 2 : index
    %c0_751 = arith.constant 0 : index
    %c384_752 = arith.constant 384 : index
    %678 = vector.load %arg2[%c0_747, %c0_748, %c0_749, %c2_750, %c0_751, %c384_752] : memref<1x2x2x9x9x768xf32, #tpu.memory_space<vmem>>, vector<1x1x1x7x7x128xf32>
    %679 = vector.shape_cast %678 : vector<1x1x1x7x7x128xf32> to vector<7x7x128xf32>
    %c20_753 = arith.constant 20 : index
    %c384_754 = arith.constant 384 : index
    %680 = vector.load %arg3[%c20_753, %c384_754] : memref<25x768xf32, #tpu.memory_space<vmem>>, vector<1x128xf32>
    %681 = vector.shape_cast %680 : vector<1x128xf32> to vector<1x1x128xf32>
    %682 = vector.broadcast %681 : vector<1x1x128xf32> to vector<7x7x128xf32>
    %683 = arith.mulf %679, %682 : vector<7x7x128xf32>
    %684 = arith.addf %677, %683 : vector<7x7x128xf32>
    %c0_755 = arith.constant 0 : index
    %c0_756 = arith.constant 0 : index
    %c1_757 = arith.constant 1 : index
    %c2_758 = arith.constant 2 : index
    %c0_759 = arith.constant 0 : index
    %c384_760 = arith.constant 384 : index
    %685 = vector.load %arg2[%c0_755, %c0_756, %c1_757, %c2_758, %c0_759, %c384_760] : memref<1x2x2x9x9x768xf32, #tpu.memory_space<vmem>>, vector<1x1x1x7x7x128xf32>
    %686 = vector.shape_cast %685 : vector<1x1x1x7x7x128xf32> to vector<7x7x128xf32>
    %c21_761 = arith.constant 21 : index
    %c384_762 = arith.constant 384 : index
    %687 = vector.load %arg3[%c21_761, %c384_762] : memref<25x768xf32, #tpu.memory_space<vmem>>, vector<1x128xf32>
    %688 = vector.shape_cast %687 : vector<1x128xf32> to vector<1x1x128xf32>
    %689 = vector.broadcast %688 : vector<1x1x128xf32> to vector<7x7x128xf32>
    %690 = arith.mulf %686, %689 : vector<7x7x128xf32>
    %691 = arith.addf %684, %690 : vector<7x7x128xf32>
    %c0_763 = arith.constant 0 : index
    %c0_764 = arith.constant 0 : index
    %c0_765 = arith.constant 0 : index
    %c2_766 = arith.constant 2 : index
    %c1_767 = arith.constant 1 : index
    %c384_768 = arith.constant 384 : index
    %692 = vector.load %arg2[%c0_763, %c0_764, %c0_765, %c2_766, %c1_767, %c384_768] : memref<1x2x2x9x9x768xf32, #tpu.memory_space<vmem>>, vector<1x1x1x7x7x128xf32>
    %693 = vector.shape_cast %692 : vector<1x1x1x7x7x128xf32> to vector<7x7x128xf32>
    %c22_769 = arith.constant 22 : index
    %c384_770 = arith.constant 384 : index
    %694 = vector.load %arg3[%c22_769, %c384_770] : memref<25x768xf32, #tpu.memory_space<vmem>>, vector<1x128xf32>
    %695 = vector.shape_cast %694 : vector<1x128xf32> to vector<1x1x128xf32>
    %696 = vector.broadcast %695 : vector<1x1x128xf32> to vector<7x7x128xf32>
    %697 = arith.mulf %693, %696 : vector<7x7x128xf32>
    %698 = arith.addf %691, %697 : vector<7x7x128xf32>
    %c0_771 = arith.constant 0 : index
    %c0_772 = arith.constant 0 : index
    %c1_773 = arith.constant 1 : index
    %c2_774 = arith.constant 2 : index
    %c1_775 = arith.constant 1 : index
    %c384_776 = arith.constant 384 : index
    %699 = vector.load %arg2[%c0_771, %c0_772, %c1_773, %c2_774, %c1_775, %c384_776] : memref<1x2x2x9x9x768xf32, #tpu.memory_space<vmem>>, vector<1x1x1x7x7x128xf32>
    %700 = vector.shape_cast %699 : vector<1x1x1x7x7x128xf32> to vector<7x7x128xf32>
    %c23_777 = arith.constant 23 : index
    %c384_778 = arith.constant 384 : index
    %701 = vector.load %arg3[%c23_777, %c384_778] : memref<25x768xf32, #tpu.memory_space<vmem>>, vector<1x128xf32>
    %702 = vector.shape_cast %701 : vector<1x128xf32> to vector<1x1x128xf32>
    %703 = vector.broadcast %702 : vector<1x1x128xf32> to vector<7x7x128xf32>
    %704 = arith.mulf %700, %703 : vector<7x7x128xf32>
    %705 = arith.addf %698, %704 : vector<7x7x128xf32>
    %c0_779 = arith.constant 0 : index
    %c0_780 = arith.constant 0 : index
    %c0_781 = arith.constant 0 : index
    %c2_782 = arith.constant 2 : index
    %c2_783 = arith.constant 2 : index
    %c384_784 = arith.constant 384 : index
    %706 = vector.load %arg2[%c0_779, %c0_780, %c0_781, %c2_782, %c2_783, %c384_784] : memref<1x2x2x9x9x768xf32, #tpu.memory_space<vmem>>, vector<1x1x1x7x7x128xf32>
    %707 = vector.shape_cast %706 : vector<1x1x1x7x7x128xf32> to vector<7x7x128xf32>
    %c24_785 = arith.constant 24 : index
    %c384_786 = arith.constant 384 : index
    %708 = vector.load %arg3[%c24_785, %c384_786] : memref<25x768xf32, #tpu.memory_space<vmem>>, vector<1x128xf32>
    %709 = vector.shape_cast %708 : vector<1x128xf32> to vector<1x1x128xf32>
    %710 = vector.broadcast %709 : vector<1x1x128xf32> to vector<7x7x128xf32>
    %711 = arith.mulf %707, %710 : vector<7x7x128xf32>
    %712 = arith.addf %705, %711 : vector<7x7x128xf32>
    %c0_787 = arith.constant 0 : index
    %c0_788 = arith.constant 0 : index
    %c0_789 = arith.constant 0 : index
    %c384_790 = arith.constant 384 : index
    %713 = vector.load %arg4[%c0_787, %c0_788, %c0_789, %c384_790] : memref<1x7x7x768xf32, #tpu.memory_space<vmem>>, vector<1x7x7x128xf32>
    %714 = vector.shape_cast %713 : vector<1x7x7x128xf32> to vector<7x7x128xf32>
    %715 = vector.shape_cast %712 : vector<7x7x128xf32> to vector<1x7x7x128xf32>
    tpu.vector_store %arg4[%c0_787, %c0_788, %c0_789, %c384_790], %715 {strides = array<i32>} : memref<1x7x7x768xf32, #tpu.memory_space<vmem>>, vector<1x7x7x128xf32>,
    %cst_791 = arith.constant 0.000000e+00 : f32
    %716 = vector.broadcast %cst_791 : f32 to vector<7x7x128xf32>
    %c0_792 = arith.constant 0 : index
    %c0_793 = arith.constant 0 : index
    %c0_794 = arith.constant 0 : index
    %c0_795 = arith.constant 0 : index
    %c0_796 = arith.constant 0 : index
    %c512 = arith.constant 512 : index
    %717 = vector.load %arg2[%c0_792, %c0_793, %c0_794, %c0_795, %c0_796, %c512] : memref<1x2x2x9x9x768xf32, #tpu.memory_space<vmem>>, vector<1x1x1x7x7x128xf32>
    %718 = vector.shape_cast %717 : vector<1x1x1x7x7x128xf32> to vector<7x7x128xf32>
    %c0_797 = arith.constant 0 : index
    %c512_798 = arith.constant 512 : index
    %719 = vector.load %arg3[%c0_797, %c512_798] : memref<25x768xf32, #tpu.memory_space<vmem>>, vector<1x128xf32>
    %720 = vector.shape_cast %719 : vector<1x128xf32> to vector<1x1x128xf32>
    %721 = vector.broadcast %720 : vector<1x1x128xf32> to vector<7x7x128xf32>
    %722 = arith.mulf %718, %721 : vector<7x7x128xf32>
    %723 = arith.addf %716, %722 : vector<7x7x128xf32>
    %c0_799 = arith.constant 0 : index
    %c0_800 = arith.constant 0 : index
    %c1_801 = arith.constant 1 : index
    %c0_802 = arith.constant 0 : index
    %c0_803 = arith.constant 0 : index
    %c512_804 = arith.constant 512 : index
    %724 = vector.load %arg2[%c0_799, %c0_800, %c1_801, %c0_802, %c0_803, %c512_804] : memref<1x2x2x9x9x768xf32, #tpu.memory_space<vmem>>, vector<1x1x1x7x7x128xf32>
    %725 = vector.shape_cast %724 : vector<1x1x1x7x7x128xf32> to vector<7x7x128xf32>
    %c1_805 = arith.constant 1 : index
    %c512_806 = arith.constant 512 : index
    %726 = vector.load %arg3[%c1_805, %c512_806] : memref<25x768xf32, #tpu.memory_space<vmem>>, vector<1x128xf32>
    %727 = vector.shape_cast %726 : vector<1x128xf32> to vector<1x1x128xf32>
    %728 = vector.broadcast %727 : vector<1x1x128xf32> to vector<7x7x128xf32>
    %729 = arith.mulf %725, %728 : vector<7x7x128xf32>
    %730 = arith.addf %723, %729 : vector<7x7x128xf32>
    %c0_807 = arith.constant 0 : index
    %c0_808 = arith.constant 0 : index
    %c0_809 = arith.constant 0 : index
    %c0_810 = arith.constant 0 : index
    %c1_811 = arith.constant 1 : index
    %c512_812 = arith.constant 512 : index
    %731 = vector.load %arg2[%c0_807, %c0_808, %c0_809, %c0_810, %c1_811, %c512_812] : memref<1x2x2x9x9x768xf32, #tpu.memory_space<vmem>>, vector<1x1x1x7x7x128xf32>
    %732 = vector.shape_cast %731 : vector<1x1x1x7x7x128xf32> to vector<7x7x128xf32>
    %c2_813 = arith.constant 2 : index
    %c512_814 = arith.constant 512 : index
    %733 = vector.load %arg3[%c2_813, %c512_814] : memref<25x768xf32, #tpu.memory_space<vmem>>, vector<1x128xf32>
    %734 = vector.shape_cast %733 : vector<1x128xf32> to vector<1x1x128xf32>
    %735 = vector.broadcast %734 : vector<1x1x128xf32> to vector<7x7x128xf32>
    %736 = arith.mulf %732, %735 : vector<7x7x128xf32>
    %737 = arith.addf %730, %736 : vector<7x7x128xf32>
    %c0_815 = arith.constant 0 : index
    %c0_816 = arith.constant 0 : index
    %c1_817 = arith.constant 1 : index
    %c0_818 = arith.constant 0 : index
    %c1_819 = arith.constant 1 : index
    %c512_820 = arith.constant 512 : index
    %738 = vector.load %arg2[%c0_815, %c0_816, %c1_817, %c0_818, %c1_819, %c512_820] : memref<1x2x2x9x9x768xf32, #tpu.memory_space<vmem>>, vector<1x1x1x7x7x128xf32>
    %739 = vector.shape_cast %738 : vector<1x1x1x7x7x128xf32> to vector<7x7x128xf32>
    %c3_821 = arith.constant 3 : index
    %c512_822 = arith.constant 512 : index
    %740 = vector.load %arg3[%c3_821, %c512_822] : memref<25x768xf32, #tpu.memory_space<vmem>>, vector<1x128xf32>
    %741 = vector.shape_cast %740 : vector<1x128xf32> to vector<1x1x128xf32>
    %742 = vector.broadcast %741 : vector<1x1x128xf32> to vector<7x7x128xf32>
    %743 = arith.mulf %739, %742 : vector<7x7x128xf32>
    %744 = arith.addf %737, %743 : vector<7x7x128xf32>
    %c0_823 = arith.constant 0 : index
    %c0_824 = arith.constant 0 : index
    %c0_825 = arith.constant 0 : index
    %c0_826 = arith.constant 0 : index
    %c2_827 = arith.constant 2 : index
    %c512_828 = arith.constant 512 : index
    %745 = vector.load %arg2[%c0_823, %c0_824, %c0_825, %c0_826, %c2_827, %c512_828] : memref<1x2x2x9x9x768xf32, #tpu.memory_space<vmem>>, vector<1x1x1x7x7x128xf32>
    %746 = vector.shape_cast %745 : vector<1x1x1x7x7x128xf32> to vector<7x7x128xf32>
    %c4_829 = arith.constant 4 : index
    %c512_830 = arith.constant 512 : index
    %747 = vector.load %arg3[%c4_829, %c512_830] : memref<25x768xf32, #tpu.memory_space<vmem>>, vector<1x128xf32>
    %748 = vector.shape_cast %747 : vector<1x128xf32> to vector<1x1x128xf32>
    %749 = vector.broadcast %748 : vector<1x1x128xf32> to vector<7x7x128xf32>
    %750 = arith.mulf %746, %749 : vector<7x7x128xf32>
    %751 = arith.addf %744, %750 : vector<7x7x128xf32>
    %c0_831 = arith.constant 0 : index
    %c1_832 = arith.constant 1 : index
    %c0_833 = arith.constant 0 : index
    %c0_834 = arith.constant 0 : index
    %c0_835 = arith.constant 0 : index
    %c512_836 = arith.constant 512 : index
    %752 = vector.load %arg2[%c0_831, %c1_832, %c0_833, %c0_834, %c0_835, %c512_836] : memref<1x2x2x9x9x768xf32, #tpu.memory_space<vmem>>, vector<1x1x1x7x7x128xf32>
    %753 = vector.shape_cast %752 : vector<1x1x1x7x7x128xf32> to vector<7x7x128xf32>
    %c5_837 = arith.constant 5 : index
    %c512_838 = arith.constant 512 : index
    %754 = vector.load %arg3[%c5_837, %c512_838] : memref<25x768xf32, #tpu.memory_space<vmem>>, vector<1x128xf32>
    %755 = vector.shape_cast %754 : vector<1x128xf32> to vector<1x1x128xf32>
    %756 = vector.broadcast %755 : vector<1x1x128xf32> to vector<7x7x128xf32>
    %757 = arith.mulf %753, %756 : vector<7x7x128xf32>
    %758 = arith.addf %751, %757 : vector<7x7x128xf32>
    %c0_839 = arith.constant 0 : index
    %c1_840 = arith.constant 1 : index
    %c1_841 = arith.constant 1 : index
    %c0_842 = arith.constant 0 : index
    %c0_843 = arith.constant 0 : index
    %c512_844 = arith.constant 512 : index
    %759 = vector.load %arg2[%c0_839, %c1_840, %c1_841, %c0_842, %c0_843, %c512_844] : memref<1x2x2x9x9x768xf32, #tpu.memory_space<vmem>>, vector<1x1x1x7x7x128xf32>
    %760 = vector.shape_cast %759 : vector<1x1x1x7x7x128xf32> to vector<7x7x128xf32>
    %c6_845 = arith.constant 6 : index
    %c512_846 = arith.constant 512 : index
    %761 = vector.load %arg3[%c6_845, %c512_846] : memref<25x768xf32, #tpu.memory_space<vmem>>, vector<1x128xf32>
    %762 = vector.shape_cast %761 : vector<1x128xf32> to vector<1x1x128xf32>
    %763 = vector.broadcast %762 : vector<1x1x128xf32> to vector<7x7x128xf32>
    %764 = arith.mulf %760, %763 : vector<7x7x128xf32>
    %765 = arith.addf %758, %764 : vector<7x7x128xf32>
    %c0_847 = arith.constant 0 : index
    %c1_848 = arith.constant 1 : index
    %c0_849 = arith.constant 0 : index
    %c0_850 = arith.constant 0 : index
    %c1_851 = arith.constant 1 : index
    %c512_852 = arith.constant 512 : index
    %766 = vector.load %arg2[%c0_847, %c1_848, %c0_849, %c0_850, %c1_851, %c512_852] : memref<1x2x2x9x9x768xf32, #tpu.memory_space<vmem>>, vector<1x1x1x7x7x128xf32>
    %767 = vector.shape_cast %766 : vector<1x1x1x7x7x128xf32> to vector<7x7x128xf32>
    %c7_853 = arith.constant 7 : index
    %c512_854 = arith.constant 512 : index
    %768 = vector.load %arg3[%c7_853, %c512_854] : memref<25x768xf32, #tpu.memory_space<vmem>>, vector<1x128xf32>
    %769 = vector.shape_cast %768 : vector<1x128xf32> to vector<1x1x128xf32>
    %770 = vector.broadcast %769 : vector<1x1x128xf32> to vector<7x7x128xf32>
    %771 = arith.mulf %767, %770 : vector<7x7x128xf32>
    %772 = arith.addf %765, %771 : vector<7x7x128xf32>
    %c0_855 = arith.constant 0 : index
    %c1_856 = arith.constant 1 : index
    %c1_857 = arith.constant 1 : index
    %c0_858 = arith.constant 0 : index
    %c1_859 = arith.constant 1 : index
    %c512_860 = arith.constant 512 : index
    %773 = vector.load %arg2[%c0_855, %c1_856, %c1_857, %c0_858, %c1_859, %c512_860] : memref<1x2x2x9x9x768xf32, #tpu.memory_space<vmem>>, vector<1x1x1x7x7x128xf32>
    %774 = vector.shape_cast %773 : vector<1x1x1x7x7x128xf32> to vector<7x7x128xf32>
    %c8_861 = arith.constant 8 : index
    %c512_862 = arith.constant 512 : index
    %775 = vector.load %arg3[%c8_861, %c512_862] : memref<25x768xf32, #tpu.memory_space<vmem>>, vector<1x128xf32>
    %776 = vector.shape_cast %775 : vector<1x128xf32> to vector<1x1x128xf32>
    %777 = vector.broadcast %776 : vector<1x1x128xf32> to vector<7x7x128xf32>
    %778 = arith.mulf %774, %777 : vector<7x7x128xf32>
    %779 = arith.addf %772, %778 : vector<7x7x128xf32>
    %c0_863 = arith.constant 0 : index
    %c1_864 = arith.constant 1 : index
    %c0_865 = arith.constant 0 : index
    %c0_866 = arith.constant 0 : index
    %c2_867 = arith.constant 2 : index
    %c512_868 = arith.constant 512 : index
    %780 = vector.load %arg2[%c0_863, %c1_864, %c0_865, %c0_866, %c2_867, %c512_868] : memref<1x2x2x9x9x768xf32, #tpu.memory_space<vmem>>, vector<1x1x1x7x7x128xf32>
    %781 = vector.shape_cast %780 : vector<1x1x1x7x7x128xf32> to vector<7x7x128xf32>
    %c9_869 = arith.constant 9 : index
    %c512_870 = arith.constant 512 : index
    %782 = vector.load %arg3[%c9_869, %c512_870] : memref<25x768xf32, #tpu.memory_space<vmem>>, vector<1x128xf32>
    %783 = vector.shape_cast %782 : vector<1x128xf32> to vector<1x1x128xf32>
    %784 = vector.broadcast %783 : vector<1x1x128xf32> to vector<7x7x128xf32>
    %785 = arith.mulf %781, %784 : vector<7x7x128xf32>
    %786 = arith.addf %779, %785 : vector<7x7x128xf32>
    %c0_871 = arith.constant 0 : index
    %c0_872 = arith.constant 0 : index
    %c0_873 = arith.constant 0 : index
    %c1_874 = arith.constant 1 : index
    %c0_875 = arith.constant 0 : index
    %c512_876 = arith.constant 512 : index
    %787 = vector.load %arg2[%c0_871, %c0_872, %c0_873, %c1_874, %c0_875, %c512_876] : memref<1x2x2x9x9x768xf32, #tpu.memory_space<vmem>>, vector<1x1x1x7x7x128xf32>
    %788 = vector.shape_cast %787 : vector<1x1x1x7x7x128xf32> to vector<7x7x128xf32>
    %c10_877 = arith.constant 10 : index
    %c512_878 = arith.constant 512 : index
    %789 = vector.load %arg3[%c10_877, %c512_878] : memref<25x768xf32, #tpu.memory_space<vmem>>, vector<1x128xf32>
    %790 = vector.shape_cast %789 : vector<1x128xf32> to vector<1x1x128xf32>
    %791 = vector.broadcast %790 : vector<1x1x128xf32> to vector<7x7x128xf32>
    %792 = arith.mulf %788, %791 : vector<7x7x128xf32>
    %793 = arith.addf %786, %792 : vector<7x7x128xf32>
    %c0_879 = arith.constant 0 : index
    %c0_880 = arith.constant 0 : index
    %c1_881 = arith.constant 1 : index
    %c1_882 = arith.constant 1 : index
    %c0_883 = arith.constant 0 : index
    %c512_884 = arith.constant 512 : index
    %794 = vector.load %arg2[%c0_879, %c0_880, %c1_881, %c1_882, %c0_883, %c512_884] : memref<1x2x2x9x9x768xf32, #tpu.memory_space<vmem>>, vector<1x1x1x7x7x128xf32>
    %795 = vector.shape_cast %794 : vector<1x1x1x7x7x128xf32> to vector<7x7x128xf32>
    %c11_885 = arith.constant 11 : index
    %c512_886 = arith.constant 512 : index
    %796 = vector.load %arg3[%c11_885, %c512_886] : memref<25x768xf32, #tpu.memory_space<vmem>>, vector<1x128xf32>
    %797 = vector.shape_cast %796 : vector<1x128xf32> to vector<1x1x128xf32>
    %798 = vector.broadcast %797 : vector<1x1x128xf32> to vector<7x7x128xf32>
    %799 = arith.mulf %795, %798 : vector<7x7x128xf32>
    %800 = arith.addf %793, %799 : vector<7x7x128xf32>
    %c0_887 = arith.constant 0 : index
    %c0_888 = arith.constant 0 : index
    %c0_889 = arith.constant 0 : index
    %c1_890 = arith.constant 1 : index
    %c1_891 = arith.constant 1 : index
    %c512_892 = arith.constant 512 : index
    %801 = vector.load %arg2[%c0_887, %c0_888, %c0_889, %c1_890, %c1_891, %c512_892] : memref<1x2x2x9x9x768xf32, #tpu.memory_space<vmem>>, vector<1x1x1x7x7x128xf32>
    %802 = vector.shape_cast %801 : vector<1x1x1x7x7x128xf32> to vector<7x7x128xf32>
    %c12_893 = arith.constant 12 : index
    %c512_894 = arith.constant 512 : index
    %803 = vector.load %arg3[%c12_893, %c512_894] : memref<25x768xf32, #tpu.memory_space<vmem>>, vector<1x128xf32>
    %804 = vector.shape_cast %803 : vector<1x128xf32> to vector<1x1x128xf32>
    %805 = vector.broadcast %804 : vector<1x1x128xf32> to vector<7x7x128xf32>
    %806 = arith.mulf %802, %805 : vector<7x7x128xf32>
    %807 = arith.addf %800, %806 : vector<7x7x128xf32>
    %c0_895 = arith.constant 0 : index
    %c0_896 = arith.constant 0 : index
    %c1_897 = arith.constant 1 : index
    %c1_898 = arith.constant 1 : index
    %c1_899 = arith.constant 1 : index
    %c512_900 = arith.constant 512 : index
    %808 = vector.load %arg2[%c0_895, %c0_896, %c1_897, %c1_898, %c1_899, %c512_900] : memref<1x2x2x9x9x768xf32, #tpu.memory_space<vmem>>, vector<1x1x1x7x7x128xf32>
    %809 = vector.shape_cast %808 : vector<1x1x1x7x7x128xf32> to vector<7x7x128xf32>
    %c13_901 = arith.constant 13 : index
    %c512_902 = arith.constant 512 : index
    %810 = vector.load %arg3[%c13_901, %c512_902] : memref<25x768xf32, #tpu.memory_space<vmem>>, vector<1x128xf32>
    %811 = vector.shape_cast %810 : vector<1x128xf32> to vector<1x1x128xf32>
    %812 = vector.broadcast %811 : vector<1x1x128xf32> to vector<7x7x128xf32>
    %813 = arith.mulf %809, %812 : vector<7x7x128xf32>
    %814 = arith.addf %807, %813 : vector<7x7x128xf32>
    %c0_903 = arith.constant 0 : index
    %c0_904 = arith.constant 0 : index
    %c0_905 = arith.constant 0 : index
    %c1_906 = arith.constant 1 : index
    %c2_907 = arith.constant 2 : index
    %c512_908 = arith.constant 512 : index
    %815 = vector.load %arg2[%c0_903, %c0_904, %c0_905, %c1_906, %c2_907, %c512_908] : memref<1x2x2x9x9x768xf32, #tpu.memory_space<vmem>>, vector<1x1x1x7x7x128xf32>
    %816 = vector.shape_cast %815 : vector<1x1x1x7x7x128xf32> to vector<7x7x128xf32>
    %c14_909 = arith.constant 14 : index
    %c512_910 = arith.constant 512 : index
    %817 = vector.load %arg3[%c14_909, %c512_910] : memref<25x768xf32, #tpu.memory_space<vmem>>, vector<1x128xf32>
    %818 = vector.shape_cast %817 : vector<1x128xf32> to vector<1x1x128xf32>
    %819 = vector.broadcast %818 : vector<1x1x128xf32> to vector<7x7x128xf32>
    %820 = arith.mulf %816, %819 : vector<7x7x128xf32>
    %821 = arith.addf %814, %820 : vector<7x7x128xf32>
    %c0_911 = arith.constant 0 : index
    %c1_912 = arith.constant 1 : index
    %c0_913 = arith.constant 0 : index
    %c1_914 = arith.constant 1 : index
    %c0_915 = arith.constant 0 : index
    %c512_916 = arith.constant 512 : index
    %822 = vector.load %arg2[%c0_911, %c1_912, %c0_913, %c1_914, %c0_915, %c512_916] : memref<1x2x2x9x9x768xf32, #tpu.memory_space<vmem>>, vector<1x1x1x7x7x128xf32>
    %823 = vector.shape_cast %822 : vector<1x1x1x7x7x128xf32> to vector<7x7x128xf32>
    %c15_917 = arith.constant 15 : index
    %c512_918 = arith.constant 512 : index
    %824 = vector.load %arg3[%c15_917, %c512_918] : memref<25x768xf32, #tpu.memory_space<vmem>>, vector<1x128xf32>
    %825 = vector.shape_cast %824 : vector<1x128xf32> to vector<1x1x128xf32>
    %826 = vector.broadcast %825 : vector<1x1x128xf32> to vector<7x7x128xf32>
    %827 = arith.mulf %823, %826 : vector<7x7x128xf32>
    %828 = arith.addf %821, %827 : vector<7x7x128xf32>
    %c0_919 = arith.constant 0 : index
    %c1_920 = arith.constant 1 : index
    %c1_921 = arith.constant 1 : index
    %c1_922 = arith.constant 1 : index
    %c0_923 = arith.constant 0 : index
    %c512_924 = arith.constant 512 : index
    %829 = vector.load %arg2[%c0_919, %c1_920, %c1_921, %c1_922, %c0_923, %c512_924] : memref<1x2x2x9x9x768xf32, #tpu.memory_space<vmem>>, vector<1x1x1x7x7x128xf32>
    %830 = vector.shape_cast %829 : vector<1x1x1x7x7x128xf32> to vector<7x7x128xf32>
    %c16_925 = arith.constant 16 : index
    %c512_926 = arith.constant 512 : index
    %831 = vector.load %arg3[%c16_925, %c512_926] : memref<25x768xf32, #tpu.memory_space<vmem>>, vector<1x128xf32>
    %832 = vector.shape_cast %831 : vector<1x128xf32> to vector<1x1x128xf32>
    %833 = vector.broadcast %832 : vector<1x1x128xf32> to vector<7x7x128xf32>
    %834 = arith.mulf %830, %833 : vector<7x7x128xf32>
    %835 = arith.addf %828, %834 : vector<7x7x128xf32>
    %c0_927 = arith.constant 0 : index
    %c1_928 = arith.constant 1 : index
    %c0_929 = arith.constant 0 : index
    %c1_930 = arith.constant 1 : index
    %c1_931 = arith.constant 1 : index
    %c512_932 = arith.constant 512 : index
    %836 = vector.load %arg2[%c0_927, %c1_928, %c0_929, %c1_930, %c1_931, %c512_932] : memref<1x2x2x9x9x768xf32, #tpu.memory_space<vmem>>, vector<1x1x1x7x7x128xf32>
    %837 = vector.shape_cast %836 : vector<1x1x1x7x7x128xf32> to vector<7x7x128xf32>
    %c17_933 = arith.constant 17 : index
    %c512_934 = arith.constant 512 : index
    %838 = vector.load %arg3[%c17_933, %c512_934] : memref<25x768xf32, #tpu.memory_space<vmem>>, vector<1x128xf32>
    %839 = vector.shape_cast %838 : vector<1x128xf32> to vector<1x1x128xf32>
    %840 = vector.broadcast %839 : vector<1x1x128xf32> to vector<7x7x128xf32>
    %841 = arith.mulf %837, %840 : vector<7x7x128xf32>
    %842 = arith.addf %835, %841 : vector<7x7x128xf32>
    %c0_935 = arith.constant 0 : index
    %c1_936 = arith.constant 1 : index
    %c1_937 = arith.constant 1 : index
    %c1_938 = arith.constant 1 : index
    %c1_939 = arith.constant 1 : index
    %c512_940 = arith.constant 512 : index
    %843 = vector.load %arg2[%c0_935, %c1_936, %c1_937, %c1_938, %c1_939, %c512_940] : memref<1x2x2x9x9x768xf32, #tpu.memory_space<vmem>>, vector<1x1x1x7x7x128xf32>
    %844 = vector.shape_cast %843 : vector<1x1x1x7x7x128xf32> to vector<7x7x128xf32>
    %c18_941 = arith.constant 18 : index
    %c512_942 = arith.constant 512 : index
    %845 = vector.load %arg3[%c18_941, %c512_942] : memref<25x768xf32, #tpu.memory_space<vmem>>, vector<1x128xf32>
    %846 = vector.shape_cast %845 : vector<1x128xf32> to vector<1x1x128xf32>
    %847 = vector.broadcast %846 : vector<1x1x128xf32> to vector<7x7x128xf32>
    %848 = arith.mulf %844, %847 : vector<7x7x128xf32>
    %849 = arith.addf %842, %848 : vector<7x7x128xf32>
    %c0_943 = arith.constant 0 : index
    %c1_944 = arith.constant 1 : index
    %c0_945 = arith.constant 0 : index
    %c1_946 = arith.constant 1 : index
    %c2_947 = arith.constant 2 : index
    %c512_948 = arith.constant 512 : index
    %850 = vector.load %arg2[%c0_943, %c1_944, %c0_945, %c1_946, %c2_947, %c512_948] : memref<1x2x2x9x9x768xf32, #tpu.memory_space<vmem>>, vector<1x1x1x7x7x128xf32>
    %851 = vector.shape_cast %850 : vector<1x1x1x7x7x128xf32> to vector<7x7x128xf32>
    %c19_949 = arith.constant 19 : index
    %c512_950 = arith.constant 512 : index
    %852 = vector.load %arg3[%c19_949, %c512_950] : memref<25x768xf32, #tpu.memory_space<vmem>>, vector<1x128xf32>
    %853 = vector.shape_cast %852 : vector<1x128xf32> to vector<1x1x128xf32>
    %854 = vector.broadcast %853 : vector<1x1x128xf32> to vector<7x7x128xf32>
    %855 = arith.mulf %851, %854 : vector<7x7x128xf32>
    %856 = arith.addf %849, %855 : vector<7x7x128xf32>
    %c0_951 = arith.constant 0 : index
    %c0_952 = arith.constant 0 : index
    %c0_953 = arith.constant 0 : index
    %c2_954 = arith.constant 2 : index
    %c0_955 = arith.constant 0 : index
    %c512_956 = arith.constant 512 : index
    %857 = vector.load %arg2[%c0_951, %c0_952, %c0_953, %c2_954, %c0_955, %c512_956] : memref<1x2x2x9x9x768xf32, #tpu.memory_space<vmem>>, vector<1x1x1x7x7x128xf32>
    %858 = vector.shape_cast %857 : vector<1x1x1x7x7x128xf32> to vector<7x7x128xf32>
    %c20_957 = arith.constant 20 : index
    %c512_958 = arith.constant 512 : index
    %859 = vector.load %arg3[%c20_957, %c512_958] : memref<25x768xf32, #tpu.memory_space<vmem>>, vector<1x128xf32>
    %860 = vector.shape_cast %859 : vector<1x128xf32> to vector<1x1x128xf32>
    %861 = vector.broadcast %860 : vector<1x1x128xf32> to vector<7x7x128xf32>
    %862 = arith.mulf %858, %861 : vector<7x7x128xf32>
    %863 = arith.addf %856, %862 : vector<7x7x128xf32>
    %c0_959 = arith.constant 0 : index
    %c0_960 = arith.constant 0 : index
    %c1_961 = arith.constant 1 : index
    %c2_962 = arith.constant 2 : index
    %c0_963 = arith.constant 0 : index
    %c512_964 = arith.constant 512 : index
    %864 = vector.load %arg2[%c0_959, %c0_960, %c1_961, %c2_962, %c0_963, %c512_964] : memref<1x2x2x9x9x768xf32, #tpu.memory_space<vmem>>, vector<1x1x1x7x7x128xf32>
    %865 = vector.shape_cast %864 : vector<1x1x1x7x7x128xf32> to vector<7x7x128xf32>
    %c21_965 = arith.constant 21 : index
    %c512_966 = arith.constant 512 : index
    %866 = vector.load %arg3[%c21_965, %c512_966] : memref<25x768xf32, #tpu.memory_space<vmem>>, vector<1x128xf32>
    %867 = vector.shape_cast %866 : vector<1x128xf32> to vector<1x1x128xf32>
    %868 = vector.broadcast %867 : vector<1x1x128xf32> to vector<7x7x128xf32>
    %869 = arith.mulf %865, %868 : vector<7x7x128xf32>
    %870 = arith.addf %863, %869 : vector<7x7x128xf32>
    %c0_967 = arith.constant 0 : index
    %c0_968 = arith.constant 0 : index
    %c0_969 = arith.constant 0 : index
    %c2_970 = arith.constant 2 : index
    %c1_971 = arith.constant 1 : index
    %c512_972 = arith.constant 512 : index
    %871 = vector.load %arg2[%c0_967, %c0_968, %c0_969, %c2_970, %c1_971, %c512_972] : memref<1x2x2x9x9x768xf32, #tpu.memory_space<vmem>>, vector<1x1x1x7x7x128xf32>
    %872 = vector.shape_cast %871 : vector<1x1x1x7x7x128xf32> to vector<7x7x128xf32>
    %c22_973 = arith.constant 22 : index
    %c512_974 = arith.constant 512 : index
    %873 = vector.load %arg3[%c22_973, %c512_974] : memref<25x768xf32, #tpu.memory_space<vmem>>, vector<1x128xf32>
    %874 = vector.shape_cast %873 : vector<1x128xf32> to vector<1x1x128xf32>
    %875 = vector.broadcast %874 : vector<1x1x128xf32> to vector<7x7x128xf32>
    %876 = arith.mulf %872, %875 : vector<7x7x128xf32>
    %877 = arith.addf %870, %876 : vector<7x7x128xf32>
    %c0_975 = arith.constant 0 : index
    %c0_976 = arith.constant 0 : index
    %c1_977 = arith.constant 1 : index
    %c2_978 = arith.constant 2 : index
    %c1_979 = arith.constant 1 : index
    %c512_980 = arith.constant 512 : index
    %878 = vector.load %arg2[%c0_975, %c0_976, %c1_977, %c2_978, %c1_979, %c512_980] : memref<1x2x2x9x9x768xf32, #tpu.memory_space<vmem>>, vector<1x1x1x7x7x128xf32>
    %879 = vector.shape_cast %878 : vector<1x1x1x7x7x128xf32> to vector<7x7x128xf32>
    %c23_981 = arith.constant 23 : index
    %c512_982 = arith.constant 512 : index
    %880 = vector.load %arg3[%c23_981, %c512_982] : memref<25x768xf32, #tpu.memory_space<vmem>>, vector<1x128xf32>
    %881 = vector.shape_cast %880 : vector<1x128xf32> to vector<1x1x128xf32>
    %882 = vector.broadcast %881 : vector<1x1x128xf32> to vector<7x7x128xf32>
    %883 = arith.mulf %879, %882 : vector<7x7x128xf32>
    %884 = arith.addf %877, %883 : vector<7x7x128xf32>
    %c0_983 = arith.constant 0 : index
    %c0_984 = arith.constant 0 : index
    %c0_985 = arith.constant 0 : index
    %c2_986 = arith.constant 2 : index
    %c2_987 = arith.constant 2 : index
    %c512_988 = arith.constant 512 : index
    %885 = vector.load %arg2[%c0_983, %c0_984, %c0_985, %c2_986, %c2_987, %c512_988] : memref<1x2x2x9x9x768xf32, #tpu.memory_space<vmem>>, vector<1x1x1x7x7x128xf32>
    %886 = vector.shape_cast %885 : vector<1x1x1x7x7x128xf32> to vector<7x7x128xf32>
    %c24_989 = arith.constant 24 : index
    %c512_990 = arith.constant 512 : index
    %887 = vector.load %arg3[%c24_989, %c512_990] : memref<25x768xf32, #tpu.memory_space<vmem>>, vector<1x128xf32>
    %888 = vector.shape_cast %887 : vector<1x128xf32> to vector<1x1x128xf32>
    %889 = vector.broadcast %888 : vector<1x1x128xf32> to vector<7x7x128xf32>
    %890 = arith.mulf %886, %889 : vector<7x7x128xf32>
    %891 = arith.addf %884, %890 : vector<7x7x128xf32>
    %c0_991 = arith.constant 0 : index
    %c0_992 = arith.constant 0 : index
    %c0_993 = arith.constant 0 : index
    %c512_994 = arith.constant 512 : index
    %892 = vector.load %arg4[%c0_991, %c0_992, %c0_993, %c512_994] : memref<1x7x7x768xf32, #tpu.memory_space<vmem>>, vector<1x7x7x128xf32>
    %893 = vector.shape_cast %892 : vector<1x7x7x128xf32> to vector<7x7x128xf32>
    %894 = vector.shape_cast %891 : vector<7x7x128xf32> to vector<1x7x7x128xf32>
    tpu.vector_store %arg4[%c0_991, %c0_992, %c0_993, %c512_994], %894 {strides = array<i32>} : memref<1x7x7x768xf32, #tpu.memory_space<vmem>>, vector<1x7x7x128xf32>,
    %cst_995 = arith.constant 0.000000e+00 : f32
    %895 = vector.broadcast %cst_995 : f32 to vector<7x7x128xf32>
    %c0_996 = arith.constant 0 : index
    %c0_997 = arith.constant 0 : index
    %c0_998 = arith.constant 0 : index
    %c0_999 = arith.constant 0 : index
    %c0_1000 = arith.constant 0 : index
    %c640 = arith.constant 640 : index
    %896 = vector.load %arg2[%c0_996, %c0_997, %c0_998, %c0_999, %c0_1000, %c640] : memref<1x2x2x9x9x768xf32, #tpu.memory_space<vmem>>, vector<1x1x1x7x7x128xf32>
    %897 = vector.shape_cast %896 : vector<1x1x1x7x7x128xf32> to vector<7x7x128xf32>
    %c0_1001 = arith.constant 0 : index
    %c640_1002 = arith.constant 640 : index
    %898 = vector.load %arg3[%c0_1001, %c640_1002] : memref<25x768xf32, #tpu.memory_space<vmem>>, vector<1x128xf32>
    %899 = vector.shape_cast %898 : vector<1x128xf32> to vector<1x1x128xf32>
    %900 = vector.broadcast %899 : vector<1x1x128xf32> to vector<7x7x128xf32>
    %901 = arith.mulf %897, %900 : vector<7x7x128xf32>
    %902 = arith.addf %895, %901 : vector<7x7x128xf32>
    %c0_1003 = arith.constant 0 : index
    %c0_1004 = arith.constant 0 : index
    %c1_1005 = arith.constant 1 : index
    %c0_1006 = arith.constant 0 : index
    %c0_1007 = arith.constant 0 : index
    %c640_1008 = arith.constant 640 : index
    %903 = vector.load %arg2[%c0_1003, %c0_1004, %c1_1005, %c0_1006, %c0_1007, %c640_1008] : memref<1x2x2x9x9x768xf32, #tpu.memory_space<vmem>>, vector<1x1x1x7x7x128xf32>
    %904 = vector.shape_cast %903 : vector<1x1x1x7x7x128xf32> to vector<7x7x128xf32>
    %c1_1009 = arith.constant 1 : index
    %c640_1010 = arith.constant 640 : index
    %905 = vector.load %arg3[%c1_1009, %c640_1010] : memref<25x768xf32, #tpu.memory_space<vmem>>, vector<1x128xf32>
    %906 = vector.shape_cast %905 : vector<1x128xf32> to vector<1x1x128xf32>
    %907 = vector.broadcast %906 : vector<1x1x128xf32> to vector<7x7x128xf32>
    %908 = arith.mulf %904, %907 : vector<7x7x128xf32>
    %909 = arith.addf %902, %908 : vector<7x7x128xf32>
    %c0_1011 = arith.constant 0 : index
    %c0_1012 = arith.constant 0 : index
    %c0_1013 = arith.constant 0 : index
    %c0_1014 = arith.constant 0 : index
    %c1_1015 = arith.constant 1 : index
    %c640_1016 = arith.constant 640 : index
    %910 = vector.load %arg2[%c0_1011, %c0_1012, %c0_1013, %c0_1014, %c1_1015, %c640_1016] : memref<1x2x2x9x9x768xf32, #tpu.memory_space<vmem>>, vector<1x1x1x7x7x128xf32>
    %911 = vector.shape_cast %910 : vector<1x1x1x7x7x128xf32> to vector<7x7x128xf32>
    %c2_1017 = arith.constant 2 : index
    %c640_1018 = arith.constant 640 : index
    %912 = vector.load %arg3[%c2_1017, %c640_1018] : memref<25x768xf32, #tpu.memory_space<vmem>>, vector<1x128xf32>
    %913 = vector.shape_cast %912 : vector<1x128xf32> to vector<1x1x128xf32>
    %914 = vector.broadcast %913 : vector<1x1x128xf32> to vector<7x7x128xf32>
    %915 = arith.mulf %911, %914 : vector<7x7x128xf32>
    %916 = arith.addf %909, %915 : vector<7x7x128xf32>
    %c0_1019 = arith.constant 0 : index
    %c0_1020 = arith.constant 0 : index
    %c1_1021 = arith.constant 1 : index
    %c0_1022 = arith.constant 0 : index
    %c1_1023 = arith.constant 1 : index
    %c640_1024 = arith.constant 640 : index
    %917 = vector.load %arg2[%c0_1019, %c0_1020, %c1_1021, %c0_1022, %c1_1023, %c640_1024] : memref<1x2x2x9x9x768xf32, #tpu.memory_space<vmem>>, vector<1x1x1x7x7x128xf32>
    %918 = vector.shape_cast %917 : vector<1x1x1x7x7x128xf32> to vector<7x7x128xf32>
    %c3_1025 = arith.constant 3 : index
    %c640_1026 = arith.constant 640 : index
    %919 = vector.load %arg3[%c3_1025, %c640_1026] : memref<25x768xf32, #tpu.memory_space<vmem>>, vector<1x128xf32>
    %920 = vector.shape_cast %919 : vector<1x128xf32> to vector<1x1x128xf32>
    %921 = vector.broadcast %920 : vector<1x1x128xf32> to vector<7x7x128xf32>
    %922 = arith.mulf %918, %921 : vector<7x7x128xf32>
    %923 = arith.addf %916, %922 : vector<7x7x128xf32>
    %c0_1027 = arith.constant 0 : index
    %c0_1028 = arith.constant 0 : index
    %c0_1029 = arith.constant 0 : index
    %c0_1030 = arith.constant 0 : index
    %c2_1031 = arith.constant 2 : index
    %c640_1032 = arith.constant 640 : index
    %924 = vector.load %arg2[%c0_1027, %c0_1028, %c0_1029, %c0_1030, %c2_1031, %c640_1032] : memref<1x2x2x9x9x768xf32, #tpu.memory_space<vmem>>, vector<1x1x1x7x7x128xf32>
    %925 = vector.shape_cast %924 : vector<1x1x1x7x7x128xf32> to vector<7x7x128xf32>
    %c4_1033 = arith.constant 4 : index
    %c640_1034 = arith.constant 640 : index
    %926 = vector.load %arg3[%c4_1033, %c640_1034] : memref<25x768xf32, #tpu.memory_space<vmem>>, vector<1x128xf32>
    %927 = vector.shape_cast %926 : vector<1x128xf32> to vector<1x1x128xf32>
    %928 = vector.broadcast %927 : vector<1x1x128xf32> to vector<7x7x128xf32>
    %929 = arith.mulf %925, %928 : vector<7x7x128xf32>
    %930 = arith.addf %923, %929 : vector<7x7x128xf32>
    %c0_1035 = arith.constant 0 : index
    %c1_1036 = arith.constant 1 : index
    %c0_1037 = arith.constant 0 : index
    %c0_1038 = arith.constant 0 : index
    %c0_1039 = arith.constant 0 : index
    %c640_1040 = arith.constant 640 : index
    %931 = vector.load %arg2[%c0_1035, %c1_1036, %c0_1037, %c0_1038, %c0_1039, %c640_1040] : memref<1x2x2x9x9x768xf32, #tpu.memory_space<vmem>>, vector<1x1x1x7x7x128xf32>
    %932 = vector.shape_cast %931 : vector<1x1x1x7x7x128xf32> to vector<7x7x128xf32>
    %c5_1041 = arith.constant 5 : index
    %c640_1042 = arith.constant 640 : index
    %933 = vector.load %arg3[%c5_1041, %c640_1042] : memref<25x768xf32, #tpu.memory_space<vmem>>, vector<1x128xf32>
    %934 = vector.shape_cast %933 : vector<1x128xf32> to vector<1x1x128xf32>
    %935 = vector.broadcast %934 : vector<1x1x128xf32> to vector<7x7x128xf32>
    %936 = arith.mulf %932, %935 : vector<7x7x128xf32>
    %937 = arith.addf %930, %936 : vector<7x7x128xf32>
    %c0_1043 = arith.constant 0 : index
    %c1_1044 = arith.constant 1 : index
    %c1_1045 = arith.constant 1 : index
    %c0_1046 = arith.constant 0 : index
    %c0_1047 = arith.constant 0 : index
    %c640_1048 = arith.constant 640 : index
    %938 = vector.load %arg2[%c0_1043, %c1_1044, %c1_1045, %c0_1046, %c0_1047, %c640_1048] : memref<1x2x2x9x9x768xf32, #tpu.memory_space<vmem>>, vector<1x1x1x7x7x128xf32>
    %939 = vector.shape_cast %938 : vector<1x1x1x7x7x128xf32> to vector<7x7x128xf32>
    %c6_1049 = arith.constant 6 : index
    %c640_1050 = arith.constant 640 : index
    %940 = vector.load %arg3[%c6_1049, %c640_1050] : memref<25x768xf32, #tpu.memory_space<vmem>>, vector<1x128xf32>
    %941 = vector.shape_cast %940 : vector<1x128xf32> to vector<1x1x128xf32>
    %942 = vector.broadcast %941 : vector<1x1x128xf32> to vector<7x7x128xf32>
    %943 = arith.mulf %939, %942 : vector<7x7x128xf32>
    %944 = arith.addf %937, %943 : vector<7x7x128xf32>
    %c0_1051 = arith.constant 0 : index
    %c1_1052 = arith.constant 1 : index
    %c0_1053 = arith.constant 0 : index
    %c0_1054 = arith.constant 0 : index
    %c1_1055 = arith.constant 1 : index
    %c640_1056 = arith.constant 640 : index
    %945 = vector.load %arg2[%c0_1051, %c1_1052, %c0_1053, %c0_1054, %c1_1055, %c640_1056] : memref<1x2x2x9x9x768xf32, #tpu.memory_space<vmem>>, vector<1x1x1x7x7x128xf32>
    %946 = vector.shape_cast %945 : vector<1x1x1x7x7x128xf32> to vector<7x7x128xf32>
    %c7_1057 = arith.constant 7 : index
    %c640_1058 = arith.constant 640 : index
    %947 = vector.load %arg3[%c7_1057, %c640_1058] : memref<25x768xf32, #tpu.memory_space<vmem>>, vector<1x128xf32>
    %948 = vector.shape_cast %947 : vector<1x128xf32> to vector<1x1x128xf32>
    %949 = vector.broadcast %948 : vector<1x1x128xf32> to vector<7x7x128xf32>
    %950 = arith.mulf %946, %949 : vector<7x7x128xf32>
    %951 = arith.addf %944, %950 : vector<7x7x128xf32>
    %c0_1059 = arith.constant 0 : index
    %c1_1060 = arith.constant 1 : index
    %c1_1061 = arith.constant 1 : index
    %c0_1062 = arith.constant 0 : index
    %c1_1063 = arith.constant 1 : index
    %c640_1064 = arith.constant 640 : index
    %952 = vector.load %arg2[%c0_1059, %c1_1060, %c1_1061, %c0_1062, %c1_1063, %c640_1064] : memref<1x2x2x9x9x768xf32, #tpu.memory_space<vmem>>, vector<1x1x1x7x7x128xf32>
    %953 = vector.shape_cast %952 : vector<1x1x1x7x7x128xf32> to vector<7x7x128xf32>
    %c8_1065 = arith.constant 8 : index
    %c640_1066 = arith.constant 640 : index
    %954 = vector.load %arg3[%c8_1065, %c640_1066] : memref<25x768xf32, #tpu.memory_space<vmem>>, vector<1x128xf32>
    %955 = vector.shape_cast %954 : vector<1x128xf32> to vector<1x1x128xf32>
    %956 = vector.broadcast %955 : vector<1x1x128xf32> to vector<7x7x128xf32>
    %957 = arith.mulf %953, %956 : vector<7x7x128xf32>
    %958 = arith.addf %951, %957 : vector<7x7x128xf32>
    %c0_1067 = arith.constant 0 : index
    %c1_1068 = arith.constant 1 : index
    %c0_1069 = arith.constant 0 : index
    %c0_1070 = arith.constant 0 : index
    %c2_1071 = arith.constant 2 : index
    %c640_1072 = arith.constant 640 : index
    %959 = vector.load %arg2[%c0_1067, %c1_1068, %c0_1069, %c0_1070, %c2_1071, %c640_1072] : memref<1x2x2x9x9x768xf32, #tpu.memory_space<vmem>>, vector<1x1x1x7x7x128xf32>
    %960 = vector.shape_cast %959 : vector<1x1x1x7x7x128xf32> to vector<7x7x128xf32>
    %c9_1073 = arith.constant 9 : index
    %c640_1074 = arith.constant 640 : index
    %961 = vector.load %arg3[%c9_1073, %c640_1074] : memref<25x768xf32, #tpu.memory_space<vmem>>, vector<1x128xf32>
    %962 = vector.shape_cast %961 : vector<1x128xf32> to vector<1x1x128xf32>
    %963 = vector.broadcast %962 : vector<1x1x128xf32> to vector<7x7x128xf32>
    %964 = arith.mulf %960, %963 : vector<7x7x128xf32>
    %965 = arith.addf %958, %964 : vector<7x7x128xf32>
    %c0_1075 = arith.constant 0 : index
    %c0_1076 = arith.constant 0 : index
    %c0_1077 = arith.constant 0 : index
    %c1_1078 = arith.constant 1 : index
    %c0_1079 = arith.constant 0 : index
    %c640_1080 = arith.constant 640 : index
    %966 = vector.load %arg2[%c0_1075, %c0_1076, %c0_1077, %c1_1078, %c0_1079, %c640_1080] : memref<1x2x2x9x9x768xf32, #tpu.memory_space<vmem>>, vector<1x1x1x7x7x128xf32>
    %967 = vector.shape_cast %966 : vector<1x1x1x7x7x128xf32> to vector<7x7x128xf32>
    %c10_1081 = arith.constant 10 : index
    %c640_1082 = arith.constant 640 : index
    %968 = vector.load %arg3[%c10_1081, %c640_1082] : memref<25x768xf32, #tpu.memory_space<vmem>>, vector<1x128xf32>
    %969 = vector.shape_cast %968 : vector<1x128xf32> to vector<1x1x128xf32>
    %970 = vector.broadcast %969 : vector<1x1x128xf32> to vector<7x7x128xf32>
    %971 = arith.mulf %967, %970 : vector<7x7x128xf32>
    %972 = arith.addf %965, %971 : vector<7x7x128xf32>
    %c0_1083 = arith.constant 0 : index
    %c0_1084 = arith.constant 0 : index
    %c1_1085 = arith.constant 1 : index
    %c1_1086 = arith.constant 1 : index
    %c0_1087 = arith.constant 0 : index
    %c640_1088 = arith.constant 640 : index
    %973 = vector.load %arg2[%c0_1083, %c0_1084, %c1_1085, %c1_1086, %c0_1087, %c640_1088] : memref<1x2x2x9x9x768xf32, #tpu.memory_space<vmem>>, vector<1x1x1x7x7x128xf32>
    %974 = vector.shape_cast %973 : vector<1x1x1x7x7x128xf32> to vector<7x7x128xf32>
    %c11_1089 = arith.constant 11 : index
    %c640_1090 = arith.constant 640 : index
    %975 = vector.load %arg3[%c11_1089, %c640_1090] : memref<25x768xf32, #tpu.memory_space<vmem>>, vector<1x128xf32>
    %976 = vector.shape_cast %975 : vector<1x128xf32> to vector<1x1x128xf32>
    %977 = vector.broadcast %976 : vector<1x1x128xf32> to vector<7x7x128xf32>
    %978 = arith.mulf %974, %977 : vector<7x7x128xf32>
    %979 = arith.addf %972, %978 : vector<7x7x128xf32>
    %c0_1091 = arith.constant 0 : index
    %c0_1092 = arith.constant 0 : index
    %c0_1093 = arith.constant 0 : index
    %c1_1094 = arith.constant 1 : index
    %c1_1095 = arith.constant 1 : index
    %c640_1096 = arith.constant 640 : index
    %980 = vector.load %arg2[%c0_1091, %c0_1092, %c0_1093, %c1_1094, %c1_1095, %c640_1096] : memref<1x2x2x9x9x768xf32, #tpu.memory_space<vmem>>, vector<1x1x1x7x7x128xf32>
    %981 = vector.shape_cast %980 : vector<1x1x1x7x7x128xf32> to vector<7x7x128xf32>
    %c12_1097 = arith.constant 12 : index
    %c640_1098 = arith.constant 640 : index
    %982 = vector.load %arg3[%c12_1097, %c640_1098] : memref<25x768xf32, #tpu.memory_space<vmem>>, vector<1x128xf32>
    %983 = vector.shape_cast %982 : vector<1x128xf32> to vector<1x1x128xf32>
    %984 = vector.broadcast %983 : vector<1x1x128xf32> to vector<7x7x128xf32>
    %985 = arith.mulf %981, %984 : vector<7x7x128xf32>
    %986 = arith.addf %979, %985 : vector<7x7x128xf32>
    %c0_1099 = arith.constant 0 : index
    %c0_1100 = arith.constant 0 : index
    %c1_1101 = arith.constant 1 : index
    %c1_1102 = arith.constant 1 : index
    %c1_1103 = arith.constant 1 : index
    %c640_1104 = arith.constant 640 : index
    %987 = vector.load %arg2[%c0_1099, %c0_1100, %c1_1101, %c1_1102, %c1_1103, %c640_1104] : memref<1x2x2x9x9x768xf32, #tpu.memory_space<vmem>>, vector<1x1x1x7x7x128xf32>
    %988 = vector.shape_cast %987 : vector<1x1x1x7x7x128xf32> to vector<7x7x128xf32>
    %c13_1105 = arith.constant 13 : index
    %c640_1106 = arith.constant 640 : index
    %989 = vector.load %arg3[%c13_1105, %c640_1106] : memref<25x768xf32, #tpu.memory_space<vmem>>, vector<1x128xf32>
    %990 = vector.shape_cast %989 : vector<1x128xf32> to vector<1x1x128xf32>
    %991 = vector.broadcast %990 : vector<1x1x128xf32> to vector<7x7x128xf32>
    %992 = arith.mulf %988, %991 : vector<7x7x128xf32>
    %993 = arith.addf %986, %992 : vector<7x7x128xf32>
    %c0_1107 = arith.constant 0 : index
    %c0_1108 = arith.constant 0 : index
    %c0_1109 = arith.constant 0 : index
    %c1_1110 = arith.constant 1 : index
    %c2_1111 = arith.constant 2 : index
    %c640_1112 = arith.constant 640 : index
    %994 = vector.load %arg2[%c0_1107, %c0_1108, %c0_1109, %c1_1110, %c2_1111, %c640_1112] : memref<1x2x2x9x9x768xf32, #tpu.memory_space<vmem>>, vector<1x1x1x7x7x128xf32>
    %995 = vector.shape_cast %994 : vector<1x1x1x7x7x128xf32> to vector<7x7x128xf32>
    %c14_1113 = arith.constant 14 : index
    %c640_1114 = arith.constant 640 : index
    %996 = vector.load %arg3[%c14_1113, %c640_1114] : memref<25x768xf32, #tpu.memory_space<vmem>>, vector<1x128xf32>
    %997 = vector.shape_cast %996 : vector<1x128xf32> to vector<1x1x128xf32>
    %998 = vector.broadcast %997 : vector<1x1x128xf32> to vector<7x7x128xf32>
    %999 = arith.mulf %995, %998 : vector<7x7x128xf32>
    %1000 = arith.addf %993, %999 : vector<7x7x128xf32>
    %c0_1115 = arith.constant 0 : index
    %c1_1116 = arith.constant 1 : index
    %c0_1117 = arith.constant 0 : index
    %c1_1118 = arith.constant 1 : index
    %c0_1119 = arith.constant 0 : index
    %c640_1120 = arith.constant 640 : index
    %1001 = vector.load %arg2[%c0_1115, %c1_1116, %c0_1117, %c1_1118, %c0_1119, %c640_1120] : memref<1x2x2x9x9x768xf32, #tpu.memory_space<vmem>>, vector<1x1x1x7x7x128xf32>
    %1002 = vector.shape_cast %1001 : vector<1x1x1x7x7x128xf32> to vector<7x7x128xf32>
    %c15_1121 = arith.constant 15 : index
    %c640_1122 = arith.constant 640 : index
    %1003 = vector.load %arg3[%c15_1121, %c640_1122] : memref<25x768xf32, #tpu.memory_space<vmem>>, vector<1x128xf32>
    %1004 = vector.shape_cast %1003 : vector<1x128xf32> to vector<1x1x128xf32>
    %1005 = vector.broadcast %1004 : vector<1x1x128xf32> to vector<7x7x128xf32>
    %1006 = arith.mulf %1002, %1005 : vector<7x7x128xf32>
    %1007 = arith.addf %1000, %1006 : vector<7x7x128xf32>
    %c0_1123 = arith.constant 0 : index
    %c1_1124 = arith.constant 1 : index
    %c1_1125 = arith.constant 1 : index
    %c1_1126 = arith.constant 1 : index
    %c0_1127 = arith.constant 0 : index
    %c640_1128 = arith.constant 640 : index
    %1008 = vector.load %arg2[%c0_1123, %c1_1124, %c1_1125, %c1_1126, %c0_1127, %c640_1128] : memref<1x2x2x9x9x768xf32, #tpu.memory_space<vmem>>, vector<1x1x1x7x7x128xf32>
    %1009 = vector.shape_cast %1008 : vector<1x1x1x7x7x128xf32> to vector<7x7x128xf32>
    %c16_1129 = arith.constant 16 : index
    %c640_1130 = arith.constant 640 : index
    %1010 = vector.load %arg3[%c16_1129, %c640_1130] : memref<25x768xf32, #tpu.memory_space<vmem>>, vector<1x128xf32>
    %1011 = vector.shape_cast %1010 : vector<1x128xf32> to vector<1x1x128xf32>
    %1012 = vector.broadcast %1011 : vector<1x1x128xf32> to vector<7x7x128xf32>
    %1013 = arith.mulf %1009, %1012 : vector<7x7x128xf32>
    %1014 = arith.addf %1007, %1013 : vector<7x7x128xf32>
    %c0_1131 = arith.constant 0 : index
    %c1_1132 = arith.constant 1 : index
    %c0_1133 = arith.constant 0 : index
    %c1_1134 = arith.constant 1 : index
    %c1_1135 = arith.constant 1 : index
    %c640_1136 = arith.constant 640 : index
    %1015 = vector.load %arg2[%c0_1131, %c1_1132, %c0_1133, %c1_1134, %c1_1135, %c640_1136] : memref<1x2x2x9x9x768xf32, #tpu.memory_space<vmem>>, vector<1x1x1x7x7x128xf32>
    %1016 = vector.shape_cast %1015 : vector<1x1x1x7x7x128xf32> to vector<7x7x128xf32>
    %c17_1137 = arith.constant 17 : index
    %c640_1138 = arith.constant 640 : index
    %1017 = vector.load %arg3[%c17_1137, %c640_1138] : memref<25x768xf32, #tpu.memory_space<vmem>>, vector<1x128xf32>
    %1018 = vector.shape_cast %1017 : vector<1x128xf32> to vector<1x1x128xf32>
    %1019 = vector.broadcast %1018 : vector<1x1x128xf32> to vector<7x7x128xf32>
    %1020 = arith.mulf %1016, %1019 : vector<7x7x128xf32>
    %1021 = arith.addf %1014, %1020 : vector<7x7x128xf32>
    %c0_1139 = arith.constant 0 : index
    %c1_1140 = arith.constant 1 : index
    %c1_1141 = arith.constant 1 : index
    %c1_1142 = arith.constant 1 : index
    %c1_1143 = arith.constant 1 : index
    %c640_1144 = arith.constant 640 : index
    %1022 = vector.load %arg2[%c0_1139, %c1_1140, %c1_1141, %c1_1142, %c1_1143, %c640_1144] : memref<1x2x2x9x9x768xf32, #tpu.memory_space<vmem>>, vector<1x1x1x7x7x128xf32>
    %1023 = vector.shape_cast %1022 : vector<1x1x1x7x7x128xf32> to vector<7x7x128xf32>
    %c18_1145 = arith.constant 18 : index
    %c640_1146 = arith.constant 640 : index
    %1024 = vector.load %arg3[%c18_1145, %c640_1146] : memref<25x768xf32, #tpu.memory_space<vmem>>, vector<1x128xf32>
    %1025 = vector.shape_cast %1024 : vector<1x128xf32> to vector<1x1x128xf32>
    %1026 = vector.broadcast %1025 : vector<1x1x128xf32> to vector<7x7x128xf32>
    %1027 = arith.mulf %1023, %1026 : vector<7x7x128xf32>
    %1028 = arith.addf %1021, %1027 : vector<7x7x128xf32>
    %c0_1147 = arith.constant 0 : index
    %c1_1148 = arith.constant 1 : index
    %c0_1149 = arith.constant 0 : index
    %c1_1150 = arith.constant 1 : index
    %c2_1151 = arith.constant 2 : index
    %c640_1152 = arith.constant 640 : index
    %1029 = vector.load %arg2[%c0_1147, %c1_1148, %c0_1149, %c1_1150, %c2_1151, %c640_1152] : memref<1x2x2x9x9x768xf32, #tpu.memory_space<vmem>>, vector<1x1x1x7x7x128xf32>
    %1030 = vector.shape_cast %1029 : vector<1x1x1x7x7x128xf32> to vector<7x7x128xf32>
    %c19_1153 = arith.constant 19 : index
    %c640_1154 = arith.constant 640 : index
    %1031 = vector.load %arg3[%c19_1153, %c640_1154] : memref<25x768xf32, #tpu.memory_space<vmem>>, vector<1x128xf32>
    %1032 = vector.shape_cast %1031 : vector<1x128xf32> to vector<1x1x128xf32>
    %1033 = vector.broadcast %1032 : vector<1x1x128xf32> to vector<7x7x128xf32>
    %1034 = arith.mulf %1030, %1033 : vector<7x7x128xf32>
    %1035 = arith.addf %1028, %1034 : vector<7x7x128xf32>
    %c0_1155 = arith.constant 0 : index
    %c0_1156 = arith.constant 0 : index
    %c0_1157 = arith.constant 0 : index
    %c2_1158 = arith.constant 2 : index
    %c0_1159 = arith.constant 0 : index
    %c640_1160 = arith.constant 640 : index
    %1036 = vector.load %arg2[%c0_1155, %c0_1156, %c0_1157, %c2_1158, %c0_1159, %c640_1160] : memref<1x2x2x9x9x768xf32, #tpu.memory_space<vmem>>, vector<1x1x1x7x7x128xf32>
    %1037 = vector.shape_cast %1036 : vector<1x1x1x7x7x128xf32> to vector<7x7x128xf32>
    %c20_1161 = arith.constant 20 : index
    %c640_1162 = arith.constant 640 : index
    %1038 = vector.load %arg3[%c20_1161, %c640_1162] : memref<25x768xf32, #tpu.memory_space<vmem>>, vector<1x128xf32>
    %1039 = vector.shape_cast %1038 : vector<1x128xf32> to vector<1x1x128xf32>
    %1040 = vector.broadcast %1039 : vector<1x1x128xf32> to vector<7x7x128xf32>
    %1041 = arith.mulf %1037, %1040 : vector<7x7x128xf32>
    %1042 = arith.addf %1035, %1041 : vector<7x7x128xf32>
    %c0_1163 = arith.constant 0 : index
    %c0_1164 = arith.constant 0 : index
    %c1_1165 = arith.constant 1 : index
    %c2_1166 = arith.constant 2 : index
    %c0_1167 = arith.constant 0 : index
    %c640_1168 = arith.constant 640 : index
    %1043 = vector.load %arg2[%c0_1163, %c0_1164, %c1_1165, %c2_1166, %c0_1167, %c640_1168] : memref<1x2x2x9x9x768xf32, #tpu.memory_space<vmem>>, vector<1x1x1x7x7x128xf32>
    %1044 = vector.shape_cast %1043 : vector<1x1x1x7x7x128xf32> to vector<7x7x128xf32>
    %c21_1169 = arith.constant 21 : index
    %c640_1170 = arith.constant 640 : index
    %1045 = vector.load %arg3[%c21_1169, %c640_1170] : memref<25x768xf32, #tpu.memory_space<vmem>>, vector<1x128xf32>
    %1046 = vector.shape_cast %1045 : vector<1x128xf32> to vector<1x1x128xf32>
    %1047 = vector.broadcast %1046 : vector<1x1x128xf32> to vector<7x7x128xf32>
    %1048 = arith.mulf %1044, %1047 : vector<7x7x128xf32>
    %1049 = arith.addf %1042, %1048 : vector<7x7x128xf32>
    %c0_1171 = arith.constant 0 : index
    %c0_1172 = arith.constant 0 : index
    %c0_1173 = arith.constant 0 : index
    %c2_1174 = arith.constant 2 : index
    %c1_1175 = arith.constant 1 : index
    %c640_1176 = arith.constant 640 : index
    %1050 = vector.load %arg2[%c0_1171, %c0_1172, %c0_1173, %c2_1174, %c1_1175, %c640_1176] : memref<1x2x2x9x9x768xf32, #tpu.memory_space<vmem>>, vector<1x1x1x7x7x128xf32>
    %1051 = vector.shape_cast %1050 : vector<1x1x1x7x7x128xf32> to vector<7x7x128xf32>
    %c22_1177 = arith.constant 22 : index
    %c640_1178 = arith.constant 640 : index
    %1052 = vector.load %arg3[%c22_1177, %c640_1178] : memref<25x768xf32, #tpu.memory_space<vmem>>, vector<1x128xf32>
    %1053 = vector.shape_cast %1052 : vector<1x128xf32> to vector<1x1x128xf32>
    %1054 = vector.broadcast %1053 : vector<1x1x128xf32> to vector<7x7x128xf32>
    %1055 = arith.mulf %1051, %1054 : vector<7x7x128xf32>
    %1056 = arith.addf %1049, %1055 : vector<7x7x128xf32>
    %c0_1179 = arith.constant 0 : index
    %c0_1180 = arith.constant 0 : index
    %c1_1181 = arith.constant 1 : index
    %c2_1182 = arith.constant 2 : index
    %c1_1183 = arith.constant 1 : index
    %c640_1184 = arith.constant 640 : index
    %1057 = vector.load %arg2[%c0_1179, %c0_1180, %c1_1181, %c2_1182, %c1_1183, %c640_1184] : memref<1x2x2x9x9x768xf32, #tpu.memory_space<vmem>>, vector<1x1x1x7x7x128xf32>
    %1058 = vector.shape_cast %1057 : vector<1x1x1x7x7x128xf32> to vector<7x7x128xf32>
    %c23_1185 = arith.constant 23 : index
    %c640_1186 = arith.constant 640 : index
    %1059 = vector.load %arg3[%c23_1185, %c640_1186] : memref<25x768xf32, #tpu.memory_space<vmem>>, vector<1x128xf32>
    %1060 = vector.shape_cast %1059 : vector<1x128xf32> to vector<1x1x128xf32>
    %1061 = vector.broadcast %1060 : vector<1x1x128xf32> to vector<7x7x128xf32>
    %1062 = arith.mulf %1058, %1061 : vector<7x7x128xf32>
    %1063 = arith.addf %1056, %1062 : vector<7x7x128xf32>
    %c0_1187 = arith.constant 0 : index
    %c0_1188 = arith.constant 0 : index
    %c0_1189 = arith.constant 0 : index
    %c2_1190 = arith.constant 2 : index
    %c2_1191 = arith.constant 2 : index
    %c640_1192 = arith.constant 640 : index
    %1064 = vector.load %arg2[%c0_1187, %c0_1188, %c0_1189, %c2_1190, %c2_1191, %c640_1192] : memref<1x2x2x9x9x768xf32, #tpu.memory_space<vmem>>, vector<1x1x1x7x7x128xf32>
    %1065 = vector.shape_cast %1064 : vector<1x1x1x7x7x128xf32> to vector<7x7x128xf32>
    %c24_1193 = arith.constant 24 : index
    %c640_1194 = arith.constant 640 : index
    %1066 = vector.load %arg3[%c24_1193, %c640_1194] : memref<25x768xf32, #tpu.memory_space<vmem>>, vector<1x128xf32>
    %1067 = vector.shape_cast %1066 : vector<1x128xf32> to vector<1x1x128xf32>
    %1068 = vector.broadcast %1067 : vector<1x1x128xf32> to vector<7x7x128xf32>
    %1069 = arith.mulf %1065, %1068 : vector<7x7x128xf32>
    %1070 = arith.addf %1063, %1069 : vector<7x7x128xf32>
    %c0_1195 = arith.constant 0 : index
    %c0_1196 = arith.constant 0 : index
    %c0_1197 = arith.constant 0 : index
    %c640_1198 = arith.constant 640 : index
    %1071 = vector.load %arg4[%c0_1195, %c0_1196, %c0_1197, %c640_1198] : memref<1x7x7x768xf32, #tpu.memory_space<vmem>>, vector<1x7x7x128xf32>
    %1072 = vector.shape_cast %1071 : vector<1x7x7x128xf32> to vector<7x7x128xf32>
    %1073 = vector.shape_cast %1070 : vector<7x7x128xf32> to vector<1x7x7x128xf32>
    tpu.vector_store %arg4[%c0_1195, %c0_1196, %c0_1197, %c640_1198], %1073 {strides = array<i32>} : memref<1x7x7x768xf32, #tpu.memory_space<vmem>>, vector<1x7x7x128xf32>,
    return
  }
  func.func @transform_0(%arg0: i32, %arg1: i32) -> (i32, i32, i32, i32, i32, i32) {
    %c0_i32 = arith.constant 0 : i32
    %c0_i32_0 = arith.constant 0 : i32
    %c0_i32_1 = arith.constant 0 : i32
    %c0_i32_2 = arith.constant 0 : i32
    %c0_i32_3 = arith.constant 0 : i32
    return %arg1, %c0_i32, %c0_i32_0, %c0_i32_1, %c0_i32_2, %arg0 : i32, i32, i32, i32, i32, i32
  }
  func.func @transform_1(%arg0: i32, %arg1: i32) -> (i32, i32) {
    %c0_i32 = arith.constant 0 : i32
    %c0_i32_0 = arith.constant 0 : i32
    return %c0_i32, %arg0 : i32, i32
  }
  func.func @transform_2(%arg0: i32, %arg1: i32) -> (i32, i32, i32, i32) {
    %c0_i32 = arith.constant 0 : i32
    %c0_i32_0 = arith.constant 0 : i32
    %c0_i32_1 = arith.constant 0 : i32
    return %arg1, %c0_i32, %c0_i32_0, %arg0 : i32, i32, i32, i32
  }
}

</mosaic_0001>

<bundles_post_ra>
// kernel: tpu_custom_call.1
= control target key start
LH: loop header
LB: loop body
LE: loop exit
PB: predicated region body
PF: predicated region fallthrough
CT: control target
= control target key end

     0   :  { %vm185_vm0 = vcmask 1045504   ;;  %s11980_s0 = inlined_call_operand.vmem [shape: f32[1,2,2,9,9,768], index: 0, kind: input, shape index: {}]   ;;  %s11981_s1 = inlined_call_operand.vmem [shape: f32[25,768], index: 1, kind: input, shape index: {}]   ;;  %s11982_s2 = inlined_call_operand.vmem [shape: f32[1,7,7,768], index: 2, kind: output, shape index: {}]  }
   0x1   :  { %v11_v0 = vld [vmem:[%s11980_s0] sm:$0x7f] }
   0x2   :  { %v12_v1 = vld [vmem:[%s11980_s0 + $0x60] sm:$0x7f] }
   0x3   :  { %v13_v2 = vld [vmem:[%s11980_s0 + $0xc0] sm:$0x7f] }
   0x4   :  { %v14_v3 = vld [vmem:[%s11980_s0 + $0x120] sm:$0x7f] }
   0x5   :  { %v15_v4 = vld [vmem:[%s11980_s0 + $0x180] sm:$0x7f] }
   0x6   :  { %v16_v5 = vld [vmem:[%s11980_s0 + $0x1e0] sm:$0x7f] }
   0x7   :  { %v17_v6 = vld [vmem:[%s11980_s0 + $0x240] sm:$0x7f] }
   0x8   :  { %v18_v7 = vld [vmem:[%s11981_s1] ss:$0 sm:$0xff]  ;;  %v41_v22 = vld [vmem:[%s11981_s1 + $0x1] ss:$0 sm:$0xff]  ;;  %v63_v35 = vld [vmem:[%s11981_s1 + $0x2] ss:$0 sm:$0xff] }
   0x9   :  { %v6307_v8 = vld [vmem:[%s11980_s0 + $0x360] sm:$0x7f]  ;;  %v19_v12 = vmul.f32 %v18_v7, %v11_v0  ;;  %v20_v13 = vmul.f32 %v18_v7, %v12_v1  ;;  %v21_v14 = vmul.f32 %v18_v7, %v13_v2  ;;  %v22_v15 = vmul.f32 %v18_v7, %v14_v3 }
   0xa   :  { %v6308_v9 = vld [vmem:[%s11980_s0 + $0x3c0] sm:$0x7f]  ;;  %v23_v19 = vmul.f32 %v18_v7, %v15_v4  ;;  %v24_v20 = vmul.f32 %v18_v7, %v16_v5  ;;  %v25_v21 = vmul.f32 %v18_v7, %v17_v6  ;;  %v42_v23 = vmul.f32 %v6307_v8, %v41_v22 }
   0xb   :  { %v6309_v10 = vld [vmem:[%s11980_s0 + $0x420] sm:$0x7f]  ;;  %v43_v24 = vmul.f32 %v6308_v9, %v41_v22 }
   0xc   :  { %v6310_v11 = vld [vmem:[%s11980_s0 + $0x480] sm:$0x7f]  ;;  %v44_v25 = vmul.f32 %v6309_v10, %v41_v22  ;;  %v49_v36 = vadd.f32 %v42_v23, %v19_v12  ;;  %v147_v23 = vld [vmem:[%s11980_s0 + $0xf0] sm:$0x1] }
   0xd   :  { %v6311_v16 = vld [vmem:[%s11980_s0 + $0x4e0] sm:$0x7f]  ;;  %v45_v26 = vmul.f32 %v6310_v11, %v41_v22  ;;  %v50_v37 = vadd.f32 %v43_v24, %v20_v13 }
   0xe   :  { %v6312_v17 = vld [vmem:[%s11980_s0 + $0x540] sm:$0x7f]  ;;  %v46_v30 = vmul.f32 %v6311_v16, %v41_v22  ;;  %v51_v38 = vadd.f32 %v44_v25, %v21_v14 }
   0xf   :  { %v6313_v18 = vld [vmem:[%s11980_s0 + $0x5a0] sm:$0x7f]  ;;  %v47_v31 = vmul.f32 %v6312_v17, %v41_v22  ;;  %v52_v39 = vadd.f32 %v45_v26, %v22_v15  ;;  %v143_v15 = vld [vmem:[%s11980_s0 + $0x30] sm:$0x1] }
  0x10   :  { %v56_v27 = vld [vmem:[%s11980_s0] sm:$0xfe]  ;;  %v48_v32 = vmul.f32 %v6313_v18, %v41_v22  ;;  %v53_v43 = vadd.f32 %v46_v30, %v23_v19 }
  0x11   :  { %v57_v28 = vld [vmem:[%s11980_s0 + $0x60] sm:$0xfe]  ;;  %v54_v44 = vadd.f32 %v47_v31, %v24_v20  ;;  %v64_v46 = vmul.f32 %v63_v35, %v56_v27 }
  0x12   :  { %v58_v29 = vld [vmem:[%s11980_s0 + $0xc0] sm:$0xfe]  ;;  %v55_v45 = vadd.f32 %v48_v32, %v25_v21  ;;  %v65_v47 = vmul.f32 %v63_v35, %v57_v28  ;;  %v145_v21 = vld [vmem:[%s11980_s0 + $0x90] sm:$0x1] }
  0x13   :  { %v59_v33 = vld [vmem:[%s11980_s0 + $0x120] sm:$0xfe]  ;;  %v66_v48 = vmul.f32 %v63_v35, %v58_v29  ;;  %v78_v55 = vrot.slane %v64_v46, 1  ;;  %v155_v46 = vld [vmem:[%s11980_s0 + $0x270] sm:$0x1] }
  0x14   :  { %v60_v34 = vld [vmem:[%s11980_s0 + $0x180] sm:$0xfe]  ;;  %v67_v49 = vmul.f32 %v63_v35, %v59_v33  ;;  %v79_v59 = vrot.slane %v65_v47, 1  ;;  %v149_v33 = vld [vmem:[%s11980_s0 + $0x150] sm:$0x1] }
  0x15   :  { %v61_v40 = vld [vmem:[%s11980_s0 + $0x1e0] sm:$0xfe]  ;;  %v68_v50 = vmul.f32 %v63_v35, %v60_v34  ;;  %v80_v60 = vrot.slane %v66_v48, 1  ;;  %v92_v2 = vadd.f32 %v78_v55, %v49_v36 }
  0x16   :  { %v62_v41 = vld [vmem:[%s11980_s0 + $0x240] sm:$0xfe]  ;;  %v69_v53 = vmul.f32 %v63_v35, %v61_v40  ;;  %v81_v61 = vrot.slane %v67_v49, 1  ;;  %v93_v6 = vadd.f32 %v79_v59, %v50_v37 }
  0x17   :  { %v6314_v42 = vld [vmem:[%s11980_s0 + $0x360] sm:$0xfe]  ;;  %v70_v54 = vmul.f32 %v63_v35, %v62_v41  ;;  %v82_v62 = vrot.slane %v68_v50, 1  ;;  %v94_v7 = vadd.f32 %v80_v60, %v51_v38  ;;  %v151_v38 = vld [vmem:[%s11980_s0 + $0x1b0] sm:$0x1] }
  0x18   :  { %v6315_v51 = vld [vmem:[%s11980_s0 + $0x3c0] sm:$0xfe]  ;;  %v83_v0 = vrot.slane %v69_v53, 1  ;;  %v95_v8 = vadd.f32 %v81_v61, %v52_v39 }
  0x19   :  { %v106_v52 = vld [vmem:[%s11981_s1 + $0x3] ss:$0 sm:$0xff]  ;;  %v84_v1 = vrot.slane %v70_v54, 1  ;;  %v96_v9 = vadd.f32 %v82_v62, %v53_v43  ;;  %v156_v28 = vld [vmem:[%s11981_s1 + $0x4] ss:$0 sm:$0xff] }
  0x1a   :  { %v6316_v56 = vld [vmem:[%s11980_s0 + $0x420] sm:$0xfe]  ;;  %v107_v58 = vmul.f32 %v6314_v42, %v106_v52  ;;  %v108_v5 = vmul.f32 %v6315_v51, %v106_v52  ;;  %v97_v10 = vadd.f32 %v83_v0, %v54_v44  ;;  %v153_v44 = vld [vmem:[%s11980_s0 + $0x210] sm:$0x1]  ;;  %v158_v47 = vmul.f32 %v156_v28, %v143_v15 }
  0x1b   :  { %v6317_v57 = vld [vmem:[%s11980_s0 + $0x480] sm:$0xfe]  ;;  %v98_v11 = vadd.f32 %v84_v1, %v55_v45  ;;  %v109_v12 = vmul.f32 %v6316_v56, %v106_v52  ;;  %v160_v49 = vmul.f32 %v156_v28, %v145_v21  ;;  %v162_v51 = vmul.f32 %v156_v28, %v147_v23 }
  0x1c   :  { %v6318_v63 = vld [vmem:[%s11980_s0 + $0x4e0] sm:$0xfe]  ;;  %v110_v13 = vmul.f32 %v6317_v57, %v106_v52  ;;  %v121_v19 = vrot.slane %v107_v58, 1  ;;  %v122_v24 = vrot.slane %v108_v5, 1  ;;  %v164_v53 = vmul.f32 %v156_v28, %v149_v33 }
  0x1d   :  { %v6319_v3 = vld [vmem:[%s11980_s0 + $0x540] sm:$0xfe]  ;;  %v111_v16 = vmul.f32 %v6318_v63, %v106_v52  ;;  %v123_v25 = vrot.slane %v109_v12, 1  ;;  %v166_v55 = vmul.f32 %v156_v28, %v151_v38  ;;  %v168_v57 = vmul.f32 %v156_v28, %v153_v44 }
  0x1e   :  { %v6320_v4 = vld [vmem:[%s11980_s0 + $0x5a0] sm:$0xfe]  ;;  %v112_v17 = vmul.f32 %v6319_v3, %v106_v52  ;;  %v124_v26 = vrot.slane %v110_v13, 1  ;;  %v135_v32 = vadd.f32 %v121_v19, %v92_v2  ;;  %v136_v34 = vadd.f32 %v122_v24, %v93_v6 }
  0x1f   :  { %v142_v14 = vld [vmem:[%s11980_s0] sm:$0xfc]  ;;  %v113_v18 = vmul.f32 %v6320_v4, %v106_v52  ;;  %v125_v29 = vrot.slane %v111_v16, 1  ;;  %v137_v35 = vadd.f32 %v123_v25, %v94_v7  ;;  %v170_v59 = vmul.f32 %v156_v28, %v155_v46 }
  0x20   :  { %v144_v20 = vld [vmem:[%s11980_s0 + $0x60] sm:$0xfc]  ;;  %v126_v30 = vrot.slane %v112_v17, 1  ;;  %v138_v36 = vadd.f32 %v124_v26, %v95_v8  ;;  %v157_v40 = vmul.f32 %v156_v28, %v142_v14  ;;  %v187_v61 = vrot.slane %v158_v47, 2 }
  0x21   :  { %v146_v22 = vld [vmem:[%s11980_s0 + $0xc0] sm:$0xfc]  ;;  %v127_v31 = vrot.slane %v113_v18, 1  ;;  %v139_v41 = vadd.f32 %v125_v29, %v96_v9  ;;  %v159_v48 = vmul.f32 %v156_v28, %v144_v20  ;;  %v190_v63 = vrot.slane %v160_v49, 2 }
  0x22   :  { %v148_v27 = vld [vmem:[%s11980_s0 + $0x120] sm:$0xfc]  ;;  %v140_v42 = vadd.f32 %v126_v30, %v97_v10  ;;  %v161_v50 = vmul.f32 %v156_v28, %v146_v22  ;;  %v186_v60 = vrot.slane %v157_v40, 2  ;;  %v193_v1 = vrot.slane %v162_v51, 2 }
  0x23   :  { %v150_v37 = vld [vmem:[%s11980_s0 + $0x180] sm:$0xfc]  ;;  %v141_v43 = vadd.f32 %v127_v31, %v98_v11  ;;  %v163_v52 = vmul.f32 %v156_v28, %v148_v27  ;;  %v189_v62 = vrot.slane %v159_v48, 2  ;;  %v196_v3 = vrot.slane %v164_v53, 2 }
  0x24   :  { %v152_v39 = vld [vmem:[%s11980_s0 + $0x1e0] sm:$0xfc]  ;;  %v165_v54 = vmul.f32 %v156_v28, %v150_v37  ;;  %v192_v0 = vrot.slane %v161_v50, 2  ;;  %v188_v4 = vsel %vm185_vm0, %v186_v60, %v187_v61  ;;  %v199_v7 = vrot.slane %v166_v55, 2 }
  0x25   :  { %v154_v45 = vld [vmem:[%s11980_s0 + $0x240] sm:$0xfc]  ;;  %v167_v56 = vmul.f32 %v156_v28, %v152_v39  ;;  %v195_v2 = vrot.slane %v163_v52, 2  ;;  %v191_v5 = vsel %vm185_vm0, %v189_v62, %v190_v63  ;;  %v202_v12 = vrot.slane %v168_v57, 2 }
  0x26   :  { %v169_v58 = vmul.f32 %v156_v28, %v154_v45  ;;  %v198_v6 = vrot.slane %v165_v54, 2  ;;  %v6321_v8 = vld [vmem:[%s11980_s0 + $0x6c0] sm:$0x7f]  ;;  %v194_v9 = vsel %vm185_vm0, %v192_v0, %v193_v1  ;;  %v205_v17 = vrot.slane %v170_v59, 2  ;;  %v274_v53 = vld [vmem:[%s11981_s1 + $0x7] ss:$0 sm:$0xff] }
  0x27   :  { %v197_v10 = vsel %vm185_vm0, %v195_v2, %v196_v3  ;;  %v201_v11 = vrot.slane %v167_v56, 2  ;;  %v6322_v13 = vld [vmem:[%s11980_s0 + $0x720] sm:$0x7f]  ;;  %v214_v18 = vadd.f32 %v188_v4, %v135_v32  ;;  %v215_v22 = vadd.f32 %v191_v5, %v136_v34 }
  0x28   :  { %v229_v14 = vld [vmem:[%s11981_s1 + $0x5] ss:$0 sm:$0xff]  ;;  %v200_v15 = vsel %vm185_vm0, %v198_v6, %v199_v7  ;;  %v204_v16 = vrot.slane %v169_v58, 2  ;;  %v216_v23 = vadd.f32 %v194_v9, %v137_v35  ;;  %v217_v24 = vadd.f32 %v197_v10, %v138_v36  ;;  %v252_v33 = vld [vmem:[%s11981_s1 + $0x6] ss:$0 sm:$0xff] }
  0x29   :  { %v6323_v19 = vld [vmem:[%s11980_s0 + $0x780] sm:$0x7f]  ;;  %v203_v21 = vsel %vm185_vm0, %v201_v11, %v202_v12  ;;  %v218_v29 = vadd.f32 %v200_v15, %v139_v41  ;;  %v230_v31 = vmul.f32 %v6321_v8, %v229_v14  ;;  %v231_v35 = vmul.f32 %v6322_v13, %v229_v14  ;;  %v317_v13 = vld [vmem:[%s11981_s1 + $0x30] ss:$0 sm:$0xff] }
  0x2a   :  { %v6324_v20 = vld [vmem:[%s11980_s0 + $0x7e0] sm:$0x7f]  ;;  %v206_v28 = vsel %vm185_vm0, %v204_v16, %v205_v17  ;;  %v219_v30 = vadd.f32 %v203_v21, %v140_v42  ;;  %v232_v36 = vmul.f32 %v6323_v19, %v229_v14 }
  0x2b   :  { %v6325_v25 = vld [vmem:[%s11980_s0 + $0x840] sm:$0x7f]  ;;  %v220_v34 = vadd.f32 %v206_v28, %v141_v43  ;;  %v233_v37 = vmul.f32 %v6324_v20, %v229_v14  ;;  %v237_v44 = vadd.f32 %v230_v31, %v214_v18  ;;  %v238_v47 = vadd.f32 %v231_v35, %v215_v22 }
  0x2c   :  { %v6326_v26 = vld [vmem:[%s11980_s0 + $0x8a0] sm:$0x7f]  ;;  %v234_v40 = vmul.f32 %v6325_v25, %v229_v14  ;;  %v239_v48 = vadd.f32 %v232_v36, %v216_v23 }
  0x2d   :  { %v6327_v27 = vld [vmem:[%s11980_s0 + $0x900] sm:$0x7f]  ;;  %v235_v41 = vmul.f32 %v6326_v26, %v229_v14  ;;  %v240_v49 = vadd.f32 %v233_v37, %v217_v24 }
  0x2e   :  { %v6328_v32 = vld [vmem:[%s11980_s0 + $0xa20] sm:$0x7f]  ;;  %v236_v42 = vmul.f32 %v6327_v27, %v229_v14  ;;  %v241_v54 = vadd.f32 %v234_v40, %v218_v29 }
  0x2f   :  { %v6329_v38 = vld [vmem:[%s11980_s0 + $0xa80] sm:$0x7f]  ;;  %v253_v51 = vmul.f32 %v6328_v32, %v252_v33  ;;  %v242_v55 = vadd.f32 %v235_v41, %v219_v30  ;;  %v367_v41 = vld [vmem:[%s11981_s1 + $0x31] ss:$0 sm:$0xff] }
  0x30   :  { %v6330_v39 = vld [vmem:[%s11980_s0 + $0xae0] sm:$0x7f]  ;;  %v243_v56 = vadd.f32 %v236_v42, %v220_v34  ;;  %v254_v57 = vmul.f32 %v6329_v38, %v252_v33 }
  0x31   :  { %v6331_v45 = vld [vmem:[%s11980_s0 + $0xb40] sm:$0x7f]  ;;  %v255_v58 = vmul.f32 %v6330_v39, %v252_v33  ;;  %v260_v2 = vadd.f32 %v253_v51, %v237_v44 }
  0x32   :  { %v6332_v43 = vld [vmem:[%s11980_s0 + $0xba0] sm:$0x7f]  ;;  %v256_v59 = vmul.f32 %v6331_v45, %v252_v33  ;;  %v261_v3 = vadd.f32 %v254_v57, %v238_v47 }
  0x33   :  { %v6333_v46 = vld [vmem:[%s11980_s0 + $0xc00] sm:$0x7f]  ;;  %v257_v60 = vmul.f32 %v6332_v43, %v252_v33  ;;  %v262_v8 = vadd.f32 %v255_v58, %v239_v48 }
  0x34   :  { %v6334_v50 = vld [vmem:[%s11980_s0 + $0xc60] sm:$0x7f]  ;;  %v258_v61 = vmul.f32 %v6333_v46, %v252_v33  ;;  %v263_v9 = vadd.f32 %v256_v59, %v240_v49  ;;  %v6350_v46 = vld [vmem:[%s11980_s0 + $0x6f0] sm:$0x1] }
  0x35   :  { %v6335_v52 = vld [vmem:[%s11980_s0 + $0x6c0] sm:$0xfe]  ;;  %v259_v1 = vmul.f32 %v6334_v50, %v252_v33  ;;  %v264_v10 = vadd.f32 %v257_v60, %v241_v54  ;;  %v6354_v54 = vld [vmem:[%s11980_s0 + $0x7b0] sm:$0x1] }
  0x36   :  { %v6336_v62 = vld [vmem:[%s11980_s0 + $0x720] sm:$0xfe]  ;;  %v275_v7 = vmul.f32 %v6335_v52, %v274_v53  ;;  %v265_v11 = vadd.f32 %v258_v61, %v242_v55  ;;  %v6352_v52 = vld [vmem:[%s11980_s0 + $0x750] sm:$0x1] }
  0x37   :  { %v6337_v63 = vld [vmem:[%s11980_s0 + $0x780] sm:$0xfe]  ;;  %v266_v14 = vadd.f32 %v259_v1, %v243_v56  ;;  %v276_v15 = vmul.f32 %v6336_v62, %v274_v53 }
  0x38   :  { %v6338_v0 = vld [vmem:[%s11980_s0 + $0x7e0] sm:$0xfe]  ;;  %v277_v16 = vmul.f32 %v6337_v63, %v274_v53  ;;  %v289_v23 = vrot.slane %v275_v7, 1  ;;  %v369_v7 = vmul.f32 %v6350_v46, %v367_v41 }
  0x39   :  { %v6339_v4 = vld [vmem:[%s11980_s0 + $0x840] sm:$0xfe]  ;;  %v278_v17 = vmul.f32 %v6338_v0, %v274_v53  ;;  %v290_v26 = vrot.slane %v276_v15, 1  ;;  %v6356_v0 = vld [vmem:[%s11980_s0 + $0x810] sm:$0x1] }
  0x3a   :  { %v6340_v5 = vld [vmem:[%s11980_s0 + $0x8a0] sm:$0xfe]  ;;  %v279_v20 = vmul.f32 %v6339_v4, %v274_v53  ;;  %v291_v27 = vrot.slane %v277_v16, 1  ;;  %v303_v34 = vadd.f32 %v289_v23, %v260_v2  ;;  %v371_v16 = vmul.f32 %v6352_v52, %v367_v41 }
  0x3b   :  { %v6341_v6 = vld [vmem:[%s11980_s0 + $0x900] sm:$0xfe]  ;;  %v280_v21 = vmul.f32 %v6340_v5, %v274_v53  ;;  %v292_v28 = vrot.slane %v278_v17, 1  ;;  %v304_v36 = vadd.f32 %v290_v26, %v261_v3  ;;  %v6358_v5 = vld [vmem:[%s11980_s0 + $0x870] sm:$0x1] }
  0x3c   :  { %v6342_v12 = vld [vmem:[%s11980_s0 + $0xa20] sm:$0xfe]  ;;  %v281_v22 = vmul.f32 %v6341_v6, %v274_v53  ;;  %v293_v31 = vrot.slane %v279_v20, 1  ;;  %v305_v37 = vadd.f32 %v291_v27, %v262_v8  ;;  %v375_v20 = vmul.f32 %v6356_v0, %v367_v41  ;;  %v462_v0 = vld [vmem:[%s11981_s1 + $0x33] ss:$0 sm:$0xff] }
  0x3d   :  { %v6343_v18 = vld [vmem:[%s11980_s0 + $0xa80] sm:$0xfe]  ;;  %v318_v30 = vmul.f32 %v6342_v12, %v317_v13  ;;  %v294_v32 = vrot.slane %v280_v21, 1  ;;  %v306_v38 = vadd.f32 %v292_v28, %v263_v9  ;;  %v6360_v12 = vld [vmem:[%s11980_s0 + $0x8d0] sm:$0x1]  ;;  %v397_v28 = vrot.slane %v369_v7, 2 }
  0x3e   :  { %v6344_v19 = vld [vmem:[%s11980_s0 + $0xae0] sm:$0xfe]  ;;  %v295_v33 = vrot.slane %v281_v22, 1  ;;  %v319_v39 = vmul.f32 %v6343_v18, %v317_v13  ;;  %v307_v42 = vadd.f32 %v293_v31, %v264_v10  ;;  %v373_v18 = vmul.f32 %v6354_v54, %v367_v41 }
  0x3f   :  { %v6345_v24 = vld [vmem:[%s11980_s0 + $0xb40] sm:$0xfe]  ;;  %v308_v44 = vadd.f32 %v294_v32, %v265_v11  ;;  %v320_v43 = vmul.f32 %v6344_v19, %v317_v13  ;;  %v332_v55 = vrot.slane %v318_v30, 1  ;;  %v377_v22 = vmul.f32 %v6358_v5, %v367_v41 }
  0x40   :  { %v6346_v25 = vld [vmem:[%s11980_s0 + $0xba0] sm:$0xfe]  ;;  %v309_v45 = vadd.f32 %v295_v33, %v266_v14  ;;  %v321_v47 = vmul.f32 %v6345_v24, %v317_v13  ;;  %v333_v56 = vrot.slane %v319_v39, 1  ;;  %v6362_v14 = vld [vmem:[%s11980_s0 + $0x930] sm:$0x1]  ;;  %v379_v24 = vmul.f32 %v6360_v12, %v367_v41 }
  0x41   :  { %v6347_v29 = vld [vmem:[%s11980_s0 + $0xc00] sm:$0xfe]  ;;  %v322_v48 = vmul.f32 %v6346_v25, %v317_v13  ;;  %v334_v57 = vrot.slane %v320_v43, 1  ;;  %v346_v1 = vadd.f32 %v332_v55, %v303_v34  ;;  %v381_v26 = vmul.f32 %v6362_v14, %v367_v41  ;;  %v439_v43 = vld [vmem:[%s11981_s1 + $0x32] ss:$0 sm:$0xff] }
  0x42   :  { %v6348_v35 = vld [vmem:[%s11980_s0 + $0xc60] sm:$0xfe]  ;;  %v323_v49 = vmul.f32 %v6347_v29, %v317_v13  ;;  %v335_v60 = vrot.slane %v321_v47, 1  ;;  %v347_v2 = vadd.f32 %v333_v56, %v304_v36  ;;  %v400_v30 = vrot.slane %v371_v16, 2 }
  0x43   :  { %v6349_v40 = vld [vmem:[%s11980_s0 + $0x6c0] sm:$0xfc]  ;;  %v324_v50 = vmul.f32 %v6348_v35, %v317_v13  ;;  %v336_v61 = vrot.slane %v322_v48, 1  ;;  %v348_v3 = vadd.f32 %v334_v57, %v305_v37  ;;  %v403_v32 = vrot.slane %v373_v18, 2 }
  0x44   :  { %v6351_v51 = vld [vmem:[%s11980_s0 + $0x720] sm:$0xfc]  ;;  %v368_v59 = vmul.f32 %v6349_v40, %v367_v41  ;;  %v337_v62 = vrot.slane %v323_v49, 1  ;;  %v349_v8 = vadd.f32 %v335_v60, %v306_v38  ;;  %v406_v34 = vrot.slane %v375_v20, 2  ;;  %v484_v20 = vld [vmem:[%s11981_s1 + $0x34] ss:$0 sm:$0xff] }
  0x45   :  { %v6353_v53 = vld [vmem:[%s11980_s0 + $0x780] sm:$0xfc]  ;;  %v338_v63 = vrot.slane %v324_v50, 1  ;;  %v350_v9 = vadd.f32 %v336_v61, %v307_v42  ;;  %v370_v15 = vmul.f32 %v6351_v51, %v367_v41  ;;  %v409_v38 = vrot.slane %v377_v22, 2 }
  0x46   :  { %v6355_v58 = vld [vmem:[%s11980_s0 + $0x7e0] sm:$0xfc]  ;;  %v351_v10 = vadd.f32 %v337_v62, %v308_v44  ;;  %v372_v17 = vmul.f32 %v6353_v53, %v367_v41  ;;  %v396_v27 = vrot.slane %v368_v59, 2  ;;  %v412_v44 = vrot.slane %v379_v24, 2 }
  0x47   :  { %v6357_v4 = vld [vmem:[%s11980_s0 + $0x840] sm:$0xfc]  ;;  %v352_v11 = vadd.f32 %v338_v63, %v309_v45  ;;  %v374_v19 = vmul.f32 %v6355_v58, %v367_v41  ;;  %v399_v29 = vrot.slane %v370_v15, 2  ;;  %v415_v48 = vrot.slane %v381_v26, 2 }
  0x48   :  { %v6359_v6 = vld [vmem:[%s11980_s0 + $0x8a0] sm:$0xfc]  ;;  %v376_v21 = vmul.f32 %v6357_v4, %v367_v41  ;;  %v402_v31 = vrot.slane %v372_v17, 2  ;;  %v398_v35 = vsel %vm185_vm0, %v396_v27, %v397_v28 }
  0x49   :  { %v6361_v13 = vld [vmem:[%s11980_s0 + $0x900] sm:$0xfc]  ;;  %v378_v23 = vmul.f32 %v6359_v6, %v367_v41  ;;  %v405_v33 = vrot.slane %v374_v19, 2  ;;  %v401_v36 = vsel %vm185_vm0, %v399_v29, %v400_v30  ;;  %v424_v49 = vadd.f32 %v398_v35, %v346_v1 }
  0x4a   :  { %v380_v25 = vmul.f32 %v6361_v13, %v367_v41  ;;  %v408_v37 = vrot.slane %v376_v21, 2  ;;  %v6363_v39 = vld [vmem:[%s11980_s0 + $0x60] sm:$0x7f]  ;;  %v404_v40 = vsel %vm185_vm0, %v402_v31, %v403_v32  ;;  %v425_v53 = vadd.f32 %v401_v36, %v347_v2 }
  0x4b   :  { %v407_v41 = vsel %vm185_vm0, %v405_v33, %v406_v34  ;;  %v411_v42 = vrot.slane %v378_v23, 2  ;;  %v6364_v45 = vld [vmem:[%s11980_s0 + $0xc0] sm:$0x7f]  ;;  %v426_v54 = vadd.f32 %v404_v40, %v348_v3  ;;  %v440_v62 = vmul.f32 %v6363_v39, %v439_v43 }
  0x4c   :  { %v410_v46 = vsel %vm185_vm0, %v408_v37, %v409_v38  ;;  %v414_v47 = vrot.slane %v380_v25, 2  ;;  %v6365_v50 = vld [vmem:[%s11980_s0 + $0x120] sm:$0x7f]  ;;  %v427_v55 = vadd.f32 %v407_v41, %v349_v8  ;;  %v441_v2 = vmul.f32 %v6364_v45, %v439_v43  ;;  %v527_v45 = vld [vmem:[%s11981_s1 + $0x35] ss:$0 sm:$0xff] }
  0x4d   :  { %v6366_v51 = vld [vmem:[%s11980_s0 + $0x180] sm:$0x7f]  ;;  %v413_v52 = vsel %vm185_vm0, %v411_v42, %v412_v44  ;;  %v428_v60 = vadd.f32 %v410_v46, %v350_v9  ;;  %v442_v3 = vmul.f32 %v6365_v50, %v439_v43 }
  0x4e   :  { %v6367_v56 = vld [vmem:[%s11980_s0 + $0x1e0] sm:$0x7f]  ;;  %v416_v59 = vsel %vm185_vm0, %v414_v47, %v415_v48  ;;  %v429_v61 = vadd.f32 %v413_v52, %v351_v10  ;;  %v443_v4 = vmul.f32 %v6366_v51, %v439_v43  ;;  %v447_v10 = vadd.f32 %v440_v62, %v424_v49 }
  0x4f   :  { %v6368_v57 = vld [vmem:[%s11980_s0 + $0x240] sm:$0x7f]  ;;  %v430_v1 = vadd.f32 %v416_v59, %v352_v11  ;;  %v444_v7 = vmul.f32 %v6367_v56, %v439_v43  ;;  %v448_v14 = vadd.f32 %v441_v2, %v425_v53  ;;  %v449_v15 = vadd.f32 %v442_v3, %v426_v54 }
  0x50   :  { %v6369_v58 = vld [vmem:[%s11980_s0 + $0x2a0] sm:$0x7f]  ;;  %v445_v8 = vmul.f32 %v6368_v57, %v439_v43  ;;  %v450_v16 = vadd.f32 %v443_v4, %v427_v55 }
  0x51   :  { %v6370_v63 = vld [vmem:[%s11980_s0 + $0x3c0] sm:$0x7f]  ;;  %v446_v9 = vmul.f32 %v6369_v58, %v439_v43  ;;  %v451_v21 = vadd.f32 %v444_v7, %v428_v60 }
  0x52   :  { %v6371_v5 = vld [vmem:[%s11980_s0 + $0x420] sm:$0x7f]  ;;  %v463_v18 = vmul.f32 %v6370_v63, %v462_v0  ;;  %v452_v22 = vadd.f32 %v445_v8, %v429_v61  ;;  %v577_v8 = vld [vmem:[%s11981_s1 + $0x36] ss:$0 sm:$0xff] }
  0x53   :  { %v6372_v6 = vld [vmem:[%s11980_s0 + $0x480] sm:$0x7f]  ;;  %v453_v23 = vadd.f32 %v446_v9, %v430_v1  ;;  %v464_v24 = vmul.f32 %v6371_v5, %v462_v0 }
  0x54   :  { %v6373_v12 = vld [vmem:[%s11980_s0 + $0x4e0] sm:$0x7f]  ;;  %v465_v25 = vmul.f32 %v6372_v6, %v462_v0  ;;  %v470_v33 = vadd.f32 %v463_v18, %v447_v10 }
  0x55   :  { %v6374_v11 = vld [vmem:[%s11980_s0 + $0x540] sm:$0x7f]  ;;  %v466_v26 = vmul.f32 %v6373_v12, %v462_v0  ;;  %v471_v34 = vadd.f32 %v464_v24, %v448_v14 }
  0x56   :  { %v6375_v13 = vld [vmem:[%s11980_s0 + $0x5a0] sm:$0x7f]  ;;  %v467_v27 = vmul.f32 %v6374_v11, %v462_v0  ;;  %v472_v39 = vadd.f32 %v465_v25, %v449_v15 }
  0x57   :  { %v6376_v17 = vld [vmem:[%s11980_s0 + $0x600] sm:$0x7f]  ;;  %v468_v28 = vmul.f32 %v6375_v13, %v462_v0  ;;  %v473_v40 = vadd.f32 %v466_v26, %v450_v16  ;;  %v6392_v13 = vld [vmem:[%s11980_s0 + $0x90] sm:$0x1] }
  0x58   :  { %v6377_v19 = vld [vmem:[%s11980_s0 + $0x60] sm:$0xfe]  ;;  %v469_v32 = vmul.f32 %v6376_v17, %v462_v0  ;;  %v474_v41 = vadd.f32 %v467_v27, %v451_v21  ;;  %v6396_v21 = vld [vmem:[%s11980_s0 + $0x150] sm:$0x1] }
  0x59   :  { %v6378_v29 = vld [vmem:[%s11980_s0 + $0xc0] sm:$0xfe]  ;;  %v485_v38 = vmul.f32 %v6377_v19, %v484_v20  ;;  %v475_v42 = vadd.f32 %v468_v28, %v452_v22  ;;  %v6394_v19 = vld [vmem:[%s11980_s0 + $0xf0] sm:$0x1] }
  0x5a   :  { %v6379_v30 = vld [vmem:[%s11980_s0 + $0x120] sm:$0xfe]  ;;  %v476_v43 = vadd.f32 %v469_v32, %v453_v23  ;;  %v486_v46 = vmul.f32 %v6378_v29, %v484_v20 }
  0x5b   :  { %v6380_v31 = vld [vmem:[%s11980_s0 + $0x180] sm:$0xfe]  ;;  %v487_v47 = vmul.f32 %v6379_v30, %v484_v20  ;;  %v499_v54 = vrot.slane %v485_v38, 1  ;;  %v579_v38 = vmul.f32 %v6392_v13, %v577_v8 }
  0x5c   :  { %v6381_v35 = vld [vmem:[%s11980_s0 + $0x1e0] sm:$0xfe]  ;;  %v488_v48 = vmul.f32 %v6380_v31, %v484_v20  ;;  %v500_v57 = vrot.slane %v486_v46, 1  ;;  %v6398_v31 = vld [vmem:[%s11980_s0 + $0x1b0] sm:$0x1] }
  0x5d   :  { %v6382_v36 = vld [vmem:[%s11980_s0 + $0x240] sm:$0xfe]  ;;  %v489_v51 = vmul.f32 %v6381_v35, %v484_v20  ;;  %v501_v58 = vrot.slane %v487_v47, 1  ;;  %v513_v1 = vadd.f32 %v499_v54, %v470_v33  ;;  %v581_v47 = vmul.f32 %v6394_v19, %v577_v8 }
  0x5e   :  { %v6383_v37 = vld [vmem:[%s11980_s0 + $0x2a0] sm:$0xfe]  ;;  %v490_v52 = vmul.f32 %v6382_v36, %v484_v20  ;;  %v502_v59 = vrot.slane %v488_v48, 1  ;;  %v514_v3 = vadd.f32 %v500_v57, %v471_v34  ;;  %v6400_v36 = vld [vmem:[%s11980_s0 + $0x210] sm:$0x1] }
  0x5f   :  { %v6384_v44 = vld [vmem:[%s11980_s0 + $0x3c0] sm:$0xfe]  ;;  %v491_v53 = vmul.f32 %v6383_v37, %v484_v20  ;;  %v503_v62 = vrot.slane %v489_v51, 1  ;;  %v515_v4 = vadd.f32 %v501_v58, %v472_v39  ;;  %v585_v51 = vmul.f32 %v6398_v31, %v577_v8  ;;  %v672_v31 = vld [vmem:[%s11981_s1 + $0x60] ss:$0 sm:$0xff] }
  0x60   :  { %v6385_v49 = vld [vmem:[%s11980_s0 + $0x420] sm:$0xfe]  ;;  %v528_v61 = vmul.f32 %v6384_v44, %v527_v45  ;;  %v504_v63 = vrot.slane %v490_v52, 1  ;;  %v516_v5 = vadd.f32 %v502_v59, %v473_v40  ;;  %v6402_v44 = vld [vmem:[%s11980_s0 + $0x270] sm:$0x1]  ;;  %v607_v59 = vrot.slane %v579_v38, 2 }
  0x61   :  { %v6386_v50 = vld [vmem:[%s11980_s0 + $0x480] sm:$0xfe]  ;;  %v505_v0 = vrot.slane %v491_v53, 1  ;;  %v529_v6 = vmul.f32 %v6385_v49, %v527_v45  ;;  %v517_v9 = vadd.f32 %v503_v62, %v474_v41  ;;  %v583_v49 = vmul.f32 %v6396_v21, %v577_v8 }
  0x62   :  { %v6387_v55 = vld [vmem:[%s11980_s0 + $0x4e0] sm:$0xfe]  ;;  %v518_v10 = vadd.f32 %v504_v63, %v475_v42  ;;  %v530_v11 = vmul.f32 %v6386_v50, %v527_v45  ;;  %v542_v22 = vrot.slane %v528_v61, 1  ;;  %v587_v53 = vmul.f32 %v6400_v36, %v577_v8 }
  0x63   :  { %v6388_v56 = vld [vmem:[%s11980_s0 + $0x540] sm:$0xfe]  ;;  %v519_v12 = vadd.f32 %v505_v0, %v476_v43  ;;  %v531_v14 = vmul.f32 %v6387_v55, %v527_v45  ;;  %v543_v23 = vrot.slane %v529_v6, 1  ;;  %v6404_v43 = vld [vmem:[%s11980_s0 + $0x2d0] sm:$0x1]  ;;  %v589_v55 = vmul.f32 %v6402_v44, %v577_v8 }
  0x64   :  { %v6389_v60 = vld [vmem:[%s11980_s0 + $0x5a0] sm:$0xfe]  ;;  %v532_v15 = vmul.f32 %v6388_v56, %v527_v45  ;;  %v544_v24 = vrot.slane %v530_v11, 1  ;;  %v556_v32 = vadd.f32 %v542_v22, %v513_v1  ;;  %v591_v57 = vmul.f32 %v6404_v43, %v577_v8  ;;  %v649_v11 = vld [vmem:[%s11981_s1 + $0x37] ss:$0 sm:$0xff] }
  0x65   :  { %v6390_v2 = vld [vmem:[%s11980_s0 + $0x600] sm:$0xfe]  ;;  %v533_v16 = vmul.f32 %v6389_v60, %v527_v45  ;;  %v545_v27 = vrot.slane %v531_v14, 1  ;;  %v557_v33 = vadd.f32 %v543_v23, %v514_v3  ;;  %v610_v61 = vrot.slane %v581_v47, 2 }
  0x66   :  { %v6391_v7 = vld [vmem:[%s11980_s0 + $0x60] sm:$0xfc]  ;;  %v534_v17 = vmul.f32 %v6390_v2, %v527_v45  ;;  %v546_v28 = vrot.slane %v532_v15, 1  ;;  %v558_v34 = vadd.f32 %v544_v24, %v515_v4  ;;  %v613_v63 = vrot.slane %v583_v49, 2 }
  0x67   :  { %v6393_v18 = vld [vmem:[%s11980_s0 + $0xc0] sm:$0xfc]  ;;  %v578_v26 = vmul.f32 %v6391_v7, %v577_v8  ;;  %v547_v29 = vrot.slane %v533_v16, 1  ;;  %v559_v39 = vadd.f32 %v545_v27, %v516_v5  ;;  %v616_v1 = vrot.slane %v585_v51, 2  ;;  %v694_v51 = vld [vmem:[%s11981_s1 + $0x61] ss:$0 sm:$0xff] }
  0x68   :  { %v6395_v20 = vld [vmem:[%s11980_s0 + $0x120] sm:$0xfc]  ;;  %v548_v30 = vrot.slane %v534_v17, 1  ;;  %v560_v40 = vadd.f32 %v546_v28, %v517_v9  ;;  %v580_v46 = vmul.f32 %v6393_v18, %v577_v8  ;;  %v619_v5 = vrot.slane %v587_v53, 2 }
  0x69   :  { %v6397_v25 = vld [vmem:[%s11980_s0 + $0x180] sm:$0xfc]  ;;  %v561_v41 = vadd.f32 %v547_v29, %v518_v10  ;;  %v582_v48 = vmul.f32 %v6395_v20, %v577_v8  ;;  %v606_v58 = vrot.slane %v578_v26, 2  ;;  %v622_v10 = vrot.slane %v589_v55, 2 }
  0x6a   :  { %v6399_v35 = vld [vmem:[%s11980_s0 + $0x1e0] sm:$0xfc]  ;;  %v562_v42 = vadd.f32 %v548_v30, %v519_v12  ;;  %v584_v50 = vmul.f32 %v6397_v25, %v577_v8  ;;  %v609_v60 = vrot.slane %v580_v46, 2  ;;  %v625_v15 = vrot.slane %v591_v57, 2 }
  0x6b   :  { %v6401_v37 = vld [vmem:[%s11980_s0 + $0x240] sm:$0xfc]  ;;  %v586_v52 = vmul.f32 %v6399_v35, %v577_v8  ;;  %v612_v62 = vrot.slane %v582_v48, 2  ;;  %v608_v2 = vsel %vm185_vm0, %v606_v58, %v607_v59 }
  0x6c   :  { %v6403_v45 = vld [vmem:[%s11980_s0 + $0x2a0] sm:$0xfc]  ;;  %v588_v54 = vmul.f32 %v6401_v37, %v577_v8  ;;  %v615_v0 = vrot.slane %v584_v50, 2  ;;  %v611_v3 = vsel %vm185_vm0, %v609_v60, %v610_v61  ;;  %v634_v16 = vadd.f32 %v608_v2, %v556_v32 }
  0x6d   :  { %v590_v56 = vmul.f32 %v6403_v45, %v577_v8  ;;  %v618_v4 = vrot.slane %v586_v52, 2  ;;  %v6405_v6 = vld [vmem:[%s11980_s0 + $0x720] sm:$0x7f]  ;;  %v614_v7 = vsel %vm185_vm0, %v612_v62, %v613_v63  ;;  %v635_v20 = vadd.f32 %v611_v3, %v557_v33 }
  0x6e   :  { %v617_v8 = vsel %vm185_vm0, %v615_v0, %v616_v1  ;;  %v621_v9 = vrot.slane %v588_v54, 2  ;;  %v6406_v12 = vld [vmem:[%s11980_s0 + $0x780] sm:$0x7f]  ;;  %v636_v21 = vadd.f32 %v614_v7, %v558_v34  ;;  %v650_v29 = vmul.f32 %v6405_v6, %v649_v11 }
  0x6f   :  { %v620_v13 = vsel %vm185_vm0, %v618_v4, %v619_v5  ;;  %v624_v14 = vrot.slane %v590_v56, 2  ;;  %v6407_v17 = vld [vmem:[%s11980_s0 + $0x7e0] sm:$0x7f]  ;;  %v637_v22 = vadd.f32 %v617_v8, %v559_v39  ;;  %v651_v33 = vmul.f32 %v6406_v12, %v649_v11 }
  0x70   :  { %v6408_v18 = vld [vmem:[%s11980_s0 + $0x840] sm:$0x7f]  ;;  %v623_v19 = vsel %vm185_vm0, %v621_v9, %v622_v10  ;;  %v638_v27 = vadd.f32 %v620_v13, %v560_v40  ;;  %v652_v34 = vmul.f32 %v6407_v17, %v649_v11 }
  0x71   :  { %v6409_v23 = vld [vmem:[%s11980_s0 + $0x8a0] sm:$0x7f]  ;;  %v626_v26 = vsel %vm185_vm0, %v624_v14, %v625_v15  ;;  %v639_v28 = vadd.f32 %v623_v19, %v561_v41  ;;  %v653_v35 = vmul.f32 %v6408_v18, %v649_v11  ;;  %v657_v41 = vadd.f32 %v650_v29, %v634_v16 }
  0x72   :  { %v6410_v24 = vld [vmem:[%s11980_s0 + $0x900] sm:$0x7f]  ;;  %v640_v32 = vadd.f32 %v626_v26, %v562_v42  ;;  %v654_v38 = vmul.f32 %v6409_v23, %v649_v11  ;;  %v658_v43 = vadd.f32 %v651_v33, %v635_v20  ;;  %v659_v46 = vadd.f32 %v652_v34, %v636_v21 }
  0x73   :  { %v6411_v25 = vld [vmem:[%s11980_s0 + $0x960] sm:$0x7f]  ;;  %v655_v39 = vmul.f32 %v6410_v24, %v649_v11  ;;  %v660_v47 = vadd.f32 %v653_v35, %v637_v22 }
  0x74   :  { %v6412_v30 = vld [vmem:[%s11980_s0 + $0xa80] sm:$0x7f]  ;;  %v656_v40 = vmul.f32 %v6411_v25, %v649_v11  ;;  %v661_v52 = vadd.f32 %v654_v38, %v638_v27 }
  0x75   :  { %v6413_v36 = vld [vmem:[%s11980_s0 + $0xae0] sm:$0x7f]  ;;  %v673_v49 = vmul.f32 %v6412_v30, %v672_v31  ;;  %v662_v53 = vadd.f32 %v655_v39, %v639_v28 }
  0x76   :  { %v6414_v37 = vld [vmem:[%s11980_s0 + $0xb40] sm:$0x7f]  ;;  %v663_v54 = vadd.f32 %v656_v40, %v640_v32  ;;  %v674_v55 = vmul.f32 %v6413_v36, %v672_v31 }
  0x77   :  { %v6415_v44 = vld [vmem:[%s11980_s0 + $0xba0] sm:$0x7f]  ;;  %v675_v56 = vmul.f32 %v6414_v37, %v672_v31  ;;  %v680_v0 = vadd.f32 %v673_v49, %v657_v41 }
  0x78   :  { %v6416_v42 = vld [vmem:[%s11980_s0 + $0xc00] sm:$0x7f]  ;;  %v676_v57 = vmul.f32 %v6415_v44, %v672_v31  ;;  %v681_v1 = vadd.f32 %v674_v55, %v658_v43 }
  0x79   :  { %v6417_v45 = vld [vmem:[%s11980_s0 + $0xc60] sm:$0x7f]  ;;  %v677_v58 = vmul.f32 %v6416_v42, %v672_v31  ;;  %v682_v6 = vadd.f32 %v675_v56, %v659_v46 }
  0x7a   :  { %v6418_v48 = vld [vmem:[%s11980_s0 + $0xcc0] sm:$0x7f]  ;;  %v678_v59 = vmul.f32 %v6417_v45, %v672_v31  ;;  %v683_v7 = vadd.f32 %v676_v57, %v660_v47  ;;  %v6434_v45 = vld [vmem:[%s11980_s0 + $0x750] sm:$0x1] }
  0x7b   :  { %v6419_v50 = vld [vmem:[%s11980_s0 + $0x720] sm:$0xfe]  ;;  %v679_v63 = vmul.f32 %v6418_v48, %v672_v31  ;;  %v684_v8 = vadd.f32 %v677_v58, %v661_v52  ;;  %v6438_v52 = vld [vmem:[%s11980_s0 + $0x810] sm:$0x1] }
  0x7c   :  { %v6420_v60 = vld [vmem:[%s11980_s0 + $0x780] sm:$0xfe]  ;;  %v695_v5 = vmul.f32 %v6419_v50, %v694_v51  ;;  %v685_v9 = vadd.f32 %v678_v59, %v662_v53  ;;  %v6436_v50 = vld [vmem:[%s11980_s0 + $0x7b0] sm:$0x1] }
  0x7d   :  { %v6421_v61 = vld [vmem:[%s11980_s0 + $0x7e0] sm:$0xfe]  ;;  %v686_v11 = vadd.f32 %v679_v63, %v663_v54  ;;  %v696_v13 = vmul.f32 %v6420_v60, %v694_v51 }
  0x7e   :  { %v6422_v62 = vld [vmem:[%s11980_s0 + $0x840] sm:$0xfe]  ;;  %v697_v14 = vmul.f32 %v6421_v61, %v694_v51  ;;  %v709_v21 = vrot.slane %v695_v5, 1 }
  0x7f   :  { %v6423_v2 = vld [vmem:[%s11980_s0 + $0x8a0] sm:$0xfe]  ;;  %v698_v15 = vmul.f32 %v6422_v62, %v694_v51  ;;  %v710_v24 = vrot.slane %v696_v13, 1  ;;  %v6440_v62 = vld [vmem:[%s11980_s0 + $0x870] sm:$0x1] }
  0x80   :  { %v6424_v3 = vld [vmem:[%s11980_s0 + $0x900] sm:$0xfe]  ;;  %v699_v18 = vmul.f32 %v6423_v2, %v694_v51  ;;  %v711_v25 = vrot.slane %v697_v14, 1  ;;  %v723_v32 = vadd.f32 %v709_v21, %v680_v0 }
  0x81   :  { %v6425_v4 = vld [vmem:[%s11980_s0 + $0x960] sm:$0xfe]  ;;  %v700_v19 = vmul.f32 %v6424_v3, %v694_v51  ;;  %v712_v26 = vrot.slane %v698_v15, 1  ;;  %v724_v34 = vadd.f32 %v710_v24, %v681_v1  ;;  %v6442_v3 = vld [vmem:[%s11980_s0 + $0x8d0] sm:$0x1] }
  0x82   :  { %v6426_v10 = vld [vmem:[%s11980_s0 + $0xa80] sm:$0xfe]  ;;  %v701_v20 = vmul.f32 %v6425_v4, %v694_v51  ;;  %v713_v29 = vrot.slane %v699_v18, 1  ;;  %v725_v35 = vadd.f32 %v711_v25, %v682_v6 }
  0x83   :  { %v737_v12 = vld [vmem:[%s11981_s1 + $0x62] ss:$0 sm:$0xff]  ;;  %v714_v30 = vrot.slane %v700_v19, 1  ;;  %v726_v36 = vadd.f32 %v712_v26, %v683_v7  ;;  %v787_v39 = vld [vmem:[%s11981_s1 + $0x63] ss:$0 sm:$0xff] }
  0x84   :  { %v6427_v16 = vld [vmem:[%s11980_s0 + $0xae0] sm:$0xfe]  ;;  %v738_v28 = vmul.f32 %v6426_v10, %v737_v12  ;;  %v715_v31 = vrot.slane %v701_v20, 1  ;;  %v727_v40 = vadd.f32 %v713_v29, %v684_v8  ;;  %v789_v5 = vmul.f32 %v6434_v45, %v787_v39  ;;  %v6444_v10 = vld [vmem:[%s11980_s0 + $0x930] sm:$0x1] }
  0x85   :  { %v6428_v17 = vld [vmem:[%s11980_s0 + $0xb40] sm:$0xfe]  ;;  %v739_v37 = vmul.f32 %v6427_v16, %v737_v12  ;;  %v728_v41 = vadd.f32 %v714_v30, %v685_v9  ;;  %v791_v14 = vmul.f32 %v6436_v50, %v787_v39  ;;  %v793_v16 = vmul.f32 %v6438_v52, %v787_v39 }
  0x86   :  { %v6429_v22 = vld [vmem:[%s11980_s0 + $0xba0] sm:$0xfe]  ;;  %v729_v44 = vadd.f32 %v715_v31, %v686_v11  ;;  %v740_v42 = vmul.f32 %v6428_v17, %v737_v12  ;;  %v752_v53 = vrot.slane %v738_v28, 1  ;;  %v6446_v11 = vld [vmem:[%s11980_s0 + $0x990] sm:$0x1]  ;;  %v795_v18 = vmul.f32 %v6440_v62, %v787_v39 }
  0x87   :  { %v6430_v23 = vld [vmem:[%s11980_s0 + $0xc00] sm:$0xfe]  ;;  %v741_v43 = vmul.f32 %v6429_v22, %v737_v12  ;;  %v753_v54 = vrot.slane %v739_v37, 1  ;;  %v797_v20 = vmul.f32 %v6442_v3, %v787_v39  ;;  %v799_v22 = vmul.f32 %v6444_v10, %v787_v39 }
  0x88   :  { %v6431_v27 = vld [vmem:[%s11980_s0 + $0xc60] sm:$0xfe]  ;;  %v742_v46 = vmul.f32 %v6430_v23, %v737_v12  ;;  %v754_v55 = vrot.slane %v740_v42, 1  ;;  %v766_v63 = vadd.f32 %v752_v53, %v723_v32  ;;  %v801_v24 = vmul.f32 %v6446_v11, %v787_v39 }
  0x89   :  { %v6432_v33 = vld [vmem:[%s11980_s0 + $0xcc0] sm:$0xfe]  ;;  %v743_v47 = vmul.f32 %v6431_v27, %v737_v12  ;;  %v755_v58 = vrot.slane %v741_v43, 1  ;;  %v767_v0 = vadd.f32 %v753_v54, %v724_v34  ;;  %v817_v26 = vrot.slane %v789_v5, 2 }
  0x8a   :  { %v6433_v38 = vld [vmem:[%s11980_s0 + $0x720] sm:$0xfc]  ;;  %v744_v48 = vmul.f32 %v6432_v33, %v737_v12  ;;  %v756_v59 = vrot.slane %v742_v46, 1  ;;  %v768_v1 = vadd.f32 %v754_v55, %v725_v35  ;;  %v820_v28 = vrot.slane %v791_v14, 2 }
  0x8b   :  { %v6435_v49 = vld [vmem:[%s11980_s0 + $0x780] sm:$0xfc]  ;;  %v788_v57 = vmul.f32 %v6433_v38, %v787_v39  ;;  %v757_v60 = vrot.slane %v743_v47, 1  ;;  %v769_v6 = vadd.f32 %v755_v58, %v726_v36  ;;  %v823_v30 = vrot.slane %v793_v16, 2 }
  0x8c   :  { %v6437_v51 = vld [vmem:[%s11980_s0 + $0x7e0] sm:$0xfc]  ;;  %v758_v61 = vrot.slane %v744_v48, 1  ;;  %v770_v7 = vadd.f32 %v756_v59, %v727_v40  ;;  %v790_v13 = vmul.f32 %v6435_v49, %v787_v39  ;;  %v826_v32 = vrot.slane %v795_v18, 2 }
  0x8d   :  { %v6439_v56 = vld [vmem:[%s11980_s0 + $0x840] sm:$0xfc]  ;;  %v771_v8 = vadd.f32 %v757_v60, %v728_v41  ;;  %v792_v15 = vmul.f32 %v6437_v51, %v787_v39  ;;  %v816_v25 = vrot.slane %v788_v57, 2  ;;  %v829_v36 = vrot.slane %v797_v20, 2 }
  0x8e   :  { %v6441_v2 = vld [vmem:[%s11980_s0 + $0x8a0] sm:$0xfc]  ;;  %v772_v9 = vadd.f32 %v758_v61, %v729_v44  ;;  %v794_v17 = vmul.f32 %v6439_v56, %v787_v39  ;;  %v819_v27 = vrot.slane %v790_v13, 2  ;;  %v832_v41 = vrot.slane %v799_v22, 2 }
  0x8f   :  { %v6443_v4 = vld [vmem:[%s11980_s0 + $0x900] sm:$0xfc]  ;;  %v796_v19 = vmul.f32 %v6441_v2, %v787_v39  ;;  %v822_v29 = vrot.slane %v792_v15, 2  ;;  %v818_v33 = vsel %vm185_vm0, %v816_v25, %v817_v26  ;;  %v835_v46 = vrot.slane %v801_v24, 2 }
  0x90   :  { %v6445_v12 = vld [vmem:[%s11980_s0 + $0x960] sm:$0xfc]  ;;  %v798_v21 = vmul.f32 %v6443_v4, %v787_v39  ;;  %v825_v31 = vrot.slane %v794_v17, 2  ;;  %v821_v34 = vsel %vm185_vm0, %v819_v27, %v820_v28  ;;  %v844_v47 = vadd.f32 %v818_v33, %v766_v63 }
  0x91   :  { %v800_v23 = vmul.f32 %v6445_v12, %v787_v39  ;;  %v828_v35 = vrot.slane %v796_v19, 2  ;;  %v6447_v37 = vld [vmem:[%s11980_s0 + $0xc0] sm:$0x7f]  ;;  %v824_v38 = vsel %vm185_vm0, %v822_v29, %v823_v30  ;;  %v845_v51 = vadd.f32 %v821_v34, %v767_v0 }
  0x92   :  { %v827_v39 = vsel %vm185_vm0, %v825_v31, %v826_v32  ;;  %v831_v40 = vrot.slane %v798_v21, 2  ;;  %v6448_v44 = vld [vmem:[%s11980_s0 + $0x120] sm:$0x7f]  ;;  %v846_v52 = vadd.f32 %v824_v38, %v768_v1 }
  0x93   :  { %v859_v42 = vld [vmem:[%s11981_s1 + $0x64] ss:$0 sm:$0xff]  ;;  %v830_v45 = vsel %vm185_vm0, %v828_v35, %v829_v36  ;;  %v834_v43 = vrot.slane %v800_v23, 2  ;;  %v847_v53 = vadd.f32 %v827_v39, %v769_v6  ;;  %v882_v62 = vld [vmem:[%s11981_s1 + $0x65] ss:$0 sm:$0xff] }
  0x94   :  { %v6449_v48 = vld [vmem:[%s11980_s0 + $0x180] sm:$0x7f]  ;;  %v833_v50 = vsel %vm185_vm0, %v831_v40, %v832_v41  ;;  %v848_v58 = vadd.f32 %v830_v45, %v770_v7  ;;  %v860_v60 = vmul.f32 %v6447_v37, %v859_v42  ;;  %v861_v0 = vmul.f32 %v6448_v44, %v859_v42  ;;  %v947_v44 = vld [vmem:[%s11981_s1 + $0x67] ss:$0 sm:$0xff] }
  0x95   :  { %v6450_v49 = vld [vmem:[%s11980_s0 + $0x1e0] sm:$0x7f]  ;;  %v836_v57 = vsel %vm185_vm0, %v834_v43, %v835_v46  ;;  %v849_v59 = vadd.f32 %v833_v50, %v771_v8  ;;  %v862_v1 = vmul.f32 %v6449_v48, %v859_v42 }
  0x96   :  { %v6451_v54 = vld [vmem:[%s11980_s0 + $0x240] sm:$0x7f]  ;;  %v850_v63 = vadd.f32 %v836_v57, %v772_v9  ;;  %v863_v2 = vmul.f32 %v6450_v49, %v859_v42  ;;  %v867_v8 = vadd.f32 %v860_v60, %v844_v47  ;;  %v868_v11 = vadd.f32 %v861_v0, %v845_v51 }
  0x97   :  { %v6452_v55 = vld [vmem:[%s11980_s0 + $0x2a0] sm:$0x7f]  ;;  %v864_v5 = vmul.f32 %v6451_v54, %v859_v42  ;;  %v869_v13 = vadd.f32 %v862_v1, %v846_v52 }
  0x98   :  { %v6453_v56 = vld [vmem:[%s11980_s0 + $0x300] sm:$0x7f]  ;;  %v865_v6 = vmul.f32 %v6452_v55, %v859_v42  ;;  %v870_v14 = vadd.f32 %v863_v2, %v847_v53 }
  0x99   :  { %v6454_v61 = vld [vmem:[%s11980_s0 + $0x420] sm:$0x7f]  ;;  %v866_v7 = vmul.f32 %v6453_v56, %v859_v42  ;;  %v871_v19 = vadd.f32 %v864_v5, %v848_v58 }
  0x9a   :  { %v6455_v3 = vld [vmem:[%s11980_s0 + $0x480] sm:$0x7f]  ;;  %v883_v16 = vmul.f32 %v6454_v61, %v882_v62  ;;  %v872_v20 = vadd.f32 %v865_v6, %v849_v59  ;;  %v997_v6 = vld [vmem:[%s11981_s1 + $0x90] ss:$0 sm:$0xff] }
  0x9b   :  { %v6456_v4 = vld [vmem:[%s11980_s0 + $0x4e0] sm:$0x7f]  ;;  %v873_v21 = vadd.f32 %v866_v7, %v850_v63  ;;  %v884_v22 = vmul.f32 %v6455_v3, %v882_v62 }
  0x9c   :  { %v6457_v10 = vld [vmem:[%s11980_s0 + $0x540] sm:$0x7f]  ;;  %v885_v23 = vmul.f32 %v6456_v4, %v882_v62  ;;  %v890_v31 = vadd.f32 %v883_v16, %v867_v8 }
  0x9d   :  { %v6458_v9 = vld [vmem:[%s11980_s0 + $0x5a0] sm:$0x7f]  ;;  %v886_v24 = vmul.f32 %v6457_v10, %v882_v62  ;;  %v891_v32 = vadd.f32 %v884_v22, %v868_v11 }
  0x9e   :  { %v6459_v12 = vld [vmem:[%s11980_s0 + $0x600] sm:$0x7f]  ;;  %v887_v25 = vmul.f32 %v6458_v9, %v882_v62  ;;  %v892_v37 = vadd.f32 %v885_v23, %v869_v13 }
  0x9f   :  { %v6460_v15 = vld [vmem:[%s11980_s0 + $0x660] sm:$0x7f]  ;;  %v888_v26 = vmul.f32 %v6459_v12, %v882_v62  ;;  %v893_v38 = vadd.f32 %v886_v24, %v870_v14  ;;  %v6476_v12 = vld [vmem:[%s11980_s0 + $0xf0] sm:$0x1] }
  0xa0   :  { %v6461_v17 = vld [vmem:[%s11980_s0 + $0xc0] sm:$0xfe]  ;;  %v889_v30 = vmul.f32 %v6460_v15, %v882_v62  ;;  %v894_v39 = vadd.f32 %v887_v25, %v871_v19  ;;  %v6480_v19 = vld [vmem:[%s11980_s0 + $0x1b0] sm:$0x1] }
  0xa1   :  { %v904_v18 = vld [vmem:[%s11981_s1 + $0x66] ss:$0 sm:$0xff]  ;;  %v895_v40 = vadd.f32 %v888_v26, %v872_v20 }
  0xa2   :  { %v6462_v27 = vld [vmem:[%s11980_s0 + $0x120] sm:$0xfe]  ;;  %v905_v36 = vmul.f32 %v6461_v17, %v904_v18  ;;  %v896_v42 = vadd.f32 %v889_v30, %v873_v21  ;;  %v6478_v17 = vld [vmem:[%s11980_s0 + $0x150] sm:$0x1] }
  0xa3   :  { %v6463_v28 = vld [vmem:[%s11980_s0 + $0x180] sm:$0xfe]  ;;  %v906_v45 = vmul.f32 %v6462_v27, %v904_v18 }
  0xa4   :  { %v6464_v29 = vld [vmem:[%s11980_s0 + $0x1e0] sm:$0xfe]  ;;  %v907_v43 = vmul.f32 %v6463_v28, %v904_v18  ;;  %v919_v52 = vrot.slane %v905_v36, 1  ;;  %v999_v36 = vmul.f32 %v6476_v12, %v997_v6 }
  0xa5   :  { %v6465_v33 = vld [vmem:[%s11980_s0 + $0x240] sm:$0xfe]  ;;  %v908_v46 = vmul.f32 %v6464_v29, %v904_v18  ;;  %v920_v55 = vrot.slane %v906_v45, 1  ;;  %v6482_v29 = vld [vmem:[%s11980_s0 + $0x210] sm:$0x1] }
  0xa6   :  { %v6466_v34 = vld [vmem:[%s11980_s0 + $0x2a0] sm:$0xfe]  ;;  %v909_v49 = vmul.f32 %v6465_v33, %v904_v18  ;;  %v921_v56 = vrot.slane %v907_v43, 1  ;;  %v933_v63 = vadd.f32 %v919_v52, %v890_v31  ;;  %v1001_v43 = vmul.f32 %v6478_v17, %v997_v6 }
  0xa7   :  { %v6467_v35 = vld [vmem:[%s11980_s0 + $0x300] sm:$0xfe]  ;;  %v910_v50 = vmul.f32 %v6466_v34, %v904_v18  ;;  %v922_v57 = vrot.slane %v908_v46, 1  ;;  %v934_v1 = vadd.f32 %v920_v55, %v891_v32  ;;  %v6484_v34 = vld [vmem:[%s11980_s0 + $0x270] sm:$0x1] }
  0xa8   :  { %v6468_v41 = vld [vmem:[%s11980_s0 + $0x420] sm:$0xfe]  ;;  %v911_v51 = vmul.f32 %v6467_v35, %v904_v18  ;;  %v923_v60 = vrot.slane %v909_v49, 1  ;;  %v935_v2 = vadd.f32 %v921_v56, %v892_v37  ;;  %v1005_v49 = vmul.f32 %v6482_v29, %v997_v6 }
  0xa9   :  { %v6469_v47 = vld [vmem:[%s11980_s0 + $0x480] sm:$0xfe]  ;;  %v948_v59 = vmul.f32 %v6468_v41, %v947_v44  ;;  %v924_v61 = vrot.slane %v910_v50, 1  ;;  %v936_v3 = vadd.f32 %v922_v57, %v893_v38  ;;  %v6486_v41 = vld [vmem:[%s11980_s0 + $0x2d0] sm:$0x1]  ;;  %v1027_v57 = vrot.slane %v999_v36, 2 }
  0xaa   :  { %v6470_v48 = vld [vmem:[%s11980_s0 + $0x4e0] sm:$0xfe]  ;;  %v925_v62 = vrot.slane %v911_v51, 1  ;;  %v949_v4 = vmul.f32 %v6469_v47, %v947_v44  ;;  %v937_v7 = vadd.f32 %v923_v60, %v894_v39  ;;  %v1003_v47 = vmul.f32 %v6480_v19, %v997_v6  ;;  %v1074_v19 = vld [vmem:[%s11980_s0 + $0x248] sm:$0x7f] }
  0xab   :  { %v6471_v53 = vld [vmem:[%s11980_s0 + $0x540] sm:$0xfe]  ;;  %v938_v8 = vadd.f32 %v924_v61, %v895_v40  ;;  %v950_v9 = vmul.f32 %v6470_v48, %v947_v44  ;;  %v962_v20 = vrot.slane %v948_v59, 1  ;;  %v1007_v51 = vmul.f32 %v6484_v34, %v997_v6  ;;  %v6494_v34 = vld [vmem:[%s11980_s0 + $0x548] sm:$0x7f] }
  0xac   :  { %v6472_v54 = vld [vmem:[%s11980_s0 + $0x5a0] sm:$0xfe]  ;;  %v939_v10 = vadd.f32 %v925_v62, %v896_v42  ;;  %v951_v11 = vmul.f32 %v6471_v53, %v947_v44  ;;  %v963_v21 = vrot.slane %v949_v4, 1  ;;  %v6488_v42 = vld [vmem:[%s11980_s0 + $0x330] sm:$0x1]  ;;  %v1009_v53 = vmul.f32 %v6486_v41, %v997_v6 }
  0xad   :  { %v6473_v58 = vld [vmem:[%s11980_s0 + $0x600] sm:$0xfe]  ;;  %v952_v13 = vmul.f32 %v6472_v54, %v947_v44  ;;  %v964_v22 = vrot.slane %v950_v9, 1  ;;  %v976_v30 = vadd.f32 %v962_v20, %v933_v63  ;;  %v1011_v55 = vmul.f32 %v6488_v42, %v997_v6  ;;  %v6489_v20 = vld [vmem:[%s11980_s0 + $0x368] sm:$0x7f] }
  0xae   :  { %v6474_v0 = vld [vmem:[%s11980_s0 + $0x660] sm:$0xfe]  ;;  %v953_v14 = vmul.f32 %v6473_v58, %v947_v44  ;;  %v965_v25 = vrot.slane %v951_v11, 1  ;;  %v977_v31 = vadd.f32 %v963_v21, %v934_v1  ;;  %v1030_v59 = vrot.slane %v1001_v43, 2  ;;  %v1072_v11 = vld [vmem:[%s11980_s0 + $0x188] sm:$0x7f] }
  0xaf   :  { %v6475_v5 = vld [vmem:[%s11980_s0 + $0xc0] sm:$0xfc]  ;;  %v954_v15 = vmul.f32 %v6474_v0, %v947_v44  ;;  %v966_v26 = vrot.slane %v952_v13, 1  ;;  %v978_v32 = vadd.f32 %v964_v22, %v935_v2  ;;  %v1033_v61 = vrot.slane %v1003_v47, 2  ;;  %v1068_v0 = vld [vmem:[%s11980_s0 + $0x8] sm:$0x7f] }
  0xb0   :  { %v6477_v16 = vld [vmem:[%s11980_s0 + $0x120] sm:$0xfc]  ;;  %v998_v24 = vmul.f32 %v6475_v5, %v997_v6  ;;  %v967_v27 = vrot.slane %v953_v14, 1  ;;  %v979_v37 = vadd.f32 %v965_v25, %v936_v3  ;;  %v1036_v63 = vrot.slane %v1005_v49, 2  ;;  %v1069_v5 = vld [vmem:[%s11980_s0 + $0x68] sm:$0x7f] }
  0xb1   :  { %v6479_v18 = vld [vmem:[%s11980_s0 + $0x180] sm:$0xfc]  ;;  %v968_v28 = vrot.slane %v954_v15, 1  ;;  %v980_v38 = vadd.f32 %v966_v26, %v937_v7  ;;  %v1000_v45 = vmul.f32 %v6477_v16, %v997_v6  ;;  %v1039_v4 = vrot.slane %v1007_v51, 2  ;;  %v1071_v7 = vld [vmem:[%s11980_s0 + $0x128] sm:$0x7f] }
  0xb2   :  { %v6481_v23 = vld [vmem:[%s11980_s0 + $0x1e0] sm:$0xfc]  ;;  %v981_v39 = vadd.f32 %v967_v27, %v938_v8  ;;  %v1002_v46 = vmul.f32 %v6479_v18, %v997_v6  ;;  %v1026_v56 = vrot.slane %v998_v24, 2  ;;  %v1042_v12 = vrot.slane %v1009_v53, 2  ;;  %v1073_v13 = vld [vmem:[%s11980_s0 + $0x1e8] sm:$0x7f] }
  0xb3   :  { %v6483_v33 = vld [vmem:[%s11980_s0 + $0x240] sm:$0xfc]  ;;  %v982_v40 = vadd.f32 %v968_v28, %v939_v10  ;;  %v1004_v48 = vmul.f32 %v6481_v23, %v997_v6  ;;  %v1029_v58 = vrot.slane %v1000_v45, 2  ;;  %v1075_v14 = vld [vmem:[%s11981_s1 + $0x8] ss:$0 sm:$0xff]  ;;  %v1045_v17 = vrot.slane %v1011_v55, 2 }
  0xb4   :  { %v6485_v35 = vld [vmem:[%s11980_s0 + $0x2a0] sm:$0xfc]  ;;  %v1006_v50 = vmul.f32 %v6483_v33, %v997_v6  ;;  %v1032_v60 = vrot.slane %v1002_v46, 2  ;;  %v1028_v1 = vsel %vm185_vm0, %v1026_v56, %v1027_v57  ;;  %v6490_v25 = vld [vmem:[%s11980_s0 + $0x3c8] sm:$0x7f]  ;;  %v1077_v36 = vmul.f32 %v1075_v14, %v1069_v5 }
  0xb5   :  { %v6487_v44 = vld [vmem:[%s11980_s0 + $0x300] sm:$0xfc]  ;;  %v1008_v52 = vmul.f32 %v6485_v35, %v997_v6  ;;  %v1035_v62 = vrot.slane %v1004_v48, 2  ;;  %v1031_v2 = vsel %vm185_vm0, %v1029_v58, %v1030_v59  ;;  %v1054_v18 = vadd.f32 %v1028_v1, %v976_v30  ;;  %v6491_v26 = vld [vmem:[%s11980_s0 + $0x428] sm:$0x7f] }
  0xb6   :  { %v1010_v54 = vmul.f32 %v6487_v44, %v997_v6  ;;  %v1038_v3 = vrot.slane %v1006_v50, 2  ;;  %v1070_v6 = vld [vmem:[%s11980_s0 + $0xc8] sm:$0x7f]  ;;  %v1034_v8 = vsel %vm185_vm0, %v1032_v60, %v1033_v61  ;;  %v1055_v22 = vadd.f32 %v1031_v2, %v977_v31 }
  0xb7   :  { %v1037_v10 = vsel %vm185_vm0, %v1035_v62, %v1036_v63  ;;  %v1041_v9 = vrot.slane %v1008_v52, 2  ;;  %v1056_v23 = vadd.f32 %v1034_v8, %v978_v32  ;;  %v1097_v27 = vld [vmem:[%s11981_s1 + $0x9] ss:$0 sm:$0xff]  ;;  %1061 = vst [vmem:[%s11982_s2] sm:$0x7f] %v1054_v18  ;;  %v1076_v31 = vmul.f32 %v1075_v14, %v1068_v0  ;;  %v1119_v41 = vld [vmem:[%s11981_s1 + $0xa] ss:$0 sm:$0xff] }
  0xb8   :  { %v1040_v15 = vsel %vm185_vm0, %v1038_v3, %v1039_v4  ;;  %v1044_v16 = vrot.slane %v1010_v54, 2  ;;  %v1057_v24 = vadd.f32 %v1037_v10, %v979_v37  ;;  %v6492_v32 = vld [vmem:[%s11980_s0 + $0x488] sm:$0x7f]  ;;  %1062 = vst [vmem:[%s11982_s2 + $0x30] sm:$0x7f] %v1055_v22  ;;  %v1078_v37 = vmul.f32 %v1075_v14, %v1070_v6 }
  0xb9   :  { %v1043_v21 = vsel %vm185_vm0, %v1041_v9, %v1042_v12  ;;  %v1058_v29 = vadd.f32 %v1040_v15, %v980_v38  ;;  %v6493_v33 = vld [vmem:[%s11980_s0 + $0x4e8] sm:$0x7f]  ;;  %1063 = vst [vmem:[%s11982_s2 + $0x60] sm:$0x7f] %v1056_v23  ;;  %v1079_v38 = vmul.f32 %v1075_v14, %v1071_v7  ;;  %v1080_v44 = vmul.f32 %v1075_v14, %v1072_v11 }
  0xba   :  { %v1046_v28 = vsel %vm185_vm0, %v1044_v16, %v1045_v17  ;;  %v1059_v30 = vadd.f32 %v1043_v21, %v981_v39  ;;  %1064 = vst [vmem:[%s11982_s2 + $0x90] sm:$0x7f] %v1057_v24  ;;  %v6495_v39 = vld [vmem:[%s11980_s0 + $0x5a8] sm:$0x7f]  ;;  %v1081_v42 = vmul.f32 %v1075_v14, %v1073_v13  ;;  %v1082_v45 = vmul.f32 %v1075_v14, %v1074_v19 }
  0xbb   :  { %v1060_v35 = vadd.f32 %v1046_v28, %v982_v40  ;;  %v1112_v40 = vld [vmem:[%s11980_s0 + $0x8] sm:$0xfe]  ;;  %1065 = vst [vmem:[%s11982_s2 + $0xc0] sm:$0x7f] %v1058_v29  ;;  %v1098_v43 = vmul.f32 %v6489_v20, %v1097_v27  ;;  %v1099_v46 = vmul.f32 %v6490_v25, %v1097_v27  ;;  %v1100_v47 = vmul.f32 %v6491_v26, %v1097_v27 }
  0xbc   :  { %1066 = vst [vmem:[%s11982_s2 + $0xf0] sm:$0x7f] %v1059_v30  ;;  %v1101_v48 = vmul.f32 %v6492_v32, %v1097_v27  ;;  %v1102_v49 = vmul.f32 %v6493_v33, %v1097_v27  ;;  %v1113_v50 = vld [vmem:[%s11980_s0 + $0x68] sm:$0xfe]  ;;  %v1103_v53 = vmul.f32 %v6494_v34, %v1097_v27  ;;  %v1104_v54 = vmul.f32 %v6495_v39, %v1097_v27  ;;  %v1199_v34 = vld [vmem:[%s11980_s0 + $0x38] sm:$0x1] }
  0xbd   :  { %1067 = vst [vmem:[%s11982_s2 + $0x120] sm:$0x7f] %v1060_v35  ;;  %v1114_v51 = vld [vmem:[%s11980_s0 + $0xc8] sm:$0xfe]  ;;  %v1105_v55 = vadd.f32 %v1098_v43, %v1076_v31  ;;  %v1120_v59 = vmul.f32 %v1119_v41, %v1112_v40  ;;  %v1106_v60 = vadd.f32 %v1099_v46, %v1077_v36  ;;  %v1107_v61 = vadd.f32 %v1100_v47, %v1078_v37  ;;  %v1201_v40 = vld [vmem:[%s11980_s0 + $0x98] sm:$0x1] }
  0xbe   :  { %v1115_v52 = vld [vmem:[%s11980_s0 + $0x128] sm:$0xfe]  ;;  %v1108_v62 = vadd.f32 %v1101_v48, %v1079_v38  ;;  %v1109_v63 = vadd.f32 %v1102_v49, %v1080_v44  ;;  %v1110_v2 = vadd.f32 %v1103_v53, %v1081_v42  ;;  %v1111_v3 = vadd.f32 %v1104_v54, %v1082_v45  ;;  %v1203_v43 = vld [vmem:[%s11980_s0 + $0xf8] sm:$0x1] }
  0xbf   :  { %v1116_v56 = vld [vmem:[%s11980_s0 + $0x188] sm:$0xfe]  ;;  %v1121_v4 = vmul.f32 %v1119_v41, %v1113_v50  ;;  %v1122_v5 = vmul.f32 %v1119_v41, %v1114_v51  ;;  %v1123_v6 = vmul.f32 %v1119_v41, %v1115_v52  ;;  %v1134_v13 = vrot.slane %v1120_v59, 1  ;;  %v1205_v52 = vld [vmem:[%s11980_s0 + $0x158] sm:$0x1] }
  0xc0   :  { %v1117_v57 = vld [vmem:[%s11980_s0 + $0x1e8] sm:$0xfe]  ;;  %v1124_v7 = vmul.f32 %v1119_v41, %v1116_v56 }
  0xc1   :  { %v1118_v58 = vld [vmem:[%s11980_s0 + $0x248] sm:$0xfe]  ;;  %v1125_v8 = vmul.f32 %v1119_v41, %v1117_v57  ;;  %v1135_v14 = vrot.slane %v1121_v4, 1  ;;  %v1136_v15 = vrot.slane %v1122_v5, 1  ;;  %v1137_v18 = vrot.slane %v1123_v6, 1 }
  0xc2   :  { %v6496_v0 = vld [vmem:[%s11980_s0 + $0x368] sm:$0xfe]  ;;  %v1126_v10 = vmul.f32 %v1119_v41, %v1118_v58  ;;  %v1138_v19 = vrot.slane %v1124_v7, 1  ;;  %v1148_v23 = vadd.f32 %v1134_v13, %v1105_v55  ;;  %v1207_v57 = vld [vmem:[%s11980_s0 + $0x1b8] sm:$0x1] }
  0xc3   :  { %v1162_v1 = vld [vmem:[%s11981_s1 + $0xb] ss:$0 sm:$0xff]  ;;  %v1139_v20 = vrot.slane %v1125_v8, 1  ;;  %v1149_v24 = vadd.f32 %v1135_v14, %v1106_v60  ;;  %v1150_v25 = vadd.f32 %v1136_v15, %v1107_v61  ;;  %v1212_v29 = vld [vmem:[%s11981_s1 + $0xc] ss:$0 sm:$0xff]  ;;  %v1151_v30 = vadd.f32 %v1137_v18, %v1108_v62 }
  0xc4   :  { %v6497_v9 = vld [vmem:[%s11980_s0 + $0x3c8] sm:$0xfe]  ;;  %v1163_v17 = vmul.f32 %v6496_v0, %v1162_v1  ;;  %v1140_v21 = vrot.slane %v1126_v10, 1  ;;  %v1152_v31 = vadd.f32 %v1138_v19, %v1109_v63  ;;  %v1214_v58 = vmul.f32 %v1212_v29, %v1199_v34  ;;  %v1209_v0 = vld [vmem:[%s11980_s0 + $0x218] sm:$0x1] }
  0xc5   :  { %v6498_v12 = vld [vmem:[%s11980_s0 + $0x428] sm:$0xfe]  ;;  %v1164_v27 = vmul.f32 %v6497_v9, %v1162_v1  ;;  %v1153_v32 = vadd.f32 %v1139_v20, %v1110_v2  ;;  %v1216_v5 = vmul.f32 %v1212_v29, %v1201_v40  ;;  %v1218_v7 = vmul.f32 %v1212_v29, %v1203_v43 }
  0xc6   :  { %v6499_v11 = vld [vmem:[%s11980_s0 + $0x488] sm:$0xfe]  ;;  %v1154_v33 = vadd.f32 %v1140_v21, %v1111_v3  ;;  %v1165_v35 = vmul.f32 %v6498_v12, %v1162_v1  ;;  %v1177_v42 = vrot.slane %v1163_v17, 1  ;;  %v1211_v3 = vld [vmem:[%s11980_s0 + $0x278] sm:$0x1]  ;;  %v1220_v10 = vmul.f32 %v1212_v29, %v1205_v52 }
  0xc7   :  { %v6500_v16 = vld [vmem:[%s11980_s0 + $0x4e8] sm:$0xfe]  ;;  %v1166_v36 = vmul.f32 %v6499_v11, %v1162_v1  ;;  %v1178_v45 = vrot.slane %v1164_v27, 1  ;;  %v1222_v12 = vmul.f32 %v1212_v29, %v1207_v57  ;;  %v1224_v13 = vmul.f32 %v1212_v29, %v1209_v0 }
  0xc8   :  { %v6501_v22 = vld [vmem:[%s11980_s0 + $0x548] sm:$0xfe]  ;;  %v1167_v37 = vmul.f32 %v6500_v16, %v1162_v1  ;;  %v1179_v48 = vrot.slane %v1165_v35, 1  ;;  %v1191_v54 = vadd.f32 %v1177_v42, %v1148_v23  ;;  %v1226_v15 = vmul.f32 %v1212_v29, %v1211_v3 }
  0xc9   :  { %v6502_v26 = vld [vmem:[%s11980_s0 + $0x5a8] sm:$0xfe]  ;;  %v1168_v38 = vmul.f32 %v6501_v22, %v1162_v1  ;;  %v1180_v49 = vrot.slane %v1166_v36, 1  ;;  %v1192_v55 = vadd.f32 %v1178_v45, %v1149_v24  ;;  %v1242_v17 = vrot.slane %v1214_v58, 2 }
  0xca   :  { %v1198_v28 = vld [vmem:[%s11980_s0 + $0x8] sm:$0xfc]  ;;  %v1169_v44 = vmul.f32 %v6502_v26, %v1162_v1  ;;  %v1181_v50 = vrot.slane %v1167_v37, 1  ;;  %v1193_v59 = vadd.f32 %v1179_v48, %v1150_v25  ;;  %v1245_v19 = vrot.slane %v1216_v5, 2 }
  0xcb   :  { %v1200_v39 = vld [vmem:[%s11980_s0 + $0x68] sm:$0xfc]  ;;  %v1213_v47 = vmul.f32 %v1212_v29, %v1198_v28  ;;  %v1182_v51 = vrot.slane %v1168_v38, 1  ;;  %v1194_v60 = vadd.f32 %v1180_v49, %v1151_v30  ;;  %v1248_v21 = vrot.slane %v1218_v7, 2 }
  0xcc   :  { %v1202_v41 = vld [vmem:[%s11980_s0 + $0xc8] sm:$0xfc]  ;;  %v1183_v53 = vrot.slane %v1169_v44, 1  ;;  %v1195_v61 = vadd.f32 %v1181_v50, %v1152_v31  ;;  %v1215_v4 = vmul.f32 %v1212_v29, %v1200_v39  ;;  %v1251_v24 = vrot.slane %v1220_v10, 2 }
  0xcd   :  { %v1204_v46 = vld [vmem:[%s11980_s0 + $0x128] sm:$0xfc]  ;;  %v1196_v62 = vadd.f32 %v1182_v51, %v1153_v32  ;;  %v1217_v6 = vmul.f32 %v1212_v29, %v1202_v41  ;;  %v1241_v16 = vrot.slane %v1213_v47, 2  ;;  %v1254_v26 = vrot.slane %v1222_v12, 2 }
  0xce   :  { %v1206_v56 = vld [vmem:[%s11980_s0 + $0x188] sm:$0xfc]  ;;  %v1197_v2 = vadd.f32 %v1183_v53, %v1154_v33  ;;  %v1219_v8 = vmul.f32 %v1212_v29, %v1204_v46  ;;  %v1244_v18 = vrot.slane %v1215_v4, 2  ;;  %v1257_v31 = vrot.slane %v1224_v13, 2 }
  0xcf   :  { %v1208_v63 = vld [vmem:[%s11980_s0 + $0x1e8] sm:$0xfc]  ;;  %v1221_v9 = vmul.f32 %v1212_v29, %v1206_v56  ;;  %v1247_v20 = vrot.slane %v1217_v6, 2  ;;  %v1243_v23 = vsel %vm185_vm0, %v1241_v16, %v1242_v17  ;;  %v1260_v37 = vrot.slane %v1226_v15, 2 }
  0xd0   :  { %v1210_v1 = vld [vmem:[%s11980_s0 + $0x248] sm:$0xfc]  ;;  %v1223_v11 = vmul.f32 %v1212_v29, %v1208_v63  ;;  %v1250_v22 = vrot.slane %v1219_v8, 2  ;;  %v1246_v28 = vsel %vm185_vm0, %v1244_v18, %v1245_v19  ;;  %v1269_v41 = vadd.f32 %v1243_v23, %v1191_v54 }
  0xd1   :  { %v1225_v14 = vmul.f32 %v1212_v29, %v1210_v1  ;;  %v1253_v25 = vrot.slane %v1221_v9, 2  ;;  %v6503_v27 = vld [vmem:[%s11980_s0 + $0x6c8] sm:$0x7f]  ;;  %v1249_v29 = vsel %vm185_vm0, %v1247_v20, %v1248_v21  ;;  %v1270_v44 = vadd.f32 %v1246_v28, %v1192_v55  ;;  %v1327_v8 = vld [vmem:[%s11981_s1 + $0xf] ss:$0 sm:$0xff] }
  0xd2   :  { %v1256_v30 = vrot.slane %v1223_v11, 2  ;;  %v6504_v32 = vld [vmem:[%s11980_s0 + $0x728] sm:$0x7f]  ;;  %v1252_v34 = vsel %vm185_vm0, %v1250_v22, %v1251_v24  ;;  %v1271_v42 = vadd.f32 %v1249_v29, %v1193_v59 }
  0xd3   :  { %v6505_v33 = vld [vmem:[%s11980_s0 + $0x788] sm:$0x7f]  ;;  %v1255_v35 = vsel %vm185_vm0, %v1253_v25, %v1254_v26  ;;  %v1259_v36 = vrot.slane %v1225_v14, 2  ;;  %v1272_v48 = vadd.f32 %v1252_v34, %v1194_v60 }
  0xd4   :  { %v6506_v38 = vld [vmem:[%s11980_s0 + $0x7e8] sm:$0x7f]  ;;  %v1258_v40 = vsel %vm185_vm0, %v1256_v30, %v1257_v31  ;;  %v1273_v49 = vadd.f32 %v1255_v35, %v1195_v61 }
  0xd5   :  { %v1283_v39 = vld [vmem:[%s11981_s1 + $0xd] ss:$0 sm:$0xff]  ;;  %v1261_v47 = vsel %vm185_vm0, %v1259_v36, %v1260_v37  ;;  %v1274_v50 = vadd.f32 %v1258_v40, %v1196_v62  ;;  %v1305_v52 = vld [vmem:[%s11981_s1 + $0xe] ss:$0 sm:$0xff] }
  0xd6   :  { %v6507_v45 = vld [vmem:[%s11980_s0 + $0x848] sm:$0x7f]  ;;  %v1275_v53 = vadd.f32 %v1261_v47, %v1197_v2  ;;  %v1284_v54 = vmul.f32 %v6503_v27, %v1283_v39  ;;  %v1285_v55 = vmul.f32 %v6504_v32, %v1283_v39  ;;  %v1286_v56 = vmul.f32 %v6505_v33, %v1283_v39  ;;  %v1370_v32 = vld [vmem:[%s11981_s1 + $0x38] ss:$0 sm:$0xff] }
  0xd7   :  { %v6508_v43 = vld [vmem:[%s11980_s0 + $0x8a8] sm:$0x7f]  ;;  %v1287_v59 = vmul.f32 %v6506_v38, %v1283_v39  ;;  %v1288_v60 = vmul.f32 %v6507_v45, %v1283_v39 }
  0xd8   :  { %v6509_v46 = vld [vmem:[%s11980_s0 + $0x908] sm:$0x7f]  ;;  %v1289_v61 = vmul.f32 %v6508_v43, %v1283_v39  ;;  %v1291_v2 = vadd.f32 %v1284_v54, %v1269_v41  ;;  %v1292_v3 = vadd.f32 %v1285_v55, %v1270_v44  ;;  %v1293_v4 = vadd.f32 %v1286_v56, %v1271_v42 }
  0xd9   :  { %v6510_v51 = vld [vmem:[%s11980_s0 + $0xa28] sm:$0x7f]  ;;  %v1290_v62 = vmul.f32 %v6509_v46, %v1283_v39  ;;  %v1294_v10 = vadd.f32 %v1287_v59, %v1272_v48  ;;  %v1295_v9 = vadd.f32 %v1288_v60, %v1273_v49  ;;  %v1420_v60 = vld [vmem:[%s11981_s1 + $0x39] ss:$0 sm:$0xff] }
  0xda   :  { %v6511_v57 = vld [vmem:[%s11980_s0 + $0xa88] sm:$0x7f]  ;;  %v1306_v6 = vmul.f32 %v6510_v51, %v1305_v52  ;;  %v1296_v12 = vadd.f32 %v1289_v61, %v1274_v50 }
  0xdb   :  { %v6512_v58 = vld [vmem:[%s11980_s0 + $0xae8] sm:$0x7f]  ;;  %v1297_v11 = vadd.f32 %v1290_v62, %v1275_v53  ;;  %v1307_v13 = vmul.f32 %v6511_v57, %v1305_v52 }
  0xdc   :  { %v6513_v63 = vld [vmem:[%s11980_s0 + $0xb48] sm:$0x7f]  ;;  %v1308_v14 = vmul.f32 %v6512_v58, %v1305_v52  ;;  %v1313_v22 = vadd.f32 %v1306_v6, %v1291_v2 }
  0xdd   :  { %v6514_v0 = vld [vmem:[%s11980_s0 + $0xba8] sm:$0x7f]  ;;  %v1309_v15 = vmul.f32 %v6513_v63, %v1305_v52  ;;  %v1314_v27 = vadd.f32 %v1307_v13, %v1292_v3 }
  0xde   :  { %v6515_v1 = vld [vmem:[%s11980_s0 + $0xc08] sm:$0x7f]  ;;  %v1310_v16 = vmul.f32 %v6514_v0, %v1305_v52  ;;  %v1315_v28 = vadd.f32 %v1308_v14, %v1293_v4 }
  0xdf   :  { %v6516_v5 = vld [vmem:[%s11980_s0 + $0xc68] sm:$0x7f]  ;;  %v1311_v20 = vmul.f32 %v6515_v1, %v1305_v52  ;;  %v1316_v29 = vadd.f32 %v1309_v15, %v1294_v10  ;;  %v6532_v1 = vld [vmem:[%s11980_s0 + $0x6f8] sm:$0x1] }
  0xe0   :  { %v6517_v7 = vld [vmem:[%s11980_s0 + $0x6c8] sm:$0xfe]  ;;  %v1312_v21 = vmul.f32 %v6516_v5, %v1305_v52  ;;  %v1317_v30 = vadd.f32 %v1310_v16, %v1295_v9 }
  0xe1   :  { %v6518_v17 = vld [vmem:[%s11980_s0 + $0x728] sm:$0xfe]  ;;  %v1328_v26 = vmul.f32 %v6517_v7, %v1327_v8  ;;  %v1318_v33 = vadd.f32 %v1311_v20, %v1296_v12  ;;  %v6534_v7 = vld [vmem:[%s11980_s0 + $0x758] sm:$0x1] }
  0xe2   :  { %v6519_v18 = vld [vmem:[%s11980_s0 + $0x788] sm:$0xfe]  ;;  %v1319_v34 = vadd.f32 %v1312_v21, %v1297_v11  ;;  %v1329_v35 = vmul.f32 %v6518_v17, %v1327_v8  ;;  %v6536_v11 = vld [vmem:[%s11980_s0 + $0x7b8] sm:$0x1] }
  0xe3   :  { %v6520_v19 = vld [vmem:[%s11980_s0 + $0x7e8] sm:$0xfe]  ;;  %v1330_v36 = vmul.f32 %v6519_v18, %v1327_v8  ;;  %v1342_v45 = vrot.slane %v1328_v26, 1 }
  0xe4   :  { %v6521_v23 = vld [vmem:[%s11980_s0 + $0x848] sm:$0xfe]  ;;  %v1331_v37 = vmul.f32 %v6520_v19, %v1327_v8  ;;  %v1343_v43 = vrot.slane %v1329_v35, 1  ;;  %v6538_v19 = vld [vmem:[%s11980_s0 + $0x818] sm:$0x1] }
  0xe5   :  { %v6522_v24 = vld [vmem:[%s11980_s0 + $0x8a8] sm:$0xfe]  ;;  %v1332_v38 = vmul.f32 %v6521_v23, %v1327_v8  ;;  %v1344_v46 = vrot.slane %v1330_v36, 1  ;;  %v1356_v54 = vadd.f32 %v1342_v45, %v1313_v22  ;;  %v1424_v36 = vmul.f32 %v6534_v7, %v1420_v60 }
  0xe6   :  { %v6523_v25 = vld [vmem:[%s11980_s0 + $0x908] sm:$0xfe]  ;;  %v1333_v39 = vmul.f32 %v6522_v24, %v1327_v8  ;;  %v1345_v49 = vrot.slane %v1331_v37, 1  ;;  %v1357_v55 = vadd.f32 %v1343_v43, %v1314_v27  ;;  %v6540_v24 = vld [vmem:[%s11980_s0 + $0x878] sm:$0x1] }
  0xe7   :  { %v6524_v31 = vld [vmem:[%s11980_s0 + $0xa28] sm:$0xfe]  ;;  %v1334_v40 = vmul.f32 %v6523_v25, %v1327_v8  ;;  %v1346_v50 = vrot.slane %v1332_v38, 1  ;;  %v1358_v56 = vadd.f32 %v1344_v46, %v1315_v28  ;;  %v1422_v25 = vmul.f32 %v6532_v1, %v1420_v60 }
  0xe8   :  { %v6525_v41 = vld [vmem:[%s11980_s0 + $0xa88] sm:$0xfe]  ;;  %v1371_v48 = vmul.f32 %v6524_v31, %v1370_v32  ;;  %v1347_v51 = vrot.slane %v1333_v39, 1  ;;  %v1359_v61 = vadd.f32 %v1345_v49, %v1316_v29  ;;  %v6542_v31 = vld [vmem:[%s11980_s0 + $0x8d8] sm:$0x1]  ;;  %v1426_v38 = vmul.f32 %v6536_v11, %v1420_v60 }
  0xe9   :  { %v6526_v44 = vld [vmem:[%s11980_s0 + $0xae8] sm:$0xfe]  ;;  %v1348_v52 = vrot.slane %v1334_v40, 1  ;;  %v1372_v58 = vmul.f32 %v6525_v41, %v1370_v32  ;;  %v1360_v62 = vadd.f32 %v1346_v50, %v1317_v30  ;;  %v1428_v40 = vmul.f32 %v6538_v19, %v1420_v60  ;;  %v1513_v19 = vld [vmem:[%s11981_s1 + $0x3b] ss:$0 sm:$0xff] }
  0xea   :  { %v6527_v42 = vld [vmem:[%s11980_s0 + $0xb48] sm:$0xfe]  ;;  %v1361_v63 = vadd.f32 %v1347_v51, %v1318_v33  ;;  %v1373_v2 = vmul.f32 %v6526_v44, %v1370_v32  ;;  %v1385_v9 = vrot.slane %v1371_v48, 1  ;;  %v1430_v44 = vmul.f32 %v6540_v24, %v1420_v60 }
  0xeb   :  { %v6528_v47 = vld [vmem:[%s11980_s0 + $0xba8] sm:$0xfe]  ;;  %v1362_v0 = vadd.f32 %v1348_v52, %v1319_v34  ;;  %v1374_v3 = vmul.f32 %v6527_v42, %v1370_v32  ;;  %v1386_v12 = vrot.slane %v1372_v58, 1  ;;  %v6544_v34 = vld [vmem:[%s11980_s0 + $0x938] sm:$0x1]  ;;  %v1432_v45 = vmul.f32 %v6542_v31, %v1420_v60 }
  0xec   :  { %v6529_v53 = vld [vmem:[%s11980_s0 + $0xc08] sm:$0xfe]  ;;  %v1375_v4 = vmul.f32 %v6528_v47, %v1370_v32  ;;  %v1387_v15 = vrot.slane %v1373_v2, 1  ;;  %v1399_v21 = vadd.f32 %v1385_v9, %v1356_v54  ;;  %v1434_v46 = vmul.f32 %v6544_v34, %v1420_v60 }
  0xed   :  { %v6530_v57 = vld [vmem:[%s11980_s0 + $0xc68] sm:$0xfe]  ;;  %v1376_v5 = vmul.f32 %v6529_v53, %v1370_v32  ;;  %v1388_v16 = vrot.slane %v1374_v3, 1  ;;  %v1400_v22 = vadd.f32 %v1386_v12, %v1357_v55  ;;  %v1450_v48 = vrot.slane %v1422_v25, 2 }
  0xee   :  { %v6531_v59 = vld [vmem:[%s11980_s0 + $0x6c8] sm:$0xfc]  ;;  %v1377_v10 = vmul.f32 %v6530_v57, %v1370_v32  ;;  %v1389_v17 = vrot.slane %v1375_v4, 1  ;;  %v1401_v26 = vadd.f32 %v1387_v15, %v1358_v56  ;;  %v1453_v50 = vrot.slane %v1424_v36, 2 }
  0xef   :  { %v6533_v6 = vld [vmem:[%s11980_s0 + $0x728] sm:$0xfc]  ;;  %v1421_v14 = vmul.f32 %v6531_v59, %v1420_v60  ;;  %v1390_v18 = vrot.slane %v1376_v5, 1  ;;  %v1402_v27 = vadd.f32 %v1388_v16, %v1359_v61  ;;  %v1456_v52 = vrot.slane %v1426_v38, 2 }
  0xf0   :  { %v6535_v8 = vld [vmem:[%s11980_s0 + $0x788] sm:$0xfc]  ;;  %v1391_v20 = vrot.slane %v1377_v10, 1  ;;  %v1403_v28 = vadd.f32 %v1389_v17, %v1360_v62  ;;  %v1423_v35 = vmul.f32 %v6533_v6, %v1420_v60  ;;  %v1459_v55 = vrot.slane %v1428_v40, 2  ;;  %v1491_v6 = vld [vmem:[%s11981_s1 + $0x3a] ss:$0 sm:$0xff] }
  0xf1   :  { %v6537_v13 = vld [vmem:[%s11980_s0 + $0x7e8] sm:$0xfc]  ;;  %v1404_v29 = vadd.f32 %v1390_v18, %v1361_v63  ;;  %v1425_v37 = vmul.f32 %v6535_v8, %v1420_v60  ;;  %v1449_v47 = vrot.slane %v1421_v14, 2  ;;  %v1462_v57 = vrot.slane %v1430_v44, 2 }
  0xf2   :  { %v6539_v23 = vld [vmem:[%s11980_s0 + $0x848] sm:$0xfc]  ;;  %v1405_v33 = vadd.f32 %v1391_v20, %v1362_v0  ;;  %v1427_v39 = vmul.f32 %v6537_v13, %v1420_v60  ;;  %v1452_v49 = vrot.slane %v1423_v35, 2  ;;  %v1465_v62 = vrot.slane %v1432_v45, 2 }
  0xf3   :  { %v6541_v30 = vld [vmem:[%s11980_s0 + $0x8a8] sm:$0xfc]  ;;  %v1429_v41 = vmul.f32 %v6539_v23, %v1420_v60  ;;  %v1455_v51 = vrot.slane %v1425_v37, 2  ;;  %v1451_v54 = vsel %vm185_vm0, %v1449_v47, %v1450_v48  ;;  %v1468_v4 = vrot.slane %v1434_v46, 2 }
  0xf4   :  { %v6543_v32 = vld [vmem:[%s11980_s0 + $0x908] sm:$0xfc]  ;;  %v1431_v42 = vmul.f32 %v6541_v30, %v1420_v60  ;;  %v1458_v53 = vrot.slane %v1427_v39, 2  ;;  %v1454_v59 = vsel %vm185_vm0, %v1452_v49, %v1453_v50  ;;  %v1477_v8 = vadd.f32 %v1451_v54, %v1399_v21  ;;  %v1535_v39 = vld [vmem:[%s11981_s1 + $0x3c] ss:$0 sm:$0xff] }
  0xf5   :  { %v1433_v43 = vmul.f32 %v6543_v32, %v1420_v60  ;;  %v1461_v56 = vrot.slane %v1429_v41, 2  ;;  %v6545_v58 = vld [vmem:[%s11980_s0 + $0x68] sm:$0x7f]  ;;  %v1457_v60 = vsel %vm185_vm0, %v1455_v51, %v1456_v52  ;;  %v1478_v10 = vadd.f32 %v1454_v59, %v1400_v22 }
  0xf6   :  { %v1464_v61 = vrot.slane %v1431_v42, 2  ;;  %v6546_v63 = vld [vmem:[%s11980_s0 + $0xc8] sm:$0x7f]  ;;  %v1460_v1 = vsel %vm185_vm0, %v1458_v53, %v1459_v55  ;;  %v1479_v9 = vadd.f32 %v1457_v60, %v1401_v26  ;;  %v1492_v21 = vmul.f32 %v6545_v58, %v1491_v6 }
  0xf7   :  { %v6547_v0 = vld [vmem:[%s11980_s0 + $0x128] sm:$0x7f]  ;;  %v1463_v2 = vsel %vm185_vm0, %v1461_v56, %v1462_v57  ;;  %v1467_v3 = vrot.slane %v1433_v43, 2  ;;  %v1480_v15 = vadd.f32 %v1460_v1, %v1402_v27  ;;  %v1493_v22 = vmul.f32 %v6546_v63, %v1491_v6  ;;  %v1578_v63 = vld [vmem:[%s11981_s1 + $0x3d] ss:$0 sm:$0xff] }
  0xf8   :  { %v6548_v5 = vld [vmem:[%s11980_s0 + $0x188] sm:$0x7f]  ;;  %v1466_v7 = vsel %vm185_vm0, %v1464_v61, %v1465_v62  ;;  %v1481_v16 = vadd.f32 %v1463_v2, %v1403_v28  ;;  %v1494_v23 = vmul.f32 %v6547_v0, %v1491_v6 }
  0xf9   :  { %v6549_v12 = vld [vmem:[%s11980_s0 + $0x1e8] sm:$0x7f]  ;;  %v1469_v14 = vsel %vm185_vm0, %v1467_v3, %v1468_v4  ;;  %v1482_v17 = vadd.f32 %v1466_v7, %v1404_v29  ;;  %v1495_v26 = vmul.f32 %v6548_v5, %v1491_v6  ;;  %v1500_v34 = vadd.f32 %v1493_v22, %v1478_v10 }
  0xfa   :  { %v6550_v11 = vld [vmem:[%s11980_s0 + $0x248] sm:$0x7f]  ;;  %v1483_v20 = vadd.f32 %v1469_v14, %v1405_v33  ;;  %v1496_v27 = vmul.f32 %v6549_v12, %v1491_v6  ;;  %v1499_v33 = vadd.f32 %v1492_v21, %v1477_v8  ;;  %v1501_v35 = vadd.f32 %v1494_v23, %v1479_v9 }
  0xfb   :  { %v6551_v13 = vld [vmem:[%s11980_s0 + $0x2a8] sm:$0x7f]  ;;  %v1497_v28 = vmul.f32 %v6550_v11, %v1491_v6  ;;  %v1502_v40 = vadd.f32 %v1495_v26, %v1480_v15 }
  0xfc   :  { %v6552_v18 = vld [vmem:[%s11980_s0 + $0x3c8] sm:$0x7f]  ;;  %v1498_v29 = vmul.f32 %v6551_v13, %v1491_v6  ;;  %v1503_v41 = vadd.f32 %v1496_v27, %v1481_v16  ;;  %v1628_v27 = vld [vmem:[%s11981_s1 + $0x3e] ss:$0 sm:$0xff] }
  0xfd   :  { %v6553_v24 = vld [vmem:[%s11980_s0 + $0x428] sm:$0x7f]  ;;  %v1514_v37 = vmul.f32 %v6552_v18, %v1513_v19  ;;  %v1504_v44 = vadd.f32 %v1497_v28, %v1482_v17 }
  0xfe   :  { %v6554_v25 = vld [vmem:[%s11980_s0 + $0x488] sm:$0x7f]  ;;  %v1505_v42 = vadd.f32 %v1498_v29, %v1483_v20  ;;  %v1515_v45 = vmul.f32 %v6553_v24, %v1513_v19 }
  0xff   :  { %v6555_v30 = vld [vmem:[%s11980_s0 + $0x4e8] sm:$0x7f]  ;;  %v1516_v43 = vmul.f32 %v6554_v25, %v1513_v19  ;;  %v1521_v53 = vadd.f32 %v1514_v37, %v1499_v33 }
 0x100   :  { %v6556_v31 = vld [vmem:[%s11980_s0 + $0x548] sm:$0x7f]  ;;  %v1517_v46 = vmul.f32 %v6555_v30, %v1513_v19  ;;  %v1522_v58 = vadd.f32 %v1515_v45, %v1500_v34 }
 0x101   :  { %v6557_v32 = vld [vmem:[%s11980_s0 + $0x5a8] sm:$0x7f]  ;;  %v1518_v47 = vmul.f32 %v6556_v31, %v1513_v19  ;;  %v1523_v59 = vadd.f32 %v1516_v43, %v1501_v35 }
 0x102   :  { %v6558_v36 = vld [vmem:[%s11980_s0 + $0x608] sm:$0x7f]  ;;  %v1519_v51 = vmul.f32 %v6557_v32, %v1513_v19  ;;  %v1524_v60 = vadd.f32 %v1517_v46, %v1502_v40  ;;  %v6574_v32 = vld [vmem:[%s11980_s0 + $0x98] sm:$0x1] }
 0x103   :  { %v6559_v38 = vld [vmem:[%s11980_s0 + $0x68] sm:$0xfe]  ;;  %v1520_v52 = vmul.f32 %v6558_v36, %v1513_v19  ;;  %v1525_v61 = vadd.f32 %v1518_v47, %v1503_v41 }
 0x104   :  { %v6560_v48 = vld [vmem:[%s11980_s0 + $0xc8] sm:$0xfe]  ;;  %v1536_v57 = vmul.f32 %v6559_v38, %v1535_v39  ;;  %v1526_v0 = vadd.f32 %v1519_v51, %v1504_v44  ;;  %v6576_v38 = vld [vmem:[%s11980_s0 + $0xf8] sm:$0x1] }
 0x105   :  { %v6561_v49 = vld [vmem:[%s11980_s0 + $0x128] sm:$0xfe]  ;;  %v1527_v1 = vadd.f32 %v1520_v52, %v1505_v42  ;;  %v1537_v2 = vmul.f32 %v6560_v48, %v1535_v39  ;;  %v6578_v42 = vld [vmem:[%s11980_s0 + $0x158] sm:$0x1] }
 0x106   :  { %v6562_v50 = vld [vmem:[%s11980_s0 + $0x188] sm:$0xfe]  ;;  %v1538_v3 = vmul.f32 %v6561_v49, %v1535_v39  ;;  %v1550_v12 = vrot.slane %v1536_v57, 1 }
 0x107   :  { %v6563_v54 = vld [vmem:[%s11980_s0 + $0x1e8] sm:$0xfe]  ;;  %v1539_v4 = vmul.f32 %v6562_v50, %v1535_v39  ;;  %v1551_v11 = vrot.slane %v1537_v2, 1  ;;  %v6580_v50 = vld [vmem:[%s11980_s0 + $0x1b8] sm:$0x1] }
 0x108   :  { %v6564_v55 = vld [vmem:[%s11980_s0 + $0x248] sm:$0xfe]  ;;  %v1540_v5 = vmul.f32 %v6563_v54, %v1535_v39  ;;  %v1552_v13 = vrot.slane %v1538_v3, 1  ;;  %v1564_v21 = vadd.f32 %v1550_v12, %v1521_v53  ;;  %v1632_v3 = vmul.f32 %v6576_v38, %v1628_v27 }
 0x109   :  { %v6565_v56 = vld [vmem:[%s11980_s0 + $0x2a8] sm:$0xfe]  ;;  %v1541_v6 = vmul.f32 %v6564_v55, %v1535_v39  ;;  %v1553_v16 = vrot.slane %v1539_v4, 1  ;;  %v1565_v22 = vadd.f32 %v1551_v11, %v1522_v58  ;;  %v6582_v55 = vld [vmem:[%s11980_s0 + $0x218] sm:$0x1] }
 0x10a   :  { %v6566_v62 = vld [vmem:[%s11980_s0 + $0x3c8] sm:$0xfe]  ;;  %v1542_v7 = vmul.f32 %v6565_v56, %v1535_v39  ;;  %v1554_v17 = vrot.slane %v1540_v5, 1  ;;  %v1566_v23 = vadd.f32 %v1552_v13, %v1523_v59  ;;  %v1630_v56 = vmul.f32 %v6574_v32, %v1628_v27 }
 0x10b   :  { %v6567_v8 = vld [vmem:[%s11980_s0 + $0x428] sm:$0xfe]  ;;  %v1579_v15 = vmul.f32 %v6566_v62, %v1578_v63  ;;  %v1555_v18 = vrot.slane %v1541_v6, 1  ;;  %v1567_v28 = vadd.f32 %v1553_v16, %v1524_v60  ;;  %v6584_v62 = vld [vmem:[%s11980_s0 + $0x278] sm:$0x1]  ;;  %v1634_v5 = vmul.f32 %v6578_v42, %v1628_v27 }
 0x10c   :  { %v6568_v10 = vld [vmem:[%s11980_s0 + $0x488] sm:$0xfe]  ;;  %v1556_v19 = vrot.slane %v1542_v7, 1  ;;  %v1580_v25 = vmul.f32 %v6567_v8, %v1578_v63  ;;  %v1568_v29 = vadd.f32 %v1554_v17, %v1525_v61  ;;  %v1636_v7 = vmul.f32 %v6580_v50, %v1628_v27  ;;  %v1721_v50 = vld [vmem:[%s11981_s1 + $0x68] ss:$0 sm:$0xff] }
 0x10d   :  { %v6569_v9 = vld [vmem:[%s11980_s0 + $0x4e8] sm:$0xfe]  ;;  %v1569_v30 = vadd.f32 %v1555_v18, %v1526_v0  ;;  %v1581_v33 = vmul.f32 %v6568_v10, %v1578_v63  ;;  %v1593_v41 = vrot.slane %v1579_v15, 1  ;;  %v1638_v10 = vmul.f32 %v6582_v55, %v1628_v27 }
 0x10e   :  { %v6570_v14 = vld [vmem:[%s11980_s0 + $0x548] sm:$0xfe]  ;;  %v1570_v31 = vadd.f32 %v1556_v19, %v1527_v1  ;;  %v1582_v34 = vmul.f32 %v6569_v9, %v1578_v63  ;;  %v1594_v44 = vrot.slane %v1580_v25, 1  ;;  %v6586_v1 = vld [vmem:[%s11980_s0 + $0x2d8] sm:$0x1]  ;;  %v1640_v12 = vmul.f32 %v6584_v62, %v1628_v27 }
 0x10f   :  { %v6571_v20 = vld [vmem:[%s11980_s0 + $0x5a8] sm:$0xfe]  ;;  %v1583_v35 = vmul.f32 %v6570_v14, %v1578_v63  ;;  %v1595_v46 = vrot.slane %v1581_v33, 1  ;;  %v1607_v52 = vadd.f32 %v1593_v41, %v1564_v21  ;;  %v1642_v13 = vmul.f32 %v6586_v1, %v1628_v27 }
 0x110   :  { %v6572_v24 = vld [vmem:[%s11980_s0 + $0x608] sm:$0xfe]  ;;  %v1584_v36 = vmul.f32 %v6571_v20, %v1578_v63  ;;  %v1596_v47 = vrot.slane %v1582_v34, 1  ;;  %v1608_v53 = vadd.f32 %v1594_v44, %v1565_v22  ;;  %v1658_v15 = vrot.slane %v1630_v56, 2 }
 0x111   :  { %v6573_v26 = vld [vmem:[%s11980_s0 + $0x68] sm:$0xfc]  ;;  %v1585_v40 = vmul.f32 %v6572_v24, %v1578_v63  ;;  %v1597_v48 = vrot.slane %v1583_v35, 1  ;;  %v1609_v57 = vadd.f32 %v1595_v46, %v1566_v23  ;;  %v1661_v17 = vrot.slane %v1632_v3, 2 }
 0x112   :  { %v6575_v37 = vld [vmem:[%s11980_s0 + $0xc8] sm:$0xfc]  ;;  %v1629_v43 = vmul.f32 %v6573_v26, %v1628_v27  ;;  %v1598_v49 = vrot.slane %v1584_v36, 1  ;;  %v1610_v58 = vadd.f32 %v1596_v47, %v1567_v28  ;;  %v1664_v19 = vrot.slane %v1634_v5, 2 }
 0x113   :  { %v6577_v39 = vld [vmem:[%s11980_s0 + $0x128] sm:$0xfc]  ;;  %v1599_v51 = vrot.slane %v1585_v40, 1  ;;  %v1611_v59 = vadd.f32 %v1597_v48, %v1568_v29  ;;  %v1631_v2 = vmul.f32 %v6575_v37, %v1628_v27  ;;  %v1667_v22 = vrot.slane %v1636_v7, 2  ;;  %v1699_v37 = vld [vmem:[%s11981_s1 + $0x3f] ss:$0 sm:$0xff] }
 0x114   :  { %v6579_v45 = vld [vmem:[%s11980_s0 + $0x188] sm:$0xfc]  ;;  %v1612_v60 = vadd.f32 %v1598_v49, %v1569_v30  ;;  %v1633_v4 = vmul.f32 %v6577_v39, %v1628_v27  ;;  %v1657_v14 = vrot.slane %v1629_v43, 2  ;;  %v1670_v24 = vrot.slane %v1638_v10, 2 }
 0x115   :  { %v6581_v54 = vld [vmem:[%s11980_s0 + $0x1e8] sm:$0xfc]  ;;  %v1613_v0 = vadd.f32 %v1599_v51, %v1570_v31  ;;  %v1635_v6 = vmul.f32 %v6579_v45, %v1628_v27  ;;  %v1660_v16 = vrot.slane %v1631_v2, 2  ;;  %v1673_v29 = vrot.slane %v1640_v12, 2 }
 0x116   :  { %v6583_v61 = vld [vmem:[%s11980_s0 + $0x248] sm:$0xfc]  ;;  %v1637_v8 = vmul.f32 %v6581_v54, %v1628_v27  ;;  %v1663_v18 = vrot.slane %v1633_v4, 2  ;;  %v1659_v21 = vsel %vm185_vm0, %v1657_v14, %v1658_v15  ;;  %v1676_v35 = vrot.slane %v1642_v13, 2 }
 0x117   :  { %v6585_v63 = vld [vmem:[%s11980_s0 + $0x2a8] sm:$0xfc]  ;;  %v1639_v9 = vmul.f32 %v6583_v61, %v1628_v27  ;;  %v1666_v20 = vrot.slane %v1635_v6, 2  ;;  %v1662_v26 = vsel %vm185_vm0, %v1660_v16, %v1661_v17  ;;  %v1685_v39 = vadd.f32 %v1659_v21, %v1607_v52  ;;  %v1743_v6 = vld [vmem:[%s11981_s1 + $0x69] ss:$0 sm:$0xff] }
 0x118   :  { %v1641_v11 = vmul.f32 %v6585_v63, %v1628_v27  ;;  %v1669_v23 = vrot.slane %v1637_v8, 2  ;;  %v6587_v25 = vld [vmem:[%s11980_s0 + $0x728] sm:$0x7f]  ;;  %v1665_v27 = vsel %vm185_vm0, %v1663_v18, %v1664_v19  ;;  %v1686_v40 = vadd.f32 %v1662_v26, %v1608_v53 }
 0x119   :  { %v1672_v28 = vrot.slane %v1639_v9, 2  ;;  %v6588_v30 = vld [vmem:[%s11980_s0 + $0x788] sm:$0x7f]  ;;  %v1668_v32 = vsel %vm185_vm0, %v1666_v20, %v1667_v22  ;;  %v1687_v41 = vadd.f32 %v1665_v27, %v1609_v57  ;;  %v1700_v52 = vmul.f32 %v6587_v25, %v1699_v37 }
 0x11a   :  { %v6589_v31 = vld [vmem:[%s11980_s0 + $0x7e8] sm:$0x7f]  ;;  %v1671_v33 = vsel %vm185_vm0, %v1669_v23, %v1670_v24  ;;  %v1675_v34 = vrot.slane %v1641_v11, 2  ;;  %v1688_v46 = vadd.f32 %v1668_v32, %v1610_v58  ;;  %v1701_v53 = vmul.f32 %v6588_v30, %v1699_v37 }
 0x11b   :  { %v6590_v36 = vld [vmem:[%s11980_s0 + $0x848] sm:$0x7f]  ;;  %v1674_v38 = vsel %vm185_vm0, %v1672_v28, %v1673_v29  ;;  %v1689_v47 = vadd.f32 %v1671_v33, %v1611_v59  ;;  %v1702_v54 = vmul.f32 %v6589_v31, %v1699_v37 }
 0x11c   :  { %v6591_v44 = vld [vmem:[%s11980_s0 + $0x8a8] sm:$0x7f]  ;;  %v1677_v43 = vsel %vm185_vm0, %v1675_v34, %v1676_v35  ;;  %v1690_v48 = vadd.f32 %v1674_v38, %v1612_v60  ;;  %v1703_v57 = vmul.f32 %v6590_v36, %v1699_v37  ;;  %v1708_v1 = vadd.f32 %v1701_v53, %v1686_v40 }
 0x11d   :  { %v6592_v42 = vld [vmem:[%s11980_s0 + $0x908] sm:$0x7f]  ;;  %v1691_v51 = vadd.f32 %v1677_v43, %v1613_v0  ;;  %v1704_v58 = vmul.f32 %v6591_v44, %v1699_v37  ;;  %v1707_v0 = vadd.f32 %v1700_v52, %v1685_v39  ;;  %v1709_v2 = vadd.f32 %v1702_v54, %v1687_v41 }
 0x11e   :  { %v6593_v45 = vld [vmem:[%s11980_s0 + $0x968] sm:$0x7f]  ;;  %v1705_v59 = vmul.f32 %v6592_v42, %v1699_v37  ;;  %v1710_v7 = vadd.f32 %v1703_v57, %v1688_v46 }
 0x11f   :  { %v6594_v49 = vld [vmem:[%s11980_s0 + $0xa88] sm:$0x7f]  ;;  %v1706_v60 = vmul.f32 %v6593_v45, %v1699_v37  ;;  %v1711_v8 = vadd.f32 %v1704_v58, %v1689_v47 }
 0x120   :  { %v6595_v55 = vld [vmem:[%s11980_s0 + $0xae8] sm:$0x7f]  ;;  %v1722_v4 = vmul.f32 %v6594_v49, %v1721_v50  ;;  %v1712_v10 = vadd.f32 %v1705_v59, %v1690_v48 }
 0x121   :  { %v6596_v56 = vld [vmem:[%s11980_s0 + $0xb48] sm:$0x7f]  ;;  %v1713_v9 = vadd.f32 %v1706_v60, %v1691_v51  ;;  %v1723_v12 = vmul.f32 %v6595_v55, %v1721_v50 }
 0x122   :  { %v6597_v61 = vld [vmem:[%s11980_s0 + $0xba8] sm:$0x7f]  ;;  %v1724_v11 = vmul.f32 %v6596_v56, %v1721_v50  ;;  %v1729_v20 = vadd.f32 %v1722_v4, %v1707_v0 }
 0x123   :  { %v6598_v62 = vld [vmem:[%s11980_s0 + $0xc08] sm:$0x7f]  ;;  %v1725_v13 = vmul.f32 %v6597_v61, %v1721_v50  ;;  %v1730_v25 = vadd.f32 %v1723_v12, %v1708_v1 }
 0x124   :  { %v6599_v63 = vld [vmem:[%s11980_s0 + $0xc68] sm:$0x7f]  ;;  %v1726_v14 = vmul.f32 %v6598_v62, %v1721_v50  ;;  %v1731_v26 = vadd.f32 %v1724_v11, %v1709_v2 }
 0x125   :  { %v6600_v3 = vld [vmem:[%s11980_s0 + $0xcc8] sm:$0x7f]  ;;  %v1727_v18 = vmul.f32 %v6599_v63, %v1721_v50  ;;  %v1732_v27 = vadd.f32 %v1725_v13, %v1710_v7  ;;  %v6616_v63 = vld [vmem:[%s11980_s0 + $0x758] sm:$0x1] }
 0x126   :  { %v6601_v5 = vld [vmem:[%s11980_s0 + $0x728] sm:$0xfe]  ;;  %v1728_v19 = vmul.f32 %v6600_v3, %v1721_v50  ;;  %v1733_v28 = vadd.f32 %v1726_v14, %v1711_v8 }
 0x127   :  { %v6602_v15 = vld [vmem:[%s11980_s0 + $0x788] sm:$0xfe]  ;;  %v1744_v24 = vmul.f32 %v6601_v5, %v1743_v6  ;;  %v1734_v31 = vadd.f32 %v1727_v18, %v1712_v10  ;;  %v6618_v5 = vld [vmem:[%s11980_s0 + $0x7b8] sm:$0x1] }
 0x128   :  { %v6603_v16 = vld [vmem:[%s11980_s0 + $0x7e8] sm:$0xfe]  ;;  %v1735_v32 = vadd.f32 %v1728_v19, %v1713_v9  ;;  %v1745_v33 = vmul.f32 %v6602_v15, %v1743_v6  ;;  %v6620_v9 = vld [vmem:[%s11980_s0 + $0x818] sm:$0x1] }
 0x129   :  { %v6604_v17 = vld [vmem:[%s11980_s0 + $0x848] sm:$0xfe]  ;;  %v1746_v34 = vmul.f32 %v6603_v16, %v1743_v6  ;;  %v1758_v44 = vrot.slane %v1744_v24, 1 }
 0x12a   :  { %v6605_v21 = vld [vmem:[%s11980_s0 + $0x8a8] sm:$0xfe]  ;;  %v1747_v35 = vmul.f32 %v6604_v17, %v1743_v6  ;;  %v1759_v42 = vrot.slane %v1745_v33, 1  ;;  %v6622_v17 = vld [vmem:[%s11980_s0 + $0x878] sm:$0x1] }
 0x12b   :  { %v6606_v22 = vld [vmem:[%s11980_s0 + $0x908] sm:$0xfe]  ;;  %v1748_v36 = vmul.f32 %v6605_v21, %v1743_v6  ;;  %v1760_v45 = vrot.slane %v1746_v34, 1  ;;  %v1772_v52 = vadd.f32 %v1758_v44, %v1729_v20 }
 0x12c   :  { %v6607_v23 = vld [vmem:[%s11980_s0 + $0x968] sm:$0xfe]  ;;  %v1749_v37 = vmul.f32 %v6606_v22, %v1743_v6  ;;  %v1761_v47 = vrot.slane %v1747_v35, 1  ;;  %v1773_v53 = vadd.f32 %v1759_v42, %v1730_v25  ;;  %v6624_v22 = vld [vmem:[%s11980_s0 + $0x8d8] sm:$0x1] }
 0x12d   :  { %v6608_v29 = vld [vmem:[%s11980_s0 + $0xa88] sm:$0xfe]  ;;  %v1750_v38 = vmul.f32 %v6607_v23, %v1743_v6  ;;  %v1762_v48 = vrot.slane %v1748_v36, 1  ;;  %v1774_v54 = vadd.f32 %v1760_v45, %v1731_v26 }
 0x12e   :  { %v1786_v30 = vld [vmem:[%s11981_s1 + $0x6a] ss:$0 sm:$0xff]  ;;  %v1763_v49 = vrot.slane %v1749_v37, 1  ;;  %v1836_v58 = vld [vmem:[%s11981_s1 + $0x6b] ss:$0 sm:$0xff]  ;;  %v1775_v59 = vadd.f32 %v1761_v47, %v1732_v27 }
 0x12f   :  { %v6609_v39 = vld [vmem:[%s11980_s0 + $0xae8] sm:$0xfe]  ;;  %v1787_v46 = vmul.f32 %v6608_v29, %v1786_v30  ;;  %v1764_v50 = vrot.slane %v1750_v38, 1  ;;  %v1776_v60 = vadd.f32 %v1762_v48, %v1733_v28  ;;  %v1838_v23 = vmul.f32 %v6616_v63, %v1836_v58  ;;  %v6626_v29 = vld [vmem:[%s11980_s0 + $0x938] sm:$0x1] }
 0x130   :  { %v6610_v40 = vld [vmem:[%s11980_s0 + $0xb48] sm:$0xfe]  ;;  %v1788_v56 = vmul.f32 %v6609_v39, %v1786_v30  ;;  %v1777_v61 = vadd.f32 %v1763_v49, %v1734_v31  ;;  %v1840_v34 = vmul.f32 %v6618_v5, %v1836_v58  ;;  %v1842_v36 = vmul.f32 %v6620_v9, %v1836_v58 }
 0x131   :  { %v6611_v41 = vld [vmem:[%s11980_s0 + $0xba8] sm:$0xfe]  ;;  %v1778_v62 = vadd.f32 %v1764_v50, %v1735_v32  ;;  %v1789_v0 = vmul.f32 %v6610_v40, %v1786_v30  ;;  %v1801_v8 = vrot.slane %v1787_v46, 1  ;;  %v6628_v32 = vld [vmem:[%s11980_s0 + $0x998] sm:$0x1]  ;;  %v1844_v38 = vmul.f32 %v6622_v17, %v1836_v58 }
 0x132   :  { %v6612_v43 = vld [vmem:[%s11980_s0 + $0xc08] sm:$0xfe]  ;;  %v1790_v1 = vmul.f32 %v6611_v41, %v1786_v30  ;;  %v1802_v10 = vrot.slane %v1788_v56, 1  ;;  %v1846_v40 = vmul.f32 %v6624_v22, %v1836_v58  ;;  %v1848_v44 = vmul.f32 %v6626_v29, %v1836_v58 }
 0x133   :  { %v6613_v51 = vld [vmem:[%s11980_s0 + $0xc68] sm:$0xfe]  ;;  %v1791_v2 = vmul.f32 %v6612_v43, %v1786_v30  ;;  %v1803_v13 = vrot.slane %v1789_v0, 1  ;;  %v1815_v19 = vadd.f32 %v1801_v8, %v1772_v52  ;;  %v1850_v45 = vmul.f32 %v6628_v32, %v1836_v58 }
 0x134   :  { %v6614_v55 = vld [vmem:[%s11980_s0 + $0xcc8] sm:$0xfe]  ;;  %v1792_v3 = vmul.f32 %v6613_v51, %v1786_v30  ;;  %v1804_v14 = vrot.slane %v1790_v1, 1  ;;  %v1816_v20 = vadd.f32 %v1802_v10, %v1773_v53  ;;  %v1866_v46 = vrot.slane %v1838_v23, 2 }
 0x135   :  { %v6615_v57 = vld [vmem:[%s11980_s0 + $0x728] sm:$0xfc]  ;;  %v1793_v7 = vmul.f32 %v6614_v55, %v1786_v30  ;;  %v1805_v15 = vrot.slane %v1791_v2, 1  ;;  %v1817_v24 = vadd.f32 %v1803_v13, %v1774_v54  ;;  %v1869_v48 = vrot.slane %v1840_v34, 2 }
 0x136   :  { %v6617_v4 = vld [vmem:[%s11980_s0 + $0x788] sm:$0xfc]  ;;  %v1837_v11 = vmul.f32 %v6615_v57, %v1836_v58  ;;  %v1806_v16 = vrot.slane %v1792_v3, 1  ;;  %v1818_v25 = vadd.f32 %v1804_v14, %v1775_v59  ;;  %v1872_v50 = vrot.slane %v1842_v36, 2 }
 0x137   :  { %v6619_v6 = vld [vmem:[%s11980_s0 + $0x7e8] sm:$0xfc]  ;;  %v1807_v18 = vrot.slane %v1793_v7, 1  ;;  %v1819_v26 = vadd.f32 %v1805_v15, %v1776_v60  ;;  %v1839_v33 = vmul.f32 %v6617_v4, %v1836_v58  ;;  %v1875_v53 = vrot.slane %v1844_v38, 2 }
 0x138   :  { %v6621_v12 = vld [vmem:[%s11980_s0 + $0x848] sm:$0xfc]  ;;  %v1820_v27 = vadd.f32 %v1806_v16, %v1777_v61  ;;  %v1841_v35 = vmul.f32 %v6619_v6, %v1836_v58  ;;  %v1865_v43 = vrot.slane %v1837_v11, 2  ;;  %v1878_v55 = vrot.slane %v1846_v40, 2 }
 0x139   :  { %v6623_v21 = vld [vmem:[%s11980_s0 + $0x8a8] sm:$0xfc]  ;;  %v1821_v31 = vadd.f32 %v1807_v18, %v1778_v62  ;;  %v1843_v37 = vmul.f32 %v6621_v12, %v1836_v58  ;;  %v1868_v47 = vrot.slane %v1839_v33, 2  ;;  %v1881_v60 = vrot.slane %v1848_v44, 2 }
 0x13a   :  { %v6625_v28 = vld [vmem:[%s11980_s0 + $0x908] sm:$0xfc]  ;;  %v1845_v39 = vmul.f32 %v6623_v21, %v1836_v58  ;;  %v1871_v49 = vrot.slane %v1841_v35, 2  ;;  %v1867_v52 = vsel %vm185_vm0, %v1865_v43, %v1866_v46  ;;  %v1884_v2 = vrot.slane %v1850_v45, 2 }
 0x13b   :  { %v6627_v30 = vld [vmem:[%s11980_s0 + $0x968] sm:$0xfc]  ;;  %v1847_v41 = vmul.f32 %v6625_v28, %v1836_v58  ;;  %v1874_v51 = vrot.slane %v1843_v37, 2  ;;  %v1870_v57 = vsel %vm185_vm0, %v1868_v47, %v1869_v48  ;;  %v1893_v6 = vadd.f32 %v1867_v52, %v1815_v19 }
 0x13c   :  { %v1849_v42 = vmul.f32 %v6627_v30, %v1836_v58  ;;  %v1877_v54 = vrot.slane %v1845_v39, 2  ;;  %v6629_v56 = vld [vmem:[%s11980_s0 + $0xc8] sm:$0x7f]  ;;  %v1873_v58 = vsel %vm185_vm0, %v1871_v49, %v1872_v50  ;;  %v1894_v7 = vadd.f32 %v1870_v57, %v1816_v20 }
 0x13d   :  { %v1880_v59 = vrot.slane %v1847_v41, 2  ;;  %v6630_v61 = vld [vmem:[%s11980_s0 + $0x128] sm:$0x7f]  ;;  %v1876_v63 = vsel %vm185_vm0, %v1874_v51, %v1875_v53  ;;  %v1895_v8 = vadd.f32 %v1873_v58, %v1817_v24 }
 0x13e   :  { %v6631_v62 = vld [vmem:[%s11980_s0 + $0x188] sm:$0x7f]  ;;  %v1879_v0 = vsel %vm185_vm0, %v1877_v54, %v1878_v55  ;;  %v1883_v1 = vrot.slane %v1849_v42, 2  ;;  %v1896_v13 = vadd.f32 %v1876_v63, %v1818_v25 }
 0x13f   :  { %v6632_v3 = vld [vmem:[%s11980_s0 + $0x1e8] sm:$0x7f]  ;;  %v1882_v5 = vsel %vm185_vm0, %v1880_v59, %v1881_v60  ;;  %v1897_v14 = vadd.f32 %v1879_v0, %v1819_v26 }
 0x140   :  { %v1907_v4 = vld [vmem:[%s11981_s1 + $0x6c] ss:$0 sm:$0xff]  ;;  %v1885_v11 = vsel %vm185_vm0, %v1883_v1, %v1884_v2  ;;  %v1898_v15 = vadd.f32 %v1882_v5, %v1820_v27  ;;  %v1929_v17 = vld [vmem:[%s11981_s1 + $0x6d] ss:$0 sm:$0xff]  ;;  %v1951_v37 = vld [vmem:[%s11981_s1 + $0x6e] ss:$0 sm:$0xff] }
 0x141   :  { %v6633_v10 = vld [vmem:[%s11980_s0 + $0x248] sm:$0x7f]  ;;  %v1899_v18 = vadd.f32 %v1885_v11, %v1821_v31  ;;  %v1908_v19 = vmul.f32 %v6629_v56, %v1907_v4  ;;  %v1909_v20 = vmul.f32 %v6630_v61, %v1907_v4  ;;  %v1910_v21 = vmul.f32 %v6631_v62, %v1907_v4  ;;  %v1994_v61 = vld [vmem:[%s11981_s1 + $0x6f] ss:$0 sm:$0xff] }
 0x142   :  { %v6634_v9 = vld [vmem:[%s11980_s0 + $0x2a8] sm:$0x7f]  ;;  %v1911_v24 = vmul.f32 %v6632_v3, %v1907_v4  ;;  %v1912_v25 = vmul.f32 %v6633_v10, %v1907_v4 }
 0x143   :  { %v6635_v12 = vld [vmem:[%s11980_s0 + $0x308] sm:$0x7f]  ;;  %v1913_v26 = vmul.f32 %v6634_v9, %v1907_v4  ;;  %v1915_v31 = vadd.f32 %v1908_v19, %v1893_v6  ;;  %v1916_v32 = vadd.f32 %v1909_v20, %v1894_v7  ;;  %v1917_v33 = vadd.f32 %v1910_v21, %v1895_v8 }
 0x144   :  { %v6636_v16 = vld [vmem:[%s11980_s0 + $0x428] sm:$0x7f]  ;;  %v1914_v27 = vmul.f32 %v6635_v12, %v1907_v4  ;;  %v1918_v38 = vadd.f32 %v1911_v24, %v1896_v13  ;;  %v1919_v39 = vadd.f32 %v1912_v25, %v1897_v14  ;;  %v2044_v25 = vld [vmem:[%s11981_s1 + $0x98] ss:$0 sm:$0xff] }
 0x145   :  { %v6637_v22 = vld [vmem:[%s11980_s0 + $0x488] sm:$0x7f]  ;;  %v1930_v35 = vmul.f32 %v6636_v16, %v1929_v17  ;;  %v1920_v40 = vadd.f32 %v1913_v26, %v1898_v15 }
 0x146   :  { %v6638_v23 = vld [vmem:[%s11980_s0 + $0x4e8] sm:$0x7f]  ;;  %v1921_v41 = vadd.f32 %v1914_v27, %v1899_v18  ;;  %v1931_v44 = vmul.f32 %v6637_v22, %v1929_v17 }
 0x147   :  { %v6639_v28 = vld [vmem:[%s11980_s0 + $0x548] sm:$0x7f]  ;;  %v1932_v42 = vmul.f32 %v6638_v23, %v1929_v17  ;;  %v1937_v51 = vadd.f32 %v1930_v35, %v1915_v31 }
 0x148   :  { %v6640_v29 = vld [vmem:[%s11980_s0 + $0x5a8] sm:$0x7f]  ;;  %v1933_v45 = vmul.f32 %v6639_v28, %v1929_v17  ;;  %v1938_v56 = vadd.f32 %v1931_v44, %v1916_v32 }
 0x149   :  { %v6641_v30 = vld [vmem:[%s11980_s0 + $0x608] sm:$0x7f]  ;;  %v1934_v43 = vmul.f32 %v6640_v29, %v1929_v17  ;;  %v1939_v57 = vadd.f32 %v1932_v42, %v1917_v33 }
 0x14a   :  { %v6642_v34 = vld [vmem:[%s11980_s0 + $0x668] sm:$0x7f]  ;;  %v1935_v49 = vmul.f32 %v6641_v30, %v1929_v17  ;;  %v1940_v58 = vadd.f32 %v1933_v45, %v1918_v38  ;;  %v6658_v30 = vld [vmem:[%s11980_s0 + $0xf8] sm:$0x1] }
 0x14b   :  { %v6643_v36 = vld [vmem:[%s11980_s0 + $0xc8] sm:$0xfe]  ;;  %v1936_v50 = vmul.f32 %v6642_v34, %v1929_v17  ;;  %v1941_v59 = vadd.f32 %v1934_v43, %v1919_v39 }
 0x14c   :  { %v6644_v46 = vld [vmem:[%s11980_s0 + $0x128] sm:$0xfe]  ;;  %v1952_v55 = vmul.f32 %v6643_v36, %v1951_v37  ;;  %v1942_v62 = vadd.f32 %v1935_v49, %v1920_v40  ;;  %v6660_v36 = vld [vmem:[%s11980_s0 + $0x158] sm:$0x1] }
 0x14d   :  { %v6645_v47 = vld [vmem:[%s11980_s0 + $0x188] sm:$0xfe]  ;;  %v1943_v63 = vadd.f32 %v1936_v50, %v1921_v41  ;;  %v1953_v0 = vmul.f32 %v6644_v46, %v1951_v37  ;;  %v6662_v41 = vld [vmem:[%s11980_s0 + $0x1b8] sm:$0x1] }
 0x14e   :  { %v6646_v48 = vld [vmem:[%s11980_s0 + $0x1e8] sm:$0xfe]  ;;  %v1954_v1 = vmul.f32 %v6645_v47, %v1951_v37  ;;  %v1966_v10 = vrot.slane %v1952_v55, 1 }
 0x14f   :  { %v6647_v52 = vld [vmem:[%s11980_s0 + $0x248] sm:$0xfe]  ;;  %v1955_v2 = vmul.f32 %v6646_v48, %v1951_v37  ;;  %v1967_v9 = vrot.slane %v1953_v0, 1  ;;  %v6664_v48 = vld [vmem:[%s11980_s0 + $0x218] sm:$0x1] }
 0x150   :  { %v6648_v53 = vld [vmem:[%s11980_s0 + $0x2a8] sm:$0xfe]  ;;  %v1956_v3 = vmul.f32 %v6647_v52, %v1951_v37  ;;  %v1968_v12 = vrot.slane %v1954_v1, 1  ;;  %v1980_v19 = vadd.f32 %v1966_v10, %v1937_v51  ;;  %v2048_v1 = vmul.f32 %v6660_v36, %v2044_v25 }
 0x151   :  { %v6649_v54 = vld [vmem:[%s11980_s0 + $0x308] sm:$0xfe]  ;;  %v1957_v4 = vmul.f32 %v6648_v53, %v1951_v37  ;;  %v1969_v14 = vrot.slane %v1955_v2, 1  ;;  %v1981_v20 = vadd.f32 %v1967_v9, %v1938_v56  ;;  %v6666_v53 = vld [vmem:[%s11980_s0 + $0x278] sm:$0x1] }
 0x152   :  { %v6650_v60 = vld [vmem:[%s11980_s0 + $0x428] sm:$0xfe]  ;;  %v1958_v5 = vmul.f32 %v6649_v54, %v1951_v37  ;;  %v1970_v15 = vrot.slane %v1956_v3, 1  ;;  %v1982_v21 = vadd.f32 %v1968_v12, %v1939_v57  ;;  %v2046_v54 = vmul.f32 %v6658_v30, %v2044_v25  ;;  %v2118_v30 = vld [vmem:[%s11980_s0 + $0x130] sm:$0x7f] }
 0x153   :  { %v6651_v6 = vld [vmem:[%s11980_s0 + $0x488] sm:$0xfe]  ;;  %v1995_v13 = vmul.f32 %v6650_v60, %v1994_v61  ;;  %v1971_v16 = vrot.slane %v1957_v4, 1  ;;  %v1983_v26 = vadd.f32 %v1969_v14, %v1940_v58  ;;  %v6668_v60 = vld [vmem:[%s11980_s0 + $0x2d8] sm:$0x1]  ;;  %v2050_v3 = vmul.f32 %v6662_v41, %v2044_v25 }
 0x154   :  { %v6652_v7 = vld [vmem:[%s11980_s0 + $0x4e8] sm:$0xfe]  ;;  %v1972_v17 = vrot.slane %v1958_v5, 1  ;;  %v1996_v23 = vmul.f32 %v6651_v6, %v1994_v61  ;;  %v1984_v27 = vadd.f32 %v1970_v15, %v1941_v59  ;;  %v2052_v5 = vmul.f32 %v6664_v48, %v2044_v25 }
 0x155   :  { %v6653_v8 = vld [vmem:[%s11980_s0 + $0x548] sm:$0xfe]  ;;  %v1985_v28 = vadd.f32 %v1971_v16, %v1942_v62  ;;  %v1997_v31 = vmul.f32 %v6652_v7, %v1994_v61  ;;  %v2009_v39 = vrot.slane %v1995_v13, 1  ;;  %v2054_v7 = vmul.f32 %v6666_v53, %v2044_v25  ;;  %v2144_v53 = vld [vmem:[%s11981_s1 + $0x11] ss:$0 sm:$0xff] }
 0x156   :  { %v6654_v11 = vld [vmem:[%s11980_s0 + $0x5a8] sm:$0xfe]  ;;  %v1986_v29 = vadd.f32 %v1972_v17, %v1943_v63  ;;  %v1998_v32 = vmul.f32 %v6653_v8, %v1994_v61  ;;  %v2010_v40 = vrot.slane %v1996_v23, 1  ;;  %v6670_v63 = vld [vmem:[%s11980_s0 + $0x338] sm:$0x1]  ;;  %v2056_v10 = vmul.f32 %v6668_v60, %v2044_v25 }
 0x157   :  { %v6655_v18 = vld [vmem:[%s11980_s0 + $0x608] sm:$0xfe]  ;;  %v1999_v33 = vmul.f32 %v6654_v11, %v1994_v61  ;;  %v2011_v45 = vrot.slane %v1997_v31, 1  ;;  %v2023_v50 = vadd.f32 %v2009_v39, %v1980_v19  ;;  %v2058_v12 = vmul.f32 %v6670_v63, %v2044_v25  ;;  %v2115_v23 = vld [vmem:[%s11980_s0 + $0x10] sm:$0x7f] }
 0x158   :  { %v6656_v22 = vld [vmem:[%s11980_s0 + $0x668] sm:$0xfe]  ;;  %v2000_v34 = vmul.f32 %v6655_v18, %v1994_v61  ;;  %v2012_v43 = vrot.slane %v1998_v32, 1  ;;  %v2024_v51 = vadd.f32 %v2010_v40, %v1981_v20  ;;  %v2074_v13 = vrot.slane %v2046_v54, 2  ;;  %v2119_v31 = vld [vmem:[%s11980_s0 + $0x190] sm:$0x7f] }
 0x159   :  { %v6657_v24 = vld [vmem:[%s11980_s0 + $0xc8] sm:$0xfc]  ;;  %v2001_v38 = vmul.f32 %v6656_v22, %v1994_v61  ;;  %v2013_v46 = vrot.slane %v1999_v33, 1  ;;  %v2025_v55 = vadd.f32 %v2011_v45, %v1982_v21  ;;  %v2077_v15 = vrot.slane %v2048_v1, 2  ;;  %v2120_v32 = vld [vmem:[%s11980_s0 + $0x1f0] sm:$0x7f] }
 0x15a   :  { %v6659_v35 = vld [vmem:[%s11980_s0 + $0x128] sm:$0xfc]  ;;  %v2045_v42 = vmul.f32 %v6657_v24, %v2044_v25  ;;  %v2014_v47 = vrot.slane %v2000_v34, 1  ;;  %v2026_v56 = vadd.f32 %v2012_v43, %v1983_v26  ;;  %v2080_v17 = vrot.slane %v2050_v3, 2  ;;  %v2116_v24 = vld [vmem:[%s11980_s0 + $0x70] sm:$0x7f] }
 0x15b   :  { %v6661_v37 = vld [vmem:[%s11980_s0 + $0x188] sm:$0xfc]  ;;  %v2015_v49 = vrot.slane %v2001_v38, 1  ;;  %v2027_v57 = vadd.f32 %v2013_v46, %v1984_v27  ;;  %v2047_v0 = vmul.f32 %v6659_v35, %v2044_v25  ;;  %v2083_v20 = vrot.slane %v2052_v5, 2  ;;  %v2121_v33 = vld [vmem:[%s11980_s0 + $0x250] sm:$0x7f] }
 0x15c   :  { %v6663_v44 = vld [vmem:[%s11980_s0 + $0x1e8] sm:$0xfc]  ;;  %v2028_v58 = vadd.f32 %v2014_v47, %v1985_v28  ;;  %v2049_v2 = vmul.f32 %v6661_v37, %v2044_v25  ;;  %v2073_v11 = vrot.slane %v2045_v42, 2  ;;  %v2086_v22 = vrot.slane %v2054_v7, 2  ;;  %v2122_v38 = vld [vmem:[%s11981_s1 + $0x10] ss:$0 sm:$0xff] }
 0x15d   :  { %v6665_v52 = vld [vmem:[%s11980_s0 + $0x248] sm:$0xfc]  ;;  %v2029_v62 = vadd.f32 %v2015_v49, %v1986_v29  ;;  %v2051_v4 = vmul.f32 %v6663_v44, %v2044_v25  ;;  %v2076_v14 = vrot.slane %v2047_v0, 2  ;;  %v2089_v29 = vrot.slane %v2056_v10, 2  ;;  %v6671_v39 = vld [vmem:[%s11980_s0 + $0x370] sm:$0x7f] }
 0x15e   :  { %v6667_v59 = vld [vmem:[%s11980_s0 + $0x2a8] sm:$0xfc]  ;;  %v2053_v6 = vmul.f32 %v6665_v52, %v2044_v25  ;;  %v2079_v16 = vrot.slane %v2049_v2, 2  ;;  %v2075_v19 = vsel %vm185_vm0, %v2073_v11, %v2074_v13  ;;  %v2092_v37 = vrot.slane %v2058_v12, 2  ;;  %v6672_v45 = vld [vmem:[%s11980_s0 + $0x3d0] sm:$0x7f] }
 0x15f   :  { %v6669_v61 = vld [vmem:[%s11980_s0 + $0x308] sm:$0xfc]  ;;  %v2055_v8 = vmul.f32 %v6667_v59, %v2044_v25  ;;  %v2082_v18 = vrot.slane %v2051_v4, 2  ;;  %v2078_v26 = vsel %vm185_vm0, %v2076_v14, %v2077_v15  ;;  %v2101_v41 = vadd.f32 %v2075_v19, %v2023_v50  ;;  %v6673_v43 = vld [vmem:[%s11980_s0 + $0x430] sm:$0x7f] }
 0x160   :  { %v2057_v9 = vmul.f32 %v6669_v61, %v2044_v25  ;;  %v2085_v21 = vrot.slane %v2053_v6, 2  ;;  %v2117_v25 = vld [vmem:[%s11980_s0 + $0xd0] sm:$0x7f]  ;;  %v2081_v27 = vsel %vm185_vm0, %v2079_v16, %v2080_v17  ;;  %v2102_v44 = vadd.f32 %v2078_v26, %v2024_v51 }
 0x161   :  { %v2088_v28 = vrot.slane %v2055_v8, 2  ;;  %v2084_v34 = vsel %vm185_vm0, %v2082_v18, %v2083_v20  ;;  %v2103_v42 = vadd.f32 %v2081_v27, %v2025_v55  ;;  %v6674_v46 = vld [vmem:[%s11980_s0 + $0x490] sm:$0x7f]  ;;  %2108 = vst [vmem:[%s11982_s2 + $0x8] sm:$0x7f] %v2101_v41  ;;  %v2123_v55 = vmul.f32 %v2122_v38, %v2115_v23 }
 0x162   :  { %v2087_v35 = vsel %vm185_vm0, %v2085_v21, %v2086_v22  ;;  %v2091_v36 = vrot.slane %v2057_v9, 2  ;;  %v2104_v48 = vadd.f32 %v2084_v34, %v2026_v56  ;;  %v6675_v50 = vld [vmem:[%s11980_s0 + $0x4f0] sm:$0x7f]  ;;  %2109 = vst [vmem:[%s11982_s2 + $0x38] sm:$0x7f] %v2102_v44  ;;  %v2124_v56 = vmul.f32 %v2122_v38, %v2116_v24 }
 0x163   :  { %v2090_v40 = vsel %vm185_vm0, %v2088_v28, %v2089_v29  ;;  %v2105_v49 = vadd.f32 %v2087_v35, %v2027_v57  ;;  %v6676_v51 = vld [vmem:[%s11980_s0 + $0x550] sm:$0x7f]  ;;  %2110 = vst [vmem:[%s11982_s2 + $0x68] sm:$0x7f] %v2103_v42  ;;  %v2125_v57 = vmul.f32 %v2122_v38, %v2117_v25  ;;  %v2126_v61 = vmul.f32 %v2122_v38, %v2118_v30 }
 0x164   :  { %v2093_v47 = vsel %vm185_vm0, %v2091_v36, %v2092_v37  ;;  %v2106_v52 = vadd.f32 %v2090_v40, %v2028_v58  ;;  %v6677_v58 = vld [vmem:[%s11980_s0 + $0x5b0] sm:$0x7f]  ;;  %2111 = vst [vmem:[%s11982_s2 + $0x98] sm:$0x7f] %v2104_v48  ;;  %v2128_v63 = vmul.f32 %v2122_v38, %v2120_v32  ;;  %v2129_v0 = vmul.f32 %v2122_v38, %v2121_v33 }
 0x165   :  { %v2107_v54 = vadd.f32 %v2093_v47, %v2029_v62  ;;  %v2159_v59 = vld [vmem:[%s11980_s0 + $0x10] sm:$0xfe]  ;;  %2112 = vst [vmem:[%s11982_s2 + $0xc8] sm:$0x7f] %v2105_v49  ;;  %v2127_v62 = vmul.f32 %v2122_v38, %v2119_v31  ;;  %v2145_v1 = vmul.f32 %v6671_v39, %v2144_v53  ;;  %v2146_v2 = vmul.f32 %v6672_v45, %v2144_v53 }
 0x166   :  { %v2166_v60 = vld [vmem:[%s11981_s1 + $0x12] ss:$0 sm:$0xff]  ;;  %2113 = vst [vmem:[%s11982_s2 + $0xf8] sm:$0x7f] %v2106_v52  ;;  %v2147_v3 = vmul.f32 %v6673_v43, %v2144_v53  ;;  %v2148_v4 = vmul.f32 %v6674_v46, %v2144_v53  ;;  %v2149_v7 = vmul.f32 %v6675_v50, %v2144_v53  ;;  %v2150_v8 = vmul.f32 %v6676_v51, %v2144_v53  ;;  %v2209_v20 = vld [vmem:[%s11981_s1 + $0x13] ss:$0 sm:$0xff] }
 0x167   :  { %2114 = vst [vmem:[%s11982_s2 + $0x128] sm:$0x7f] %v2107_v54  ;;  %v2160_v5 = vld [vmem:[%s11980_s0 + $0x70] sm:$0xfe]  ;;  %v2151_v10 = vmul.f32 %v6677_v58, %v2144_v53  ;;  %v2167_v13 = vmul.f32 %v2166_v60, %v2159_v59  ;;  %v2152_v14 = vadd.f32 %v2145_v1, %v2123_v55  ;;  %v2153_v15 = vadd.f32 %v2146_v2, %v2124_v56  ;;  %v2248_v59 = vld [vmem:[%s11980_s0 + $0xa0] sm:$0x1] }
 0x168   :  { %v2161_v6 = vld [vmem:[%s11980_s0 + $0xd0] sm:$0xfe]  ;;  %v2154_v16 = vadd.f32 %v2147_v3, %v2125_v57  ;;  %v2155_v17 = vadd.f32 %v2148_v4, %v2126_v61  ;;  %v2156_v21 = vadd.f32 %v2149_v7, %v2127_v62  ;;  %v2157_v22 = vadd.f32 %v2150_v8, %v2128_v63  ;;  %v2246_v57 = vld [vmem:[%s11980_s0 + $0x40] sm:$0x1] }
 0x169   :  { %v2162_v9 = vld [vmem:[%s11980_s0 + $0x130] sm:$0xfe]  ;;  %v2158_v23 = vadd.f32 %v2151_v10, %v2129_v0  ;;  %v2168_v24 = vmul.f32 %v2166_v60, %v2160_v5  ;;  %v2169_v25 = vmul.f32 %v2166_v60, %v2161_v6  ;;  %v2181_v31 = vrot.slane %v2167_v13, 1  ;;  %v2250_v1 = vld [vmem:[%s11980_s0 + $0x100] sm:$0x1] }
 0x16a   :  { %v2163_v12 = vld [vmem:[%s11980_s0 + $0x190] sm:$0xfe]  ;;  %v2170_v26 = vmul.f32 %v2166_v60, %v2162_v9 }
 0x16b   :  { %v2164_v11 = vld [vmem:[%s11980_s0 + $0x1f0] sm:$0xfe]  ;;  %v2171_v27 = vmul.f32 %v2166_v60, %v2163_v12  ;;  %v2182_v32 = vrot.slane %v2168_v24, 1  ;;  %v2183_v36 = vrot.slane %v2169_v25, 1  ;;  %v2195_v44 = vadd.f32 %v2181_v31, %v2152_v14  ;;  %v2252_v12 = vld [vmem:[%s11980_s0 + $0x160] sm:$0x1] }
 0x16c   :  { %v2165_v18 = vld [vmem:[%s11980_s0 + $0x250] sm:$0xfe]  ;;  %v2172_v28 = vmul.f32 %v2166_v60, %v2164_v11  ;;  %v2184_v37 = vrot.slane %v2170_v26, 1 }
 0x16d   :  { %v6678_v19 = vld [vmem:[%s11980_s0 + $0x370] sm:$0xfe]  ;;  %v2173_v30 = vmul.f32 %v2166_v60, %v2165_v18  ;;  %v2185_v38 = vrot.slane %v2171_v27, 1  ;;  %v2196_v42 = vadd.f32 %v2182_v32, %v2153_v15  ;;  %v2197_v47 = vadd.f32 %v2183_v36, %v2154_v16  ;;  %v2254_v16 = vld [vmem:[%s11980_s0 + $0x1c0] sm:$0x1] }
 0x16e   :  { %v6679_v29 = vld [vmem:[%s11980_s0 + $0x3d0] sm:$0xfe]  ;;  %v2210_v35 = vmul.f32 %v6678_v19, %v2209_v20  ;;  %v2186_v39 = vrot.slane %v2172_v28, 1  ;;  %v2198_v48 = vadd.f32 %v2184_v37, %v2155_v17  ;;  %v2256_v18 = vld [vmem:[%s11980_s0 + $0x220] sm:$0x1] }
 0x16f   :  { %v6680_v33 = vld [vmem:[%s11980_s0 + $0x430] sm:$0xfe]  ;;  %v2187_v41 = vrot.slane %v2173_v30, 1  ;;  %v2211_v46 = vmul.f32 %v6679_v29, %v2209_v20  ;;  %v2199_v49 = vadd.f32 %v2185_v38, %v2156_v21 }
 0x170   :  { %v6681_v34 = vld [vmem:[%s11980_s0 + $0x490] sm:$0xfe]  ;;  %v2200_v52 = vadd.f32 %v2186_v39, %v2157_v22  ;;  %v2212_v54 = vmul.f32 %v6680_v33, %v2209_v20  ;;  %v2224_v62 = vrot.slane %v2210_v35, 1 }
 0x171   :  { %v6682_v40 = vld [vmem:[%s11980_s0 + $0x4f0] sm:$0xfe]  ;;  %v2201_v53 = vadd.f32 %v2187_v41, %v2158_v23  ;;  %v2213_v55 = vmul.f32 %v6681_v34, %v2209_v20  ;;  %v2225_v63 = vrot.slane %v2211_v46, 1  ;;  %v2258_v23 = vld [vmem:[%s11980_s0 + $0x280] sm:$0x1] }
 0x172   :  { %v6683_v45 = vld [vmem:[%s11980_s0 + $0x550] sm:$0xfe]  ;;  %v2214_v56 = vmul.f32 %v6682_v40, %v2209_v20  ;;  %v2226_v2 = vrot.slane %v2212_v54, 1  ;;  %v2238_v10 = vadd.f32 %v2224_v62, %v2195_v44 }
 0x173   :  { %v6684_v43 = vld [vmem:[%s11980_s0 + $0x5b0] sm:$0xfe]  ;;  %v2215_v60 = vmul.f32 %v6683_v45, %v2209_v20  ;;  %v2227_v3 = vrot.slane %v2213_v55, 1  ;;  %v2239_v9 = vadd.f32 %v2225_v63, %v2196_v42 }
 0x174   :  { %v2245_v50 = vld [vmem:[%s11980_s0 + $0x10] sm:$0xfc]  ;;  %v2216_v61 = vmul.f32 %v6684_v43, %v2209_v20  ;;  %v2228_v4 = vrot.slane %v2214_v56, 1  ;;  %v2240_v13 = vadd.f32 %v2226_v2, %v2197_v47 }
 0x175   :  { %v2259_v51 = vld [vmem:[%s11981_s1 + $0x14] ss:$0 sm:$0xff]  ;;  %v2229_v7 = vrot.slane %v2215_v60, 1  ;;  %v2241_v14 = vadd.f32 %v2227_v3, %v2198_v48 }
 0x176   :  { %v2247_v58 = vld [vmem:[%s11980_s0 + $0x70] sm:$0xfc]  ;;  %v2260_v6 = vmul.f32 %v2259_v51, %v2245_v50  ;;  %v2230_v8 = vrot.slane %v2216_v61, 1  ;;  %v2242_v15 = vadd.f32 %v2228_v4, %v2199_v49  ;;  %v2261_v19 = vmul.f32 %v2259_v51, %v2246_v57 }
 0x177   :  { %v2249_v0 = vld [vmem:[%s11980_s0 + $0xd0] sm:$0xfc]  ;;  %v2243_v20 = vadd.f32 %v2229_v7, %v2200_v52  ;;  %v2262_v24 = vmul.f32 %v2259_v51, %v2247_v58  ;;  %v2263_v25 = vmul.f32 %v2259_v51, %v2248_v59  ;;  %v2265_v27 = vmul.f32 %v2259_v51, %v2250_v1 }
 0x178   :  { %v2251_v5 = vld [vmem:[%s11980_s0 + $0x130] sm:$0xfc]  ;;  %v2244_v21 = vadd.f32 %v2230_v8, %v2201_v53  ;;  %v2264_v26 = vmul.f32 %v2259_v51, %v2249_v0  ;;  %v2267_v29 = vmul.f32 %v2259_v51, %v2252_v12  ;;  %v2269_v31 = vmul.f32 %v2259_v51, %v2254_v16 }
 0x179   :  { %v2253_v11 = vld [vmem:[%s11980_s0 + $0x190] sm:$0xfc]  ;;  %v2266_v28 = vmul.f32 %v2259_v51, %v2251_v5  ;;  %v2271_v33 = vmul.f32 %v2259_v51, %v2256_v18  ;;  %v2273_v35 = vmul.f32 %v2259_v51, %v2258_v23  ;;  %v2288_v36 = vrot.slane %v2260_v6, 2 }
 0x17a   :  { %v2255_v17 = vld [vmem:[%s11980_s0 + $0x1f0] sm:$0xfc]  ;;  %v2268_v30 = vmul.f32 %v2259_v51, %v2253_v11  ;;  %v2289_v37 = vrot.slane %v2261_v19, 2  ;;  %v2291_v38 = vrot.slane %v2262_v24, 2  ;;  %v2292_v39 = vrot.slane %v2263_v25, 2 }
 0x17b   :  { %v2257_v22 = vld [vmem:[%s11980_s0 + $0x250] sm:$0xfc]  ;;  %v2270_v32 = vmul.f32 %v2259_v51, %v2255_v17  ;;  %v2294_v40 = vrot.slane %v2264_v26, 2  ;;  %v2295_v41 = vrot.slane %v2265_v27, 2  ;;  %v2297_v42 = vrot.slane %v2266_v28, 2 }
 0x17c   :  { %v2272_v34 = vmul.f32 %v2259_v51, %v2257_v22  ;;  %v2290_v44 = vsel %vm185_vm0, %v2288_v36, %v2289_v37  ;;  %v2298_v45 = vrot.slane %v2267_v29, 2  ;;  %v2300_v43 = vrot.slane %v2268_v30, 2  ;;  %v6685_v46 = vld [vmem:[%s11980_s0 + $0x6d0] sm:$0x7f] }
 0x17d   :  { %v2293_v47 = vsel %vm185_vm0, %v2291_v38, %v2292_v39  ;;  %v2296_v48 = vsel %vm185_vm0, %v2294_v40, %v2295_v41  ;;  %v2301_v49 = vrot.slane %v2269_v31, 2  ;;  %v2303_v52 = vrot.slane %v2270_v32, 2  ;;  %v6686_v50 = vld [vmem:[%s11980_s0 + $0x730] sm:$0x7f]  ;;  %v2374_v31 = vld [vmem:[%s11981_s1 + $0x17] ss:$0 sm:$0xff] }
 0x17e   :  { %v6687_v51 = vld [vmem:[%s11980_s0 + $0x790] sm:$0x7f]  ;;  %v2299_v53 = vsel %vm185_vm0, %v2297_v42, %v2298_v45  ;;  %v2304_v54 = vrot.slane %v2271_v33, 2  ;;  %v2306_v55 = vrot.slane %v2272_v34, 2  ;;  %v2307_v56 = vrot.slane %v2273_v35, 2 }
 0x17f   :  { %v2330_v57 = vld [vmem:[%s11981_s1 + $0x15] ss:$0 sm:$0xff]  ;;  %v2302_v58 = vsel %vm185_vm0, %v2300_v43, %v2301_v49  ;;  %v2316_v59 = vadd.f32 %v2290_v44, %v2238_v10  ;;  %v2317_v60 = vadd.f32 %v2293_v47, %v2239_v9  ;;  %v2318_v61 = vadd.f32 %v2296_v48, %v2240_v13  ;;  %v2352_v7 = vld [vmem:[%s11981_s1 + $0x16] ss:$0 sm:$0xff] }
 0x180   :  { %v6688_v62 = vld [vmem:[%s11980_s0 + $0x7f0] sm:$0x7f]  ;;  %v2305_v1 = vsel %vm185_vm0, %v2303_v52, %v2304_v54  ;;  %v2308_v2 = vsel %vm185_vm0, %v2306_v55, %v2307_v56  ;;  %v2319_v3 = vadd.f32 %v2299_v53, %v2241_v14  ;;  %v2320_v4 = vadd.f32 %v2302_v58, %v2242_v15 }
 0x181   :  { %v6689_v63 = vld [vmem:[%s11980_s0 + $0x850] sm:$0x7f]  ;;  %v2321_v8 = vadd.f32 %v2305_v1, %v2243_v20  ;;  %v2322_v10 = vadd.f32 %v2308_v2, %v2244_v21  ;;  %v2331_v9 = vmul.f32 %v6685_v46, %v2330_v57  ;;  %v2332_v12 = vmul.f32 %v6686_v50, %v2330_v57  ;;  %v2417_v50 = vld [vmem:[%s11981_s1 + $0x40] ss:$0 sm:$0xff] }
 0x182   :  { %v6690_v0 = vld [vmem:[%s11980_s0 + $0x8b0] sm:$0x7f]  ;;  %v2333_v11 = vmul.f32 %v6687_v51, %v2330_v57  ;;  %v2334_v13 = vmul.f32 %v6688_v62, %v2330_v57  ;;  %v2335_v14 = vmul.f32 %v6689_v63, %v2330_v57 }
 0x183   :  { %v6691_v5 = vld [vmem:[%s11980_s0 + $0x910] sm:$0x7f]  ;;  %v2336_v15 = vmul.f32 %v6690_v0, %v2330_v57  ;;  %v2338_v20 = vadd.f32 %v2331_v9, %v2316_v59  ;;  %v2339_v21 = vadd.f32 %v2332_v12, %v2317_v60 }
 0x184   :  { %v6692_v6 = vld [vmem:[%s11980_s0 + $0xa30] sm:$0x7f]  ;;  %v2337_v19 = vmul.f32 %v6691_v5, %v2330_v57  ;;  %v2340_v26 = vadd.f32 %v2333_v11, %v2318_v61  ;;  %v2341_v27 = vadd.f32 %v2334_v13, %v2319_v3  ;;  %v2342_v28 = vadd.f32 %v2335_v14, %v2320_v4 }
 0x185   :  { %v6693_v16 = vld [vmem:[%s11980_s0 + $0xa90] sm:$0x7f]  ;;  %v2353_v25 = vmul.f32 %v6692_v6, %v2352_v7  ;;  %v2343_v29 = vadd.f32 %v2336_v15, %v2321_v8 }
 0x186   :  { %v6694_v17 = vld [vmem:[%s11980_s0 + $0xaf0] sm:$0x7f]  ;;  %v2344_v32 = vadd.f32 %v2337_v19, %v2322_v10  ;;  %v2354_v33 = vmul.f32 %v6693_v16, %v2352_v7  ;;  %v2467_v19 = vld [vmem:[%s11981_s1 + $0x41] ss:$0 sm:$0xff] }
 0x187   :  { %v6695_v18 = vld [vmem:[%s11980_s0 + $0xb50] sm:$0x7f]  ;;  %v2355_v34 = vmul.f32 %v6694_v17, %v2352_v7  ;;  %v2360_v41 = vadd.f32 %v2353_v25, %v2338_v20 }
 0x188   :  { %v6696_v22 = vld [vmem:[%s11980_s0 + $0xbb0] sm:$0x7f]  ;;  %v2356_v35 = vmul.f32 %v6695_v18, %v2352_v7  ;;  %v2361_v43 = vadd.f32 %v2354_v33, %v2339_v21 }
 0x189   :  { %v6697_v23 = vld [vmem:[%s11980_s0 + $0xc10] sm:$0x7f]  ;;  %v2357_v38 = vmul.f32 %v6696_v22, %v2352_v7  ;;  %v2362_v46 = vadd.f32 %v2355_v34, %v2340_v26  ;;  %v6716_v26 = vld [vmem:[%s11980_s0 + $0x760] sm:$0x1] }
 0x18a   :  { %v6698_v24 = vld [vmem:[%s11980_s0 + $0xc70] sm:$0x7f]  ;;  %v2358_v39 = vmul.f32 %v6697_v23, %v2352_v7  ;;  %v2363_v47 = vadd.f32 %v2356_v35, %v2341_v27 }
 0x18b   :  { %v6699_v30 = vld [vmem:[%s11980_s0 + $0x6d0] sm:$0xfe]  ;;  %v2359_v40 = vmul.f32 %v6698_v24, %v2352_v7  ;;  %v2364_v51 = vadd.f32 %v2357_v38, %v2342_v28  ;;  %v6714_v24 = vld [vmem:[%s11980_s0 + $0x700] sm:$0x1] }
 0x18c   :  { %v6700_v36 = vld [vmem:[%s11980_s0 + $0x730] sm:$0xfe]  ;;  %v2375_v49 = vmul.f32 %v6699_v30, %v2374_v31  ;;  %v2365_v53 = vadd.f32 %v2358_v39, %v2343_v29 }
 0x18d   :  { %v6701_v37 = vld [vmem:[%s11980_s0 + $0x790] sm:$0xfe]  ;;  %v2366_v54 = vadd.f32 %v2359_v40, %v2344_v32  ;;  %v2376_v55 = vmul.f32 %v6700_v36, %v2374_v31  ;;  %v6718_v32 = vld [vmem:[%s11980_s0 + $0x7c0] sm:$0x1] }
 0x18e   :  { %v6702_v44 = vld [vmem:[%s11980_s0 + $0x7f0] sm:$0xfe]  ;;  %v2377_v56 = vmul.f32 %v6701_v37, %v2374_v31  ;;  %v2389_v62 = vrot.slane %v2375_v49, 1  ;;  %v6724_v49 = vld [vmem:[%s11980_s0 + $0x8e0] sm:$0x1] }
 0x18f   :  { %v6703_v42 = vld [vmem:[%s11980_s0 + $0x850] sm:$0xfe]  ;;  %v2378_v57 = vmul.f32 %v6702_v44, %v2374_v31  ;;  %v2390_v63 = vrot.slane %v2376_v55, 1  ;;  %v6720_v44 = vld [vmem:[%s11980_s0 + $0x820] sm:$0x1] }
 0x190   :  { %v6704_v45 = vld [vmem:[%s11980_s0 + $0x8b0] sm:$0xfe]  ;;  %v2379_v58 = vmul.f32 %v6703_v42, %v2374_v31  ;;  %v2391_v3 = vrot.slane %v2377_v56, 1  ;;  %v2403_v10 = vadd.f32 %v2389_v62, %v2360_v41  ;;  %v2471_v56 = vmul.f32 %v6716_v26, %v2467_v19 }
 0x191   :  { %v6705_v48 = vld [vmem:[%s11980_s0 + $0x910] sm:$0xfe]  ;;  %v2380_v59 = vmul.f32 %v6704_v45, %v2374_v31  ;;  %v2392_v4 = vrot.slane %v2378_v57, 1  ;;  %v2404_v9 = vadd.f32 %v2390_v63, %v2361_v43 }
 0x192   :  { %v6706_v52 = vld [vmem:[%s11980_s0 + $0xa30] sm:$0xfe]  ;;  %v2381_v61 = vmul.f32 %v6705_v48, %v2374_v31  ;;  %v2393_v5 = vrot.slane %v2379_v58, 1  ;;  %v2405_v14 = vadd.f32 %v2391_v3, %v2362_v46  ;;  %v2473_v58 = vmul.f32 %v6718_v32, %v2467_v19 }
 0x193   :  { %v6707_v60 = vld [vmem:[%s11980_s0 + $0xa90] sm:$0xfe]  ;;  %v2418_v2 = vmul.f32 %v6706_v52, %v2417_v50  ;;  %v2394_v6 = vrot.slane %v2380_v59, 1  ;;  %v2406_v15 = vadd.f32 %v2392_v4, %v2363_v47  ;;  %v6722_v47 = vld [vmem:[%s11980_s0 + $0x880] sm:$0x1]  ;;  %v2469_v52 = vmul.f32 %v6714_v24, %v2467_v19 }
 0x194   :  { %v6708_v0 = vld [vmem:[%s11980_s0 + $0xaf0] sm:$0xfe]  ;;  %v2395_v8 = vrot.slane %v2381_v61, 1  ;;  %v2419_v13 = vmul.f32 %v6707_v60, %v2417_v50  ;;  %v2407_v16 = vadd.f32 %v2393_v5, %v2364_v51  ;;  %v2475_v60 = vmul.f32 %v6720_v44, %v2467_v19  ;;  %v2538_v24 = vld [vmem:[%s11981_s1 + $0x42] ss:$0 sm:$0xff] }
 0x195   :  { %v6709_v1 = vld [vmem:[%s11980_s0 + $0xb50] sm:$0xfe]  ;;  %v2408_v17 = vadd.f32 %v2394_v6, %v2365_v53  ;;  %v2420_v21 = vmul.f32 %v6708_v0, %v2417_v50  ;;  %v2432_v29 = vrot.slane %v2418_v2, 1  ;;  %v2477_v62 = vmul.f32 %v6722_v47, %v2467_v19 }
 0x196   :  { %v6710_v7 = vld [vmem:[%s11980_s0 + $0xbb0] sm:$0xfe]  ;;  %v2409_v20 = vadd.f32 %v2395_v8, %v2366_v54  ;;  %v2421_v22 = vmul.f32 %v6709_v1, %v2417_v50  ;;  %v2433_v30 = vrot.slane %v2419_v13, 1  ;;  %v6726_v54 = vld [vmem:[%s11980_s0 + $0x940] sm:$0x1]  ;;  %v2479_v0 = vmul.f32 %v6724_v49, %v2467_v19 }
 0x197   :  { %v6711_v12 = vld [vmem:[%s11980_s0 + $0xc10] sm:$0xfe]  ;;  %v2422_v23 = vmul.f32 %v6710_v7, %v2417_v50  ;;  %v2434_v33 = vrot.slane %v2420_v21, 1  ;;  %v2446_v40 = vadd.f32 %v2432_v29, %v2403_v10  ;;  %v2481_v2 = vmul.f32 %v6726_v54, %v2467_v19 }
 0x198   :  { %v6712_v11 = vld [vmem:[%s11980_s0 + $0xc70] sm:$0xfe]  ;;  %v2423_v27 = vmul.f32 %v6711_v12, %v2417_v50  ;;  %v2435_v34 = vrot.slane %v2421_v22, 1  ;;  %v2447_v41 = vadd.f32 %v2433_v30, %v2404_v9  ;;  %v2497_v4 = vrot.slane %v2469_v52, 2 }
 0x199   :  { %v6713_v18 = vld [vmem:[%s11980_s0 + $0x6d0] sm:$0xfc]  ;;  %v2424_v28 = vmul.f32 %v6712_v11, %v2417_v50  ;;  %v2436_v35 = vrot.slane %v2422_v23, 1  ;;  %v2448_v45 = vadd.f32 %v2434_v33, %v2405_v14  ;;  %v2500_v6 = vrot.slane %v2471_v56, 2 }
 0x19a   :  { %v6715_v25 = vld [vmem:[%s11980_s0 + $0x730] sm:$0xfc]  ;;  %v2468_v37 = vmul.f32 %v6713_v18, %v2467_v19  ;;  %v2437_v38 = vrot.slane %v2423_v27, 1  ;;  %v2449_v43 = vadd.f32 %v2435_v34, %v2406_v15  ;;  %v2503_v8 = vrot.slane %v2473_v58, 2 }
 0x19b   :  { %v6717_v31 = vld [vmem:[%s11980_s0 + $0x790] sm:$0xfc]  ;;  %v2438_v39 = vrot.slane %v2424_v28, 1  ;;  %v2450_v46 = vadd.f32 %v2436_v35, %v2407_v16  ;;  %v2470_v55 = vmul.f32 %v6715_v25, %v2467_v19  ;;  %v2506_v12 = vrot.slane %v2475_v60, 2 }
 0x19c   :  { %v6719_v36 = vld [vmem:[%s11980_s0 + $0x7f0] sm:$0xfc]  ;;  %v2451_v50 = vadd.f32 %v2437_v38, %v2408_v17  ;;  %v2472_v57 = vmul.f32 %v6717_v31, %v2467_v19  ;;  %v2496_v3 = vrot.slane %v2468_v37, 2  ;;  %v2509_v16 = vrot.slane %v2477_v62, 2  ;;  %v2560_v38 = vld [vmem:[%s11981_s1 + $0x43] ss:$0 sm:$0xff] }
 0x19d   :  { %v6721_v42 = vld [vmem:[%s11980_s0 + $0x850] sm:$0xfc]  ;;  %v2452_v51 = vadd.f32 %v2438_v39, %v2409_v20  ;;  %v2474_v59 = vmul.f32 %v6719_v36, %v2467_v19  ;;  %v2499_v5 = vrot.slane %v2470_v55, 2  ;;  %v2512_v21 = vrot.slane %v2479_v0, 2  ;;  %v2582_v62 = vld [vmem:[%s11981_s1 + $0x44] ss:$0 sm:$0xff] }
 0x19e   :  { %v6723_v48 = vld [vmem:[%s11980_s0 + $0x8b0] sm:$0xfc]  ;;  %v2476_v61 = vmul.f32 %v6721_v42, %v2467_v19  ;;  %v2502_v7 = vrot.slane %v2472_v57, 2  ;;  %v2498_v10 = vsel %vm185_vm0, %v2496_v3, %v2497_v4  ;;  %v2515_v23 = vrot.slane %v2481_v2, 2 }
 0x19f   :  { %v6725_v53 = vld [vmem:[%s11980_s0 + $0x910] sm:$0xfc]  ;;  %v2478_v63 = vmul.f32 %v6723_v48, %v2467_v19  ;;  %v2505_v9 = vrot.slane %v2474_v59, 2  ;;  %v2501_v14 = vsel %vm185_vm0, %v2499_v5, %v2500_v6  ;;  %v2524_v26 = vadd.f32 %v2498_v10, %v2446_v40 }
 0x1a0   :  { %v2480_v1 = vmul.f32 %v6725_v53, %v2467_v19  ;;  %v2508_v11 = vrot.slane %v2476_v61, 2  ;;  %v6727_v13 = vld [vmem:[%s11980_s0 + $0x70] sm:$0x7f]  ;;  %v2504_v15 = vsel %vm185_vm0, %v2502_v7, %v2503_v8  ;;  %v2525_v27 = vadd.f32 %v2501_v14, %v2447_v41 }
 0x1a1   :  { %v2511_v17 = vrot.slane %v2478_v63, 2  ;;  %v6728_v18 = vld [vmem:[%s11980_s0 + $0xd0] sm:$0x7f]  ;;  %v2507_v20 = vsel %vm185_vm0, %v2505_v9, %v2506_v12  ;;  %v2526_v28 = vadd.f32 %v2504_v15, %v2448_v45  ;;  %v2539_v41 = vmul.f32 %v6727_v13, %v2538_v24 }
 0x1a2   :  { %v6729_v19 = vld [vmem:[%s11980_s0 + $0x130] sm:$0x7f]  ;;  %v2514_v22 = vrot.slane %v2480_v1, 2  ;;  %v2510_v25 = vsel %vm185_vm0, %v2508_v11, %v2509_v16  ;;  %v2527_v34 = vadd.f32 %v2507_v20, %v2449_v43  ;;  %v2540_v44 = vmul.f32 %v6728_v18, %v2538_v24  ;;  %v2625_v18 = vld [vmem:[%s11981_s1 + $0x45] ss:$0 sm:$0xff] }
 0x1a3   :  { %v6730_v29 = vld [vmem:[%s11980_s0 + $0x190] sm:$0x7f]  ;;  %v2513_v32 = vsel %vm185_vm0, %v2511_v17, %v2512_v21  ;;  %v2528_v35 = vadd.f32 %v2510_v25, %v2450_v46  ;;  %v2541_v42 = vmul.f32 %v6729_v19, %v2538_v24 }
 0x1a4   :  { %v6731_v30 = vld [vmem:[%s11980_s0 + $0x1f0] sm:$0x7f]  ;;  %v2516_v33 = vsel %vm185_vm0, %v2514_v22, %v2515_v23  ;;  %v2529_v39 = vadd.f32 %v2513_v32, %v2451_v50  ;;  %v2542_v45 = vmul.f32 %v6730_v29, %v2538_v24  ;;  %v2546_v50 = vadd.f32 %v2539_v41, %v2524_v26 }
 0x1a5   :  { %v6732_v31 = vld [vmem:[%s11980_s0 + $0x250] sm:$0x7f]  ;;  %v2530_v40 = vadd.f32 %v2516_v33, %v2452_v51  ;;  %v2543_v43 = vmul.f32 %v6731_v30, %v2538_v24  ;;  %v2547_v51 = vadd.f32 %v2540_v44, %v2525_v27  ;;  %v2548_v57 = vadd.f32 %v2541_v42, %v2526_v28 }
 0x1a6   :  { %v6733_v36 = vld [vmem:[%s11980_s0 + $0x2b0] sm:$0x7f]  ;;  %v2544_v46 = vmul.f32 %v6732_v31, %v2538_v24  ;;  %v2549_v58 = vadd.f32 %v2542_v45, %v2527_v34 }
 0x1a7   :  { %v6734_v37 = vld [vmem:[%s11980_s0 + $0x3d0] sm:$0x7f]  ;;  %v2545_v52 = vmul.f32 %v6733_v36, %v2538_v24  ;;  %v2550_v59 = vadd.f32 %v2543_v43, %v2528_v35 }
 0x1a8   :  { %v6735_v47 = vld [vmem:[%s11980_s0 + $0x430] sm:$0x7f]  ;;  %v2561_v56 = vmul.f32 %v6734_v37, %v2560_v38  ;;  %v2551_v60 = vadd.f32 %v2544_v46, %v2529_v39 }
 0x1a9   :  { %v6736_v48 = vld [vmem:[%s11980_s0 + $0x490] sm:$0x7f]  ;;  %v2552_v63 = vadd.f32 %v2545_v52, %v2530_v40  ;;  %v2562_v0 = vmul.f32 %v6735_v47, %v2560_v38  ;;  %v2675_v52 = vld [vmem:[%s11981_s1 + $0x46] ss:$0 sm:$0xff] }
 0x1aa   :  { %v6737_v49 = vld [vmem:[%s11980_s0 + $0x4f0] sm:$0x7f]  ;;  %v2563_v1 = vmul.f32 %v6736_v48, %v2560_v38  ;;  %v2568_v8 = vadd.f32 %v2561_v56, %v2546_v50 }
 0x1ab   :  { %v6738_v53 = vld [vmem:[%s11980_s0 + $0x550] sm:$0x7f]  ;;  %v2564_v2 = vmul.f32 %v6737_v49, %v2560_v38  ;;  %v2569_v11 = vadd.f32 %v2562_v0, %v2547_v51 }
 0x1ac   :  { %v6739_v54 = vld [vmem:[%s11980_s0 + $0x5b0] sm:$0x7f]  ;;  %v2565_v5 = vmul.f32 %v6738_v53, %v2560_v38  ;;  %v2570_v13 = vadd.f32 %v2563_v1, %v2548_v57  ;;  %v6758_v57 = vld [vmem:[%s11980_s0 + $0x100] sm:$0x1] }
 0x1ad   :  { %v6740_v55 = vld [vmem:[%s11980_s0 + $0x610] sm:$0x7f]  ;;  %v2566_v6 = vmul.f32 %v6739_v54, %v2560_v38  ;;  %v2571_v14 = vadd.f32 %v2564_v2, %v2549_v58 }
 0x1ae   :  { %v6741_v61 = vld [vmem:[%s11980_s0 + $0x70] sm:$0xfe]  ;;  %v2567_v7 = vmul.f32 %v6740_v55, %v2560_v38  ;;  %v2572_v19 = vadd.f32 %v2565_v5, %v2550_v59  ;;  %v6756_v55 = vld [vmem:[%s11980_s0 + $0xa0] sm:$0x1] }
 0x1af   :  { %v6742_v3 = vld [vmem:[%s11980_s0 + $0xd0] sm:$0xfe]  ;;  %v2583_v16 = vmul.f32 %v6741_v61, %v2582_v62  ;;  %v2573_v20 = vadd.f32 %v2566_v6, %v2551_v60 }
 0x1b0   :  { %v6743_v4 = vld [vmem:[%s11980_s0 + $0x130] sm:$0xfe]  ;;  %v2574_v21 = vadd.f32 %v2567_v7, %v2552_v63  ;;  %v2584_v22 = vmul.f32 %v6742_v3, %v2582_v62  ;;  %v6760_v63 = vld [vmem:[%s11980_s0 + $0x160] sm:$0x1] }
 0x1b1   :  { %v6744_v10 = vld [vmem:[%s11980_s0 + $0x190] sm:$0xfe]  ;;  %v2585_v23 = vmul.f32 %v6743_v4, %v2582_v62  ;;  %v2597_v29 = vrot.slane %v2583_v16, 1  ;;  %v6766_v16 = vld [vmem:[%s11980_s0 + $0x280] sm:$0x1] }
 0x1b2   :  { %v6745_v9 = vld [vmem:[%s11980_s0 + $0x1f0] sm:$0xfe]  ;;  %v2586_v24 = vmul.f32 %v6744_v10, %v2582_v62  ;;  %v2598_v30 = vrot.slane %v2584_v22, 1  ;;  %v6762_v10 = vld [vmem:[%s11980_s0 + $0x1c0] sm:$0x1] }
 0x1b3   :  { %v6746_v12 = vld [vmem:[%s11980_s0 + $0x250] sm:$0xfe]  ;;  %v2587_v25 = vmul.f32 %v6745_v9, %v2582_v62  ;;  %v2599_v34 = vrot.slane %v2585_v23, 1  ;;  %v2611_v40 = vadd.f32 %v2597_v29, %v2568_v8  ;;  %v2679_v23 = vmul.f32 %v6758_v57, %v2675_v52 }
 0x1b4   :  { %v6747_v15 = vld [vmem:[%s11980_s0 + $0x2b0] sm:$0xfe]  ;;  %v2588_v26 = vmul.f32 %v6746_v12, %v2582_v62  ;;  %v2600_v35 = vrot.slane %v2586_v24, 1  ;;  %v2612_v41 = vadd.f32 %v2598_v30, %v2569_v11 }
 0x1b5   :  { %v6748_v17 = vld [vmem:[%s11980_s0 + $0x3d0] sm:$0xfe]  ;;  %v2589_v28 = vmul.f32 %v6747_v15, %v2582_v62  ;;  %v2601_v36 = vrot.slane %v2587_v25, 1  ;;  %v2613_v43 = vadd.f32 %v2599_v34, %v2570_v13  ;;  %v2681_v25 = vmul.f32 %v6760_v63, %v2675_v52 }
 0x1b6   :  { %v6749_v27 = vld [vmem:[%s11980_s0 + $0x430] sm:$0xfe]  ;;  %v2626_v33 = vmul.f32 %v6748_v17, %v2625_v18  ;;  %v2602_v37 = vrot.slane %v2588_v26, 1  ;;  %v2614_v46 = vadd.f32 %v2600_v35, %v2571_v14  ;;  %v6764_v14 = vld [vmem:[%s11980_s0 + $0x220] sm:$0x1]  ;;  %v2677_v17 = vmul.f32 %v6756_v55, %v2675_v52 }
 0x1b7   :  { %v6750_v31 = vld [vmem:[%s11980_s0 + $0x490] sm:$0xfe]  ;;  %v2603_v39 = vrot.slane %v2589_v28, 1  ;;  %v2627_v45 = vmul.f32 %v6749_v27, %v2625_v18  ;;  %v2615_v47 = vadd.f32 %v2601_v36, %v2572_v19  ;;  %v2683_v27 = vmul.f32 %v6762_v10, %v2675_v52  ;;  %v2746_v55 = vld [vmem:[%s11981_s1 + $0x47] ss:$0 sm:$0xff] }
 0x1b8   :  { %v6751_v32 = vld [vmem:[%s11980_s0 + $0x4f0] sm:$0xfe]  ;;  %v2616_v48 = vadd.f32 %v2602_v37, %v2573_v20  ;;  %v2628_v51 = vmul.f32 %v6750_v31, %v2625_v18  ;;  %v2640_v60 = vrot.slane %v2626_v33, 1  ;;  %v2685_v29 = vmul.f32 %v6764_v14, %v2675_v52 }
 0x1b9   :  { %v6752_v38 = vld [vmem:[%s11980_s0 + $0x550] sm:$0xfe]  ;;  %v2617_v50 = vadd.f32 %v2603_v39, %v2574_v21  ;;  %v2629_v53 = vmul.f32 %v6751_v32, %v2625_v18  ;;  %v2641_v61 = vrot.slane %v2627_v45, 1  ;;  %v6768_v21 = vld [vmem:[%s11980_s0 + $0x2e0] sm:$0x1]  ;;  %v2687_v31 = vmul.f32 %v6766_v16, %v2675_v52 }
 0x1ba   :  { %v6753_v44 = vld [vmem:[%s11980_s0 + $0x5b0] sm:$0xfe]  ;;  %v2630_v54 = vmul.f32 %v6752_v38, %v2625_v18  ;;  %v2642_v0 = vrot.slane %v2628_v51, 1  ;;  %v2654_v7 = vadd.f32 %v2640_v60, %v2611_v40  ;;  %v2689_v33 = vmul.f32 %v6768_v21, %v2675_v52 }
 0x1bb   :  { %v6754_v42 = vld [vmem:[%s11980_s0 + $0x610] sm:$0xfe]  ;;  %v2631_v58 = vmul.f32 %v6753_v44, %v2625_v18  ;;  %v2643_v1 = vrot.slane %v2629_v53, 1  ;;  %v2655_v8 = vadd.f32 %v2641_v61, %v2612_v41  ;;  %v2705_v35 = vrot.slane %v2677_v17, 2 }
 0x1bc   :  { %v6755_v49 = vld [vmem:[%s11980_s0 + $0x70] sm:$0xfc]  ;;  %v2632_v59 = vmul.f32 %v6754_v42, %v2625_v18  ;;  %v2644_v2 = vrot.slane %v2630_v54, 1  ;;  %v2656_v12 = vadd.f32 %v2642_v0, %v2613_v43  ;;  %v2708_v37 = vrot.slane %v2679_v23, 2 }
 0x1bd   :  { %v6757_v56 = vld [vmem:[%s11980_s0 + $0xd0] sm:$0xfc]  ;;  %v2676_v4 = vmul.f32 %v6755_v49, %v2675_v52  ;;  %v2645_v5 = vrot.slane %v2631_v58, 1  ;;  %v2657_v11 = vadd.f32 %v2643_v1, %v2614_v46  ;;  %v2711_v39 = vrot.slane %v2681_v25, 2 }
 0x1be   :  { %v6759_v62 = vld [vmem:[%s11980_s0 + $0x130] sm:$0xfc]  ;;  %v2646_v6 = vrot.slane %v2632_v59, 1  ;;  %v2658_v13 = vadd.f32 %v2644_v2, %v2615_v47  ;;  %v2678_v22 = vmul.f32 %v6757_v56, %v2675_v52  ;;  %v2714_v44 = vrot.slane %v2683_v27, 2 }
 0x1bf   :  { %v6761_v3 = vld [vmem:[%s11980_s0 + $0x190] sm:$0xfc]  ;;  %v2659_v18 = vadd.f32 %v2645_v5, %v2616_v48  ;;  %v2680_v24 = vmul.f32 %v6759_v62, %v2675_v52  ;;  %v2704_v34 = vrot.slane %v2676_v4, 2  ;;  %v2717_v47 = vrot.slane %v2685_v29, 2  ;;  %v2768_v5 = vld [vmem:[%s11981_s1 + $0x70] ss:$0 sm:$0xff] }
 0x1c0   :  { %v6763_v9 = vld [vmem:[%s11980_s0 + $0x1f0] sm:$0xfc]  ;;  %v2660_v19 = vadd.f32 %v2646_v6, %v2617_v50  ;;  %v2682_v26 = vmul.f32 %v6761_v3, %v2675_v52  ;;  %v2707_v36 = vrot.slane %v2678_v22, 2  ;;  %v2720_v51 = vrot.slane %v2687_v31, 2  ;;  %v2790_v29 = vld [vmem:[%s11981_s1 + $0x71] ss:$0 sm:$0xff] }
 0x1c1   :  { %v6765_v15 = vld [vmem:[%s11980_s0 + $0x250] sm:$0xfc]  ;;  %v2684_v28 = vmul.f32 %v6763_v9, %v2675_v52  ;;  %v2710_v38 = vrot.slane %v2680_v24, 2  ;;  %v2706_v40 = vsel %vm185_vm0, %v2704_v34, %v2705_v35  ;;  %v2723_v54 = vrot.slane %v2689_v33, 2 }
 0x1c2   :  { %v6767_v20 = vld [vmem:[%s11980_s0 + $0x2b0] sm:$0xfc]  ;;  %v2686_v30 = vmul.f32 %v6765_v15, %v2675_v52  ;;  %v2713_v41 = vrot.slane %v2682_v26, 2  ;;  %v2709_v43 = vsel %vm185_vm0, %v2707_v36, %v2708_v37  ;;  %v2732_v57 = vadd.f32 %v2706_v40, %v2654_v7 }
 0x1c3   :  { %v2688_v32 = vmul.f32 %v6767_v20, %v2675_v52  ;;  %v2716_v42 = vrot.slane %v2684_v28, 2  ;;  %v6769_v45 = vld [vmem:[%s11980_s0 + $0x730] sm:$0x7f]  ;;  %v2712_v46 = vsel %vm185_vm0, %v2710_v38, %v2711_v39  ;;  %v2733_v58 = vadd.f32 %v2709_v43, %v2655_v8 }
 0x1c4   :  { %v2719_v48 = vrot.slane %v2686_v30, 2  ;;  %v6770_v49 = vld [vmem:[%s11980_s0 + $0x790] sm:$0x7f]  ;;  %v2715_v50 = vsel %vm185_vm0, %v2713_v41, %v2714_v44  ;;  %v2734_v59 = vadd.f32 %v2712_v46, %v2656_v12  ;;  %v2747_v8 = vmul.f32 %v6769_v45, %v2746_v55 }
 0x1c5   :  { %v6771_v52 = vld [vmem:[%s11980_s0 + $0x7f0] sm:$0x7f]  ;;  %v2722_v53 = vrot.slane %v2688_v32, 2  ;;  %v2718_v56 = vsel %vm185_vm0, %v2716_v42, %v2717_v47  ;;  %v2735_v1 = vadd.f32 %v2715_v50, %v2657_v11  ;;  %v2748_v10 = vmul.f32 %v6770_v49, %v2746_v55 }
 0x1c6   :  { %v6772_v60 = vld [vmem:[%s11980_s0 + $0x850] sm:$0x7f]  ;;  %v2721_v63 = vsel %vm185_vm0, %v2719_v48, %v2720_v51  ;;  %v2736_v2 = vadd.f32 %v2718_v56, %v2658_v13  ;;  %v2749_v9 = vmul.f32 %v6771_v52, %v2746_v55 }
 0x1c7   :  { %v6773_v61 = vld [vmem:[%s11980_s0 + $0x8b0] sm:$0x7f]  ;;  %v2724_v0 = vsel %vm185_vm0, %v2722_v53, %v2723_v54  ;;  %v2737_v6 = vadd.f32 %v2721_v63, %v2659_v18  ;;  %v2750_v12 = vmul.f32 %v6772_v60, %v2746_v55  ;;  %v2754_v18 = vadd.f32 %v2747_v8, %v2732_v57 }
 0x1c8   :  { %v6774_v62 = vld [vmem:[%s11980_s0 + $0x910] sm:$0x7f]  ;;  %v2738_v7 = vadd.f32 %v2724_v0, %v2660_v19  ;;  %v2751_v11 = vmul.f32 %v6773_v61, %v2746_v55  ;;  %v2755_v19 = vadd.f32 %v2748_v10, %v2733_v58  ;;  %v2756_v24 = vadd.f32 %v2749_v9, %v2734_v59 }
 0x1c9   :  { %v6775_v3 = vld [vmem:[%s11980_s0 + $0x970] sm:$0x7f]  ;;  %v2752_v13 = vmul.f32 %v6774_v62, %v2746_v55  ;;  %v2757_v25 = vadd.f32 %v2750_v12, %v2735_v1 }
 0x1ca   :  { %v6776_v4 = vld [vmem:[%s11980_s0 + $0xa90] sm:$0x7f]  ;;  %v2753_v17 = vmul.f32 %v6775_v3, %v2746_v55  ;;  %v2758_v26 = vadd.f32 %v2751_v11, %v2736_v2 }
 0x1cb   :  { %v6777_v14 = vld [vmem:[%s11980_s0 + $0xaf0] sm:$0x7f]  ;;  %v2769_v23 = vmul.f32 %v6776_v4, %v2768_v5  ;;  %v2759_v27 = vadd.f32 %v2752_v13, %v2737_v6 }
 0x1cc   :  { %v6778_v15 = vld [vmem:[%s11980_s0 + $0xb50] sm:$0x7f]  ;;  %v2760_v30 = vadd.f32 %v2753_v17, %v2738_v7  ;;  %v2770_v31 = vmul.f32 %v6777_v14, %v2768_v5 }
 0x1cd   :  { %v6779_v16 = vld [vmem:[%s11980_s0 + $0xbb0] sm:$0x7f]  ;;  %v2771_v32 = vmul.f32 %v6778_v15, %v2768_v5  ;;  %v2776_v39 = vadd.f32 %v2769_v23, %v2754_v18 }
 0x1ce   :  { %v6780_v20 = vld [vmem:[%s11980_s0 + $0xc10] sm:$0x7f]  ;;  %v2772_v33 = vmul.f32 %v6779_v16, %v2768_v5  ;;  %v2777_v42 = vadd.f32 %v2770_v31, %v2755_v19 }
 0x1cf   :  { %v6781_v21 = vld [vmem:[%s11980_s0 + $0xc70] sm:$0x7f]  ;;  %v2773_v36 = vmul.f32 %v6780_v20, %v2768_v5  ;;  %v2778_v45 = vadd.f32 %v2771_v32, %v2756_v24  ;;  %v6800_v24 = vld [vmem:[%s11980_s0 + $0x7c0] sm:$0x1] }
 0x1d0   :  { %v6782_v22 = vld [vmem:[%s11980_s0 + $0xcd0] sm:$0x7f]  ;;  %v2774_v37 = vmul.f32 %v6781_v21, %v2768_v5  ;;  %v2779_v43 = vadd.f32 %v2772_v33, %v2757_v25 }
 0x1d1   :  { %v6783_v28 = vld [vmem:[%s11980_s0 + $0x730] sm:$0xfe]  ;;  %v2775_v38 = vmul.f32 %v6782_v22, %v2768_v5  ;;  %v2780_v52 = vadd.f32 %v2773_v36, %v2758_v26  ;;  %v6798_v22 = vld [vmem:[%s11980_s0 + $0x760] sm:$0x1] }
 0x1d2   :  { %v6784_v34 = vld [vmem:[%s11980_s0 + $0x790] sm:$0xfe]  ;;  %v2791_v47 = vmul.f32 %v6783_v28, %v2790_v29  ;;  %v2781_v50 = vadd.f32 %v2774_v37, %v2759_v27 }
 0x1d3   :  { %v6785_v35 = vld [vmem:[%s11980_s0 + $0x7f0] sm:$0xfe]  ;;  %v2782_v51 = vadd.f32 %v2775_v38, %v2760_v30  ;;  %v2792_v53 = vmul.f32 %v6784_v34, %v2790_v29  ;;  %v6802_v30 = vld [vmem:[%s11980_s0 + $0x820] sm:$0x1] }
 0x1d4   :  { %v6786_v40 = vld [vmem:[%s11980_s0 + $0x850] sm:$0xfe]  ;;  %v2793_v54 = vmul.f32 %v6785_v35, %v2790_v29  ;;  %v2805_v60 = vrot.slane %v2791_v47, 1  ;;  %v6808_v47 = vld [vmem:[%s11980_s0 + $0x940] sm:$0x1] }
 0x1d5   :  { %v6787_v41 = vld [vmem:[%s11980_s0 + $0x8b0] sm:$0xfe]  ;;  %v2794_v55 = vmul.f32 %v6786_v40, %v2790_v29  ;;  %v2806_v61 = vrot.slane %v2792_v53, 1  ;;  %v6804_v40 = vld [vmem:[%s11980_s0 + $0x880] sm:$0x1] }
 0x1d6   :  { %v6788_v44 = vld [vmem:[%s11980_s0 + $0x910] sm:$0xfe]  ;;  %v2795_v56 = vmul.f32 %v6787_v41, %v2790_v29  ;;  %v2807_v1 = vrot.slane %v2793_v54, 1  ;;  %v2819_v7 = vadd.f32 %v2805_v60, %v2776_v39 }
 0x1d7   :  { %v6789_v46 = vld [vmem:[%s11980_s0 + $0x970] sm:$0xfe]  ;;  %v2796_v57 = vmul.f32 %v6788_v44, %v2790_v29  ;;  %v2808_v2 = vrot.slane %v2794_v55, 1  ;;  %v2820_v8 = vadd.f32 %v2806_v61, %v2777_v42 }
 0x1d8   :  { %v6790_v48 = vld [vmem:[%s11980_s0 + $0xa90] sm:$0xfe]  ;;  %v2797_v59 = vmul.f32 %v6789_v46, %v2790_v29  ;;  %v2809_v3 = vrot.slane %v2795_v56, 1  ;;  %v2821_v11 = vadd.f32 %v2807_v1, %v2778_v45 }
 0x1d9   :  { %v2833_v49 = vld [vmem:[%s11981_s1 + $0x72] ss:$0 sm:$0xff]  ;;  %v2810_v4 = vrot.slane %v2796_v57, 1  ;;  %v2822_v13 = vadd.f32 %v2808_v2, %v2779_v43  ;;  %v2883_v17 = vld [vmem:[%s11981_s1 + $0x73] ss:$0 sm:$0xff] }
 0x1da   :  { %v6791_v58 = vld [vmem:[%s11980_s0 + $0xaf0] sm:$0xfe]  ;;  %v2834_v0 = vmul.f32 %v6790_v48, %v2833_v49  ;;  %v2811_v6 = vrot.slane %v2797_v59, 1  ;;  %v2823_v14 = vadd.f32 %v2809_v3, %v2780_v52  ;;  %v6806_v43 = vld [vmem:[%s11980_s0 + $0x8e0] sm:$0x1]  ;;  %v2885_v48 = vmul.f32 %v6798_v22, %v2883_v17 }
 0x1db   :  { %v6792_v62 = vld [vmem:[%s11980_s0 + $0xb50] sm:$0xfe]  ;;  %v2835_v12 = vmul.f32 %v6791_v58, %v2833_v49  ;;  %v2824_v15 = vadd.f32 %v2810_v4, %v2781_v50  ;;  %v2887_v54 = vmul.f32 %v6800_v24, %v2883_v17  ;;  %v2889_v56 = vmul.f32 %v6802_v30, %v2883_v17 }
 0x1dc   :  { %v6793_v63 = vld [vmem:[%s11980_s0 + $0xbb0] sm:$0xfe]  ;;  %v2825_v18 = vadd.f32 %v2811_v6, %v2782_v51  ;;  %v2836_v19 = vmul.f32 %v6792_v62, %v2833_v49  ;;  %v2848_v27 = vrot.slane %v2834_v0, 1  ;;  %v6810_v51 = vld [vmem:[%s11980_s0 + $0x9a0] sm:$0x1]  ;;  %v2891_v58 = vmul.f32 %v6804_v40, %v2883_v17 }
 0x1dd   :  { %v6794_v5 = vld [vmem:[%s11980_s0 + $0xc10] sm:$0xfe]  ;;  %v2837_v20 = vmul.f32 %v6793_v63, %v2833_v49  ;;  %v2849_v28 = vrot.slane %v2835_v12, 1  ;;  %v2893_v60 = vmul.f32 %v6806_v43, %v2883_v17  ;;  %v2895_v62 = vmul.f32 %v6808_v47, %v2883_v17 }
 0x1de   :  { %v6795_v10 = vld [vmem:[%s11980_s0 + $0xc70] sm:$0xfe]  ;;  %v2838_v21 = vmul.f32 %v6794_v5, %v2833_v49  ;;  %v2850_v31 = vrot.slane %v2836_v19, 1  ;;  %v2862_v38 = vadd.f32 %v2848_v27, %v2819_v7  ;;  %v2897_v0 = vmul.f32 %v6810_v51, %v2883_v17 }
 0x1df   :  { %v6796_v9 = vld [vmem:[%s11980_s0 + $0xcd0] sm:$0xfe]  ;;  %v2839_v25 = vmul.f32 %v6795_v10, %v2833_v49  ;;  %v2851_v32 = vrot.slane %v2837_v20, 1  ;;  %v2863_v39 = vadd.f32 %v2849_v28, %v2820_v8  ;;  %v2913_v2 = vrot.slane %v2885_v48, 2 }
 0x1e0   :  { %v6797_v16 = vld [vmem:[%s11980_s0 + $0x730] sm:$0xfc]  ;;  %v2840_v26 = vmul.f32 %v6796_v9, %v2833_v49  ;;  %v2852_v33 = vrot.slane %v2838_v21, 1  ;;  %v2864_v44 = vadd.f32 %v2850_v31, %v2821_v11  ;;  %v2916_v4 = vrot.slane %v2887_v54, 2 }
 0x1e1   :  { %v6799_v23 = vld [vmem:[%s11980_s0 + $0x790] sm:$0xfc]  ;;  %v2884_v35 = vmul.f32 %v6797_v16, %v2883_v17  ;;  %v2853_v36 = vrot.slane %v2839_v25, 1  ;;  %v2865_v42 = vadd.f32 %v2851_v32, %v2822_v13  ;;  %v2919_v6 = vrot.slane %v2889_v56, 2 }
 0x1e2   :  { %v6801_v29 = vld [vmem:[%s11980_s0 + $0x7f0] sm:$0xfc]  ;;  %v2854_v37 = vrot.slane %v2840_v26, 1  ;;  %v2866_v45 = vadd.f32 %v2852_v33, %v2823_v14  ;;  %v2886_v53 = vmul.f32 %v6799_v23, %v2883_v17  ;;  %v2922_v10 = vrot.slane %v2891_v58, 2 }
 0x1e3   :  { %v6803_v34 = vld [vmem:[%s11980_s0 + $0x850] sm:$0xfc]  ;;  %v2867_v49 = vadd.f32 %v2853_v36, %v2824_v15  ;;  %v2888_v55 = vmul.f32 %v6801_v29, %v2883_v17  ;;  %v2912_v1 = vrot.slane %v2884_v35, 2  ;;  %v2925_v14 = vrot.slane %v2893_v60, 2 }
 0x1e4   :  { %v6805_v41 = vld [vmem:[%s11980_s0 + $0x8b0] sm:$0xfc]  ;;  %v2868_v52 = vadd.f32 %v2854_v37, %v2825_v18  ;;  %v2890_v57 = vmul.f32 %v6803_v34, %v2883_v17  ;;  %v2915_v3 = vrot.slane %v2886_v53, 2  ;;  %v2928_v19 = vrot.slane %v2895_v62, 2 }
 0x1e5   :  { %v6807_v46 = vld [vmem:[%s11980_s0 + $0x910] sm:$0xfc]  ;;  %v2892_v59 = vmul.f32 %v6805_v41, %v2883_v17  ;;  %v2918_v5 = vrot.slane %v2888_v55, 2  ;;  %v2914_v7 = vsel %vm185_vm0, %v2912_v1, %v2913_v2  ;;  %v2931_v21 = vrot.slane %v2897_v0, 2 }
 0x1e6   :  { %v6809_v50 = vld [vmem:[%s11980_s0 + $0x970] sm:$0xfc]  ;;  %v2894_v61 = vmul.f32 %v6807_v46, %v2883_v17  ;;  %v2921_v8 = vrot.slane %v2890_v57, 2  ;;  %v2917_v11 = vsel %vm185_vm0, %v2915_v3, %v2916_v4  ;;  %v2940_v24 = vadd.f32 %v2914_v7, %v2862_v38 }
 0x1e7   :  { %v2896_v63 = vmul.f32 %v6809_v50, %v2883_v17  ;;  %v2924_v9 = vrot.slane %v2892_v59, 2  ;;  %v6811_v12 = vld [vmem:[%s11980_s0 + $0xd0] sm:$0x7f]  ;;  %v2920_v13 = vsel %vm185_vm0, %v2918_v5, %v2919_v6  ;;  %v2941_v25 = vadd.f32 %v2917_v11, %v2863_v39 }
 0x1e8   :  { %v2927_v15 = vrot.slane %v2894_v61, 2  ;;  %v6812_v16 = vld [vmem:[%s11980_s0 + $0x130] sm:$0x7f]  ;;  %v2923_v18 = vsel %vm185_vm0, %v2921_v8, %v2922_v10  ;;  %v2942_v26 = vadd.f32 %v2920_v13, %v2864_v44 }
 0x1e9   :  { %v6813_v17 = vld [vmem:[%s11980_s0 + $0x190] sm:$0x7f]  ;;  %v2930_v20 = vrot.slane %v2896_v63, 2  ;;  %v2926_v23 = vsel %vm185_vm0, %v2924_v9, %v2925_v14  ;;  %v2943_v32 = vadd.f32 %v2923_v18, %v2865_v42 }
 0x1ea   :  { %v2954_v22 = vld [vmem:[%s11981_s1 + $0x74] ss:$0 sm:$0xff]  ;;  %v2929_v30 = vsel %vm185_vm0, %v2927_v15, %v2928_v19  ;;  %v2944_v33 = vadd.f32 %v2926_v23, %v2866_v45  ;;  %v2976_v36 = vld [vmem:[%s11981_s1 + $0x75] ss:$0 sm:$0xff]  ;;  %v2998_v60 = vld [vmem:[%s11981_s1 + $0x76] ss:$0 sm:$0xff] }
 0x1eb   :  { %v6814_v27 = vld [vmem:[%s11980_s0 + $0x1f0] sm:$0x7f]  ;;  %v2932_v31 = vsel %vm185_vm0, %v2930_v20, %v2931_v21  ;;  %v2945_v37 = vadd.f32 %v2929_v30, %v2867_v49  ;;  %v2955_v39 = vmul.f32 %v6811_v12, %v2954_v22  ;;  %v2956_v40 = vmul.f32 %v6812_v16, %v2954_v22  ;;  %v3041_v16 = vld [vmem:[%s11981_s1 + $0x77] ss:$0 sm:$0xff] }
 0x1ec   :  { %v6815_v28 = vld [vmem:[%s11980_s0 + $0x250] sm:$0x7f]  ;;  %v2946_v38 = vadd.f32 %v2932_v31, %v2868_v52  ;;  %v2957_v41 = vmul.f32 %v6813_v17, %v2954_v22  ;;  %v2958_v44 = vmul.f32 %v6814_v27, %v2954_v22 }
 0x1ed   :  { %v6816_v29 = vld [vmem:[%s11980_s0 + $0x2b0] sm:$0x7f]  ;;  %v2959_v42 = vmul.f32 %v6815_v28, %v2954_v22  ;;  %v2962_v49 = vadd.f32 %v2955_v39, %v2940_v24  ;;  %v2963_v52 = vadd.f32 %v2956_v40, %v2941_v25 }
 0x1ee   :  { %v6817_v34 = vld [vmem:[%s11980_s0 + $0x310] sm:$0x7f]  ;;  %v2960_v45 = vmul.f32 %v6816_v29, %v2954_v22  ;;  %v2964_v55 = vadd.f32 %v2957_v41, %v2942_v26  ;;  %v2965_v56 = vadd.f32 %v2958_v44, %v2943_v32 }
 0x1ef   :  { %v6818_v35 = vld [vmem:[%s11980_s0 + $0x430] sm:$0x7f]  ;;  %v2961_v48 = vmul.f32 %v6817_v34, %v2954_v22  ;;  %v2966_v57 = vadd.f32 %v2959_v42, %v2944_v33 }
 0x1f0   :  { %v6819_v43 = vld [vmem:[%s11980_s0 + $0x490] sm:$0x7f]  ;;  %v2977_v54 = vmul.f32 %v6818_v35, %v2976_v36  ;;  %v2967_v58 = vadd.f32 %v2960_v45, %v2945_v37 }
 0x1f1   :  { %v6820_v46 = vld [vmem:[%s11980_s0 + $0x4f0] sm:$0x7f]  ;;  %v2968_v61 = vadd.f32 %v2961_v48, %v2946_v38  ;;  %v2978_v62 = vmul.f32 %v6819_v43, %v2976_v36  ;;  %v3091_v48 = vld [vmem:[%s11981_s1 + $0xa0] ss:$0 sm:$0xff] }
 0x1f2   :  { %v6821_v47 = vld [vmem:[%s11980_s0 + $0x550] sm:$0x7f]  ;;  %v2979_v63 = vmul.f32 %v6820_v46, %v2976_v36  ;;  %v2984_v6 = vadd.f32 %v2977_v54, %v2962_v49 }
 0x1f3   :  { %v6822_v50 = vld [vmem:[%s11980_s0 + $0x5b0] sm:$0x7f]  ;;  %v2980_v0 = vmul.f32 %v6821_v47, %v2976_v36  ;;  %v2985_v9 = vadd.f32 %v2978_v62, %v2963_v52 }
 0x1f4   :  { %v6823_v51 = vld [vmem:[%s11980_s0 + $0x610] sm:$0x7f]  ;;  %v2981_v3 = vmul.f32 %v6822_v50, %v2976_v36  ;;  %v2986_v12 = vadd.f32 %v2979_v63, %v2964_v55  ;;  %v6842_v55 = vld [vmem:[%s11980_s0 + $0x160] sm:$0x1] }
 0x1f5   :  { %v6824_v53 = vld [vmem:[%s11980_s0 + $0x670] sm:$0x7f]  ;;  %v2982_v4 = vmul.f32 %v6823_v51, %v2976_v36  ;;  %v2987_v11 = vadd.f32 %v2980_v0, %v2965_v56 }
 0x1f6   :  { %v6825_v59 = vld [vmem:[%s11980_s0 + $0xd0] sm:$0xfe]  ;;  %v2983_v5 = vmul.f32 %v6824_v53, %v2976_v36  ;;  %v2988_v17 = vadd.f32 %v2981_v3, %v2966_v57  ;;  %v6840_v53 = vld [vmem:[%s11980_s0 + $0x100] sm:$0x1] }
 0x1f7   :  { %v6826_v1 = vld [vmem:[%s11980_s0 + $0x130] sm:$0xfe]  ;;  %v2999_v14 = vmul.f32 %v6825_v59, %v2998_v60  ;;  %v2989_v18 = vadd.f32 %v2982_v4, %v2967_v58 }
 0x1f8   :  { %v6827_v2 = vld [vmem:[%s11980_s0 + $0x190] sm:$0xfe]  ;;  %v2990_v19 = vadd.f32 %v2983_v5, %v2968_v61  ;;  %v3000_v20 = vmul.f32 %v6826_v1, %v2998_v60  ;;  %v6844_v61 = vld [vmem:[%s11980_s0 + $0x1c0] sm:$0x1] }
 0x1f9   :  { %v6828_v7 = vld [vmem:[%s11980_s0 + $0x1f0] sm:$0xfe]  ;;  %v3001_v21 = vmul.f32 %v6827_v2, %v2998_v60  ;;  %v3013_v27 = vrot.slane %v2999_v14, 1  ;;  %v6850_v14 = vld [vmem:[%s11980_s0 + $0x2e0] sm:$0x1] }
 0x1fa   :  { %v6829_v8 = vld [vmem:[%s11980_s0 + $0x250] sm:$0xfe]  ;;  %v3002_v22 = vmul.f32 %v6828_v7, %v2998_v60  ;;  %v3014_v28 = vrot.slane %v3000_v20, 1  ;;  %v6846_v7 = vld [vmem:[%s11980_s0 + $0x220] sm:$0x1] }
 0x1fb   :  { %v6830_v10 = vld [vmem:[%s11980_s0 + $0x2b0] sm:$0xfe]  ;;  %v3003_v23 = vmul.f32 %v6829_v8, %v2998_v60  ;;  %v3015_v32 = vrot.slane %v3001_v21, 1  ;;  %v3027_v38 = vadd.f32 %v3013_v27, %v2984_v6  ;;  %v3095_v21 = vmul.f32 %v6842_v55, %v3091_v48 }
 0x1fc   :  { %v6831_v13 = vld [vmem:[%s11980_s0 + $0x310] sm:$0xfe]  ;;  %v3004_v24 = vmul.f32 %v6830_v10, %v2998_v60  ;;  %v3016_v33 = vrot.slane %v3002_v22, 1  ;;  %v3028_v39 = vadd.f32 %v3014_v28, %v2985_v9 }
 0x1fd   :  { %v6832_v15 = vld [vmem:[%s11980_s0 + $0x430] sm:$0xfe]  ;;  %v3005_v26 = vmul.f32 %v6831_v13, %v2998_v60  ;;  %v3017_v34 = vrot.slane %v3003_v23, 1  ;;  %v3029_v42 = vadd.f32 %v3015_v32, %v2986_v12  ;;  %v3097_v23 = vmul.f32 %v6844_v61, %v3091_v48  ;;  %v3168_v61 = vld [vmem:[%s11980_s0 + $0x258] sm:$0x7f] }
 0x1fe   :  { %v6833_v25 = vld [vmem:[%s11980_s0 + $0x490] sm:$0xfe]  ;;  %v3042_v31 = vmul.f32 %v6832_v15, %v3041_v16  ;;  %v3018_v35 = vrot.slane %v3004_v24, 1  ;;  %v3030_v45 = vadd.f32 %v3016_v33, %v2987_v11  ;;  %v6848_v11 = vld [vmem:[%s11980_s0 + $0x280] sm:$0x1]  ;;  %v3093_v15 = vmul.f32 %v6840_v53, %v3091_v48 }
 0x1ff   :  { %v6834_v29 = vld [vmem:[%s11980_s0 + $0x4f0] sm:$0xfe]  ;;  %v3019_v37 = vrot.slane %v3005_v26, 1  ;;  %v3043_v44 = vmul.f32 %v6833_v25, %v3041_v16  ;;  %v3031_v43 = vadd.f32 %v3017_v34, %v2988_v17  ;;  %v3099_v25 = vmul.f32 %v6846_v7, %v3091_v48 }
 0x200   :  { %v6835_v30 = vld [vmem:[%s11980_s0 + $0x550] sm:$0xfe]  ;;  %v3032_v46 = vadd.f32 %v3018_v35, %v2989_v18  ;;  %v3044_v52 = vmul.f32 %v6834_v29, %v3041_v16  ;;  %v3056_v58 = vrot.slane %v3042_v31, 1  ;;  %v3101_v27 = vmul.f32 %v6848_v11, %v3091_v48  ;;  %v6858_v11 = vld [vmem:[%s11980_s0 + $0x558] sm:$0x7f] }
 0x201   :  { %v6836_v36 = vld [vmem:[%s11980_s0 + $0x5b0] sm:$0xfe]  ;;  %v3033_v49 = vadd.f32 %v3019_v37, %v2990_v19  ;;  %v3045_v50 = vmul.f32 %v6835_v30, %v3041_v16  ;;  %v3057_v59 = vrot.slane %v3043_v44, 1  ;;  %v6852_v19 = vld [vmem:[%s11980_s0 + $0x340] sm:$0x1]  ;;  %v3103_v29 = vmul.f32 %v6850_v14, %v3091_v48 }
 0x202   :  { %v6837_v40 = vld [vmem:[%s11980_s0 + $0x610] sm:$0xfe]  ;;  %v3046_v51 = vmul.f32 %v6836_v36, %v3041_v16  ;;  %v3058_v62 = vrot.slane %v3044_v52, 1  ;;  %v3070_v5 = vadd.f32 %v3056_v58, %v3027_v38  ;;  %v3105_v31 = vmul.f32 %v6852_v19, %v3091_v48  ;;  %v3162_v44 = vld [vmem:[%s11980_s0 + $0x18] sm:$0x7f] }
 0x203   :  { %v6838_v41 = vld [vmem:[%s11980_s0 + $0x670] sm:$0xfe]  ;;  %v3047_v56 = vmul.f32 %v6837_v40, %v3041_v16  ;;  %v3059_v63 = vrot.slane %v3045_v50, 1  ;;  %v3071_v6 = vadd.f32 %v3057_v59, %v3028_v39  ;;  %v3121_v33 = vrot.slane %v3093_v15, 2  ;;  %v3166_v52 = vld [vmem:[%s11980_s0 + $0x198] sm:$0x7f] }
 0x204   :  { %v6839_v47 = vld [vmem:[%s11980_s0 + $0xd0] sm:$0xfc]  ;;  %v3048_v57 = vmul.f32 %v6838_v41, %v3041_v16  ;;  %v3060_v0 = vrot.slane %v3046_v51, 1  ;;  %v3072_v10 = vadd.f32 %v3058_v62, %v3029_v42  ;;  %v3124_v35 = vrot.slane %v3095_v21, 2  ;;  %v3163_v42 = vld [vmem:[%s11980_s0 + $0x78] sm:$0x7f] }
 0x205   :  { %v6841_v54 = vld [vmem:[%s11980_s0 + $0x130] sm:$0xfc]  ;;  %v3092_v2 = vmul.f32 %v6839_v47, %v3091_v48  ;;  %v3061_v3 = vrot.slane %v3047_v56, 1  ;;  %v3073_v9 = vadd.f32 %v3059_v63, %v3030_v45  ;;  %v3127_v37 = vrot.slane %v3097_v23, 2  ;;  %v3167_v50 = vld [vmem:[%s11980_s0 + $0x1f8] sm:$0x7f] }
 0x206   :  { %v6843_v60 = vld [vmem:[%s11980_s0 + $0x190] sm:$0xfc]  ;;  %v3062_v4 = vrot.slane %v3048_v57, 1  ;;  %v3074_v12 = vadd.f32 %v3060_v0, %v3031_v43  ;;  %v3094_v20 = vmul.f32 %v6841_v54, %v3091_v48  ;;  %v3130_v40 = vrot.slane %v3099_v25, 2  ;;  %v3169_v56 = vld [vmem:[%s11981_s1 + $0x18] ss:$0 sm:$0xff] }
 0x207   :  { %v6845_v1 = vld [vmem:[%s11980_s0 + $0x1f0] sm:$0xfc]  ;;  %v3075_v16 = vadd.f32 %v3061_v3, %v3032_v46  ;;  %v3096_v22 = vmul.f32 %v6843_v60, %v3091_v48  ;;  %v3120_v32 = vrot.slane %v3092_v2, 2  ;;  %v3133_v46 = vrot.slane %v3101_v27, 2  ;;  %v6853_v62 = vld [vmem:[%s11980_s0 + $0x378] sm:$0x7f] }
 0x208   :  { %v6847_v8 = vld [vmem:[%s11980_s0 + $0x250] sm:$0xfc]  ;;  %v3076_v17 = vadd.f32 %v3062_v4, %v3033_v49  ;;  %v3098_v24 = vmul.f32 %v6845_v1, %v3091_v48  ;;  %v3123_v34 = vrot.slane %v3094_v20, 2  ;;  %v3165_v49 = vld [vmem:[%s11980_s0 + $0x138] sm:$0x7f]  ;;  %v3136_v53 = vrot.slane %v3103_v29, 2 }
 0x209   :  { %v6849_v13 = vld [vmem:[%s11980_s0 + $0x2b0] sm:$0xfc]  ;;  %v3100_v26 = vmul.f32 %v6847_v8, %v3091_v48  ;;  %v3126_v36 = vrot.slane %v3096_v22, 2  ;;  %v3122_v38 = vsel %vm185_vm0, %v3120_v32, %v3121_v33  ;;  %v3139_v55 = vrot.slane %v3105_v31, 2  ;;  %v6854_v63 = vld [vmem:[%s11980_s0 + $0x3d8] sm:$0x7f] }
 0x20a   :  { %v6851_v18 = vld [vmem:[%s11980_s0 + $0x310] sm:$0xfc]  ;;  %v3102_v28 = vmul.f32 %v6849_v13, %v3091_v48  ;;  %v3129_v39 = vrot.slane %v3098_v24, 2  ;;  %v3125_v45 = vsel %vm185_vm0, %v3123_v34, %v3124_v35  ;;  %v3148_v58 = vadd.f32 %v3122_v38, %v3070_v5  ;;  %v6855_v4 = vld [vmem:[%s11980_s0 + $0x438] sm:$0x7f] }
 0x20b   :  { %v3104_v30 = vmul.f32 %v6851_v18, %v3091_v48  ;;  %v3132_v41 = vrot.slane %v3100_v26, 2  ;;  %v3128_v43 = vsel %vm185_vm0, %v3126_v36, %v3127_v37  ;;  %v3164_v48 = vld [vmem:[%s11980_s0 + $0xd8] sm:$0x7f]  ;;  %v3149_v59 = vadd.f32 %v3125_v45, %v3071_v6 }
 0x20c   :  { %v3135_v47 = vrot.slane %v3102_v28, 2  ;;  %v3131_v51 = vsel %vm185_vm0, %v3129_v39, %v3130_v40  ;;  %v3150_v60 = vadd.f32 %v3128_v43, %v3072_v10  ;;  %v6856_v5 = vld [vmem:[%s11980_s0 + $0x498] sm:$0x7f]  ;;  %3155 = vst [vmem:[%s11982_s2 + $0x10] sm:$0x7f] %v3148_v58  ;;  %v3170_v10 = vmul.f32 %v3169_v56, %v3162_v44 }
 0x20d   :  { %v3138_v54 = vrot.slane %v3104_v30, 2  ;;  %v3134_v57 = vsel %vm185_vm0, %v3132_v41, %v3133_v46  ;;  %v3151_v2 = vadd.f32 %v3131_v51, %v3073_v9  ;;  %v3191_v6 = vld [vmem:[%s11981_s1 + $0x19] ss:$0 sm:$0xff]  ;;  %3156 = vst [vmem:[%s11982_s2 + $0x40] sm:$0x7f] %v3149_v59  ;;  %v3171_v9 = vmul.f32 %v3169_v56, %v3163_v42 }
 0x20e   :  { %v3137_v0 = vsel %vm185_vm0, %v3135_v47, %v3136_v53  ;;  %v3152_v3 = vadd.f32 %v3134_v57, %v3074_v12  ;;  %3157 = vst [vmem:[%s11982_s2 + $0x70] sm:$0x7f] %v3150_v60  ;;  %v6857_v12 = vld [vmem:[%s11980_s0 + $0x4f8] sm:$0x7f]  ;;  %v3172_v14 = vmul.f32 %v3169_v56, %v3164_v48  ;;  %v3173_v15 = vmul.f32 %v3169_v56, %v3165_v49 }
 0x20f   :  { %v3140_v1 = vsel %vm185_vm0, %v3138_v54, %v3139_v55  ;;  %v3153_v7 = vadd.f32 %v3137_v0, %v3075_v16  ;;  %v6859_v13 = vld [vmem:[%s11980_s0 + $0x5b8] sm:$0x7f]  ;;  %3158 = vst [vmem:[%s11982_s2 + $0xa0] sm:$0x7f] %v3151_v2  ;;  %v3174_v16 = vmul.f32 %v3169_v56, %v3166_v52  ;;  %v3176_v20 = vmul.f32 %v3169_v56, %v3168_v61 }
 0x210   :  { %v3154_v8 = vadd.f32 %v3140_v1, %v3076_v17  ;;  %3159 = vst [vmem:[%s11982_s2 + $0xd0] sm:$0x7f] %v3152_v3  ;;  %v3175_v17 = vmul.f32 %v3169_v56, %v3167_v50  ;;  %v3206_v18 = vld [vmem:[%s11980_s0 + $0x18] sm:$0xfe]  ;;  %v3192_v21 = vmul.f32 %v6853_v62, %v3191_v6  ;;  %v3193_v22 = vmul.f32 %v6854_v63, %v3191_v6 }
 0x211   :  { %v3213_v19 = vld [vmem:[%s11981_s1 + $0x1a] ss:$0 sm:$0xff]  ;;  %3160 = vst [vmem:[%s11982_s2 + $0x100] sm:$0x7f] %v3153_v7  ;;  %v3194_v23 = vmul.f32 %v6855_v4, %v3191_v6  ;;  %v3195_v26 = vmul.f32 %v6856_v5, %v3191_v6  ;;  %v3196_v27 = vmul.f32 %v6857_v12, %v3191_v6  ;;  %v3197_v28 = vmul.f32 %v6858_v11, %v3191_v6  ;;  %v3256_v39 = vld [vmem:[%s11981_s1 + $0x1b] ss:$0 sm:$0xff] }
 0x212   :  { %3161 = vst [vmem:[%s11982_s2 + $0x130] sm:$0x7f] %v3154_v8  ;;  %v3207_v24 = vld [vmem:[%s11980_s0 + $0x78] sm:$0xfe]  ;;  %v3198_v29 = vmul.f32 %v6859_v13, %v3191_v6  ;;  %v3199_v33 = vadd.f32 %v3192_v21, %v3170_v10  ;;  %v3200_v34 = vadd.f32 %v3193_v22, %v3171_v9  ;;  %v3214_v37 = vmul.f32 %v3213_v19, %v3206_v18  ;;  %v3293_v11 = vld [vmem:[%s11980_s0 + $0x48] sm:$0x1] }
 0x213   :  { %v3208_v25 = vld [vmem:[%s11980_s0 + $0xd8] sm:$0xfe]  ;;  %v3201_v35 = vadd.f32 %v3194_v23, %v3172_v14  ;;  %v3202_v40 = vadd.f32 %v3195_v26, %v3173_v15  ;;  %v3203_v41 = vadd.f32 %v3196_v27, %v3174_v16  ;;  %v3204_v44 = vadd.f32 %v3197_v28, %v3175_v17  ;;  %v3295_v18 = vld [vmem:[%s11980_s0 + $0xa8] sm:$0x1] }
 0x214   :  { %v3209_v30 = vld [vmem:[%s11980_s0 + $0x138] sm:$0xfe]  ;;  %v3205_v42 = vadd.f32 %v3198_v29, %v3176_v20  ;;  %v3215_v45 = vmul.f32 %v3213_v19, %v3207_v24  ;;  %v3216_v43 = vmul.f32 %v3213_v19, %v3208_v25  ;;  %v3228_v50 = vrot.slane %v3214_v37, 1  ;;  %v3297_v20 = vld [vmem:[%s11980_s0 + $0x108] sm:$0x1] }
 0x215   :  { %v3210_v31 = vld [vmem:[%s11980_s0 + $0x198] sm:$0xfe]  ;;  %v3217_v46 = vmul.f32 %v3213_v19, %v3209_v30  ;;  %v3299_v30 = vld [vmem:[%s11980_s0 + $0x168] sm:$0x1] }
 0x216   :  { %v3211_v32 = vld [vmem:[%s11980_s0 + $0x1f8] sm:$0xfe]  ;;  %v3218_v47 = vmul.f32 %v3213_v19, %v3210_v31  ;;  %v3229_v55 = vrot.slane %v3215_v45, 1  ;;  %v3230_v56 = vrot.slane %v3216_v43, 1  ;;  %v3242_v62 = vadd.f32 %v3228_v50, %v3199_v33 }
 0x217   :  { %v3212_v36 = vld [vmem:[%s11980_s0 + $0x258] sm:$0xfe]  ;;  %v3219_v49 = vmul.f32 %v3213_v19, %v3211_v32  ;;  %v3231_v57 = vrot.slane %v3217_v46, 1 }
 0x218   :  { %v6860_v38 = vld [vmem:[%s11980_s0 + $0x378] sm:$0xfe]  ;;  %v3220_v52 = vmul.f32 %v3213_v19, %v3212_v36  ;;  %v3232_v58 = vrot.slane %v3218_v47, 1  ;;  %v3243_v2 = vadd.f32 %v3229_v55, %v3200_v34  ;;  %v3244_v3 = vadd.f32 %v3230_v56, %v3201_v35  ;;  %v3301_v35 = vld [vmem:[%s11980_s0 + $0x1c8] sm:$0x1] }
 0x219   :  { %v6861_v48 = vld [vmem:[%s11980_s0 + $0x3d8] sm:$0xfe]  ;;  %v3257_v54 = vmul.f32 %v6860_v38, %v3256_v39  ;;  %v3233_v60 = vrot.slane %v3219_v49, 1  ;;  %v3245_v4 = vadd.f32 %v3231_v57, %v3202_v40 }
 0x21a   :  { %v6862_v51 = vld [vmem:[%s11980_s0 + $0x438] sm:$0xfe]  ;;  %v3234_v61 = vrot.slane %v3220_v52, 1  ;;  %v3258_v1 = vmul.f32 %v6861_v48, %v3256_v39  ;;  %v3246_v5 = vadd.f32 %v3232_v58, %v3203_v41  ;;  %v3303_v41 = vld [vmem:[%s11980_s0 + $0x228] sm:$0x1] }
 0x21b   :  { %v6863_v53 = vld [vmem:[%s11980_s0 + $0x498] sm:$0xfe]  ;;  %v3247_v8 = vadd.f32 %v3233_v60, %v3204_v44  ;;  %v3259_v9 = vmul.f32 %v6862_v51, %v3256_v39  ;;  %v3271_v17 = vrot.slane %v3257_v54, 1 }
 0x21c   :  { %v6864_v59 = vld [vmem:[%s11980_s0 + $0x4f8] sm:$0xfe]  ;;  %v3248_v10 = vadd.f32 %v3234_v61, %v3205_v42  ;;  %v3260_v12 = vmul.f32 %v6863_v53, %v3256_v39  ;;  %v3272_v21 = vrot.slane %v3258_v1, 1  ;;  %v3305_v42 = vld [vmem:[%s11980_s0 + $0x288] sm:$0x1] }
 0x21d   :  { %v6865_v63 = vld [vmem:[%s11980_s0 + $0x558] sm:$0xfe]  ;;  %v3261_v14 = vmul.f32 %v6864_v59, %v3256_v39  ;;  %v3273_v22 = vrot.slane %v3259_v9, 1  ;;  %v3285_v29 = vadd.f32 %v3271_v17, %v3242_v62 }
 0x21e   :  { %v6866_v0 = vld [vmem:[%s11980_s0 + $0x5b8] sm:$0xfe]  ;;  %v3262_v15 = vmul.f32 %v6865_v63, %v3256_v39  ;;  %v3274_v23 = vrot.slane %v3260_v12, 1  ;;  %v3286_v31 = vadd.f32 %v3272_v21, %v3243_v2 }
 0x21f   :  { %v3292_v6 = vld [vmem:[%s11980_s0 + $0x18] sm:$0xfc]  ;;  %v3263_v16 = vmul.f32 %v6866_v0, %v3256_v39  ;;  %v3275_v26 = vrot.slane %v3261_v14, 1  ;;  %v3287_v32 = vadd.f32 %v3273_v22, %v3244_v3 }
 0x220   :  { %v3306_v7 = vld [vmem:[%s11981_s1 + $0x1c] ss:$0 sm:$0xff]  ;;  %v3276_v27 = vrot.slane %v3262_v15, 1  ;;  %v3288_v33 = vadd.f32 %v3274_v23, %v3245_v4 }
 0x221   :  { %v3294_v13 = vld [vmem:[%s11980_s0 + $0x78] sm:$0xfc]  ;;  %v3307_v25 = vmul.f32 %v3306_v7, %v3292_v6  ;;  %v3277_v28 = vrot.slane %v3263_v16, 1  ;;  %v3308_v37 = vmul.f32 %v3306_v7, %v3293_v11  ;;  %v3289_v38 = vadd.f32 %v3275_v26, %v3246_v5 }
 0x222   :  { %v3296_v19 = vld [vmem:[%s11980_s0 + $0xd8] sm:$0xfc]  ;;  %v3290_v39 = vadd.f32 %v3276_v27, %v3247_v8  ;;  %v3309_v45 = vmul.f32 %v3306_v7, %v3294_v13  ;;  %v3310_v43 = vmul.f32 %v3306_v7, %v3295_v18  ;;  %v3312_v47 = vmul.f32 %v3306_v7, %v3297_v20 }
 0x223   :  { %v3298_v24 = vld [vmem:[%s11980_s0 + $0x138] sm:$0xfc]  ;;  %v3291_v40 = vadd.f32 %v3277_v28, %v3248_v10  ;;  %v3311_v46 = vmul.f32 %v3306_v7, %v3296_v19  ;;  %v3314_v49 = vmul.f32 %v3306_v7, %v3299_v30  ;;  %v3316_v50 = vmul.f32 %v3306_v7, %v3301_v35 }
 0x224   :  { %v3300_v34 = vld [vmem:[%s11980_s0 + $0x198] sm:$0xfc]  ;;  %v3313_v48 = vmul.f32 %v3306_v7, %v3298_v24  ;;  %v3318_v53 = vmul.f32 %v3306_v7, %v3303_v41  ;;  %v3320_v55 = vmul.f32 %v3306_v7, %v3305_v42  ;;  %v3335_v56 = vrot.slane %v3307_v25, 2 }
 0x225   :  { %v3302_v36 = vld [vmem:[%s11980_s0 + $0x1f8] sm:$0xfc]  ;;  %v3315_v52 = vmul.f32 %v3306_v7, %v3300_v34  ;;  %v3336_v57 = vrot.slane %v3308_v37, 2  ;;  %v3338_v58 = vrot.slane %v3309_v45, 2  ;;  %v3339_v59 = vrot.slane %v3310_v43, 2 }
 0x226   :  { %v3304_v44 = vld [vmem:[%s11980_s0 + $0x258] sm:$0xfc]  ;;  %v3317_v51 = vmul.f32 %v3306_v7, %v3302_v36  ;;  %v3341_v60 = vrot.slane %v3311_v46, 2  ;;  %v3342_v61 = vrot.slane %v3312_v47, 2  ;;  %v3344_v62 = vrot.slane %v3313_v48, 2 }
 0x227   :  { %v3319_v54 = vmul.f32 %v3306_v7, %v3304_v44  ;;  %v3345_v63 = vrot.slane %v3314_v49, 2  ;;  %v3347_v0 = vrot.slane %v3315_v52, 2  ;;  %v3337_v1 = vsel %vm185_vm0, %v3335_v56, %v3336_v57  ;;  %v6867_v5 = vld [vmem:[%s11980_s0 + $0x6d8] sm:$0x7f]  ;;  %v3421_v52 = vld [vmem:[%s11981_s1 + $0x1f] ss:$0 sm:$0xff] }
 0x228   :  { %v3340_v2 = vsel %vm185_vm0, %v3338_v58, %v3339_v59  ;;  %v3348_v3 = vrot.slane %v3316_v50, 2  ;;  %v3350_v4 = vrot.slane %v3317_v51, 2  ;;  %v6868_v6 = vld [vmem:[%s11980_s0 + $0x738] sm:$0x7f]  ;;  %v3343_v7 = vsel %vm185_vm0, %v3341_v60, %v3342_v61 }
 0x229   :  { %v3346_v8 = vsel %vm185_vm0, %v3344_v62, %v3345_v63  ;;  %v3351_v10 = vrot.slane %v3318_v53, 2  ;;  %v3353_v9 = vrot.slane %v3319_v54, 2  ;;  %v6869_v12 = vld [vmem:[%s11980_s0 + $0x798] sm:$0x7f]  ;;  %v3354_v14 = vrot.slane %v3320_v55, 2 }
 0x22a   :  { %v3377_v11 = vld [vmem:[%s11981_s1 + $0x1d] ss:$0 sm:$0xff]  ;;  %v3349_v13 = vsel %vm185_vm0, %v3347_v0, %v3348_v3  ;;  %v3363_v15 = vadd.f32 %v3337_v1, %v3285_v29  ;;  %v3364_v16 = vadd.f32 %v3340_v2, %v3286_v31  ;;  %v3365_v20 = vadd.f32 %v3343_v7, %v3287_v32  ;;  %v3399_v30 = vld [vmem:[%s11981_s1 + $0x1e] ss:$0 sm:$0xff] }
 0x22b   :  { %v6870_v17 = vld [vmem:[%s11980_s0 + $0x7f8] sm:$0x7f]  ;;  %v3352_v19 = vsel %vm185_vm0, %v3350_v4, %v3351_v10  ;;  %v3366_v21 = vadd.f32 %v3346_v8, %v3288_v33  ;;  %v3367_v22 = vadd.f32 %v3349_v13, %v3289_v38  ;;  %v3355_v25 = vsel %vm185_vm0, %v3353_v9, %v3354_v14 }
 0x22c   :  { %v6871_v18 = vld [vmem:[%s11980_s0 + $0x858] sm:$0x7f]  ;;  %v3368_v26 = vadd.f32 %v3352_v19, %v3290_v39  ;;  %v3378_v27 = vmul.f32 %v6867_v5, %v3377_v11  ;;  %v3379_v28 = vmul.f32 %v6868_v6, %v3377_v11  ;;  %v3369_v31 = vadd.f32 %v3355_v25, %v3291_v40  ;;  %v3464_v6 = vld [vmem:[%s11981_s1 + $0x48] ss:$0 sm:$0xff] }
 0x22d   :  { %v6872_v23 = vld [vmem:[%s11980_s0 + $0x8b8] sm:$0x7f]  ;;  %v3380_v32 = vmul.f32 %v6869_v12, %v3377_v11  ;;  %v3381_v33 = vmul.f32 %v6870_v17, %v3377_v11  ;;  %v3382_v34 = vmul.f32 %v6871_v18, %v3377_v11 }
 0x22e   :  { %v6873_v24 = vld [vmem:[%s11980_s0 + $0x918] sm:$0x7f]  ;;  %v3383_v38 = vmul.f32 %v6872_v23, %v3377_v11  ;;  %v3385_v41 = vadd.f32 %v3378_v27, %v3363_v15  ;;  %v3386_v44 = vadd.f32 %v3379_v28, %v3364_v16 }
 0x22f   :  { %v6874_v29 = vld [vmem:[%s11980_s0 + $0xa38] sm:$0x7f]  ;;  %v3384_v39 = vmul.f32 %v6873_v24, %v3377_v11  ;;  %v3387_v43 = vadd.f32 %v3380_v32, %v3365_v20  ;;  %v3388_v46 = vadd.f32 %v3381_v33, %v3366_v21  ;;  %v3389_v47 = vadd.f32 %v3382_v34, %v3367_v22 }
 0x230   :  { %v6875_v35 = vld [vmem:[%s11980_s0 + $0xa98] sm:$0x7f]  ;;  %v3400_v48 = vmul.f32 %v6874_v29, %v3399_v30  ;;  %v3390_v50 = vadd.f32 %v3383_v38, %v3368_v26  ;;  %v3514_v38 = vld [vmem:[%s11981_s1 + $0x49] ss:$0 sm:$0xff] }
 0x231   :  { %v6876_v36 = vld [vmem:[%s11980_s0 + $0xaf8] sm:$0x7f]  ;;  %v3391_v51 = vadd.f32 %v3384_v39, %v3369_v31  ;;  %v3401_v53 = vmul.f32 %v6875_v35, %v3399_v30 }
 0x232   :  { %v6877_v37 = vld [vmem:[%s11980_s0 + $0xb58] sm:$0x7f]  ;;  %v3402_v54 = vmul.f32 %v6876_v36, %v3399_v30  ;;  %v3407_v0 = vadd.f32 %v3400_v48, %v3385_v41 }
 0x233   :  { %v6878_v40 = vld [vmem:[%s11980_s0 + $0xbb8] sm:$0x7f]  ;;  %v3403_v57 = vmul.f32 %v6877_v37, %v3399_v30  ;;  %v3408_v1 = vadd.f32 %v3401_v53, %v3386_v44 }
 0x234   :  { %v6879_v42 = vld [vmem:[%s11980_s0 + $0xc18] sm:$0x7f]  ;;  %v3404_v58 = vmul.f32 %v6878_v40, %v3399_v30  ;;  %v3409_v2 = vadd.f32 %v3402_v54, %v3387_v43 }
 0x235   :  { %v6880_v45 = vld [vmem:[%s11980_s0 + $0xc78] sm:$0x7f]  ;;  %v3405_v59 = vmul.f32 %v6879_v42, %v3399_v30  ;;  %v3410_v7 = vadd.f32 %v3403_v57, %v3388_v46  ;;  %v6896_v42 = vld [vmem:[%s11980_s0 + $0x708] sm:$0x1] }
 0x236   :  { %v6881_v49 = vld [vmem:[%s11980_s0 + $0x6d8] sm:$0xfe]  ;;  %v3406_v60 = vmul.f32 %v6880_v45, %v3399_v30  ;;  %v3411_v8 = vadd.f32 %v3404_v58, %v3389_v47 }
 0x237   :  { %v6882_v55 = vld [vmem:[%s11980_s0 + $0x738] sm:$0xfe]  ;;  %v3422_v4 = vmul.f32 %v6881_v49, %v3421_v52  ;;  %v3412_v10 = vadd.f32 %v3405_v59, %v3390_v50  ;;  %v6898_v49 = vld [vmem:[%s11980_s0 + $0x768] sm:$0x1] }
 0x238   :  { %v6883_v56 = vld [vmem:[%s11980_s0 + $0x798] sm:$0xfe]  ;;  %v3413_v9 = vadd.f32 %v3406_v60, %v3391_v51  ;;  %v3423_v12 = vmul.f32 %v6882_v55, %v3421_v52  ;;  %v6900_v50 = vld [vmem:[%s11980_s0 + $0x7c8] sm:$0x1] }
 0x239   :  { %v6884_v61 = vld [vmem:[%s11980_s0 + $0x7f8] sm:$0xfe]  ;;  %v3424_v11 = vmul.f32 %v6883_v56, %v3421_v52  ;;  %v3436_v18 = vrot.slane %v3422_v4, 1  ;;  %v3516_v4 = vmul.f32 %v6896_v42, %v3514_v38  ;;  %v3585_v42 = vld [vmem:[%s11981_s1 + $0x4a] ss:$0 sm:$0xff] }
 0x23a   :  { %v6885_v62 = vld [vmem:[%s11980_s0 + $0x858] sm:$0xfe]  ;;  %v3425_v13 = vmul.f32 %v6884_v61, %v3421_v52  ;;  %v3437_v22 = vrot.slane %v3423_v12, 1  ;;  %v6902_v61 = vld [vmem:[%s11980_s0 + $0x828] sm:$0x1] }
 0x23b   :  { %v6886_v63 = vld [vmem:[%s11980_s0 + $0x8b8] sm:$0xfe]  ;;  %v3426_v14 = vmul.f32 %v6885_v62, %v3421_v52  ;;  %v3438_v23 = vrot.slane %v3424_v11, 1  ;;  %v3450_v29 = vadd.f32 %v3436_v18, %v3407_v0  ;;  %v3518_v11 = vmul.f32 %v6898_v49, %v3514_v38 }
 0x23c   :  { %v6887_v3 = vld [vmem:[%s11980_s0 + $0x918] sm:$0xfe]  ;;  %v3427_v16 = vmul.f32 %v6886_v63, %v3421_v52  ;;  %v3439_v24 = vrot.slane %v3425_v13, 1  ;;  %v3451_v33 = vadd.f32 %v3437_v22, %v3408_v1 }
 0x23d   :  { %v6888_v5 = vld [vmem:[%s11980_s0 + $0xa38] sm:$0xfe]  ;;  %v3428_v17 = vmul.f32 %v6887_v3, %v3421_v52  ;;  %v3440_v25 = vrot.slane %v3426_v14, 1  ;;  %v3452_v34 = vadd.f32 %v3438_v23, %v3409_v2  ;;  %v6904_v2 = vld [vmem:[%s11980_s0 + $0x888] sm:$0x1]  ;;  %v3520_v14 = vmul.f32 %v6900_v50, %v3514_v38 }
 0x23e   :  { %v6889_v15 = vld [vmem:[%s11980_s0 + $0xa98] sm:$0xfe]  ;;  %v3465_v21 = vmul.f32 %v6888_v5, %v3464_v6  ;;  %v3441_v27 = vrot.slane %v3427_v16, 1  ;;  %v3453_v35 = vadd.f32 %v3439_v24, %v3410_v7  ;;  %v3522_v16 = vmul.f32 %v6902_v61, %v3514_v38  ;;  %v3607_v61 = vld [vmem:[%s11981_s1 + $0x4b] ss:$0 sm:$0xff] }
 0x23f   :  { %v6890_v19 = vld [vmem:[%s11980_s0 + $0xaf8] sm:$0xfe]  ;;  %v3442_v28 = vrot.slane %v3428_v17, 1  ;;  %v3466_v32 = vmul.f32 %v6889_v15, %v3464_v6  ;;  %v3454_v36 = vadd.f32 %v3440_v25, %v3411_v8  ;;  %v6906_v8 = vld [vmem:[%s11980_s0 + $0x8e8] sm:$0x1]  ;;  %v3524_v18 = vmul.f32 %v6904_v2, %v3514_v38 }
 0x240   :  { %v6891_v20 = vld [vmem:[%s11980_s0 + $0xb58] sm:$0xfe]  ;;  %v3455_v39 = vadd.f32 %v3441_v27, %v3412_v10  ;;  %v3467_v44 = vmul.f32 %v6890_v19, %v3464_v6  ;;  %v3479_v48 = vrot.slane %v3465_v21, 1  ;;  %v3544_v24 = vrot.slane %v3516_v4, 2 }
 0x241   :  { %v6892_v26 = vld [vmem:[%s11980_s0 + $0xbb8] sm:$0xfe]  ;;  %v3456_v41 = vadd.f32 %v3442_v28, %v3413_v9  ;;  %v3468_v40 = vmul.f32 %v6891_v20, %v3464_v6  ;;  %v3480_v51 = vrot.slane %v3466_v32, 1  ;;  %v6908_v9 = vld [vmem:[%s11980_s0 + $0x948] sm:$0x1]  ;;  %v3526_v20 = vmul.f32 %v6906_v8, %v3514_v38 }
 0x242   :  { %v6893_v30 = vld [vmem:[%s11980_s0 + $0xc18] sm:$0xfe]  ;;  %v3469_v43 = vmul.f32 %v6892_v26, %v3464_v6  ;;  %v3481_v53 = vrot.slane %v3467_v44, 1  ;;  %v3493_v60 = vadd.f32 %v3479_v48, %v3450_v29  ;;  %v3528_v22 = vmul.f32 %v6908_v9, %v3514_v38 }
 0x243   :  { %v6894_v31 = vld [vmem:[%s11980_s0 + $0xc78] sm:$0xfe]  ;;  %v3470_v46 = vmul.f32 %v6893_v30, %v3464_v6  ;;  %v3482_v54 = vrot.slane %v3468_v40, 1  ;;  %v3494_v62 = vadd.f32 %v3480_v51, %v3451_v33  ;;  %v3547_v26 = vrot.slane %v3518_v11, 2 }
 0x244   :  { %v6895_v37 = vld [vmem:[%s11980_s0 + $0x6d8] sm:$0xfc]  ;;  %v3471_v47 = vmul.f32 %v6894_v31, %v3464_v6  ;;  %v3483_v57 = vrot.slane %v3469_v43, 1  ;;  %v3495_v63 = vadd.f32 %v3481_v53, %v3452_v34  ;;  %v3550_v28 = vrot.slane %v3520_v14, 2 }
 0x245   :  { %v6897_v45 = vld [vmem:[%s11980_s0 + $0x738] sm:$0xfc]  ;;  %v3515_v56 = vmul.f32 %v6895_v37, %v3514_v38  ;;  %v3484_v58 = vrot.slane %v3470_v46, 1  ;;  %v3496_v0 = vadd.f32 %v3482_v54, %v3453_v35  ;;  %v3553_v30 = vrot.slane %v3522_v16, 2 }
 0x246   :  { %v6899_v52 = vld [vmem:[%s11980_s0 + $0x798] sm:$0xfc]  ;;  %v3485_v59 = vrot.slane %v3471_v47, 1  ;;  %v3497_v5 = vadd.f32 %v3483_v57, %v3454_v36  ;;  %v3517_v12 = vmul.f32 %v6897_v45, %v3514_v38  ;;  %v3556_v34 = vrot.slane %v3524_v18, 2 }
 0x247   :  { %v6901_v55 = vld [vmem:[%s11980_s0 + $0x7f8] sm:$0xfc]  ;;  %v3498_v6 = vadd.f32 %v3484_v58, %v3455_v39  ;;  %v3519_v13 = vmul.f32 %v6899_v52, %v3514_v38  ;;  %v3543_v23 = vrot.slane %v3515_v56, 2  ;;  %v3562_v43 = vrot.slane %v3528_v22, 2 }
 0x248   :  { %v6903_v1 = vld [vmem:[%s11980_s0 + $0x858] sm:$0xfc]  ;;  %v3499_v7 = vadd.f32 %v3485_v59, %v3456_v41  ;;  %v3521_v15 = vmul.f32 %v6901_v55, %v3514_v38  ;;  %v3546_v25 = vrot.slane %v3517_v12, 2  ;;  %v3559_v41 = vrot.slane %v3526_v20, 2 }
 0x249   :  { %v6905_v3 = vld [vmem:[%s11980_s0 + $0x8b8] sm:$0xfc]  ;;  %v3523_v17 = vmul.f32 %v6903_v1, %v3514_v38  ;;  %v3549_v27 = vrot.slane %v3519_v13, 2  ;;  %v3545_v32 = vsel %vm185_vm0, %v3543_v23, %v3544_v24 }
 0x24a   :  { %v6907_v10 = vld [vmem:[%s11980_s0 + $0x918] sm:$0xfc]  ;;  %v3525_v19 = vmul.f32 %v6905_v3, %v3514_v38  ;;  %v3552_v29 = vrot.slane %v3521_v15, 2  ;;  %v3548_v33 = vsel %vm185_vm0, %v3546_v25, %v3547_v26  ;;  %v3571_v46 = vadd.f32 %v3545_v32, %v3493_v60 }
 0x24b   :  { %v3527_v21 = vmul.f32 %v6907_v10, %v3514_v38  ;;  %v3555_v31 = vrot.slane %v3523_v17, 2  ;;  %v6909_v36 = vld [vmem:[%s11980_s0 + $0x78] sm:$0x7f]  ;;  %v3551_v38 = vsel %vm185_vm0, %v3549_v27, %v3550_v28  ;;  %v3572_v47 = vadd.f32 %v3548_v33, %v3494_v62  ;;  %v3629_v17 = vld [vmem:[%s11981_s1 + $0x4c] ss:$0 sm:$0xff] }
 0x24c   :  { %v3558_v35 = vrot.slane %v3525_v19, 2  ;;  %v6910_v37 = vld [vmem:[%s11980_s0 + $0xd8] sm:$0x7f]  ;;  %v3554_v39 = vsel %vm185_vm0, %v3552_v29, %v3553_v30  ;;  %v3573_v50 = vadd.f32 %v3551_v38, %v3495_v63  ;;  %v3586_v58 = vmul.f32 %v6909_v36, %v3585_v42 }
 0x24d   :  { %v3561_v44 = vrot.slane %v3527_v21, 2  ;;  %v6911_v40 = vld [vmem:[%s11980_s0 + $0x138] sm:$0x7f]  ;;  %v3557_v45 = vsel %vm185_vm0, %v3555_v31, %v3556_v34  ;;  %v3574_v51 = vadd.f32 %v3554_v39, %v3496_v0  ;;  %v3587_v59 = vmul.f32 %v6910_v37, %v3585_v42  ;;  %v3672_v37 = vld [vmem:[%s11981_s1 + $0x4d] ss:$0 sm:$0xff] }
 0x24e   :  { %v6912_v48 = vld [vmem:[%s11980_s0 + $0x198] sm:$0x7f]  ;;  %v3560_v52 = vsel %vm185_vm0, %v3558_v35, %v3559_v41  ;;  %v3575_v53 = vadd.f32 %v3557_v45, %v3497_v5  ;;  %v3588_v63 = vmul.f32 %v6911_v40, %v3585_v42  ;;  %v3593_v8 = vadd.f32 %v3586_v58, %v3571_v46 }
 0x24f   :  { %v6913_v49 = vld [vmem:[%s11980_s0 + $0x1f8] sm:$0x7f]  ;;  %v3563_v56 = vsel %vm185_vm0, %v3561_v44, %v3562_v43  ;;  %v3576_v57 = vadd.f32 %v3560_v52, %v3498_v6  ;;  %v3589_v0 = vmul.f32 %v6912_v48, %v3585_v42  ;;  %v3594_v10 = vadd.f32 %v3587_v59, %v3572_v47 }
 0x250   :  { %v6914_v54 = vld [vmem:[%s11980_s0 + $0x258] sm:$0x7f]  ;;  %v3577_v62 = vadd.f32 %v3563_v56, %v3499_v7  ;;  %v3590_v1 = vmul.f32 %v6913_v49, %v3585_v42  ;;  %v3595_v11 = vadd.f32 %v3588_v63, %v3573_v50 }
 0x251   :  { %v6915_v55 = vld [vmem:[%s11980_s0 + $0x2b8] sm:$0x7f]  ;;  %v3591_v5 = vmul.f32 %v6914_v54, %v3585_v42  ;;  %v3596_v13 = vadd.f32 %v3589_v0, %v3574_v51 }
 0x252   :  { %v6916_v60 = vld [vmem:[%s11980_s0 + $0x3d8] sm:$0x7f]  ;;  %v3592_v6 = vmul.f32 %v6915_v55, %v3585_v42  ;;  %v3597_v14 = vadd.f32 %v3590_v1, %v3575_v53 }
 0x253   :  { %v6917_v2 = vld [vmem:[%s11980_s0 + $0x438] sm:$0x7f]  ;;  %v3608_v15 = vmul.f32 %v6916_v60, %v3607_v61  ;;  %v3598_v18 = vadd.f32 %v3591_v5, %v3576_v57  ;;  %v3722_v5 = vld [vmem:[%s11981_s1 + $0x4e] ss:$0 sm:$0xff] }
 0x254   :  { %v6918_v3 = vld [vmem:[%s11980_s0 + $0x498] sm:$0x7f]  ;;  %v3599_v19 = vadd.f32 %v3592_v6, %v3577_v62  ;;  %v3609_v20 = vmul.f32 %v6917_v2, %v3607_v61 }
 0x255   :  { %v6919_v4 = vld [vmem:[%s11980_s0 + $0x4f8] sm:$0x7f]  ;;  %v3610_v21 = vmul.f32 %v6918_v3, %v3607_v61  ;;  %v3615_v31 = vadd.f32 %v3608_v15, %v3593_v8 }
 0x256   :  { %v6920_v7 = vld [vmem:[%s11980_s0 + $0x558] sm:$0x7f]  ;;  %v3611_v24 = vmul.f32 %v6919_v4, %v3607_v61  ;;  %v3616_v32 = vadd.f32 %v3609_v20, %v3594_v10 }
 0x257   :  { %v6921_v9 = vld [vmem:[%s11980_s0 + $0x5b8] sm:$0x7f]  ;;  %v3612_v25 = vmul.f32 %v6920_v7, %v3607_v61  ;;  %v3617_v33 = vadd.f32 %v3610_v21, %v3595_v11 }
 0x258   :  { %v6922_v12 = vld [vmem:[%s11980_s0 + $0x618] sm:$0x7f]  ;;  %v3613_v26 = vmul.f32 %v6921_v9, %v3607_v61  ;;  %v3618_v38 = vadd.f32 %v3611_v24, %v3596_v13  ;;  %v6938_v9 = vld [vmem:[%s11980_s0 + $0xa8] sm:$0x1] }
 0x259   :  { %v6923_v16 = vld [vmem:[%s11980_s0 + $0x78] sm:$0xfe]  ;;  %v3614_v27 = vmul.f32 %v6922_v12, %v3607_v61  ;;  %v3619_v39 = vadd.f32 %v3612_v25, %v3597_v14 }
 0x25a   :  { %v6924_v22 = vld [vmem:[%s11980_s0 + $0xd8] sm:$0xfe]  ;;  %v3630_v35 = vmul.f32 %v6923_v16, %v3629_v17  ;;  %v3620_v41 = vadd.f32 %v3613_v26, %v3598_v18  ;;  %v6940_v16 = vld [vmem:[%s11980_s0 + $0x108] sm:$0x1] }
 0x25b   :  { %v6925_v23 = vld [vmem:[%s11980_s0 + $0x138] sm:$0xfe]  ;;  %v3621_v44 = vadd.f32 %v3614_v27, %v3599_v19  ;;  %v3631_v40 = vmul.f32 %v6924_v22, %v3629_v17  ;;  %v6942_v18 = vld [vmem:[%s11980_s0 + $0x168] sm:$0x1] }
 0x25c   :  { %v6926_v28 = vld [vmem:[%s11980_s0 + $0x198] sm:$0xfe]  ;;  %v3632_v42 = vmul.f32 %v6925_v23, %v3629_v17  ;;  %v3644_v49 = vrot.slane %v3630_v35, 1  ;;  %v3724_v35 = vmul.f32 %v6938_v9, %v3722_v5  ;;  %v3793_v9 = vld [vmem:[%s11981_s1 + $0x4f] ss:$0 sm:$0xff] }
 0x25d   :  { %v6927_v29 = vld [vmem:[%s11980_s0 + $0x1f8] sm:$0xfe]  ;;  %v3633_v45 = vmul.f32 %v6926_v28, %v3629_v17  ;;  %v3645_v53 = vrot.slane %v3631_v40, 1  ;;  %v6944_v28 = vld [vmem:[%s11980_s0 + $0x1c8] sm:$0x1] }
 0x25e   :  { %v6928_v30 = vld [vmem:[%s11980_s0 + $0x258] sm:$0xfe]  ;;  %v3634_v43 = vmul.f32 %v6927_v29, %v3629_v17  ;;  %v3646_v54 = vrot.slane %v3632_v42, 1  ;;  %v3658_v60 = vadd.f32 %v3644_v49, %v3615_v31  ;;  %v3726_v42 = vmul.f32 %v6940_v16, %v3722_v5 }
 0x25f   :  { %v6929_v34 = vld [vmem:[%s11980_s0 + $0x2b8] sm:$0xfe]  ;;  %v3635_v47 = vmul.f32 %v6928_v30, %v3629_v17  ;;  %v3647_v55 = vrot.slane %v3633_v45, 1  ;;  %v3659_v0 = vadd.f32 %v3645_v53, %v3616_v32 }
 0x260   :  { %v6930_v36 = vld [vmem:[%s11980_s0 + $0x3d8] sm:$0xfe]  ;;  %v3636_v48 = vmul.f32 %v6929_v34, %v3629_v17  ;;  %v3648_v56 = vrot.slane %v3634_v43, 1  ;;  %v3660_v1 = vadd.f32 %v3646_v54, %v3617_v33  ;;  %v6946_v33 = vld [vmem:[%s11980_s0 + $0x228] sm:$0x1]  ;;  %v3728_v43 = vmul.f32 %v6942_v18, %v3722_v5 }
 0x261   :  { %v6931_v46 = vld [vmem:[%s11980_s0 + $0x438] sm:$0xfe]  ;;  %v3673_v51 = vmul.f32 %v6930_v36, %v3672_v37  ;;  %v3649_v58 = vrot.slane %v3635_v47, 1  ;;  %v3661_v2 = vadd.f32 %v3647_v55, %v3618_v38  ;;  %v3730_v47 = vmul.f32 %v6944_v28, %v3722_v5  ;;  %v3815_v28 = vld [vmem:[%s11981_s1 + $0x78] ss:$0 sm:$0xff] }
 0x262   :  { %v6932_v52 = vld [vmem:[%s11980_s0 + $0x498] sm:$0xfe]  ;;  %v3650_v59 = vrot.slane %v3636_v48, 1  ;;  %v3674_v63 = vmul.f32 %v6931_v46, %v3672_v37  ;;  %v3662_v3 = vadd.f32 %v3648_v56, %v3619_v39  ;;  %v6948_v39 = vld [vmem:[%s11980_s0 + $0x288] sm:$0x1]  ;;  %v3732_v49 = vmul.f32 %v6946_v33, %v3722_v5 }
 0x263   :  { %v6933_v50 = vld [vmem:[%s11980_s0 + $0x4f8] sm:$0xfe]  ;;  %v3663_v6 = vadd.f32 %v3649_v58, %v3620_v41  ;;  %v3675_v10 = vmul.f32 %v6932_v52, %v3672_v37  ;;  %v3687_v15 = vrot.slane %v3673_v51, 1  ;;  %v3752_v55 = vrot.slane %v3724_v35, 2 }
 0x264   :  { %v6934_v57 = vld [vmem:[%s11980_s0 + $0x558] sm:$0xfe]  ;;  %v3664_v8 = vadd.f32 %v3650_v59, %v3621_v44  ;;  %v3676_v7 = vmul.f32 %v6933_v50, %v3672_v37  ;;  %v3688_v19 = vrot.slane %v3674_v63, 1  ;;  %v6950_v44 = vld [vmem:[%s11980_s0 + $0x2e8] sm:$0x1]  ;;  %v3734_v50 = vmul.f32 %v6948_v39, %v3722_v5 }
 0x265   :  { %v6935_v61 = vld [vmem:[%s11980_s0 + $0x5b8] sm:$0xfe]  ;;  %v3677_v11 = vmul.f32 %v6934_v57, %v3672_v37  ;;  %v3689_v20 = vrot.slane %v3675_v10, 1  ;;  %v3701_v27 = vadd.f32 %v3687_v15, %v3658_v60  ;;  %v3736_v53 = vmul.f32 %v6950_v44, %v3722_v5 }
 0x266   :  { %v6936_v62 = vld [vmem:[%s11980_s0 + $0x618] sm:$0xfe]  ;;  %v3678_v13 = vmul.f32 %v6935_v61, %v3672_v37  ;;  %v3690_v21 = vrot.slane %v3676_v7, 1  ;;  %v3702_v29 = vadd.f32 %v3688_v19, %v3659_v0  ;;  %v3755_v57 = vrot.slane %v3726_v42, 2 }
 0x267   :  { %v6937_v4 = vld [vmem:[%s11980_s0 + $0x78] sm:$0xfc]  ;;  %v3679_v14 = vmul.f32 %v6936_v62, %v3672_v37  ;;  %v3691_v24 = vrot.slane %v3677_v11, 1  ;;  %v3703_v30 = vadd.f32 %v3689_v20, %v3660_v1  ;;  %v3758_v59 = vrot.slane %v3728_v43, 2 }
 0x268   :  { %v6939_v12 = vld [vmem:[%s11980_s0 + $0xd8] sm:$0xfc]  ;;  %v3723_v23 = vmul.f32 %v6937_v4, %v3722_v5  ;;  %v3692_v25 = vrot.slane %v3678_v13, 1  ;;  %v3704_v31 = vadd.f32 %v3690_v21, %v3661_v2  ;;  %v3761_v61 = vrot.slane %v3730_v47, 2 }
 0x269   :  { %v6941_v17 = vld [vmem:[%s11980_s0 + $0x138] sm:$0xfc]  ;;  %v3693_v26 = vrot.slane %v3679_v14, 1  ;;  %v3705_v36 = vadd.f32 %v3691_v24, %v3662_v3  ;;  %v3725_v40 = vmul.f32 %v6939_v12, %v3722_v5  ;;  %v3764_v1 = vrot.slane %v3732_v49, 2 }
 0x26a   :  { %v6943_v22 = vld [vmem:[%s11980_s0 + $0x198] sm:$0xfc]  ;;  %v3706_v37 = vadd.f32 %v3692_v25, %v3663_v6  ;;  %v3727_v45 = vmul.f32 %v6941_v17, %v3722_v5  ;;  %v3751_v54 = vrot.slane %v3723_v23, 2  ;;  %v3770_v11 = vrot.slane %v3736_v53, 2 }
 0x26b   :  { %v6945_v32 = vld [vmem:[%s11980_s0 + $0x1f8] sm:$0xfc]  ;;  %v3707_v38 = vadd.f32 %v3693_v26, %v3664_v8  ;;  %v3729_v46 = vmul.f32 %v6943_v22, %v3722_v5  ;;  %v3754_v56 = vrot.slane %v3725_v40, 2  ;;  %v3767_v8 = vrot.slane %v3734_v50, 2 }
 0x26c   :  { %v6947_v34 = vld [vmem:[%s11980_s0 + $0x258] sm:$0xfc]  ;;  %v3731_v48 = vmul.f32 %v6945_v32, %v3722_v5  ;;  %v3757_v58 = vrot.slane %v3727_v45, 2  ;;  %v3753_v63 = vsel %vm185_vm0, %v3751_v54, %v3752_v55 }
 0x26d   :  { %v6949_v41 = vld [vmem:[%s11980_s0 + $0x2b8] sm:$0xfc]  ;;  %v3733_v52 = vmul.f32 %v6947_v34, %v3722_v5  ;;  %v3760_v60 = vrot.slane %v3729_v46, 2  ;;  %v3756_v0 = vsel %vm185_vm0, %v3754_v56, %v3755_v57  ;;  %v3779_v13 = vadd.f32 %v3753_v63, %v3701_v27 }
 0x26e   :  { %v3735_v51 = vmul.f32 %v6949_v41, %v3722_v5  ;;  %v3763_v62 = vrot.slane %v3731_v48, 2  ;;  %v6951_v3 = vld [vmem:[%s11980_s0 + $0x738] sm:$0x7f]  ;;  %v3759_v5 = vsel %vm185_vm0, %v3757_v58, %v3758_v59  ;;  %v3780_v14 = vadd.f32 %v3756_v0, %v3702_v29 }
 0x26f   :  { %v3766_v2 = vrot.slane %v3733_v52, 2  ;;  %v6952_v4 = vld [vmem:[%s11980_s0 + $0x798] sm:$0x7f]  ;;  %v3762_v6 = vsel %vm185_vm0, %v3760_v60, %v3761_v61  ;;  %v3781_v18 = vadd.f32 %v3759_v5, %v3703_v30  ;;  %v3794_v25 = vmul.f32 %v6951_v3, %v3793_v9 }
 0x270   :  { %v3769_v10 = vrot.slane %v3735_v51, 2  ;;  %v6953_v7 = vld [vmem:[%s11980_s0 + $0x7f8] sm:$0x7f]  ;;  %v3765_v12 = vsel %vm185_vm0, %v3763_v62, %v3764_v1  ;;  %v3782_v19 = vadd.f32 %v3762_v6, %v3704_v31  ;;  %v3795_v26 = vmul.f32 %v6952_v4, %v3793_v9 }
 0x271   :  { %v6954_v15 = vld [vmem:[%s11980_s0 + $0x858] sm:$0x7f]  ;;  %v3768_v17 = vsel %vm185_vm0, %v3766_v2, %v3767_v8  ;;  %v3783_v20 = vadd.f32 %v3765_v12, %v3705_v36  ;;  %v3796_v30 = vmul.f32 %v6953_v7, %v3793_v9  ;;  %v3801_v39 = vadd.f32 %v3794_v25, %v3779_v13 }
 0x272   :  { %v6955_v16 = vld [vmem:[%s11980_s0 + $0x8b8] sm:$0x7f]  ;;  %v3771_v23 = vsel %vm185_vm0, %v3769_v10, %v3770_v11  ;;  %v3784_v24 = vadd.f32 %v3768_v17, %v3706_v37  ;;  %v3797_v31 = vmul.f32 %v6954_v15, %v3793_v9  ;;  %v3802_v41 = vadd.f32 %v3795_v26, %v3780_v14 }
 0x273   :  { %v6956_v21 = vld [vmem:[%s11980_s0 + $0x918] sm:$0x7f]  ;;  %v3785_v29 = vadd.f32 %v3771_v23, %v3707_v38  ;;  %v3798_v32 = vmul.f32 %v6955_v16, %v3793_v9  ;;  %v3803_v42 = vadd.f32 %v3796_v30, %v3781_v18 }
 0x274   :  { %v6957_v22 = vld [vmem:[%s11980_s0 + $0x978] sm:$0x7f]  ;;  %v3799_v36 = vmul.f32 %v6956_v21, %v3793_v9  ;;  %v3804_v45 = vadd.f32 %v3797_v31, %v3782_v19 }
 0x275   :  { %v6958_v27 = vld [vmem:[%s11980_s0 + $0xa98] sm:$0x7f]  ;;  %v3800_v37 = vmul.f32 %v6957_v22, %v3793_v9  ;;  %v3805_v43 = vadd.f32 %v3798_v32, %v3783_v20 }
 0x276   :  { %v6959_v33 = vld [vmem:[%s11980_s0 + $0xaf8] sm:$0x7f]  ;;  %v3816_v46 = vmul.f32 %v6958_v27, %v3815_v28  ;;  %v3806_v49 = vadd.f32 %v3799_v36, %v3784_v24 }
 0x277   :  { %v6960_v34 = vld [vmem:[%s11980_s0 + $0xb58] sm:$0x7f]  ;;  %v3807_v52 = vadd.f32 %v3800_v37, %v3785_v29  ;;  %v3817_v50 = vmul.f32 %v6959_v33, %v3815_v28 }
 0x278   :  { %v6961_v35 = vld [vmem:[%s11980_s0 + $0xbb8] sm:$0x7f]  ;;  %v3818_v51 = vmul.f32 %v6960_v34, %v3815_v28  ;;  %v3823_v62 = vadd.f32 %v3816_v46, %v3801_v39 }
 0x279   :  { %v6962_v38 = vld [vmem:[%s11980_s0 + $0xc18] sm:$0x7f]  ;;  %v3819_v55 = vmul.f32 %v6961_v35, %v3815_v28  ;;  %v3824_v63 = vadd.f32 %v3817_v50, %v3802_v41 }
 0x27a   :  { %v6963_v44 = vld [vmem:[%s11980_s0 + $0xc78] sm:$0x7f]  ;;  %v3820_v56 = vmul.f32 %v6962_v38, %v3815_v28  ;;  %v3825_v0 = vadd.f32 %v3818_v51, %v3803_v42 }
 0x27b   :  { %v6964_v40 = vld [vmem:[%s11980_s0 + $0xcd8] sm:$0x7f]  ;;  %v3821_v57 = vmul.f32 %v6963_v44, %v3815_v28  ;;  %v3826_v5 = vadd.f32 %v3819_v55, %v3804_v45  ;;  %v6980_v44 = vld [vmem:[%s11980_s0 + $0x768] sm:$0x1] }
 0x27c   :  { %v6965_v47 = vld [vmem:[%s11980_s0 + $0x738] sm:$0xfe]  ;;  %v3822_v58 = vmul.f32 %v6964_v40, %v3815_v28  ;;  %v3827_v6 = vadd.f32 %v3820_v56, %v3805_v43 }
 0x27d   :  { %v3837_v48 = vld [vmem:[%s11981_s1 + $0x79] ss:$0 sm:$0xff]  ;;  %v3880_v4 = vld [vmem:[%s11981_s1 + $0x7a] ss:$0 sm:$0xff]  ;;  %v3828_v8 = vadd.f32 %v3821_v57, %v3806_v49  ;;  %v3930_v36 = vld [vmem:[%s11981_s1 + $0x7b] ss:$0 sm:$0xff] }
 0x27e   :  { %v6966_v53 = vld [vmem:[%s11980_s0 + $0x798] sm:$0xfe]  ;;  %v3838_v2 = vmul.f32 %v6965_v47, %v3837_v48  ;;  %v3829_v10 = vadd.f32 %v3822_v58, %v3807_v52  ;;  %v6982_v47 = vld [vmem:[%s11980_s0 + $0x7c8] sm:$0x1] }
 0x27f   :  { %v6967_v54 = vld [vmem:[%s11980_s0 + $0x7f8] sm:$0xfe]  ;;  %v3839_v7 = vmul.f32 %v6966_v53, %v3837_v48  ;;  %v6984_v49 = vld [vmem:[%s11980_s0 + $0x828] sm:$0x1] }
 0x280   :  { %v6968_v59 = vld [vmem:[%s11980_s0 + $0x858] sm:$0xfe]  ;;  %v3840_v9 = vmul.f32 %v6967_v54, %v3837_v48  ;;  %v3852_v16 = vrot.slane %v3838_v2, 1  ;;  %v3932_v2 = vmul.f32 %v6980_v44, %v3930_v36 }
 0x281   :  { %v6969_v60 = vld [vmem:[%s11980_s0 + $0x8b8] sm:$0xfe]  ;;  %v3841_v12 = vmul.f32 %v6968_v59, %v3837_v48  ;;  %v3853_v20 = vrot.slane %v3839_v7, 1  ;;  %v6986_v59 = vld [vmem:[%s11980_s0 + $0x888] sm:$0x1] }
 0x282   :  { %v6970_v61 = vld [vmem:[%s11980_s0 + $0x918] sm:$0xfe]  ;;  %v3842_v11 = vmul.f32 %v6969_v60, %v3837_v48  ;;  %v3854_v21 = vrot.slane %v3840_v9, 1  ;;  %v3866_v27 = vadd.f32 %v3852_v16, %v3823_v62  ;;  %v3934_v9 = vmul.f32 %v6982_v47, %v3930_v36 }
 0x283   :  { %v6971_v1 = vld [vmem:[%s11980_s0 + $0x978] sm:$0xfe]  ;;  %v3843_v14 = vmul.f32 %v6970_v61, %v3837_v48  ;;  %v3855_v22 = vrot.slane %v3841_v12, 1  ;;  %v3867_v31 = vadd.f32 %v3853_v20, %v3824_v63 }
 0x284   :  { %v6972_v3 = vld [vmem:[%s11980_s0 + $0xa98] sm:$0xfe]  ;;  %v3844_v15 = vmul.f32 %v6971_v1, %v3837_v48  ;;  %v3856_v23 = vrot.slane %v3842_v11, 1  ;;  %v3868_v32 = vadd.f32 %v3854_v21, %v3825_v0  ;;  %v6988_v0 = vld [vmem:[%s11980_s0 + $0x8e8] sm:$0x1]  ;;  %v3936_v11 = vmul.f32 %v6984_v49, %v3930_v36 }
 0x285   :  { %v6973_v13 = vld [vmem:[%s11980_s0 + $0xaf8] sm:$0xfe]  ;;  %v3881_v19 = vmul.f32 %v6972_v3, %v3880_v4  ;;  %v3857_v25 = vrot.slane %v3843_v14, 1  ;;  %v3869_v33 = vadd.f32 %v3855_v22, %v3826_v5  ;;  %v3938_v14 = vmul.f32 %v6986_v59, %v3930_v36 }
 0x286   :  { %v6974_v17 = vld [vmem:[%s11980_s0 + $0xb58] sm:$0xfe]  ;;  %v3858_v26 = vrot.slane %v3844_v15, 1  ;;  %v3882_v30 = vmul.f32 %v6973_v13, %v3880_v4  ;;  %v3870_v34 = vadd.f32 %v3856_v23, %v3827_v6  ;;  %v6990_v6 = vld [vmem:[%s11980_s0 + $0x948] sm:$0x1]  ;;  %v3940_v16 = vmul.f32 %v6988_v0, %v3930_v36 }
 0x287   :  { %v6975_v18 = vld [vmem:[%s11980_s0 + $0xbb8] sm:$0xfe]  ;;  %v3871_v37 = vadd.f32 %v3857_v25, %v3828_v8  ;;  %v3883_v41 = vmul.f32 %v6974_v17, %v3880_v4  ;;  %v3895_v46 = vrot.slane %v3881_v19, 1  ;;  %v3960_v22 = vrot.slane %v3932_v2, 2 }
 0x288   :  { %v6976_v24 = vld [vmem:[%s11980_s0 + $0xc18] sm:$0xfe]  ;;  %v3872_v39 = vadd.f32 %v3858_v26, %v3829_v10  ;;  %v3884_v38 = vmul.f32 %v6975_v18, %v3880_v4  ;;  %v3896_v52 = vrot.slane %v3882_v30, 1  ;;  %v6992_v10 = vld [vmem:[%s11980_s0 + $0x9a8] sm:$0x1]  ;;  %v3942_v18 = vmul.f32 %v6990_v6, %v3930_v36 }
 0x289   :  { %v6977_v28 = vld [vmem:[%s11980_s0 + $0xc78] sm:$0xfe]  ;;  %v3885_v42 = vmul.f32 %v6976_v24, %v3880_v4  ;;  %v3897_v50 = vrot.slane %v3883_v41, 1  ;;  %v3909_v58 = vadd.f32 %v3895_v46, %v3866_v27  ;;  %v3944_v20 = vmul.f32 %v6992_v10, %v3930_v36 }
 0x28a   :  { %v6978_v29 = vld [vmem:[%s11980_s0 + $0xcd8] sm:$0xfe]  ;;  %v3886_v45 = vmul.f32 %v6977_v28, %v3880_v4  ;;  %v3898_v51 = vrot.slane %v3884_v38, 1  ;;  %v3910_v60 = vadd.f32 %v3896_v52, %v3867_v31  ;;  %v3963_v24 = vrot.slane %v3934_v9, 2 }
 0x28b   :  { %v6979_v35 = vld [vmem:[%s11980_s0 + $0x738] sm:$0xfc]  ;;  %v3887_v43 = vmul.f32 %v6978_v29, %v3880_v4  ;;  %v3899_v55 = vrot.slane %v3885_v42, 1  ;;  %v3911_v61 = vadd.f32 %v3897_v50, %v3868_v32  ;;  %v3966_v26 = vrot.slane %v3936_v11, 2 }
 0x28c   :  { %v6981_v40 = vld [vmem:[%s11980_s0 + $0x798] sm:$0xfc]  ;;  %v3931_v54 = vmul.f32 %v6979_v35, %v3930_v36  ;;  %v3900_v56 = vrot.slane %v3886_v45, 1  ;;  %v3912_v62 = vadd.f32 %v3898_v51, %v3869_v33  ;;  %v3969_v28 = vrot.slane %v3938_v14, 2 }
 0x28d   :  { %v6983_v48 = vld [vmem:[%s11980_s0 + $0x7f8] sm:$0xfc]  ;;  %v3901_v57 = vrot.slane %v3887_v43, 1  ;;  %v3913_v3 = vadd.f32 %v3899_v55, %v3870_v34  ;;  %v3933_v7 = vmul.f32 %v6981_v40, %v3930_v36  ;;  %v3972_v32 = vrot.slane %v3940_v16, 2 }
 0x28e   :  { %v6985_v53 = vld [vmem:[%s11980_s0 + $0x858] sm:$0xfc]  ;;  %v3914_v4 = vadd.f32 %v3900_v56, %v3871_v37  ;;  %v3935_v12 = vmul.f32 %v6983_v48, %v3930_v36  ;;  %v3959_v21 = vrot.slane %v3931_v54, 2  ;;  %v3978_v42 = vrot.slane %v3944_v20, 2 }
 0x28f   :  { %v6987_v63 = vld [vmem:[%s11980_s0 + $0x8b8] sm:$0xfc]  ;;  %v3915_v5 = vadd.f32 %v3901_v57, %v3872_v39  ;;  %v3937_v13 = vmul.f32 %v6985_v53, %v3930_v36  ;;  %v3962_v23 = vrot.slane %v3933_v7, 2  ;;  %v3975_v39 = vrot.slane %v3942_v18, 2 }
 0x290   :  { %v6989_v1 = vld [vmem:[%s11980_s0 + $0x918] sm:$0xfc]  ;;  %v3939_v15 = vmul.f32 %v6987_v63, %v3930_v36  ;;  %v3965_v25 = vrot.slane %v3935_v12, 2  ;;  %v3961_v30 = vsel %vm185_vm0, %v3959_v21, %v3960_v22 }
 0x291   :  { %v6991_v8 = vld [vmem:[%s11980_s0 + $0x978] sm:$0xfc]  ;;  %v3941_v17 = vmul.f32 %v6989_v1, %v3930_v36  ;;  %v3968_v27 = vrot.slane %v3937_v13, 2  ;;  %v3964_v31 = vsel %vm185_vm0, %v3962_v23, %v3963_v24  ;;  %v3987_v45 = vadd.f32 %v3961_v30, %v3909_v58 }
 0x292   :  { %v3943_v19 = vmul.f32 %v6991_v8, %v3930_v36  ;;  %v3971_v29 = vrot.slane %v3939_v15, 2  ;;  %v6993_v34 = vld [vmem:[%s11980_s0 + $0xd8] sm:$0x7f]  ;;  %v3967_v36 = vsel %vm185_vm0, %v3965_v25, %v3966_v26  ;;  %v3988_v43 = vadd.f32 %v3964_v31, %v3910_v60 }
 0x293   :  { %v3974_v33 = vrot.slane %v3941_v17, 2  ;;  %v6994_v35 = vld [vmem:[%s11980_s0 + $0x138] sm:$0x7f]  ;;  %v3970_v37 = vsel %vm185_vm0, %v3968_v27, %v3969_v28  ;;  %v3989_v49 = vadd.f32 %v3967_v36, %v3911_v61 }
 0x294   :  { %v3977_v41 = vrot.slane %v3943_v19, 2  ;;  %v6995_v38 = vld [vmem:[%s11980_s0 + $0x198] sm:$0x7f]  ;;  %v3973_v40 = vsel %vm185_vm0, %v3971_v29, %v3972_v32  ;;  %v3990_v52 = vadd.f32 %v3970_v37, %v3912_v62 }
 0x295   :  { %v4001_v44 = vld [vmem:[%s11981_s1 + $0x7c] ss:$0 sm:$0xff]  ;;  %v3976_v48 = vsel %vm185_vm0, %v3974_v33, %v3975_v39  ;;  %v3991_v50 = vadd.f32 %v3973_v40, %v3913_v3  ;;  %v4023_v59 = vld [vmem:[%s11981_s1 + $0x7d] ss:$0 sm:$0xff]  ;;  %v4045_v15 = vld [vmem:[%s11981_s1 + $0x7e] ss:$0 sm:$0xff] }
 0x296   :  { %v6996_v46 = vld [vmem:[%s11980_s0 + $0x1f8] sm:$0x7f]  ;;  %v3979_v54 = vsel %vm185_vm0, %v3977_v41, %v3978_v42  ;;  %v3992_v55 = vadd.f32 %v3976_v48, %v3914_v4  ;;  %v4002_v56 = vmul.f32 %v6993_v34, %v4001_v44  ;;  %v4003_v57 = vmul.f32 %v6994_v35, %v4001_v44  ;;  %v4088_v35 = vld [vmem:[%s11981_s1 + $0x7f] ss:$0 sm:$0xff] }
 0x297   :  { %v6997_v47 = vld [vmem:[%s11980_s0 + $0x258] sm:$0x7f]  ;;  %v3993_v60 = vadd.f32 %v3979_v54, %v3915_v5  ;;  %v4004_v61 = vmul.f32 %v6995_v38, %v4001_v44  ;;  %v4005_v62 = vmul.f32 %v6996_v46, %v4001_v44 }
 0x298   :  { %v6998_v51 = vld [vmem:[%s11980_s0 + $0x2b8] sm:$0x7f]  ;;  %v4006_v63 = vmul.f32 %v6997_v47, %v4001_v44  ;;  %v4009_v6 = vadd.f32 %v4002_v56, %v3987_v45  ;;  %v4010_v8 = vadd.f32 %v4003_v57, %v3988_v43 }
 0x299   :  { %v6999_v53 = vld [vmem:[%s11980_s0 + $0x318] sm:$0x7f]  ;;  %v4007_v3 = vmul.f32 %v6998_v51, %v4001_v44  ;;  %v4011_v9 = vadd.f32 %v4004_v61, %v3989_v49  ;;  %v4012_v12 = vadd.f32 %v4005_v62, %v3990_v52 }
 0x29a   :  { %v7000_v58 = vld [vmem:[%s11980_s0 + $0x438] sm:$0x7f]  ;;  %v4008_v4 = vmul.f32 %v6999_v53, %v4001_v44  ;;  %v4013_v11 = vadd.f32 %v4006_v63, %v3991_v50 }
 0x29b   :  { %v7001_v0 = vld [vmem:[%s11980_s0 + $0x498] sm:$0x7f]  ;;  %v4024_v13 = vmul.f32 %v7000_v58, %v4023_v59  ;;  %v4014_v16 = vadd.f32 %v4007_v3, %v3992_v55  ;;  %v4138_v3 = vld [vmem:[%s11981_s1 + $0xa8] ss:$0 sm:$0xff] }
 0x29c   :  { %v7002_v1 = vld [vmem:[%s11980_s0 + $0x4f8] sm:$0x7f]  ;;  %v4015_v17 = vadd.f32 %v4008_v4, %v3993_v60  ;;  %v4025_v18 = vmul.f32 %v7001_v0, %v4023_v59 }
 0x29d   :  { %v7003_v2 = vld [vmem:[%s11980_s0 + $0x558] sm:$0x7f]  ;;  %v4026_v19 = vmul.f32 %v7002_v1, %v4023_v59  ;;  %v4031_v29 = vadd.f32 %v4024_v13, %v4009_v6 }
 0x29e   :  { %v7004_v5 = vld [vmem:[%s11980_s0 + $0x5b8] sm:$0x7f]  ;;  %v4027_v22 = vmul.f32 %v7003_v2, %v4023_v59  ;;  %v4032_v30 = vadd.f32 %v4025_v18, %v4010_v8 }
 0x29f   :  { %v7005_v10 = vld [vmem:[%s11980_s0 + $0x618] sm:$0x7f]  ;;  %v4028_v23 = vmul.f32 %v7004_v5, %v4023_v59  ;;  %v4033_v31 = vadd.f32 %v4026_v19, %v4011_v9 }
 0x2a0   :  { %v7006_v7 = vld [vmem:[%s11980_s0 + $0x678] sm:$0x7f]  ;;  %v4029_v24 = vmul.f32 %v7005_v10, %v4023_v59  ;;  %v4034_v36 = vadd.f32 %v4027_v22, %v4012_v12  ;;  %v7022_v10 = vld [vmem:[%s11980_s0 + $0x108] sm:$0x1] }
 0x2a1   :  { %v7007_v14 = vld [vmem:[%s11980_s0 + $0xd8] sm:$0xfe]  ;;  %v4030_v25 = vmul.f32 %v7006_v7, %v4023_v59  ;;  %v4035_v37 = vadd.f32 %v4028_v23, %v4013_v11 }
 0x2a2   :  { %v7008_v20 = vld [vmem:[%s11980_s0 + $0x138] sm:$0xfe]  ;;  %v4046_v33 = vmul.f32 %v7007_v14, %v4045_v15  ;;  %v4036_v39 = vadd.f32 %v4029_v24, %v4014_v16  ;;  %v7024_v14 = vld [vmem:[%s11980_s0 + $0x168] sm:$0x1] }
 0x2a3   :  { %v7009_v21 = vld [vmem:[%s11980_s0 + $0x198] sm:$0xfe]  ;;  %v4037_v41 = vadd.f32 %v4030_v25, %v4015_v17  ;;  %v4047_v38 = vmul.f32 %v7008_v20, %v4045_v15  ;;  %v7026_v16 = vld [vmem:[%s11980_s0 + $0x1c8] sm:$0x1] }
 0x2a4   :  { %v7010_v26 = vld [vmem:[%s11980_s0 + $0x1f8] sm:$0xfe]  ;;  %v4048_v44 = vmul.f32 %v7009_v21, %v4045_v15  ;;  %v4060_v47 = vrot.slane %v4046_v33, 1  ;;  %v4140_v33 = vmul.f32 %v7022_v10, %v4138_v3 }
 0x2a5   :  { %v7011_v27 = vld [vmem:[%s11980_s0 + $0x258] sm:$0xfe]  ;;  %v4049_v40 = vmul.f32 %v7010_v26, %v4045_v15  ;;  %v4061_v50 = vrot.slane %v4047_v38, 1  ;;  %v7028_v26 = vld [vmem:[%s11980_s0 + $0x228] sm:$0x1] }
 0x2a6   :  { %v7012_v28 = vld [vmem:[%s11980_s0 + $0x2b8] sm:$0xfe]  ;;  %v4050_v42 = vmul.f32 %v7011_v27, %v4045_v15  ;;  %v4062_v51 = vrot.slane %v4048_v44, 1  ;;  %v4074_v58 = vadd.f32 %v4060_v47, %v4031_v29  ;;  %v4142_v44 = vmul.f32 %v7024_v14, %v4138_v3 }
 0x2a7   :  { %v7013_v32 = vld [vmem:[%s11980_s0 + $0x318] sm:$0xfe]  ;;  %v4051_v43 = vmul.f32 %v7012_v28, %v4045_v15  ;;  %v4063_v53 = vrot.slane %v4049_v40, 1  ;;  %v4075_v62 = vadd.f32 %v4061_v50, %v4032_v30 }
 0x2a8   :  { %v7014_v34 = vld [vmem:[%s11980_s0 + $0x438] sm:$0xfe]  ;;  %v4052_v46 = vmul.f32 %v7013_v32, %v4045_v15  ;;  %v4064_v54 = vrot.slane %v4050_v42, 1  ;;  %v4076_v63 = vadd.f32 %v4062_v51, %v4033_v31  ;;  %v7030_v31 = vld [vmem:[%s11980_s0 + $0x288] sm:$0x1]  ;;  %v4144_v42 = vmul.f32 %v7026_v16, %v4138_v3 }
 0x2a9   :  { %v7015_v45 = vld [vmem:[%s11980_s0 + $0x498] sm:$0xfe]  ;;  %v4089_v52 = vmul.f32 %v7014_v34, %v4088_v35  ;;  %v4065_v56 = vrot.slane %v4051_v43, 1  ;;  %v4077_v0 = vadd.f32 %v4063_v53, %v4034_v36  ;;  %v4146_v43 = vmul.f32 %v7028_v26, %v4138_v3  ;;  %v4215_v16 = vld [vmem:[%s11980_s0 + $0x260] sm:$0x7f] }
 0x2aa   :  { %v7016_v48 = vld [vmem:[%s11980_s0 + $0x4f8] sm:$0xfe]  ;;  %v4066_v57 = vrot.slane %v4052_v46, 1  ;;  %v4090_v61 = vmul.f32 %v7015_v45, %v4088_v35  ;;  %v4078_v1 = vadd.f32 %v4064_v54, %v4035_v37  ;;  %v7032_v37 = vld [vmem:[%s11980_s0 + $0x2e8] sm:$0x1]  ;;  %v4148_v47 = vmul.f32 %v7030_v31, %v4138_v3 }
 0x2ab   :  { %v7017_v49 = vld [vmem:[%s11980_s0 + $0x558] sm:$0xfe]  ;;  %v4079_v4 = vadd.f32 %v4065_v56, %v4036_v39  ;;  %v4091_v8 = vmul.f32 %v7016_v48, %v4088_v35  ;;  %v4103_v13 = vrot.slane %v4089_v52, 1  ;;  %v4168_v53 = vrot.slane %v4140_v33, 2  ;;  %v7040_v31 = vld [vmem:[%s11980_s0 + $0x560] sm:$0x7f] }
 0x2ac   :  { %v7018_v55 = vld [vmem:[%s11980_s0 + $0x5b8] sm:$0xfe]  ;;  %v4080_v6 = vadd.f32 %v4066_v57, %v4037_v41  ;;  %v4092_v5 = vmul.f32 %v7017_v49, %v4088_v35  ;;  %v4104_v17 = vrot.slane %v4090_v61, 1  ;;  %v7034_v41 = vld [vmem:[%s11980_s0 + $0x348] sm:$0x1]  ;;  %v4150_v49 = vmul.f32 %v7032_v37, %v4138_v3 }
 0x2ad   :  { %v7019_v59 = vld [vmem:[%s11980_s0 + $0x618] sm:$0xfe]  ;;  %v4093_v9 = vmul.f32 %v7018_v55, %v4088_v35  ;;  %v4105_v18 = vrot.slane %v4091_v8, 1  ;;  %v4117_v25 = vadd.f32 %v4103_v13, %v4074_v58  ;;  %v4152_v50 = vmul.f32 %v7034_v41, %v4138_v3  ;;  %v4209_v61 = vld [vmem:[%s11980_s0 + $0x20] sm:$0x7f] }
 0x2ae   :  { %v7020_v60 = vld [vmem:[%s11980_s0 + $0x678] sm:$0xfe]  ;;  %v4094_v12 = vmul.f32 %v7019_v59, %v4088_v35  ;;  %v4106_v19 = vrot.slane %v4092_v5, 1  ;;  %v4118_v27 = vadd.f32 %v4104_v17, %v4075_v62  ;;  %v4171_v55 = vrot.slane %v4142_v44, 2  ;;  %v4210_v62 = vld [vmem:[%s11980_s0 + $0x80] sm:$0x7f] }
 0x2af   :  { %v7021_v2 = vld [vmem:[%s11980_s0 + $0xd8] sm:$0xfc]  ;;  %v4095_v11 = vmul.f32 %v7020_v60, %v4088_v35  ;;  %v4107_v22 = vrot.slane %v4093_v9, 1  ;;  %v4119_v28 = vadd.f32 %v4105_v18, %v4076_v63  ;;  %v4174_v57 = vrot.slane %v4144_v42, 2  ;;  %v4214_v9 = vld [vmem:[%s11980_s0 + $0x200] sm:$0x7f] }
 0x2b0   :  { %v7023_v7 = vld [vmem:[%s11980_s0 + $0x138] sm:$0xfc]  ;;  %v4139_v21 = vmul.f32 %v7021_v2, %v4138_v3  ;;  %v4108_v23 = vrot.slane %v4094_v12, 1  ;;  %v4120_v29 = vadd.f32 %v4106_v19, %v4077_v0  ;;  %v4177_v59 = vrot.slane %v4146_v43, 2  ;;  %v4216_v12 = vld [vmem:[%s11981_s1 + $0x20] ss:$0 sm:$0xff] }
 0x2b1   :  { %v7025_v15 = vld [vmem:[%s11980_s0 + $0x198] sm:$0xfc]  ;;  %v4109_v24 = vrot.slane %v4095_v11, 1  ;;  %v4121_v34 = vadd.f32 %v4107_v22, %v4078_v1  ;;  %v4141_v38 = vmul.f32 %v7023_v7, %v4138_v3  ;;  %v4180_v1 = vrot.slane %v4148_v47, 2  ;;  %v7035_v17 = vld [vmem:[%s11980_s0 + $0x380] sm:$0x7f] }
 0x2b2   :  { %v7027_v20 = vld [vmem:[%s11980_s0 + $0x1f8] sm:$0xfc]  ;;  %v4122_v35 = vadd.f32 %v4108_v23, %v4079_v4  ;;  %v4143_v40 = vmul.f32 %v7025_v15, %v4138_v3  ;;  %v4167_v51 = vrot.slane %v4139_v21, 2  ;;  %v4212_v4 = vld [vmem:[%s11980_s0 + $0x140] sm:$0x7f]  ;;  %v4183_v10 = vrot.slane %v4150_v49, 2 }
 0x2b3   :  { %v7029_v30 = vld [vmem:[%s11980_s0 + $0x258] sm:$0xfc]  ;;  %v4123_v36 = vadd.f32 %v4109_v24, %v4080_v6  ;;  %v4145_v45 = vmul.f32 %v7027_v20, %v4138_v3  ;;  %v4170_v54 = vrot.slane %v4141_v38, 2  ;;  %v4213_v6 = vld [vmem:[%s11980_s0 + $0x1a0] sm:$0x7f]  ;;  %v4186_v13 = vrot.slane %v4152_v50, 2 }
 0x2b4   :  { %v7031_v32 = vld [vmem:[%s11980_s0 + $0x2b8] sm:$0xfc]  ;;  %v4147_v46 = vmul.f32 %v7029_v30, %v4138_v3  ;;  %v4173_v56 = vrot.slane %v4143_v40, 2  ;;  %v4169_v63 = vsel %vm185_vm0, %v4167_v51, %v4168_v53  ;;  %v7036_v22 = vld [vmem:[%s11980_s0 + $0x3e0] sm:$0x7f]  ;;  %v4222_v41 = vmul.f32 %v4216_v12, %v4214_v9 }
 0x2b5   :  { %v7033_v39 = vld [vmem:[%s11980_s0 + $0x318] sm:$0xfc]  ;;  %v4149_v48 = vmul.f32 %v7031_v32, %v4138_v3  ;;  %v4176_v58 = vrot.slane %v4145_v45, 2  ;;  %v4172_v0 = vsel %vm185_vm0, %v4170_v54, %v4171_v55  ;;  %v4195_v14 = vadd.f32 %v4169_v63, %v4117_v25  ;;  %v7037_v23 = vld [vmem:[%s11980_s0 + $0x440] sm:$0x7f] }
 0x2b6   :  { %v4151_v52 = vmul.f32 %v7033_v39, %v4138_v3  ;;  %v4179_v60 = vrot.slane %v4147_v46, 2  ;;  %v4211_v3 = vld [vmem:[%s11980_s0 + $0xe0] sm:$0x7f]  ;;  %v4175_v8 = vsel %vm185_vm0, %v4173_v56, %v4174_v57  ;;  %v4196_v15 = vadd.f32 %v4172_v0, %v4118_v27 }
 0x2b7   :  { %v4182_v2 = vrot.slane %v4149_v48, 2  ;;  %v4178_v5 = vsel %vm185_vm0, %v4176_v58, %v4177_v59  ;;  %v4197_v19 = vadd.f32 %v4175_v8, %v4119_v28  ;;  %v4238_v24 = vld [vmem:[%s11981_s1 + $0x21] ss:$0 sm:$0xff]  ;;  %4202 = vst [vmem:[%s11982_s2 + $0x18] sm:$0x7f] %v4195_v14  ;;  %v4217_v27 = vmul.f32 %v4216_v12, %v4209_v61 }
 0x2b8   :  { %v4185_v7 = vrot.slane %v4151_v52, 2  ;;  %v4181_v11 = vsel %vm185_vm0, %v4179_v60, %v4180_v1  ;;  %v4198_v20 = vadd.f32 %v4178_v5, %v4120_v29  ;;  %4203 = vst [vmem:[%s11982_s2 + $0x48] sm:$0x7f] %v4196_v15  ;;  %v4218_v28 = vmul.f32 %v4216_v12, %v4210_v62  ;;  %v7038_v29 = vld [vmem:[%s11980_s0 + $0x4a0] sm:$0x7f] }
 0x2b9   :  { %v4184_v18 = vsel %vm185_vm0, %v4182_v2, %v4183_v10  ;;  %v4199_v21 = vadd.f32 %v4181_v11, %v4121_v34  ;;  %v7039_v30 = vld [vmem:[%s11980_s0 + $0x500] sm:$0x7f]  ;;  %4204 = vst [vmem:[%s11982_s2 + $0x78] sm:$0x7f] %v4197_v19  ;;  %v4219_v33 = vmul.f32 %v4216_v12, %v4211_v3  ;;  %v4220_v34 = vmul.f32 %v4216_v12, %v4212_v4 }
 0x2ba   :  { %v4187_v25 = vsel %vm185_vm0, %v4185_v7, %v4186_v13  ;;  %v4200_v26 = vadd.f32 %v4184_v18, %v4122_v35  ;;  %4205 = vst [vmem:[%s11982_s2 + $0xa8] sm:$0x7f] %v4198_v20  ;;  %v4221_v35 = vmul.f32 %v4216_v12, %v4213_v6  ;;  %v7041_v37 = vld [vmem:[%s11980_s0 + $0x5c0] sm:$0x7f]  ;;  %v4223_v38 = vmul.f32 %v4216_v12, %v4215_v16 }
 0x2bb   :  { %v4201_v32 = vadd.f32 %v4187_v25, %v4123_v36  ;;  %4206 = vst [vmem:[%s11982_s2 + $0xd8] sm:$0x7f] %v4199_v21  ;;  %v4253_v36 = vld [vmem:[%s11980_s0 + $0x20] sm:$0xfe]  ;;  %v4239_v44 = vmul.f32 %v7035_v17, %v4238_v24  ;;  %v4240_v40 = vmul.f32 %v7036_v22, %v4238_v24  ;;  %v4241_v42 = vmul.f32 %v7037_v23, %v4238_v24 }
 0x2bc   :  { %v4260_v39 = vld [vmem:[%s11981_s1 + $0x22] ss:$0 sm:$0xff]  ;;  %4207 = vst [vmem:[%s11982_s2 + $0x108] sm:$0x7f] %v4200_v26  ;;  %v4242_v45 = vmul.f32 %v7038_v29, %v4238_v24  ;;  %v4243_v43 = vmul.f32 %v7039_v30, %v4238_v24  ;;  %v4244_v46 = vmul.f32 %v7040_v31, %v4238_v24  ;;  %v4245_v52 = vmul.f32 %v7041_v37, %v4238_v24  ;;  %v4303_v62 = vld [vmem:[%s11981_s1 + $0x23] ss:$0 sm:$0xff] }
 0x2bd   :  { %4208 = vst [vmem:[%s11982_s2 + $0x138] sm:$0x7f] %v4201_v32  ;;  %v4254_v47 = vld [vmem:[%s11980_s0 + $0x80] sm:$0xfe]  ;;  %v4246_v50 = vadd.f32 %v4239_v44, %v4217_v27  ;;  %v4247_v51 = vadd.f32 %v4240_v40, %v4218_v28  ;;  %v4261_v56 = vmul.f32 %v4260_v39, %v4253_v36  ;;  %v4248_v57 = vadd.f32 %v4241_v42, %v4219_v33  ;;  %v4340_v31 = vld [vmem:[%s11980_s0 + $0x50] sm:$0x1] }
 0x2be   :  { %v4255_v48 = vld [vmem:[%s11980_s0 + $0xe0] sm:$0xfe]  ;;  %v4249_v58 = vadd.f32 %v4242_v45, %v4220_v34  ;;  %v4250_v59 = vadd.f32 %v4243_v43, %v4221_v35  ;;  %v4251_v60 = vadd.f32 %v4244_v46, %v4222_v41  ;;  %v4252_v63 = vadd.f32 %v4245_v52, %v4223_v38  ;;  %v4342_v36 = vld [vmem:[%s11980_s0 + $0xb0] sm:$0x1] }
 0x2bf   :  { %v4256_v49 = vld [vmem:[%s11980_s0 + $0x140] sm:$0xfe]  ;;  %v4262_v0 = vmul.f32 %v4260_v39, %v4254_v47  ;;  %v4263_v1 = vmul.f32 %v4260_v39, %v4255_v48  ;;  %v4275_v10 = vrot.slane %v4261_v56, 1  ;;  %v4344_v41 = vld [vmem:[%s11980_s0 + $0x110] sm:$0x1] }
 0x2c0   :  { %v4257_v53 = vld [vmem:[%s11980_s0 + $0x1a0] sm:$0xfe]  ;;  %v4264_v2 = vmul.f32 %v4260_v39, %v4256_v49  ;;  %v4346_v49 = vld [vmem:[%s11980_s0 + $0x170] sm:$0x1] }
 0x2c1   :  { %v4258_v54 = vld [vmem:[%s11980_s0 + $0x200] sm:$0xfe]  ;;  %v4265_v6 = vmul.f32 %v4260_v39, %v4257_v53  ;;  %v4276_v12 = vrot.slane %v4262_v0, 1  ;;  %v4277_v11 = vrot.slane %v4263_v1, 1  ;;  %v4289_v19 = vadd.f32 %v4275_v10, %v4246_v50 }
 0x2c2   :  { %v4259_v55 = vld [vmem:[%s11980_s0 + $0x260] sm:$0xfe]  ;;  %v4266_v8 = vmul.f32 %v4260_v39, %v4258_v54  ;;  %v4278_v13 = vrot.slane %v4264_v2, 1  ;;  %v4348_v54 = vld [vmem:[%s11980_s0 + $0x1d0] sm:$0x1] }
 0x2c3   :  { %v7042_v61 = vld [vmem:[%s11980_s0 + $0x380] sm:$0xfe]  ;;  %v4267_v5 = vmul.f32 %v4260_v39, %v4259_v55  ;;  %v4279_v16 = vrot.slane %v4265_v6, 1  ;;  %v4290_v21 = vadd.f32 %v4276_v12, %v4247_v51  ;;  %v4291_v22 = vadd.f32 %v4277_v11, %v4248_v57 }
 0x2c4   :  { %v7043_v3 = vld [vmem:[%s11980_s0 + $0x3e0] sm:$0xfe]  ;;  %v4304_v15 = vmul.f32 %v7042_v61, %v4303_v62  ;;  %v4280_v17 = vrot.slane %v4266_v8, 1  ;;  %v4292_v23 = vadd.f32 %v4278_v13, %v4249_v58  ;;  %v4350_v61 = vld [vmem:[%s11980_s0 + $0x230] sm:$0x1] }
 0x2c5   :  { %v7044_v4 = vld [vmem:[%s11980_s0 + $0x440] sm:$0xfe]  ;;  %v4281_v18 = vrot.slane %v4267_v5, 1  ;;  %v4305_v24 = vmul.f32 %v7043_v3, %v4303_v62  ;;  %v4293_v27 = vadd.f32 %v4279_v16, %v4250_v59 }
 0x2c6   :  { %v7045_v7 = vld [vmem:[%s11980_s0 + $0x4a0] sm:$0xfe]  ;;  %v4294_v28 = vadd.f32 %v4280_v17, %v4251_v60  ;;  %v4306_v30 = vmul.f32 %v7044_v4, %v4303_v62  ;;  %v4318_v38 = vrot.slane %v4304_v15, 1 }
 0x2c7   :  { %v7046_v9 = vld [vmem:[%s11980_s0 + $0x500] sm:$0xfe]  ;;  %v4295_v29 = vadd.f32 %v4281_v18, %v4252_v63  ;;  %v4307_v32 = vmul.f32 %v7045_v7, %v4303_v62  ;;  %v4319_v44 = vrot.slane %v4305_v24, 1  ;;  %v4352_v63 = vld [vmem:[%s11980_s0 + $0x290] sm:$0x1] }
 0x2c8   :  { %v7047_v14 = vld [vmem:[%s11980_s0 + $0x560] sm:$0xfe]  ;;  %v4308_v33 = vmul.f32 %v7046_v9, %v4303_v62  ;;  %v4320_v40 = vrot.slane %v4306_v30, 1  ;;  %v4332_v52 = vadd.f32 %v4318_v38, %v4289_v19 }
 0x2c9   :  { %v7048_v20 = vld [vmem:[%s11980_s0 + $0x5c0] sm:$0xfe]  ;;  %v4309_v34 = vmul.f32 %v7047_v14, %v4303_v62  ;;  %v4321_v43 = vrot.slane %v4307_v32, 1  ;;  %v4333_v50 = vadd.f32 %v4319_v44, %v4290_v21 }
 0x2ca   :  { %v4339_v25 = vld [vmem:[%s11980_s0 + $0x20] sm:$0xfc]  ;;  %v4310_v35 = vmul.f32 %v7048_v20, %v4303_v62  ;;  %v4322_v46 = vrot.slane %v4308_v33, 1  ;;  %v4334_v51 = vadd.f32 %v4320_v40, %v4291_v22 }
 0x2cb   :  { %v4353_v26 = vld [vmem:[%s11981_s1 + $0x24] ss:$0 sm:$0xff]  ;;  %v4323_v47 = vrot.slane %v4309_v34, 1  ;;  %v4335_v57 = vadd.f32 %v4321_v43, %v4292_v23  ;;  %v4424_v30 = vld [vmem:[%s11981_s1 + $0x25] ss:$0 sm:$0xff] }
 0x2cc   :  { %v4341_v37 = vld [vmem:[%s11980_s0 + $0x80] sm:$0xfc]  ;;  %v4354_v45 = vmul.f32 %v4353_v26, %v4339_v25  ;;  %v4324_v48 = vrot.slane %v4310_v35, 1  ;;  %v4355_v56 = vmul.f32 %v4353_v26, %v4340_v31  ;;  %v4336_v58 = vadd.f32 %v4322_v46, %v4293_v27 }
 0x2cd   :  { %v4343_v39 = vld [vmem:[%s11980_s0 + $0xe0] sm:$0xfc]  ;;  %v4337_v59 = vadd.f32 %v4323_v47, %v4294_v28  ;;  %v4356_v0 = vmul.f32 %v4353_v26, %v4341_v37  ;;  %v4357_v1 = vmul.f32 %v4353_v26, %v4342_v36  ;;  %v4359_v3 = vmul.f32 %v4353_v26, %v4344_v41 }
 0x2ce   :  { %v4345_v42 = vld [vmem:[%s11980_s0 + $0x140] sm:$0xfc]  ;;  %v4338_v60 = vadd.f32 %v4324_v48, %v4295_v29  ;;  %v4358_v2 = vmul.f32 %v4353_v26, %v4343_v39  ;;  %v4361_v6 = vmul.f32 %v4353_v26, %v4346_v49  ;;  %v4363_v5 = vmul.f32 %v4353_v26, %v4348_v54 }
 0x2cf   :  { %v4347_v53 = vld [vmem:[%s11980_s0 + $0x1a0] sm:$0xfc]  ;;  %v4360_v4 = vmul.f32 %v4353_v26, %v4345_v42  ;;  %v4365_v7 = vmul.f32 %v4353_v26, %v4350_v61  ;;  %v4367_v12 = vmul.f32 %v4353_v26, %v4352_v63  ;;  %v4382_v11 = vrot.slane %v4354_v45, 2 }
 0x2d0   :  { %v4349_v55 = vld [vmem:[%s11980_s0 + $0x200] sm:$0xfc]  ;;  %v4362_v8 = vmul.f32 %v4353_v26, %v4347_v53  ;;  %v4383_v13 = vrot.slane %v4355_v56, 2  ;;  %v4385_v14 = vrot.slane %v4356_v0, 2  ;;  %v4386_v15 = vrot.slane %v4357_v1, 2 }
 0x2d1   :  { %v4351_v62 = vld [vmem:[%s11980_s0 + $0x260] sm:$0xfc]  ;;  %v4364_v10 = vmul.f32 %v4353_v26, %v4349_v55  ;;  %v4388_v16 = vrot.slane %v4358_v2, 2  ;;  %v4389_v17 = vrot.slane %v4359_v3, 2  ;;  %v4391_v18 = vrot.slane %v4360_v4, 2 }
 0x2d2   :  { %v4366_v9 = vmul.f32 %v4353_v26, %v4351_v62  ;;  %v4392_v19 = vrot.slane %v4361_v6, 2  ;;  %v4384_v20 = vsel %vm185_vm0, %v4382_v11, %v4383_v13  ;;  %v4387_v21 = vsel %vm185_vm0, %v4385_v14, %v4386_v15  ;;  %v7049_v24 = vld [vmem:[%s11980_s0 + $0x6e0] sm:$0x7f]  ;;  %v4468_v6 = vld [vmem:[%s11981_s1 + $0x27] ss:$0 sm:$0xff] }
 0x2d3   :  { %v4394_v22 = vrot.slane %v4362_v8, 2  ;;  %v4395_v23 = vrot.slane %v4363_v5, 2  ;;  %v4390_v25 = vsel %vm185_vm0, %v4388_v16, %v4389_v17  ;;  %v4397_v27 = vrot.slane %v4364_v10, 2  ;;  %v7050_v29 = vld [vmem:[%s11980_s0 + $0x740] sm:$0x7f] }
 0x2d4   :  { %v4393_v26 = vsel %vm185_vm0, %v4391_v18, %v4392_v19  ;;  %v4398_v28 = vrot.slane %v4365_v7, 2  ;;  %v4400_v32 = vrot.slane %v4366_v9, 2  ;;  %v4401_v33 = vrot.slane %v4367_v12, 2  ;;  %v7051_v35 = vld [vmem:[%s11980_s0 + $0x7a0] sm:$0x7f] }
 0x2d5   :  { %v4396_v31 = vsel %vm185_vm0, %v4394_v22, %v4395_v23  ;;  %v4410_v34 = vadd.f32 %v4384_v20, %v4332_v52  ;;  %v7052_v37 = vld [vmem:[%s11980_s0 + $0x800] sm:$0x7f]  ;;  %v4411_v39 = vadd.f32 %v4387_v21, %v4333_v50  ;;  %v4412_v41 = vadd.f32 %v4390_v25, %v4334_v51 }
 0x2d6   :  { %v4399_v36 = vsel %vm185_vm0, %v4397_v27, %v4398_v28  ;;  %v4413_v38 = vadd.f32 %v4393_v26, %v4335_v57  ;;  %v7053_v44 = vld [vmem:[%s11980_s0 + $0x860] sm:$0x7f]  ;;  %v4402_v45 = vsel %vm185_vm0, %v4400_v32, %v4401_v33  ;;  %v4414_v43 = vadd.f32 %v4396_v31, %v4336_v58 }
 0x2d7   :  { %v7054_v40 = vld [vmem:[%s11980_s0 + $0x8c0] sm:$0x7f]  ;;  %v4415_v46 = vadd.f32 %v4399_v36, %v4337_v59  ;;  %v4425_v47 = vmul.f32 %v7049_v24, %v4424_v30  ;;  %v4416_v52 = vadd.f32 %v4402_v45, %v4338_v60  ;;  %v4426_v50 = vmul.f32 %v7050_v29, %v4424_v30  ;;  %v4511_v29 = vld [vmem:[%s11981_s1 + $0x50] ss:$0 sm:$0xff] }
 0x2d8   :  { %v7055_v42 = vld [vmem:[%s11980_s0 + $0x920] sm:$0x7f]  ;;  %v4427_v51 = vmul.f32 %v7051_v35, %v4424_v30  ;;  %v4428_v53 = vmul.f32 %v7052_v37, %v4424_v30  ;;  %v4429_v56 = vmul.f32 %v7053_v44, %v4424_v30  ;;  %v4430_v57 = vmul.f32 %v7054_v40, %v4424_v30 }
 0x2d9   :  { %v7056_v48 = vld [vmem:[%s11980_s0 + $0xa40] sm:$0x7f]  ;;  %v4431_v58 = vmul.f32 %v7055_v42, %v4424_v30  ;;  %v4432_v59 = vadd.f32 %v4425_v47, %v4410_v34  ;;  %v4433_v63 = vadd.f32 %v4426_v50, %v4411_v39 }
 0x2da   :  { %v4446_v49 = vld [vmem:[%s11981_s1 + $0x26] ss:$0 sm:$0xff]  ;;  %v4434_v0 = vadd.f32 %v4427_v51, %v4412_v41  ;;  %v4435_v1 = vadd.f32 %v4428_v53, %v4413_v38  ;;  %v4436_v8 = vadd.f32 %v4429_v56, %v4414_v43  ;;  %v4437_v5 = vadd.f32 %v4430_v57, %v4415_v46  ;;  %v4561_v57 = vld [vmem:[%s11981_s1 + $0x51] ss:$0 sm:$0xff] }
 0x2db   :  { %v7057_v54 = vld [vmem:[%s11980_s0 + $0xaa0] sm:$0x7f]  ;;  %v4447_v3 = vmul.f32 %v7056_v48, %v4446_v49  ;;  %v4438_v10 = vadd.f32 %v4431_v58, %v4416_v52 }
 0x2dc   :  { %v7058_v55 = vld [vmem:[%s11980_s0 + $0xb00] sm:$0x7f]  ;;  %v4448_v7 = vmul.f32 %v7057_v54, %v4446_v49 }
 0x2dd   :  { %v7059_v61 = vld [vmem:[%s11980_s0 + $0xb60] sm:$0x7f]  ;;  %v4449_v9 = vmul.f32 %v7058_v55, %v4446_v49  ;;  %v4454_v18 = vadd.f32 %v4447_v3, %v4432_v59 }
 0x2de   :  { %v7060_v60 = vld [vmem:[%s11980_s0 + $0xbc0] sm:$0x7f]  ;;  %v4450_v12 = vmul.f32 %v7059_v61, %v4446_v49  ;;  %v4455_v19 = vadd.f32 %v4448_v7, %v4433_v63 }
 0x2df   :  { %v7061_v62 = vld [vmem:[%s11980_s0 + $0xc20] sm:$0x7f]  ;;  %v4451_v11 = vmul.f32 %v7060_v60, %v4446_v49  ;;  %v4456_v24 = vadd.f32 %v4449_v9, %v4434_v0 }
 0x2e0   :  { %v7062_v2 = vld [vmem:[%s11980_s0 + $0xc80] sm:$0x7f]  ;;  %v4452_v13 = vmul.f32 %v7061_v62, %v4446_v49  ;;  %v4457_v25 = vadd.f32 %v4450_v12, %v4435_v1  ;;  %v7078_v62 = vld [vmem:[%s11980_s0 + $0x710] sm:$0x1] }
 0x2e1   :  { %v7063_v4 = vld [vmem:[%s11980_s0 + $0x6e0] sm:$0xfe]  ;;  %v4453_v17 = vmul.f32 %v7062_v2, %v4446_v49  ;;  %v4458_v26 = vadd.f32 %v4451_v11, %v4436_v8  ;;  %v7082_v8 = vld [vmem:[%s11980_s0 + $0x7d0] sm:$0x1] }
 0x2e2   :  { %v7064_v14 = vld [vmem:[%s11980_s0 + $0x740] sm:$0xfe]  ;;  %v4469_v23 = vmul.f32 %v7063_v4, %v4468_v6  ;;  %v4459_v27 = vadd.f32 %v4452_v13, %v4437_v5  ;;  %v7080_v4 = vld [vmem:[%s11980_s0 + $0x770] sm:$0x1] }
 0x2e3   :  { %v7065_v15 = vld [vmem:[%s11980_s0 + $0x7a0] sm:$0xfe]  ;;  %v4460_v30 = vadd.f32 %v4453_v17, %v4438_v10  ;;  %v4470_v31 = vmul.f32 %v7064_v14, %v4468_v6 }
 0x2e4   :  { %v7066_v16 = vld [vmem:[%s11980_s0 + $0x800] sm:$0xfe]  ;;  %v4471_v32 = vmul.f32 %v7065_v15, %v4468_v6  ;;  %v4483_v41 = vrot.slane %v4469_v23, 1  ;;  %v4563_v23 = vmul.f32 %v7078_v62, %v4561_v57 }
 0x2e5   :  { %v7067_v20 = vld [vmem:[%s11980_s0 + $0x860] sm:$0xfe]  ;;  %v4472_v33 = vmul.f32 %v7066_v16, %v4468_v6  ;;  %v4484_v40 = vrot.slane %v4470_v31, 1  ;;  %v7084_v16 = vld [vmem:[%s11980_s0 + $0x830] sm:$0x1] }
 0x2e6   :  { %v7068_v21 = vld [vmem:[%s11980_s0 + $0x8c0] sm:$0xfe]  ;;  %v4473_v37 = vmul.f32 %v7067_v20, %v4468_v6  ;;  %v4485_v42 = vrot.slane %v4471_v32, 1  ;;  %v4497_v52 = vadd.f32 %v4483_v41, %v4454_v18  ;;  %v4565_v32 = vmul.f32 %v7080_v4, %v4561_v57 }
 0x2e7   :  { %v7069_v22 = vld [vmem:[%s11980_s0 + $0x920] sm:$0xfe]  ;;  %v4474_v36 = vmul.f32 %v7068_v21, %v4468_v6  ;;  %v4486_v45 = vrot.slane %v4472_v33, 1  ;;  %v4498_v51 = vadd.f32 %v4484_v40, %v4455_v19  ;;  %v7086_v21 = vld [vmem:[%s11980_s0 + $0x890] sm:$0x1] }
 0x2e8   :  { %v7070_v28 = vld [vmem:[%s11980_s0 + $0xa40] sm:$0xfe]  ;;  %v4475_v39 = vmul.f32 %v7069_v22, %v4468_v6  ;;  %v4487_v47 = vrot.slane %v4473_v37, 1  ;;  %v4499_v53 = vadd.f32 %v4485_v42, %v4456_v24  ;;  %v4569_v37 = vmul.f32 %v7084_v16, %v4561_v57  ;;  %v4654_v16 = vld [vmem:[%s11981_s1 + $0x53] ss:$0 sm:$0xff] }
 0x2e9   :  { %v7071_v34 = vld [vmem:[%s11980_s0 + $0xaa0] sm:$0xfe]  ;;  %v4512_v46 = vmul.f32 %v7070_v28, %v4511_v29  ;;  %v4488_v48 = vrot.slane %v4474_v36, 1  ;;  %v4500_v54 = vadd.f32 %v4486_v45, %v4457_v25  ;;  %v7088_v28 = vld [vmem:[%s11980_s0 + $0x8f0] sm:$0x1]  ;;  %v4591_v45 = vrot.slane %v4563_v23, 2 }
 0x2ea   :  { %v7072_v35 = vld [vmem:[%s11980_s0 + $0xb00] sm:$0xfe]  ;;  %v4489_v49 = vrot.slane %v4475_v39, 1  ;;  %v4513_v55 = vmul.f32 %v7071_v34, %v4511_v29  ;;  %v4501_v58 = vadd.f32 %v4487_v47, %v4458_v26  ;;  %v4567_v34 = vmul.f32 %v7082_v8, %v4561_v57 }
 0x2eb   :  { %v7073_v38 = vld [vmem:[%s11980_s0 + $0xb60] sm:$0xfe]  ;;  %v4502_v59 = vadd.f32 %v4488_v48, %v4459_v27  ;;  %v4514_v60 = vmul.f32 %v7072_v35, %v4511_v29  ;;  %v4526_v5 = vrot.slane %v4512_v46, 1  ;;  %v4571_v39 = vmul.f32 %v7086_v21, %v4561_v57 }
 0x2ec   :  { %v7074_v44 = vld [vmem:[%s11980_s0 + $0xbc0] sm:$0xfe]  ;;  %v4503_v61 = vadd.f32 %v4489_v49, %v4460_v30  ;;  %v4515_v63 = vmul.f32 %v7073_v38, %v4511_v29  ;;  %v4527_v10 = vrot.slane %v4513_v55, 1  ;;  %v7090_v30 = vld [vmem:[%s11980_s0 + $0x950] sm:$0x1]  ;;  %v4573_v38 = vmul.f32 %v7088_v28, %v4561_v57 }
 0x2ed   :  { %v7075_v43 = vld [vmem:[%s11980_s0 + $0xc20] sm:$0xfe]  ;;  %v4516_v0 = vmul.f32 %v7074_v44, %v4511_v29  ;;  %v4528_v7 = vrot.slane %v4514_v60, 1  ;;  %v4540_v17 = vadd.f32 %v4526_v5, %v4497_v52  ;;  %v4575_v40 = vmul.f32 %v7090_v30, %v4561_v57  ;;  %v4632_v60 = vld [vmem:[%s11981_s1 + $0x52] ss:$0 sm:$0xff] }
 0x2ee   :  { %v7076_v50 = vld [vmem:[%s11980_s0 + $0xc80] sm:$0xfe]  ;;  %v4517_v1 = vmul.f32 %v7075_v43, %v4511_v29  ;;  %v4529_v11 = vrot.slane %v4515_v63, 1  ;;  %v4541_v18 = vadd.f32 %v4527_v10, %v4498_v51  ;;  %v4594_v46 = vrot.slane %v4565_v32, 2 }
 0x2ef   :  { %v7077_v56 = vld [vmem:[%s11980_s0 + $0x6e0] sm:$0xfc]  ;;  %v4518_v2 = vmul.f32 %v7076_v50, %v4511_v29  ;;  %v4530_v13 = vrot.slane %v4516_v0, 1  ;;  %v4542_v19 = vadd.f32 %v4528_v7, %v4499_v53  ;;  %v4597_v48 = vrot.slane %v4567_v34, 2 }
 0x2f0   :  { %v7079_v3 = vld [vmem:[%s11980_s0 + $0x740] sm:$0xfc]  ;;  %v4562_v12 = vmul.f32 %v7077_v56, %v4561_v57  ;;  %v4531_v14 = vrot.slane %v4517_v1, 1  ;;  %v4543_v24 = vadd.f32 %v4529_v11, %v4500_v54  ;;  %v4600_v52 = vrot.slane %v4569_v37, 2  ;;  %v4676_v37 = vld [vmem:[%s11981_s1 + $0x54] ss:$0 sm:$0xff] }
 0x2f1   :  { %v7081_v6 = vld [vmem:[%s11980_s0 + $0x7a0] sm:$0xfc]  ;;  %v4532_v15 = vrot.slane %v4518_v2, 1  ;;  %v4544_v25 = vadd.f32 %v4530_v13, %v4501_v58  ;;  %v4564_v31 = vmul.f32 %v7079_v3, %v4561_v57  ;;  %v4603_v54 = vrot.slane %v4571_v39, 2 }
 0x2f2   :  { %v7083_v9 = vld [vmem:[%s11980_s0 + $0x800] sm:$0xfc]  ;;  %v4545_v26 = vadd.f32 %v4531_v14, %v4502_v59  ;;  %v4566_v33 = vmul.f32 %v7081_v6, %v4561_v57  ;;  %v4590_v42 = vrot.slane %v4562_v12, 2  ;;  %v4606_v59 = vrot.slane %v4573_v38, 2 }
 0x2f3   :  { %v7085_v20 = vld [vmem:[%s11980_s0 + $0x860] sm:$0xfc]  ;;  %v4546_v27 = vadd.f32 %v4532_v15, %v4503_v61  ;;  %v4568_v35 = vmul.f32 %v7083_v9, %v4561_v57  ;;  %v4593_v43 = vrot.slane %v4564_v31, 2  ;;  %v4609_v0 = vrot.slane %v4575_v40, 2 }
 0x2f4   :  { %v7087_v22 = vld [vmem:[%s11980_s0 + $0x8c0] sm:$0xfc]  ;;  %v4570_v36 = vmul.f32 %v7085_v20, %v4561_v57  ;;  %v4596_v47 = vrot.slane %v4566_v33, 2  ;;  %v4592_v50 = vsel %vm185_vm0, %v4590_v42, %v4591_v45 }
 0x2f5   :  { %v7089_v29 = vld [vmem:[%s11980_s0 + $0x920] sm:$0xfc]  ;;  %v4572_v41 = vmul.f32 %v7087_v22, %v4561_v57  ;;  %v4599_v49 = vrot.slane %v4568_v35, 2  ;;  %v4595_v51 = vsel %vm185_vm0, %v4593_v43, %v4594_v46  ;;  %v4618_v1 = vadd.f32 %v4592_v50, %v4540_v17 }
 0x2f6   :  { %v4574_v44 = vmul.f32 %v7089_v29, %v4561_v57  ;;  %v4602_v53 = vrot.slane %v4570_v36, 2  ;;  %v7091_v55 = vld [vmem:[%s11980_s0 + $0x80] sm:$0x7f]  ;;  %v4598_v56 = vsel %vm185_vm0, %v4596_v47, %v4597_v48  ;;  %v4619_v6 = vadd.f32 %v4595_v51, %v4541_v18 }
 0x2f7   :  { %v4601_v57 = vsel %vm185_vm0, %v4599_v49, %v4600_v52  ;;  %v4605_v58 = vrot.slane %v4572_v41, 2  ;;  %v7092_v61 = vld [vmem:[%s11980_s0 + $0xe0] sm:$0x7f]  ;;  %v4620_v8 = vadd.f32 %v4598_v56, %v4542_v19  ;;  %v4633_v14 = vmul.f32 %v7091_v55, %v4632_v60 }
 0x2f8   :  { %v4604_v62 = vsel %vm185_vm0, %v4602_v53, %v4603_v54  ;;  %v4608_v63 = vrot.slane %v4574_v44, 2  ;;  %v7093_v2 = vld [vmem:[%s11980_s0 + $0x140] sm:$0x7f]  ;;  %v4621_v5 = vadd.f32 %v4601_v57, %v4543_v24  ;;  %v4634_v18 = vmul.f32 %v7092_v61, %v4632_v60  ;;  %v4719_v61 = vld [vmem:[%s11981_s1 + $0x55] ss:$0 sm:$0xff] }
 0x2f9   :  { %v7094_v3 = vld [vmem:[%s11980_s0 + $0x1a0] sm:$0x7f]  ;;  %v4607_v4 = vsel %vm185_vm0, %v4605_v58, %v4606_v59  ;;  %v4622_v11 = vadd.f32 %v4604_v62, %v4544_v25  ;;  %v4635_v19 = vmul.f32 %v7093_v2, %v4632_v60 }
 0x2fa   :  { %v7095_v10 = vld [vmem:[%s11980_s0 + $0x200] sm:$0x7f]  ;;  %v4610_v12 = vsel %vm185_vm0, %v4608_v63, %v4609_v0  ;;  %v4623_v13 = vadd.f32 %v4607_v4, %v4545_v26  ;;  %v4636_v20 = vmul.f32 %v7094_v3, %v4632_v60  ;;  %v4640_v26 = vadd.f32 %v4633_v14, %v4618_v1 }
 0x2fb   :  { %v7096_v7 = vld [vmem:[%s11980_s0 + $0x260] sm:$0x7f]  ;;  %v4624_v17 = vadd.f32 %v4610_v12, %v4546_v27  ;;  %v4637_v23 = vmul.f32 %v7095_v10, %v4632_v60  ;;  %v4641_v30 = vadd.f32 %v4634_v18, %v4619_v6  ;;  %v4642_v31 = vadd.f32 %v4635_v19, %v4620_v8 }
 0x2fc   :  { %v7097_v9 = vld [vmem:[%s11980_s0 + $0x2c0] sm:$0x7f]  ;;  %v4638_v24 = vmul.f32 %v7096_v7, %v4632_v60  ;;  %v4643_v32 = vadd.f32 %v4636_v20, %v4621_v5 }
 0x2fd   :  { %v7098_v15 = vld [vmem:[%s11980_s0 + $0x3e0] sm:$0x7f]  ;;  %v4639_v25 = vmul.f32 %v7097_v9, %v4632_v60  ;;  %v4644_v36 = vadd.f32 %v4637_v23, %v4622_v11 }
 0x2fe   :  { %v7099_v21 = vld [vmem:[%s11980_s0 + $0x440] sm:$0x7f]  ;;  %v4655_v34 = vmul.f32 %v7098_v15, %v4654_v16  ;;  %v4645_v39 = vadd.f32 %v4638_v24, %v4623_v13  ;;  %v4769_v24 = vld [vmem:[%s11981_s1 + $0x56] ss:$0 sm:$0xff] }
 0x2ff   :  { %v7100_v22 = vld [vmem:[%s11980_s0 + $0x4a0] sm:$0x7f]  ;;  %v4646_v41 = vadd.f32 %v4639_v25, %v4624_v17  ;;  %v4656_v38 = vmul.f32 %v7099_v21, %v4654_v16 }
 0x300   :  { %v7101_v28 = vld [vmem:[%s11980_s0 + $0x500] sm:$0x7f]  ;;  %v4657_v44 = vmul.f32 %v7100_v22, %v4654_v16  ;;  %v4662_v49 = vadd.f32 %v4655_v34, %v4640_v26 }
 0x301   :  { %v7102_v27 = vld [vmem:[%s11980_s0 + $0x560] sm:$0x7f]  ;;  %v4658_v40 = vmul.f32 %v7101_v28, %v4654_v16  ;;  %v4663_v52 = vadd.f32 %v4656_v38, %v4641_v30 }
 0x302   :  { %v7103_v29 = vld [vmem:[%s11980_s0 + $0x5c0] sm:$0x7f]  ;;  %v4659_v42 = vmul.f32 %v7102_v27, %v4654_v16  ;;  %v4664_v55 = vadd.f32 %v4657_v44, %v4642_v31 }
 0x303   :  { %v7104_v33 = vld [vmem:[%s11980_s0 + $0x620] sm:$0x7f]  ;;  %v4660_v45 = vmul.f32 %v7103_v29, %v4654_v16  ;;  %v4665_v56 = vadd.f32 %v4658_v40, %v4643_v32  ;;  %v7120_v29 = vld [vmem:[%s11980_s0 + $0xb0] sm:$0x1] }
 0x304   :  { %v7105_v35 = vld [vmem:[%s11980_s0 + $0x80] sm:$0xfe]  ;;  %v4661_v48 = vmul.f32 %v7104_v33, %v4654_v16  ;;  %v4666_v57 = vadd.f32 %v4659_v42, %v4644_v36  ;;  %v7124_v36 = vld [vmem:[%s11980_s0 + $0x170] sm:$0x1] }
 0x305   :  { %v7106_v43 = vld [vmem:[%s11980_s0 + $0xe0] sm:$0xfe]  ;;  %v4677_v54 = vmul.f32 %v7105_v35, %v4676_v37  ;;  %v4667_v58 = vadd.f32 %v4660_v45, %v4645_v39  ;;  %v7122_v35 = vld [vmem:[%s11980_s0 + $0x110] sm:$0x1] }
 0x306   :  { %v7107_v46 = vld [vmem:[%s11980_s0 + $0x140] sm:$0xfe]  ;;  %v4668_v60 = vadd.f32 %v4661_v48, %v4646_v41  ;;  %v4678_v62 = vmul.f32 %v7106_v43, %v4676_v37 }
 0x307   :  { %v7108_v47 = vld [vmem:[%s11980_s0 + $0x1a0] sm:$0xfe]  ;;  %v4679_v63 = vmul.f32 %v7107_v46, %v4676_v37  ;;  %v4691_v8 = vrot.slane %v4677_v54, 1  ;;  %v4771_v54 = vmul.f32 %v7120_v29, %v4769_v24 }
 0x308   :  { %v7109_v50 = vld [vmem:[%s11980_s0 + $0x200] sm:$0xfe]  ;;  %v4680_v0 = vmul.f32 %v7108_v47, %v4676_v37  ;;  %v4692_v7 = vrot.slane %v4678_v62, 1  ;;  %v7126_v47 = vld [vmem:[%s11980_s0 + $0x1d0] sm:$0x1] }
 0x309   :  { %v7110_v51 = vld [vmem:[%s11980_s0 + $0x260] sm:$0xfe]  ;;  %v4681_v3 = vmul.f32 %v7109_v50, %v4676_v37  ;;  %v4693_v9 = vrot.slane %v4679_v63, 1  ;;  %v4705_v17 = vadd.f32 %v4691_v8, %v4662_v49  ;;  %v4773_v63 = vmul.f32 %v7122_v35, %v4769_v24 }
 0x30a   :  { %v7111_v53 = vld [vmem:[%s11980_s0 + $0x2c0] sm:$0xfe]  ;;  %v4682_v4 = vmul.f32 %v7110_v51, %v4676_v37  ;;  %v4694_v12 = vrot.slane %v4680_v0, 1  ;;  %v4706_v19 = vadd.f32 %v4692_v7, %v4663_v52  ;;  %v7128_v51 = vld [vmem:[%s11980_s0 + $0x230] sm:$0x1] }
 0x30b   :  { %v7112_v59 = vld [vmem:[%s11980_s0 + $0x3e0] sm:$0xfe]  ;;  %v4683_v6 = vmul.f32 %v7111_v53, %v4676_v37  ;;  %v4695_v14 = vrot.slane %v4681_v3, 1  ;;  %v4707_v20 = vadd.f32 %v4693_v9, %v4664_v55  ;;  %v4777_v3 = vmul.f32 %v7126_v47, %v4769_v24  ;;  %v4862_v47 = vld [vmem:[%s11981_s1 + $0x80] ss:$0 sm:$0xff] }
 0x30c   :  { %v7113_v1 = vld [vmem:[%s11980_s0 + $0x440] sm:$0xfe]  ;;  %v4720_v13 = vmul.f32 %v7112_v59, %v4719_v61  ;;  %v4696_v15 = vrot.slane %v4682_v4, 1  ;;  %v4708_v21 = vadd.f32 %v4694_v12, %v4665_v56  ;;  %v7130_v59 = vld [vmem:[%s11980_s0 + $0x290] sm:$0x1]  ;;  %v4799_v12 = vrot.slane %v4771_v54, 2 }
 0x30d   :  { %v7114_v2 = vld [vmem:[%s11980_s0 + $0x4a0] sm:$0xfe]  ;;  %v4697_v16 = vrot.slane %v4683_v6, 1  ;;  %v4721_v22 = vmul.f32 %v7113_v1, %v4719_v61  ;;  %v4709_v25 = vadd.f32 %v4695_v14, %v4666_v57  ;;  %v4775_v1 = vmul.f32 %v7124_v36, %v4769_v24 }
 0x30e   :  { %v7115_v5 = vld [vmem:[%s11980_s0 + $0x500] sm:$0xfe]  ;;  %v4710_v26 = vadd.f32 %v4696_v15, %v4667_v58  ;;  %v4722_v27 = vmul.f32 %v7114_v2, %v4719_v61  ;;  %v4734_v39 = vrot.slane %v4720_v13, 1  ;;  %v4779_v6 = vmul.f32 %v7128_v51, %v4769_v24 }
 0x30f   :  { %v7116_v10 = vld [vmem:[%s11980_s0 + $0x560] sm:$0xfe]  ;;  %v4711_v28 = vadd.f32 %v4697_v16, %v4668_v60  ;;  %v4723_v30 = vmul.f32 %v7115_v5, %v4719_v61  ;;  %v4735_v41 = vrot.slane %v4721_v22, 1  ;;  %v7132_v60 = vld [vmem:[%s11980_s0 + $0x2f0] sm:$0x1]  ;;  %v4781_v5 = vmul.f32 %v7130_v59, %v4769_v24 }
 0x310   :  { %v7117_v11 = vld [vmem:[%s11980_s0 + $0x5c0] sm:$0xfe]  ;;  %v4724_v31 = vmul.f32 %v7116_v10, %v4719_v61  ;;  %v4736_v38 = vrot.slane %v4722_v27, 1  ;;  %v4748_v48 = vadd.f32 %v4734_v39, %v4705_v17  ;;  %v4783_v7 = vmul.f32 %v7132_v60, %v4769_v24  ;;  %v4840_v27 = vld [vmem:[%s11981_s1 + $0x57] ss:$0 sm:$0xff] }
 0x311   :  { %v7118_v18 = vld [vmem:[%s11980_s0 + $0x620] sm:$0xfe]  ;;  %v4725_v32 = vmul.f32 %v7117_v11, %v4719_v61  ;;  %v4737_v42 = vrot.slane %v4723_v30, 1  ;;  %v4749_v49 = vadd.f32 %v4735_v41, %v4706_v19  ;;  %v4802_v13 = vrot.slane %v4773_v63, 2 }
 0x312   :  { %v7119_v23 = vld [vmem:[%s11980_s0 + $0x80] sm:$0xfc]  ;;  %v4726_v33 = vmul.f32 %v7118_v18, %v4719_v61  ;;  %v4738_v45 = vrot.slane %v4724_v31, 1  ;;  %v4750_v52 = vadd.f32 %v4736_v38, %v4707_v20  ;;  %v4805_v15 = vrot.slane %v4775_v1, 2 }
 0x313   :  { %v7121_v34 = vld [vmem:[%s11980_s0 + $0xe0] sm:$0xfc]  ;;  %v4770_v40 = vmul.f32 %v7119_v23, %v4769_v24  ;;  %v4739_v43 = vrot.slane %v4725_v32, 1  ;;  %v4751_v55 = vadd.f32 %v4737_v42, %v4708_v21  ;;  %v4808_v17 = vrot.slane %v4777_v3, 2  ;;  %v4884_v3 = vld [vmem:[%s11981_s1 + $0x81] ss:$0 sm:$0xff] }
 0x314   :  { %v7123_v37 = vld [vmem:[%s11980_s0 + $0x140] sm:$0xfc]  ;;  %v4740_v46 = vrot.slane %v4726_v33, 1  ;;  %v4752_v56 = vadd.f32 %v4738_v45, %v4709_v25  ;;  %v4772_v62 = vmul.f32 %v7121_v34, %v4769_v24  ;;  %v4811_v21 = vrot.slane %v4779_v6, 2 }
 0x315   :  { %v7125_v44 = vld [vmem:[%s11980_s0 + $0x1a0] sm:$0xfc]  ;;  %v4753_v57 = vadd.f32 %v4739_v43, %v4710_v26  ;;  %v4774_v0 = vmul.f32 %v7123_v37, %v4769_v24  ;;  %v4798_v9 = vrot.slane %v4770_v40, 2  ;;  %v4814_v26 = vrot.slane %v4781_v5, 2 }
 0x316   :  { %v7127_v50 = vld [vmem:[%s11980_s0 + $0x200] sm:$0xfc]  ;;  %v4754_v58 = vadd.f32 %v4740_v46, %v4711_v28  ;;  %v4776_v2 = vmul.f32 %v7125_v44, %v4769_v24  ;;  %v4801_v11 = vrot.slane %v4772_v62, 2  ;;  %v4817_v31 = vrot.slane %v4783_v7, 2 }
 0x317   :  { %v7129_v53 = vld [vmem:[%s11980_s0 + $0x260] sm:$0xfc]  ;;  %v4778_v4 = vmul.f32 %v7127_v50, %v4769_v24  ;;  %v4804_v14 = vrot.slane %v4774_v0, 2  ;;  %v4800_v18 = vsel %vm185_vm0, %v4798_v9, %v4799_v12 }
 0x318   :  { %v7131_v61 = vld [vmem:[%s11980_s0 + $0x2c0] sm:$0xfc]  ;;  %v4780_v8 = vmul.f32 %v7129_v53, %v4769_v24  ;;  %v4807_v16 = vrot.slane %v4776_v2, 2  ;;  %v4803_v19 = vsel %vm185_vm0, %v4801_v11, %v4802_v13  ;;  %v4826_v32 = vadd.f32 %v4800_v18, %v4748_v48 }
 0x319   :  { %v4782_v10 = vmul.f32 %v7131_v61, %v4769_v24  ;;  %v4810_v20 = vrot.slane %v4778_v4, 2  ;;  %v7133_v22 = vld [vmem:[%s11980_s0 + $0x740] sm:$0x7f]  ;;  %v4806_v23 = vsel %vm185_vm0, %v4804_v14, %v4805_v15  ;;  %v4827_v37 = vadd.f32 %v4803_v19, %v4749_v49 }
 0x31a   :  { %v4809_v24 = vsel %vm185_vm0, %v4807_v16, %v4808_v17  ;;  %v4813_v25 = vrot.slane %v4780_v8, 2  ;;  %v7134_v28 = vld [vmem:[%s11980_s0 + $0x7a0] sm:$0x7f]  ;;  %v4828_v36 = vadd.f32 %v4806_v23, %v4750_v52  ;;  %v4841_v43 = vmul.f32 %v7133_v22, %v4840_v27 }
 0x31b   :  { %v4812_v29 = vsel %vm185_vm0, %v4810_v20, %v4811_v21  ;;  %v4816_v30 = vrot.slane %v4782_v10, 2  ;;  %v7135_v33 = vld [vmem:[%s11980_s0 + $0x800] sm:$0x7f]  ;;  %v4829_v39 = vadd.f32 %v4809_v24, %v4751_v55  ;;  %v4842_v49 = vmul.f32 %v7134_v28, %v4840_v27 }
 0x31c   :  { %v7136_v34 = vld [vmem:[%s11980_s0 + $0x860] sm:$0x7f]  ;;  %v4815_v35 = vsel %vm185_vm0, %v4813_v25, %v4814_v26  ;;  %v4830_v42 = vadd.f32 %v4812_v29, %v4752_v56  ;;  %v4843_v52 = vmul.f32 %v7135_v33, %v4840_v27 }
 0x31d   :  { %v7137_v41 = vld [vmem:[%s11980_s0 + $0x8c0] sm:$0x7f]  ;;  %v4818_v40 = vsel %vm185_vm0, %v4816_v30, %v4817_v31  ;;  %v4831_v45 = vadd.f32 %v4815_v35, %v4753_v57  ;;  %v4844_v50 = vmul.f32 %v7136_v34, %v4840_v27  ;;  %v4848_v57 = vadd.f32 %v4841_v43, %v4826_v32 }
 0x31e   :  { %v7138_v38 = vld [vmem:[%s11980_s0 + $0x920] sm:$0x7f]  ;;  %v4832_v48 = vadd.f32 %v4818_v40, %v4754_v58  ;;  %v4845_v54 = vmul.f32 %v7137_v41, %v4840_v27  ;;  %v4849_v60 = vadd.f32 %v4842_v49, %v4827_v37  ;;  %v4850_v62 = vadd.f32 %v4843_v52, %v4828_v36 }
 0x31f   :  { %v7139_v44 = vld [vmem:[%s11980_s0 + $0x980] sm:$0x7f]  ;;  %v4846_v55 = vmul.f32 %v7138_v38, %v4840_v27  ;;  %v4851_v63 = vadd.f32 %v4844_v50, %v4829_v39 }
 0x320   :  { %v7140_v46 = vld [vmem:[%s11980_s0 + $0xaa0] sm:$0x7f]  ;;  %v4847_v56 = vmul.f32 %v7139_v44, %v4840_v27  ;;  %v4852_v4 = vadd.f32 %v4845_v54, %v4830_v42 }
 0x321   :  { %v7141_v51 = vld [vmem:[%s11980_s0 + $0xb00] sm:$0x7f]  ;;  %v4863_v1 = vmul.f32 %v7140_v46, %v4862_v47  ;;  %v4853_v6 = vadd.f32 %v4846_v55, %v4831_v45 }
 0x322   :  { %v7142_v53 = vld [vmem:[%s11980_s0 + $0xb60] sm:$0x7f]  ;;  %v4854_v8 = vadd.f32 %v4847_v56, %v4832_v48  ;;  %v4864_v5 = vmul.f32 %v7141_v51, %v4862_v47 }
 0x323   :  { %v7143_v59 = vld [vmem:[%s11980_s0 + $0xbc0] sm:$0x7f]  ;;  %v4865_v10 = vmul.f32 %v7142_v53, %v4862_v47  ;;  %v4870_v16 = vadd.f32 %v4863_v1, %v4848_v57 }
 0x324   :  { %v7144_v58 = vld [vmem:[%s11980_s0 + $0xc20] sm:$0x7f]  ;;  %v4866_v7 = vmul.f32 %v7143_v59, %v4862_v47  ;;  %v4871_v17 = vadd.f32 %v4864_v5, %v4849_v60 }
 0x325   :  { %v7145_v61 = vld [vmem:[%s11980_s0 + $0xc80] sm:$0x7f]  ;;  %v4867_v9 = vmul.f32 %v7144_v58, %v4862_v47  ;;  %v4872_v22 = vadd.f32 %v4865_v10, %v4850_v62 }
 0x326   :  { %v7146_v0 = vld [vmem:[%s11980_s0 + $0xce0] sm:$0x7f]  ;;  %v4868_v12 = vmul.f32 %v7145_v61, %v4862_v47  ;;  %v4873_v23 = vadd.f32 %v4866_v7, %v4851_v63  ;;  %v7162_v61 = vld [vmem:[%s11980_s0 + $0x770] sm:$0x1] }
 0x327   :  { %v7147_v2 = vld [vmem:[%s11980_s0 + $0x740] sm:$0xfe]  ;;  %v4869_v15 = vmul.f32 %v7146_v0, %v4862_v47  ;;  %v4874_v24 = vadd.f32 %v4867_v9, %v4852_v4  ;;  %v7166_v4 = vld [vmem:[%s11980_s0 + $0x830] sm:$0x1] }
 0x328   :  { %v7148_v11 = vld [vmem:[%s11980_s0 + $0x7a0] sm:$0xfe]  ;;  %v4885_v21 = vmul.f32 %v7147_v2, %v4884_v3  ;;  %v4875_v25 = vadd.f32 %v4868_v12, %v4853_v6  ;;  %v7164_v2 = vld [vmem:[%s11980_s0 + $0x7d0] sm:$0x1] }
 0x329   :  { %v7149_v13 = vld [vmem:[%s11980_s0 + $0x800] sm:$0xfe]  ;;  %v4876_v27 = vadd.f32 %v4869_v15, %v4854_v8  ;;  %v4886_v29 = vmul.f32 %v7148_v11, %v4884_v3 }
 0x32a   :  { %v7150_v14 = vld [vmem:[%s11980_s0 + $0x860] sm:$0xfe]  ;;  %v4887_v30 = vmul.f32 %v7149_v13, %v4884_v3  ;;  %v4899_v36 = vrot.slane %v4885_v21, 1 }
 0x32b   :  { %v7151_v18 = vld [vmem:[%s11980_s0 + $0x8c0] sm:$0xfe]  ;;  %v4888_v31 = vmul.f32 %v7150_v14, %v4884_v3  ;;  %v4900_v38 = vrot.slane %v4886_v29, 1  ;;  %v7168_v14 = vld [vmem:[%s11980_s0 + $0x890] sm:$0x1] }
 0x32c   :  { %v7152_v19 = vld [vmem:[%s11980_s0 + $0x920] sm:$0xfe]  ;;  %v4889_v34 = vmul.f32 %v7151_v18, %v4884_v3  ;;  %v4901_v44 = vrot.slane %v4887_v30, 1  ;;  %v4913_v48 = vadd.f32 %v4899_v36, %v4870_v16 }
 0x32d   :  { %v7153_v20 = vld [vmem:[%s11980_s0 + $0x980] sm:$0xfe]  ;;  %v4890_v35 = vmul.f32 %v7152_v19, %v4884_v3  ;;  %v4902_v40 = vrot.slane %v4888_v31, 1  ;;  %v4914_v52 = vadd.f32 %v4900_v38, %v4871_v17  ;;  %v7170_v19 = vld [vmem:[%s11980_s0 + $0x8f0] sm:$0x1] }
 0x32e   :  { %v7154_v26 = vld [vmem:[%s11980_s0 + $0xaa0] sm:$0xfe]  ;;  %v4891_v37 = vmul.f32 %v7153_v20, %v4884_v3  ;;  %v4903_v43 = vrot.slane %v4889_v34, 1  ;;  %v4915_v50 = vadd.f32 %v4901_v44, %v4872_v22 }
 0x32f   :  { %v4927_v28 = vld [vmem:[%s11981_s1 + $0x82] ss:$0 sm:$0xff]  ;;  %v4904_v46 = vrot.slane %v4890_v35, 1  ;;  %v4916_v51 = vadd.f32 %v4902_v40, %v4873_v23  ;;  %v4977_v55 = vld [vmem:[%s11981_s1 + $0x83] ss:$0 sm:$0xff] }
 0x330   :  { %v7155_v32 = vld [vmem:[%s11980_s0 + $0xb00] sm:$0xfe]  ;;  %v4928_v45 = vmul.f32 %v7154_v26, %v4927_v28  ;;  %v4905_v47 = vrot.slane %v4891_v37, 1  ;;  %v4917_v56 = vadd.f32 %v4903_v43, %v4874_v24  ;;  %v4979_v21 = vmul.f32 %v7162_v61, %v4977_v55  ;;  %v7172_v26 = vld [vmem:[%s11980_s0 + $0x950] sm:$0x1] }
 0x331   :  { %v7156_v33 = vld [vmem:[%s11980_s0 + $0xb60] sm:$0xfe]  ;;  %v4929_v53 = vmul.f32 %v7155_v32, %v4927_v28  ;;  %v4918_v57 = vadd.f32 %v4904_v46, %v4875_v25  ;;  %v4981_v30 = vmul.f32 %v7164_v2, %v4977_v55  ;;  %v4983_v32 = vmul.f32 %v7166_v4, %v4977_v55 }
 0x332   :  { %v7157_v39 = vld [vmem:[%s11980_s0 + $0xbc0] sm:$0xfe]  ;;  %v4919_v59 = vadd.f32 %v4905_v47, %v4876_v27  ;;  %v4930_v58 = vmul.f32 %v7156_v33, %v4927_v28  ;;  %v4942_v6 = vrot.slane %v4928_v45, 1  ;;  %v7174_v27 = vld [vmem:[%s11980_s0 + $0x9b0] sm:$0x1]  ;;  %v4985_v34 = vmul.f32 %v7168_v14, %v4977_v55 }
 0x333   :  { %v7158_v41 = vld [vmem:[%s11980_s0 + $0xc20] sm:$0xfe]  ;;  %v4931_v60 = vmul.f32 %v7157_v39, %v4927_v28  ;;  %v4943_v8 = vrot.slane %v4929_v53, 1  ;;  %v4987_v37 = vmul.f32 %v7170_v19, %v4977_v55  ;;  %v4989_v39 = vmul.f32 %v7172_v26, %v4977_v55 }
 0x334   :  { %v7159_v42 = vld [vmem:[%s11980_s0 + $0xc80] sm:$0xfe]  ;;  %v4932_v62 = vmul.f32 %v7158_v41, %v4927_v28  ;;  %v4944_v5 = vrot.slane %v4930_v58, 1  ;;  %v4956_v15 = vadd.f32 %v4942_v6, %v4913_v48  ;;  %v4991_v38 = vmul.f32 %v7174_v27, %v4977_v55 }
 0x335   :  { %v7160_v49 = vld [vmem:[%s11980_s0 + $0xce0] sm:$0xfe]  ;;  %v4933_v63 = vmul.f32 %v7159_v42, %v4927_v28  ;;  %v4945_v9 = vrot.slane %v4931_v60, 1  ;;  %v4957_v16 = vadd.f32 %v4943_v8, %v4914_v52  ;;  %v5007_v40 = vrot.slane %v4979_v21, 2 }
 0x336   :  { %v7161_v54 = vld [vmem:[%s11980_s0 + $0x740] sm:$0xfc]  ;;  %v4934_v0 = vmul.f32 %v7160_v49, %v4927_v28  ;;  %v4946_v12 = vrot.slane %v4932_v62, 1  ;;  %v4958_v17 = vadd.f32 %v4944_v5, %v4915_v50  ;;  %v5010_v45 = vrot.slane %v4981_v30, 2 }
 0x337   :  { %v7163_v1 = vld [vmem:[%s11980_s0 + $0x7a0] sm:$0xfc]  ;;  %v4978_v7 = vmul.f32 %v7161_v54, %v4977_v55  ;;  %v4947_v11 = vrot.slane %v4933_v63, 1  ;;  %v4959_v22 = vadd.f32 %v4945_v9, %v4916_v51  ;;  %v5013_v46 = vrot.slane %v4983_v32, 2 }
 0x338   :  { %v7165_v3 = vld [vmem:[%s11980_s0 + $0x800] sm:$0xfc]  ;;  %v4948_v13 = vrot.slane %v4934_v0, 1  ;;  %v4960_v23 = vadd.f32 %v4946_v12, %v4917_v56  ;;  %v4980_v29 = vmul.f32 %v7163_v1, %v4977_v55  ;;  %v5016_v48 = vrot.slane %v4985_v34, 2 }
 0x339   :  { %v7167_v10 = vld [vmem:[%s11980_s0 + $0x860] sm:$0xfc]  ;;  %v4961_v24 = vadd.f32 %v4947_v11, %v4918_v57  ;;  %v4982_v31 = vmul.f32 %v7165_v3, %v4977_v55  ;;  %v5006_v44 = vrot.slane %v4978_v7, 2  ;;  %v5019_v51 = vrot.slane %v4987_v37, 2 }
 0x33a   :  { %v7169_v18 = vld [vmem:[%s11980_s0 + $0x8c0] sm:$0xfc]  ;;  %v4962_v25 = vadd.f32 %v4948_v13, %v4919_v59  ;;  %v4984_v33 = vmul.f32 %v7167_v10, %v4977_v55  ;;  %v5009_v42 = vrot.slane %v4980_v29, 2  ;;  %v5022_v57 = vrot.slane %v4989_v39, 2 }
 0x33b   :  { %v7171_v20 = vld [vmem:[%s11980_s0 + $0x920] sm:$0xfc]  ;;  %v4986_v35 = vmul.f32 %v7169_v18, %v4977_v55  ;;  %v5012_v43 = vrot.slane %v4982_v31, 2  ;;  %v5008_v49 = vsel %vm185_vm0, %v5006_v44, %v5007_v40  ;;  %v5025_v62 = vrot.slane %v4991_v38, 2 }
 0x33c   :  { %v7173_v28 = vld [vmem:[%s11980_s0 + $0x980] sm:$0xfc]  ;;  %v4988_v36 = vmul.f32 %v7171_v20, %v4977_v55  ;;  %v5015_v47 = vrot.slane %v4984_v33, 2  ;;  %v5011_v52 = vsel %vm185_vm0, %v5009_v42, %v5010_v45  ;;  %v5034_v63 = vadd.f32 %v5008_v49, %v4956_v15 }
 0x33d   :  { %v4990_v41 = vmul.f32 %v7173_v28, %v4977_v55  ;;  %v5018_v50 = vrot.slane %v4986_v35, 2  ;;  %v7175_v53 = vld [vmem:[%s11980_s0 + $0xe0] sm:$0x7f]  ;;  %v5014_v54 = vsel %vm185_vm0, %v5012_v43, %v5013_v46  ;;  %v5035_v3 = vadd.f32 %v5011_v52, %v4957_v16 }
 0x33e   :  { %v5017_v55 = vsel %vm185_vm0, %v5015_v47, %v5016_v48  ;;  %v5021_v56 = vrot.slane %v4988_v36, 2  ;;  %v7176_v59 = vld [vmem:[%s11980_s0 + $0x140] sm:$0x7f]  ;;  %v5036_v4 = vadd.f32 %v5014_v54, %v4958_v17 }
 0x33f   :  { %v5048_v58 = vld [vmem:[%s11981_s1 + $0x84] ss:$0 sm:$0xff]  ;;  %v5020_v61 = vsel %vm185_vm0, %v5018_v50, %v5019_v51  ;;  %v5024_v60 = vrot.slane %v4990_v41, 2  ;;  %v5037_v6 = vadd.f32 %v5017_v55, %v4959_v22  ;;  %v5070_v14 = vld [vmem:[%s11981_s1 + $0x85] ss:$0 sm:$0xff] }
 0x340   :  { %v7177_v0 = vld [vmem:[%s11980_s0 + $0x1a0] sm:$0x7f]  ;;  %v5023_v2 = vsel %vm185_vm0, %v5021_v56, %v5022_v57  ;;  %v5038_v9 = vadd.f32 %v5020_v61, %v4960_v23  ;;  %v5049_v11 = vmul.f32 %v7175_v53, %v5048_v58  ;;  %v5050_v16 = vmul.f32 %v7176_v59, %v5048_v58  ;;  %v5135_v59 = vld [vmem:[%s11981_s1 + $0x87] ss:$0 sm:$0xff] }
 0x341   :  { %v7178_v1 = vld [vmem:[%s11980_s0 + $0x200] sm:$0x7f]  ;;  %v5026_v7 = vsel %vm185_vm0, %v5024_v60, %v5025_v62  ;;  %v5039_v12 = vadd.f32 %v5023_v2, %v4961_v24  ;;  %v5051_v17 = vmul.f32 %v7177_v0, %v5048_v58 }
 0x342   :  { %v7179_v8 = vld [vmem:[%s11980_s0 + $0x260] sm:$0x7f]  ;;  %v5040_v15 = vadd.f32 %v5026_v7, %v4962_v25  ;;  %v5052_v18 = vmul.f32 %v7178_v1, %v5048_v58  ;;  %v5056_v24 = vadd.f32 %v5049_v11, %v5034_v63  ;;  %v5057_v27 = vadd.f32 %v5050_v16, %v5035_v3 }
 0x343   :  { %v7180_v5 = vld [vmem:[%s11980_s0 + $0x2c0] sm:$0x7f]  ;;  %v5053_v21 = vmul.f32 %v7179_v8, %v5048_v58  ;;  %v5058_v29 = vadd.f32 %v5051_v17, %v5036_v4 }
 0x344   :  { %v7181_v10 = vld [vmem:[%s11980_s0 + $0x320] sm:$0x7f]  ;;  %v5054_v22 = vmul.f32 %v7180_v5, %v5048_v58  ;;  %v5059_v30 = vadd.f32 %v5052_v18, %v5037_v6 }
 0x345   :  { %v7182_v13 = vld [vmem:[%s11980_s0 + $0x440] sm:$0x7f]  ;;  %v5055_v23 = vmul.f32 %v7181_v10, %v5048_v58  ;;  %v5060_v35 = vadd.f32 %v5053_v21, %v5038_v9 }
 0x346   :  { %v7183_v19 = vld [vmem:[%s11980_s0 + $0x4a0] sm:$0x7f]  ;;  %v5071_v32 = vmul.f32 %v7182_v13, %v5070_v14  ;;  %v5061_v37 = vadd.f32 %v5054_v22, %v5039_v12  ;;  %v5185_v22 = vld [vmem:[%s11981_s1 + $0xb0] ss:$0 sm:$0xff] }
 0x347   :  { %v7184_v20 = vld [vmem:[%s11980_s0 + $0x500] sm:$0x7f]  ;;  %v5062_v36 = vadd.f32 %v5055_v23, %v5040_v15  ;;  %v5072_v39 = vmul.f32 %v7183_v19, %v5070_v14 }
 0x348   :  { %v7185_v26 = vld [vmem:[%s11980_s0 + $0x560] sm:$0x7f]  ;;  %v5073_v41 = vmul.f32 %v7184_v20, %v5070_v14  ;;  %v5078_v47 = vadd.f32 %v5071_v32, %v5056_v24 }
 0x349   :  { %v7186_v25 = vld [vmem:[%s11980_s0 + $0x5c0] sm:$0x7f]  ;;  %v5074_v38 = vmul.f32 %v7185_v26, %v5070_v14  ;;  %v5079_v48 = vadd.f32 %v5072_v39, %v5057_v27 }
 0x34a   :  { %v7187_v28 = vld [vmem:[%s11980_s0 + $0x620] sm:$0x7f]  ;;  %v5075_v44 = vmul.f32 %v7186_v25, %v5070_v14  ;;  %v5080_v53 = vadd.f32 %v5073_v41, %v5058_v29 }
 0x34b   :  { %v7188_v31 = vld [vmem:[%s11980_s0 + $0x680] sm:$0x7f]  ;;  %v5076_v40 = vmul.f32 %v7187_v28, %v5070_v14  ;;  %v5081_v54 = vadd.f32 %v5074_v38, %v5059_v30  ;;  %v7204_v28 = vld [vmem:[%s11980_s0 + $0x110] sm:$0x1] }
 0x34c   :  { %v7189_v33 = vld [vmem:[%s11980_s0 + $0xe0] sm:$0xfe]  ;;  %v5077_v46 = vmul.f32 %v7188_v31, %v5070_v14  ;;  %v5082_v55 = vadd.f32 %v5075_v44, %v5060_v35  ;;  %v7208_v35 = vld [vmem:[%s11980_s0 + $0x1d0] sm:$0x1] }
 0x34d   :  { %v5092_v34 = vld [vmem:[%s11981_s1 + $0x86] ss:$0 sm:$0xff]  ;;  %v5083_v56 = vadd.f32 %v5076_v40, %v5061_v37 }
 0x34e   :  { %v7190_v42 = vld [vmem:[%s11980_s0 + $0x140] sm:$0xfe]  ;;  %v5093_v51 = vmul.f32 %v7189_v33, %v5092_v34  ;;  %v5084_v58 = vadd.f32 %v5077_v46, %v5062_v36  ;;  %v7206_v33 = vld [vmem:[%s11980_s0 + $0x170] sm:$0x1] }
 0x34f   :  { %v7191_v45 = vld [vmem:[%s11980_s0 + $0x1a0] sm:$0xfe]  ;;  %v5094_v61 = vmul.f32 %v7190_v42, %v5092_v34 }
 0x350   :  { %v7192_v43 = vld [vmem:[%s11980_s0 + $0x200] sm:$0xfe]  ;;  %v5095_v60 = vmul.f32 %v7191_v45, %v5092_v34  ;;  %v5107_v4 = vrot.slane %v5093_v51, 1  ;;  %v5187_v51 = vmul.f32 %v7204_v28, %v5185_v22 }
 0x351   :  { %v7193_v49 = vld [vmem:[%s11980_s0 + $0x260] sm:$0xfe]  ;;  %v5096_v62 = vmul.f32 %v7192_v43, %v5092_v34  ;;  %v5108_v5 = vrot.slane %v5094_v61, 1  ;;  %v7210_v43 = vld [vmem:[%s11980_s0 + $0x230] sm:$0x1] }
 0x352   :  { %v7194_v52 = vld [vmem:[%s11980_s0 + $0x2c0] sm:$0xfe]  ;;  %v5097_v1 = vmul.f32 %v7193_v49, %v5092_v34  ;;  %v5109_v10 = vrot.slane %v5095_v60, 1  ;;  %v5121_v15 = vadd.f32 %v5107_v4, %v5078_v47  ;;  %v5189_v60 = vmul.f32 %v7206_v33, %v5185_v22 }
 0x353   :  { %v7195_v50 = vld [vmem:[%s11980_s0 + $0x320] sm:$0xfe]  ;;  %v5098_v2 = vmul.f32 %v7194_v52, %v5092_v34  ;;  %v5110_v7 = vrot.slane %v5096_v62, 1  ;;  %v5122_v17 = vadd.f32 %v5108_v5, %v5079_v48  ;;  %v7212_v52 = vld [vmem:[%s11980_s0 + $0x290] sm:$0x1] }
 0x354   :  { %v7196_v57 = vld [vmem:[%s11980_s0 + $0x440] sm:$0xfe]  ;;  %v5099_v3 = vmul.f32 %v7195_v50, %v5092_v34  ;;  %v5111_v11 = vrot.slane %v5097_v1, 1  ;;  %v5123_v18 = vadd.f32 %v5109_v10, %v5080_v53  ;;  %v5193_v1 = vmul.f32 %v7210_v43, %v5185_v22 }
 0x355   :  { %v7197_v63 = vld [vmem:[%s11980_s0 + $0x4a0] sm:$0xfe]  ;;  %v5136_v12 = vmul.f32 %v7196_v57, %v5135_v59  ;;  %v5112_v13 = vrot.slane %v5098_v2, 1  ;;  %v5124_v19 = vadd.f32 %v5110_v7, %v5081_v54  ;;  %v7214_v57 = vld [vmem:[%s11980_s0 + $0x2f0] sm:$0x1]  ;;  %v5215_v7 = vrot.slane %v5187_v51, 2 }
 0x356   :  { %v7198_v0 = vld [vmem:[%s11980_s0 + $0x500] sm:$0xfe]  ;;  %v5113_v14 = vrot.slane %v5099_v3, 1  ;;  %v5137_v20 = vmul.f32 %v7197_v63, %v5135_v59  ;;  %v5125_v23 = vadd.f32 %v5111_v11, %v5082_v55  ;;  %v5191_v63 = vmul.f32 %v7208_v35, %v5185_v22  ;;  %v5262_v35 = vld [vmem:[%s11980_s0 + $0x268] sm:$0x7f] }
 0x357   :  { %v7199_v6 = vld [vmem:[%s11980_s0 + $0x560] sm:$0xfe]  ;;  %v5126_v24 = vadd.f32 %v5112_v13, %v5083_v56  ;;  %v5138_v25 = vmul.f32 %v7198_v0, %v5135_v59  ;;  %v5150_v37 = vrot.slane %v5136_v12, 1  ;;  %v5195_v3 = vmul.f32 %v7212_v52, %v5185_v22  ;;  %v7222_v52 = vld [vmem:[%s11980_s0 + $0x568] sm:$0x7f] }
 0x358   :  { %v7200_v8 = vld [vmem:[%s11980_s0 + $0x5c0] sm:$0xfe]  ;;  %v5127_v26 = vadd.f32 %v5113_v14, %v5084_v58  ;;  %v5139_v27 = vmul.f32 %v7199_v6, %v5135_v59  ;;  %v5151_v36 = vrot.slane %v5137_v20, 1  ;;  %v7216_v58 = vld [vmem:[%s11980_s0 + $0x350] sm:$0x1]  ;;  %v5197_v6 = vmul.f32 %v7214_v57, %v5185_v22 }
 0x359   :  { %v7201_v9 = vld [vmem:[%s11980_s0 + $0x620] sm:$0xfe]  ;;  %v5140_v29 = vmul.f32 %v7200_v8, %v5135_v59  ;;  %v5152_v39 = vrot.slane %v5138_v25, 1  ;;  %v5164_v46 = vadd.f32 %v5150_v37, %v5121_v15  ;;  %v5199_v5 = vmul.f32 %v7216_v58, %v5185_v22  ;;  %v7217_v37 = vld [vmem:[%s11980_s0 + $0x388] sm:$0x7f] }
 0x35a   :  { %v7202_v16 = vld [vmem:[%s11980_s0 + $0x680] sm:$0xfe]  ;;  %v5141_v30 = vmul.f32 %v7201_v9, %v5135_v59  ;;  %v5153_v44 = vrot.slane %v5139_v27, 1  ;;  %v5165_v47 = vadd.f32 %v5151_v36, %v5122_v17  ;;  %v5218_v12 = vrot.slane %v5189_v60, 2  ;;  %v5260_v27 = vld [vmem:[%s11980_s0 + $0x1a8] sm:$0x7f] }
 0x35b   :  { %v7203_v21 = vld [vmem:[%s11980_s0 + $0xe0] sm:$0xfc]  ;;  %v5142_v31 = vmul.f32 %v7202_v16, %v5135_v59  ;;  %v5154_v40 = vrot.slane %v5140_v29, 1  ;;  %v5166_v48 = vadd.f32 %v5152_v39, %v5123_v18  ;;  %v5221_v13 = vrot.slane %v5191_v63, 2  ;;  %v5256_v16 = vld [vmem:[%s11980_s0 + $0x28] sm:$0x7f] }
 0x35c   :  { %v7205_v32 = vld [vmem:[%s11980_s0 + $0x140] sm:$0xfc]  ;;  %v5186_v38 = vmul.f32 %v7203_v21, %v5185_v22  ;;  %v5155_v42 = vrot.slane %v5141_v30, 1  ;;  %v5167_v53 = vadd.f32 %v5153_v44, %v5124_v19  ;;  %v5224_v15 = vrot.slane %v5193_v1, 2  ;;  %v5257_v21 = vld [vmem:[%s11980_s0 + $0x88] sm:$0x7f] }
 0x35d   :  { %v7207_v34 = vld [vmem:[%s11980_s0 + $0x1a0] sm:$0xfc]  ;;  %v5156_v45 = vrot.slane %v5142_v31, 1  ;;  %v5168_v54 = vadd.f32 %v5154_v40, %v5125_v23  ;;  %v5188_v61 = vmul.f32 %v7205_v32, %v5185_v22  ;;  %v5227_v20 = vrot.slane %v5195_v3, 2  ;;  %v5259_v23 = vld [vmem:[%s11980_s0 + $0x148] sm:$0x7f] }
 0x35e   :  { %v7209_v41 = vld [vmem:[%s11980_s0 + $0x200] sm:$0xfc]  ;;  %v5169_v55 = vadd.f32 %v5155_v42, %v5126_v24  ;;  %v5190_v62 = vmul.f32 %v7207_v34, %v5185_v22  ;;  %v5214_v10 = vrot.slane %v5186_v38, 2  ;;  %v5230_v28 = vrot.slane %v5197_v6, 2  ;;  %v5261_v29 = vld [vmem:[%s11980_s0 + $0x208] sm:$0x7f] }
 0x35f   :  { %v7211_v49 = vld [vmem:[%s11980_s0 + $0x260] sm:$0xfc]  ;;  %v5170_v56 = vadd.f32 %v5156_v45, %v5127_v26  ;;  %v5192_v0 = vmul.f32 %v7209_v41, %v5185_v22  ;;  %v5217_v9 = vrot.slane %v5188_v61, 2  ;;  %v5263_v30 = vld [vmem:[%s11981_s1 + $0x28] ss:$0 sm:$0xff]  ;;  %v5233_v33 = vrot.slane %v5199_v5, 2 }
 0x360   :  { %v7213_v50 = vld [vmem:[%s11980_s0 + $0x2c0] sm:$0xfc]  ;;  %v5194_v2 = vmul.f32 %v7211_v49, %v5185_v22  ;;  %v5220_v11 = vrot.slane %v5190_v62, 2  ;;  %v5216_v17 = vsel %vm185_vm0, %v5214_v10, %v5215_v7  ;;  %v7218_v44 = vld [vmem:[%s11980_s0 + $0x3e8] sm:$0x7f]  ;;  %v5265_v51 = vmul.f32 %v5263_v30, %v5257_v21 }
 0x361   :  { %v7215_v59 = vld [vmem:[%s11980_s0 + $0x320] sm:$0xfc]  ;;  %v5196_v4 = vmul.f32 %v7213_v50, %v5185_v22  ;;  %v5223_v14 = vrot.slane %v5192_v0, 2  ;;  %v5219_v18 = vsel %vm185_vm0, %v5217_v9, %v5218_v12  ;;  %v5242_v34 = vadd.f32 %v5216_v17, %v5164_v46  ;;  %v7219_v40 = vld [vmem:[%s11980_s0 + $0x448] sm:$0x7f] }
 0x362   :  { %v5198_v8 = vmul.f32 %v7215_v59, %v5185_v22  ;;  %v5226_v19 = vrot.slane %v5194_v2, 2  ;;  %v5258_v22 = vld [vmem:[%s11980_s0 + $0xe8] sm:$0x7f]  ;;  %v5222_v24 = vsel %vm185_vm0, %v5220_v11, %v5221_v13  ;;  %v5243_v39 = vadd.f32 %v5219_v18, %v5165_v47 }
 0x363   :  { %v5225_v26 = vsel %vm185_vm0, %v5223_v14, %v5224_v15  ;;  %v5229_v25 = vrot.slane %v5196_v4, 2  ;;  %v5244_v41 = vadd.f32 %v5222_v24, %v5166_v48  ;;  %v5285_v42 = vld [vmem:[%s11981_s1 + $0x29] ss:$0 sm:$0xff]  ;;  %5249 = vst [vmem:[%s11982_s2 + $0x20] sm:$0x7f] %v5242_v34  ;;  %v5264_v47 = vmul.f32 %v5263_v30, %v5256_v16 }
 0x364   :  { %v5228_v31 = vsel %vm185_vm0, %v5226_v19, %v5227_v20  ;;  %v5232_v32 = vrot.slane %v5198_v8, 2  ;;  %v5245_v38 = vadd.f32 %v5225_v26, %v5167_v53  ;;  %v7220_v48 = vld [vmem:[%s11980_s0 + $0x4a8] sm:$0x7f]  ;;  %5250 = vst [vmem:[%s11982_s2 + $0x50] sm:$0x7f] %v5243_v39  ;;  %v5266_v53 = vmul.f32 %v5263_v30, %v5258_v22 }
 0x365   :  { %v5231_v36 = vsel %vm185_vm0, %v5229_v25, %v5230_v28  ;;  %v5246_v43 = vadd.f32 %v5228_v31, %v5168_v54  ;;  %v7221_v49 = vld [vmem:[%s11980_s0 + $0x508] sm:$0x7f]  ;;  %5251 = vst [vmem:[%s11982_s2 + $0x80] sm:$0x7f] %v5244_v41  ;;  %v5267_v54 = vmul.f32 %v5263_v30, %v5259_v23  ;;  %v5268_v59 = vmul.f32 %v5263_v30, %v5260_v27 }
 0x366   :  { %v5234_v45 = vsel %vm185_vm0, %v5232_v32, %v5233_v33  ;;  %v5247_v46 = vadd.f32 %v5231_v36, %v5169_v55  ;;  %5252 = vst [vmem:[%s11982_s2 + $0xb0] sm:$0x7f] %v5245_v38  ;;  %v7223_v55 = vld [vmem:[%s11980_s0 + $0x5c8] sm:$0x7f]  ;;  %v5269_v58 = vmul.f32 %v5263_v30, %v5261_v29  ;;  %v5270_v61 = vmul.f32 %v5263_v30, %v5262_v35 }
 0x367   :  { %v5248_v50 = vadd.f32 %v5234_v45, %v5170_v56  ;;  %v5300_v56 = vld [vmem:[%s11980_s0 + $0x28] sm:$0xfe]  ;;  %5253 = vst [vmem:[%s11982_s2 + $0xe0] sm:$0x7f] %v5246_v43  ;;  %v5286_v60 = vmul.f32 %v7217_v37, %v5285_v42  ;;  %v5287_v62 = vmul.f32 %v7218_v44, %v5285_v42  ;;  %v5288_v63 = vmul.f32 %v7219_v40, %v5285_v42 }
 0x368   :  { %v5307_v57 = vld [vmem:[%s11981_s1 + $0x2a] ss:$0 sm:$0xff]  ;;  %5254 = vst [vmem:[%s11982_s2 + $0x110] sm:$0x7f] %v5247_v46  ;;  %v5289_v0 = vmul.f32 %v7220_v48, %v5285_v42  ;;  %v5290_v1 = vmul.f32 %v7221_v49, %v5285_v42  ;;  %v5291_v6 = vmul.f32 %v7222_v52, %v5285_v42  ;;  %v5292_v8 = vmul.f32 %v7223_v55, %v5285_v42  ;;  %v5350_v17 = vld [vmem:[%s11981_s1 + $0x2b] ss:$0 sm:$0xff] }
 0x369   :  { %5255 = vst [vmem:[%s11982_s2 + $0x140] sm:$0x7f] %v5248_v50  ;;  %v5301_v2 = vld [vmem:[%s11980_s0 + $0x88] sm:$0xfe]  ;;  %v5293_v5 = vadd.f32 %v5286_v60, %v5264_v47  ;;  %v5308_v12 = vmul.f32 %v5307_v57, %v5300_v56  ;;  %v5294_v11 = vadd.f32 %v5287_v62, %v5265_v51  ;;  %v5295_v13 = vadd.f32 %v5288_v63, %v5266_v53  ;;  %v5387_v52 = vld [vmem:[%s11980_s0 + $0x58] sm:$0x1] }
 0x36a   :  { %v5302_v3 = vld [vmem:[%s11980_s0 + $0xe8] sm:$0xfe]  ;;  %v5296_v14 = vadd.f32 %v5289_v0, %v5267_v54  ;;  %v5297_v15 = vadd.f32 %v5290_v1, %v5268_v59  ;;  %v5298_v18 = vadd.f32 %v5291_v6, %v5269_v58  ;;  %v5299_v19 = vadd.f32 %v5292_v8, %v5270_v61  ;;  %v5389_v56 = vld [vmem:[%s11980_s0 + $0xb8] sm:$0x1] }
 0x36b   :  { %v5303_v4 = vld [vmem:[%s11980_s0 + $0x148] sm:$0xfe]  ;;  %v5309_v20 = vmul.f32 %v5307_v57, %v5301_v2  ;;  %v5310_v21 = vmul.f32 %v5307_v57, %v5302_v3  ;;  %v5322_v29 = vrot.slane %v5308_v12, 1  ;;  %v5391_v60 = vld [vmem:[%s11980_s0 + $0x118] sm:$0x1] }
 0x36c   :  { %v5304_v10 = vld [vmem:[%s11980_s0 + $0x1a8] sm:$0xfe]  ;;  %v5311_v22 = vmul.f32 %v5307_v57, %v5303_v4  ;;  %v5393_v4 = vld [vmem:[%s11980_s0 + $0x178] sm:$0x1] }
 0x36d   :  { %v5305_v7 = vld [vmem:[%s11980_s0 + $0x208] sm:$0xfe]  ;;  %v5312_v23 = vmul.f32 %v5307_v57, %v5304_v10  ;;  %v5323_v30 = vrot.slane %v5309_v20, 1  ;;  %v5324_v31 = vrot.slane %v5310_v21, 1  ;;  %v5336_v41 = vadd.f32 %v5322_v29, %v5293_v5 }
 0x36e   :  { %v5306_v9 = vld [vmem:[%s11980_s0 + $0x268] sm:$0xfe]  ;;  %v5313_v24 = vmul.f32 %v5307_v57, %v5305_v7  ;;  %v5325_v34 = vrot.slane %v5311_v22, 1  ;;  %v5395_v7 = vld [vmem:[%s11980_s0 + $0x1d8] sm:$0x1] }
 0x36f   :  { %v7224_v16 = vld [vmem:[%s11980_s0 + $0x388] sm:$0xfe]  ;;  %v5314_v26 = vmul.f32 %v5307_v57, %v5306_v9  ;;  %v5326_v35 = vrot.slane %v5312_v23, 1  ;;  %v5337_v38 = vadd.f32 %v5323_v30, %v5294_v11  ;;  %v5338_v44 = vadd.f32 %v5324_v31, %v5295_v13 }
 0x370   :  { %v7225_v25 = vld [vmem:[%s11980_s0 + $0x3e8] sm:$0xfe]  ;;  %v5351_v33 = vmul.f32 %v7224_v16, %v5350_v17  ;;  %v5327_v37 = vrot.slane %v5313_v24, 1  ;;  %v5339_v46 = vadd.f32 %v5325_v34, %v5296_v14  ;;  %v5397_v16 = vld [vmem:[%s11980_s0 + $0x238] sm:$0x1] }
 0x371   :  { %v7226_v28 = vld [vmem:[%s11980_s0 + $0x448] sm:$0xfe]  ;;  %v5328_v36 = vrot.slane %v5314_v26, 1  ;;  %v5352_v42 = vmul.f32 %v7225_v25, %v5350_v17  ;;  %v5340_v47 = vadd.f32 %v5326_v35, %v5297_v15 }
 0x372   :  { %v7227_v27 = vld [vmem:[%s11980_s0 + $0x4a8] sm:$0xfe]  ;;  %v5341_v48 = vadd.f32 %v5327_v37, %v5298_v18  ;;  %v5353_v50 = vmul.f32 %v7226_v28, %v5350_v17  ;;  %v5365_v58 = vrot.slane %v5351_v33, 1 }
 0x373   :  { %v7228_v32 = vld [vmem:[%s11980_s0 + $0x508] sm:$0xfe]  ;;  %v5342_v49 = vadd.f32 %v5328_v36, %v5299_v19  ;;  %v5354_v51 = vmul.f32 %v7227_v27, %v5350_v17  ;;  %v5366_v61 = vrot.slane %v5352_v42, 1  ;;  %v5399_v19 = vld [vmem:[%s11980_s0 + $0x298] sm:$0x1] }
 0x374   :  { %v7229_v39 = vld [vmem:[%s11980_s0 + $0x568] sm:$0xfe]  ;;  %v5355_v53 = vmul.f32 %v7228_v32, %v5350_v17  ;;  %v5367_v0 = vrot.slane %v5353_v50, 1  ;;  %v5379_v8 = vadd.f32 %v5365_v58, %v5336_v41 }
 0x375   :  { %v7230_v40 = vld [vmem:[%s11980_s0 + $0x5c8] sm:$0xfe]  ;;  %v5356_v54 = vmul.f32 %v7229_v39, %v5350_v17  ;;  %v5368_v1 = vrot.slane %v5354_v51, 1  ;;  %v5380_v5 = vadd.f32 %v5366_v61, %v5337_v38 }
 0x376   :  { %v5386_v45 = vld [vmem:[%s11980_s0 + $0x28] sm:$0xfc]  ;;  %v5357_v59 = vmul.f32 %v7230_v40, %v5350_v17  ;;  %v5369_v2 = vrot.slane %v5355_v53, 1  ;;  %v5381_v12 = vadd.f32 %v5367_v0, %v5338_v44 }
 0x377   :  { %v5400_v43 = vld [vmem:[%s11981_s1 + $0x2c] ss:$0 sm:$0xff]  ;;  %v5370_v3 = vrot.slane %v5356_v54, 1  ;;  %v5382_v11 = vadd.f32 %v5368_v1, %v5339_v46 }
 0x378   :  { %v5388_v55 = vld [vmem:[%s11980_s0 + $0x88] sm:$0xfc]  ;;  %v5401_v63 = vmul.f32 %v5400_v43, %v5386_v45  ;;  %v5371_v6 = vrot.slane %v5357_v59, 1  ;;  %v5402_v9 = vmul.f32 %v5400_v43, %v5387_v52  ;;  %v5383_v13 = vadd.f32 %v5369_v2, %v5340_v47 }
 0x379   :  { %v5390_v57 = vld [vmem:[%s11980_s0 + $0xe8] sm:$0xfc]  ;;  %v5384_v14 = vadd.f32 %v5370_v3, %v5341_v48  ;;  %v5403_v20 = vmul.f32 %v5400_v43, %v5388_v55  ;;  %v5404_v21 = vmul.f32 %v5400_v43, %v5389_v56  ;;  %v5406_v23 = vmul.f32 %v5400_v43, %v5391_v60 }
 0x37a   :  { %v5392_v62 = vld [vmem:[%s11980_s0 + $0x148] sm:$0xfc]  ;;  %v5385_v18 = vadd.f32 %v5371_v6, %v5342_v49  ;;  %v5405_v22 = vmul.f32 %v5400_v43, %v5390_v57  ;;  %v5408_v26 = vmul.f32 %v5400_v43, %v5393_v4  ;;  %v5410_v28 = vmul.f32 %v5400_v43, %v5395_v7 }
 0x37b   :  { %v5394_v10 = vld [vmem:[%s11980_s0 + $0x1a8] sm:$0xfc]  ;;  %v5407_v24 = vmul.f32 %v5400_v43, %v5392_v62  ;;  %v5412_v29 = vmul.f32 %v5400_v43, %v5397_v16  ;;  %v5414_v31 = vmul.f32 %v5400_v43, %v5399_v19  ;;  %v5429_v32 = vrot.slane %v5401_v63, 2 }
 0x37c   :  { %v5396_v15 = vld [vmem:[%s11980_s0 + $0x208] sm:$0xfc]  ;;  %v5409_v25 = vmul.f32 %v5400_v43, %v5394_v10  ;;  %v5430_v33 = vrot.slane %v5402_v9, 2  ;;  %v5432_v34 = vrot.slane %v5403_v20, 2  ;;  %v5433_v35 = vrot.slane %v5404_v21, 2 }
 0x37d   :  { %v5398_v17 = vld [vmem:[%s11980_s0 + $0x268] sm:$0xfc]  ;;  %v5411_v27 = vmul.f32 %v5400_v43, %v5396_v15  ;;  %v5435_v37 = vrot.slane %v5405_v22, 2  ;;  %v5436_v36 = vrot.slane %v5406_v23, 2  ;;  %v5438_v39 = vrot.slane %v5407_v24, 2 }
 0x37e   :  { %v5413_v30 = vmul.f32 %v5400_v43, %v5398_v17  ;;  %v5431_v41 = vsel %vm185_vm0, %v5429_v32, %v5430_v33  ;;  %v5439_v38 = vrot.slane %v5408_v26, 2  ;;  %v5441_v44 = vrot.slane %v5409_v25, 2  ;;  %v7231_v42 = vld [vmem:[%s11980_s0 + $0x6e8] sm:$0x7f]  ;;  %v5515_v24 = vld [vmem:[%s11981_s1 + $0x2f] ss:$0 sm:$0xff] }
 0x37f   :  { %v5442_v40 = vrot.slane %v5410_v28, 2  ;;  %v5434_v45 = vsel %vm185_vm0, %v5432_v34, %v5433_v35  ;;  %v5437_v43 = vsel %vm185_vm0, %v5435_v37, %v5436_v36  ;;  %v5444_v46 = vrot.slane %v5411_v27, 2  ;;  %v7232_v48 = vld [vmem:[%s11980_s0 + $0x748] sm:$0x7f] }
 0x380   :  { %v5445_v47 = vrot.slane %v5412_v29, 2  ;;  %v7233_v49 = vld [vmem:[%s11980_s0 + $0x7a8] sm:$0x7f]  ;;  %v5440_v52 = vsel %vm185_vm0, %v5438_v39, %v5439_v38  ;;  %v5447_v51 = vrot.slane %v5413_v30, 2  ;;  %v5448_v53 = vrot.slane %v5414_v31, 2 }
 0x381   :  { %v5443_v50 = vsel %vm185_vm0, %v5441_v44, %v5442_v40  ;;  %v7234_v54 = vld [vmem:[%s11980_s0 + $0x808] sm:$0x7f]  ;;  %v5457_v57 = vadd.f32 %v5431_v41, %v5379_v8  ;;  %v5458_v59 = vadd.f32 %v5434_v45, %v5380_v5  ;;  %v5459_v58 = vadd.f32 %v5437_v43, %v5381_v12 }
 0x382   :  { %v5471_v55 = vld [vmem:[%s11981_s1 + $0x2d] ss:$0 sm:$0xff]  ;;  %v5446_v56 = vsel %vm185_vm0, %v5444_v46, %v5445_v47  ;;  %v5449_v63 = vsel %vm185_vm0, %v5447_v51, %v5448_v53  ;;  %v5460_v0 = vadd.f32 %v5440_v52, %v5382_v11  ;;  %v5461_v1 = vadd.f32 %v5443_v50, %v5383_v13  ;;  %v5493_v4 = vld [vmem:[%s11981_s1 + $0x2e] ss:$0 sm:$0xff] }
 0x383   :  { %v7235_v61 = vld [vmem:[%s11980_s0 + $0x868] sm:$0x7f]  ;;  %v5462_v2 = vadd.f32 %v5446_v56, %v5384_v14  ;;  %v5463_v6 = vadd.f32 %v5449_v63, %v5385_v18  ;;  %v5472_v8 = vmul.f32 %v7231_v42, %v5471_v55  ;;  %v5473_v5 = vmul.f32 %v7232_v48, %v5471_v55  ;;  %v5558_v48 = vld [vmem:[%s11981_s1 + $0x58] ss:$0 sm:$0xff] }
 0x384   :  { %v7236_v60 = vld [vmem:[%s11980_s0 + $0x8c8] sm:$0x7f]  ;;  %v5474_v10 = vmul.f32 %v7233_v49, %v5471_v55  ;;  %v5475_v12 = vmul.f32 %v7234_v54, %v5471_v55  ;;  %v5476_v11 = vmul.f32 %v7235_v61, %v5471_v55 }
 0x385   :  { %v7237_v62 = vld [vmem:[%s11980_s0 + $0x928] sm:$0x7f]  ;;  %v5477_v13 = vmul.f32 %v7236_v60, %v5471_v55  ;;  %v5479_v18 = vadd.f32 %v5472_v8, %v5457_v57  ;;  %v5480_v19 = vadd.f32 %v5473_v5, %v5458_v59 }
 0x386   :  { %v7238_v3 = vld [vmem:[%s11980_s0 + $0xa48] sm:$0x7f]  ;;  %v5478_v14 = vmul.f32 %v7237_v62, %v5471_v55  ;;  %v5481_v20 = vadd.f32 %v5474_v10, %v5459_v58  ;;  %v5482_v26 = vadd.f32 %v5475_v12, %v5460_v0  ;;  %v5483_v25 = vadd.f32 %v5476_v11, %v5461_v1  ;;  %v5608_v11 = vld [vmem:[%s11981_s1 + $0x59] ss:$0 sm:$0xff] }
 0x387   :  { %v7239_v7 = vld [vmem:[%s11980_s0 + $0xaa8] sm:$0x7f]  ;;  %v5494_v22 = vmul.f32 %v7238_v3, %v5493_v4  ;;  %v5484_v28 = vadd.f32 %v5477_v13, %v5462_v2 }
 0x388   :  { %v7240_v9 = vld [vmem:[%s11980_s0 + $0xb08] sm:$0x7f]  ;;  %v5485_v27 = vadd.f32 %v5478_v14, %v5463_v6  ;;  %v5495_v29 = vmul.f32 %v7239_v7, %v5493_v4 }
 0x389   :  { %v7241_v15 = vld [vmem:[%s11980_s0 + $0xb68] sm:$0x7f]  ;;  %v5496_v30 = vmul.f32 %v7240_v9, %v5493_v4  ;;  %v5501_v39 = vadd.f32 %v5494_v22, %v5479_v18 }
 0x38a   :  { %v7242_v16 = vld [vmem:[%s11980_s0 + $0xbc8] sm:$0x7f]  ;;  %v5497_v31 = vmul.f32 %v7241_v15, %v5493_v4  ;;  %v5502_v42 = vadd.f32 %v5495_v29, %v5480_v19 }
 0x38b   :  { %v7243_v17 = vld [vmem:[%s11980_s0 + $0xc28] sm:$0x7f]  ;;  %v5498_v32 = vmul.f32 %v7242_v16, %v5493_v4  ;;  %v5503_v45 = vadd.f32 %v5496_v30, %v5481_v20 }
 0x38c   :  { %v7244_v21 = vld [vmem:[%s11980_s0 + $0xc88] sm:$0x7f]  ;;  %v5499_v37 = vmul.f32 %v7243_v17, %v5493_v4  ;;  %v5504_v43 = vadd.f32 %v5497_v31, %v5482_v26  ;;  %v7260_v17 = vld [vmem:[%s11980_s0 + $0x718] sm:$0x1] }
 0x38d   :  { %v7245_v23 = vld [vmem:[%s11980_s0 + $0x6e8] sm:$0xfe]  ;;  %v5500_v36 = vmul.f32 %v7244_v21, %v5493_v4  ;;  %v5505_v46 = vadd.f32 %v5498_v32, %v5483_v25 }
 0x38e   :  { %v7246_v33 = vld [vmem:[%s11980_s0 + $0x748] sm:$0xfe]  ;;  %v5516_v40 = vmul.f32 %v7245_v23, %v5515_v24  ;;  %v5506_v49 = vadd.f32 %v5499_v37, %v5484_v28  ;;  %v7262_v23 = vld [vmem:[%s11980_s0 + $0x778] sm:$0x1] }
 0x38f   :  { %v7247_v34 = vld [vmem:[%s11980_s0 + $0x7a8] sm:$0xfe]  ;;  %v5507_v52 = vadd.f32 %v5500_v36, %v5485_v27  ;;  %v5517_v50 = vmul.f32 %v7246_v33, %v5515_v24  ;;  %v7264_v27 = vld [vmem:[%s11980_s0 + $0x7d8] sm:$0x1] }
 0x390   :  { %v7248_v35 = vld [vmem:[%s11980_s0 + $0x808] sm:$0xfe]  ;;  %v5518_v51 = vmul.f32 %v7247_v34, %v5515_v24  ;;  %v5530_v61 = vrot.slane %v5516_v40, 1 }
 0x391   :  { %v7249_v41 = vld [vmem:[%s11980_s0 + $0x868] sm:$0xfe]  ;;  %v5519_v53 = vmul.f32 %v7248_v35, %v5515_v24  ;;  %v5531_v60 = vrot.slane %v5517_v50, 1  ;;  %v7266_v35 = vld [vmem:[%s11980_s0 + $0x838] sm:$0x1] }
 0x392   :  { %v7250_v38 = vld [vmem:[%s11980_s0 + $0x8c8] sm:$0xfe]  ;;  %v5520_v54 = vmul.f32 %v7249_v41, %v5515_v24  ;;  %v5532_v62 = vrot.slane %v5518_v51, 1  ;;  %v5544_v8 = vadd.f32 %v5530_v61, %v5501_v39  ;;  %v5612_v51 = vmul.f32 %v7262_v23, %v5608_v11 }
 0x393   :  { %v7251_v44 = vld [vmem:[%s11980_s0 + $0x928] sm:$0xfe]  ;;  %v5521_v55 = vmul.f32 %v7250_v38, %v5515_v24  ;;  %v5533_v1 = vrot.slane %v5519_v53, 1  ;;  %v5545_v5 = vadd.f32 %v5531_v60, %v5502_v42  ;;  %v7268_v38 = vld [vmem:[%s11980_s0 + $0x898] sm:$0x1] }
 0x394   :  { %v7252_v47 = vld [vmem:[%s11980_s0 + $0xa48] sm:$0xfe]  ;;  %v5522_v56 = vmul.f32 %v7251_v44, %v5515_v24  ;;  %v5534_v2 = vrot.slane %v5520_v54, 1  ;;  %v5546_v10 = vadd.f32 %v5532_v62, %v5503_v45  ;;  %v5610_v44 = vmul.f32 %v7260_v17, %v5608_v11 }
 0x395   :  { %v7253_v57 = vld [vmem:[%s11980_s0 + $0xaa8] sm:$0xfe]  ;;  %v5559_v0 = vmul.f32 %v7252_v47, %v5558_v48  ;;  %v5535_v3 = vrot.slane %v5521_v55, 1  ;;  %v5547_v13 = vadd.f32 %v5533_v1, %v5504_v43  ;;  %v7270_v47 = vld [vmem:[%s11980_s0 + $0x8f8] sm:$0x1]  ;;  %v5614_v54 = vmul.f32 %v7264_v27, %v5608_v11 }
 0x396   :  { %v7254_v59 = vld [vmem:[%s11980_s0 + $0xb08] sm:$0xfe]  ;;  %v5536_v4 = vrot.slane %v5522_v56, 1  ;;  %v5560_v9 = vmul.f32 %v7253_v57, %v5558_v48  ;;  %v5548_v14 = vadd.f32 %v5534_v2, %v5505_v46  ;;  %v5616_v56 = vmul.f32 %v7266_v35, %v5608_v11  ;;  %v5701_v35 = vld [vmem:[%s11981_s1 + $0x5b] ss:$0 sm:$0xff] }
 0x397   :  { %v7255_v58 = vld [vmem:[%s11980_s0 + $0xb68] sm:$0xfe]  ;;  %v5549_v15 = vadd.f32 %v5535_v3, %v5506_v49  ;;  %v5561_v18 = vmul.f32 %v7254_v59, %v5558_v48  ;;  %v5573_v25 = vrot.slane %v5559_v0, 1  ;;  %v5618_v59 = vmul.f32 %v7268_v38, %v5608_v11 }
 0x398   :  { %v7256_v63 = vld [vmem:[%s11980_s0 + $0xbc8] sm:$0xfe]  ;;  %v5550_v16 = vadd.f32 %v5536_v4, %v5507_v52  ;;  %v5562_v19 = vmul.f32 %v7255_v58, %v5558_v48  ;;  %v5574_v28 = vrot.slane %v5560_v9, 1  ;;  %v7272_v52 = vld [vmem:[%s11980_s0 + $0x958] sm:$0x1]  ;;  %v5620_v61 = vmul.f32 %v7270_v47, %v5608_v11 }
 0x399   :  { %v7257_v6 = vld [vmem:[%s11980_s0 + $0xc28] sm:$0xfe]  ;;  %v5563_v20 = vmul.f32 %v7256_v63, %v5558_v48  ;;  %v5575_v31 = vrot.slane %v5561_v18, 1  ;;  %v5587_v36 = vadd.f32 %v5573_v25, %v5544_v8  ;;  %v5622_v62 = vmul.f32 %v7272_v52, %v5608_v11 }
 0x39a   :  { %v7258_v7 = vld [vmem:[%s11980_s0 + $0xc88] sm:$0xfe]  ;;  %v5564_v21 = vmul.f32 %v7257_v6, %v5558_v48  ;;  %v5576_v32 = vrot.slane %v5562_v19, 1  ;;  %v5588_v39 = vadd.f32 %v5574_v28, %v5545_v5  ;;  %v5638_v0 = vrot.slane %v5610_v44, 2 }
 0x39b   :  { %v7259_v12 = vld [vmem:[%s11980_s0 + $0x6e8] sm:$0xfc]  ;;  %v5565_v26 = vmul.f32 %v7258_v7, %v5558_v48  ;;  %v5577_v33 = vrot.slane %v5563_v20, 1  ;;  %v5589_v40 = vadd.f32 %v5575_v31, %v5546_v10  ;;  %v5641_v2 = vrot.slane %v5612_v51, 2 }
 0x39c   :  { %v7261_v22 = vld [vmem:[%s11980_s0 + $0x748] sm:$0xfc]  ;;  %v5609_v30 = vmul.f32 %v7259_v12, %v5608_v11  ;;  %v5578_v34 = vrot.slane %v5564_v21, 1  ;;  %v5590_v42 = vadd.f32 %v5576_v32, %v5547_v13  ;;  %v5644_v4 = vrot.slane %v5614_v54, 2 }
 0x39d   :  { %v7263_v24 = vld [vmem:[%s11980_s0 + $0x7a8] sm:$0xfc]  ;;  %v5579_v37 = vrot.slane %v5565_v26, 1  ;;  %v5591_v45 = vadd.f32 %v5577_v33, %v5548_v14  ;;  %v5611_v50 = vmul.f32 %v7261_v22, %v5608_v11  ;;  %v5647_v5 = vrot.slane %v5616_v56, 2  ;;  %v5679_v22 = vld [vmem:[%s11981_s1 + $0x5a] ss:$0 sm:$0xff] }
 0x39e   :  { %v7265_v29 = vld [vmem:[%s11980_s0 + $0x808] sm:$0xfc]  ;;  %v5592_v43 = vadd.f32 %v5578_v34, %v5549_v15  ;;  %v5613_v53 = vmul.f32 %v7263_v24, %v5608_v11  ;;  %v5637_v63 = vrot.slane %v5609_v30, 2  ;;  %v5650_v7 = vrot.slane %v5618_v59, 2 }
 0x39f   :  { %v7267_v41 = vld [vmem:[%s11980_s0 + $0x868] sm:$0xfc]  ;;  %v5593_v49 = vadd.f32 %v5579_v37, %v5550_v16  ;;  %v5615_v55 = vmul.f32 %v7265_v29, %v5608_v11  ;;  %v5640_v1 = vrot.slane %v5611_v50, 2  ;;  %v5653_v14 = vrot.slane %v5620_v61, 2 }
 0x3a0   :  { %v7269_v46 = vld [vmem:[%s11980_s0 + $0x8c8] sm:$0xfc]  ;;  %v5617_v57 = vmul.f32 %v7267_v41, %v5608_v11  ;;  %v5643_v3 = vrot.slane %v5613_v53, 2  ;;  %v5639_v8 = vsel %vm185_vm0, %v5637_v63, %v5638_v0  ;;  %v5656_v20 = vrot.slane %v5622_v62, 2 }
 0x3a1   :  { %v7271_v48 = vld [vmem:[%s11980_s0 + $0x928] sm:$0xfc]  ;;  %v5619_v58 = vmul.f32 %v7269_v46, %v5608_v11  ;;  %v5646_v6 = vrot.slane %v5615_v55, 2  ;;  %v5642_v12 = vsel %vm185_vm0, %v5640_v1, %v5641_v2  ;;  %v5665_v24 = vadd.f32 %v5639_v8, %v5587_v36  ;;  %v5723_v55 = vld [vmem:[%s11981_s1 + $0x5c] ss:$0 sm:$0xff] }
 0x3a2   :  { %v5621_v60 = vmul.f32 %v7271_v48, %v5608_v11  ;;  %v5649_v10 = vrot.slane %v5617_v57, 2  ;;  %v7273_v9 = vld [vmem:[%s11980_s0 + $0x88] sm:$0x7f]  ;;  %v5645_v11 = vsel %vm185_vm0, %v5643_v3, %v5644_v4  ;;  %v5666_v26 = vadd.f32 %v5642_v12, %v5588_v39 }
 0x3a3   :  { %v5652_v13 = vrot.slane %v5619_v58, 2  ;;  %v7274_v15 = vld [vmem:[%s11980_s0 + $0xe8] sm:$0x7f]  ;;  %v5648_v17 = vsel %vm185_vm0, %v5646_v6, %v5647_v5  ;;  %v5667_v25 = vadd.f32 %v5645_v11, %v5589_v40  ;;  %v5680_v36 = vmul.f32 %v7273_v9, %v5679_v22 }
 0x3a4   :  { %v7275_v16 = vld [vmem:[%s11980_s0 + $0x148] sm:$0x7f]  ;;  %v5651_v18 = vsel %vm185_vm0, %v5649_v10, %v5650_v7  ;;  %v5655_v19 = vrot.slane %v5621_v60, 2  ;;  %v5668_v31 = vadd.f32 %v5648_v17, %v5590_v42  ;;  %v5681_v39 = vmul.f32 %v7274_v15, %v5679_v22  ;;  %v5766_v15 = vld [vmem:[%s11981_s1 + $0x5d] ss:$0 sm:$0xff] }
 0x3a5   :  { %v7276_v21 = vld [vmem:[%s11980_s0 + $0x1a8] sm:$0x7f]  ;;  %v5654_v23 = vsel %vm185_vm0, %v5652_v13, %v5653_v14  ;;  %v5669_v32 = vadd.f32 %v5651_v18, %v5591_v45  ;;  %v5682_v41 = vmul.f32 %v7275_v16, %v5679_v22 }
 0x3a6   :  { %v7277_v28 = vld [vmem:[%s11980_s0 + $0x208] sm:$0x7f]  ;;  %v5657_v30 = vsel %vm185_vm0, %v5655_v19, %v5656_v20  ;;  %v5670_v33 = vadd.f32 %v5654_v23, %v5592_v43  ;;  %v5683_v40 = vmul.f32 %v7276_v21, %v5679_v22  ;;  %v5688_v52 = vadd.f32 %v5681_v39, %v5666_v26 }
 0x3a7   :  { %v7278_v27 = vld [vmem:[%s11980_s0 + $0x268] sm:$0x7f]  ;;  %v5671_v37 = vadd.f32 %v5657_v30, %v5593_v49  ;;  %v5684_v42 = vmul.f32 %v7277_v28, %v5679_v22  ;;  %v5687_v49 = vadd.f32 %v5680_v36, %v5665_v24  ;;  %v5689_v50 = vadd.f32 %v5682_v41, %v5667_v25 }
 0x3a8   :  { %v7279_v29 = vld [vmem:[%s11980_s0 + $0x2c8] sm:$0x7f]  ;;  %v5685_v45 = vmul.f32 %v7278_v27, %v5679_v22  ;;  %v5690_v56 = vadd.f32 %v5683_v40, %v5668_v31 }
 0x3a9   :  { %v7280_v34 = vld [vmem:[%s11980_s0 + $0x3e8] sm:$0x7f]  ;;  %v5686_v43 = vmul.f32 %v7279_v29, %v5679_v22  ;;  %v5691_v57 = vadd.f32 %v5684_v42, %v5669_v32  ;;  %v5816_v42 = vld [vmem:[%s11981_s1 + $0x5e] ss:$0 sm:$0xff] }
 0x3aa   :  { %v7281_v38 = vld [vmem:[%s11980_s0 + $0x448] sm:$0x7f]  ;;  %v5702_v53 = vmul.f32 %v7280_v34, %v5701_v35  ;;  %v5692_v59 = vadd.f32 %v5685_v45, %v5670_v33 }
 0x3ab   :  { %v7282_v44 = vld [vmem:[%s11980_s0 + $0x4a8] sm:$0x7f]  ;;  %v5693_v58 = vadd.f32 %v5686_v43, %v5671_v37  ;;  %v5703_v61 = vmul.f32 %v7281_v38, %v5701_v35 }
 0x3ac   :  { %v7283_v46 = vld [vmem:[%s11980_s0 + $0x508] sm:$0x7f]  ;;  %v5704_v60 = vmul.f32 %v7282_v44, %v5701_v35  ;;  %v5709_v6 = vadd.f32 %v5702_v53, %v5687_v49 }
 0x3ad   :  { %v7284_v47 = vld [vmem:[%s11980_s0 + $0x568] sm:$0x7f]  ;;  %v5705_v62 = vmul.f32 %v7283_v46, %v5701_v35  ;;  %v5710_v9 = vadd.f32 %v5703_v61, %v5688_v52 }
 0x3ae   :  { %v7285_v48 = vld [vmem:[%s11980_s0 + $0x5c8] sm:$0x7f]  ;;  %v5706_v63 = vmul.f32 %v7284_v47, %v5701_v35  ;;  %v5711_v12 = vadd.f32 %v5704_v60, %v5689_v50 }
 0x3af   :  { %v7286_v51 = vld [vmem:[%s11980_s0 + $0x628] sm:$0x7f]  ;;  %v5707_v3 = vmul.f32 %v7285_v48, %v5701_v35  ;;  %v5712_v11 = vadd.f32 %v5705_v62, %v5690_v56  ;;  %v7302_v48 = vld [vmem:[%s11980_s0 + $0xb8] sm:$0x1] }
 0x3b0   :  { %v7287_v54 = vld [vmem:[%s11980_s0 + $0x88] sm:$0xfe]  ;;  %v5708_v4 = vmul.f32 %v7286_v51, %v5701_v35  ;;  %v5713_v13 = vadd.f32 %v5706_v63, %v5691_v57 }
 0x3b1   :  { %v7288_v0 = vld [vmem:[%s11980_s0 + $0xe8] sm:$0xfe]  ;;  %v5724_v7 = vmul.f32 %v7287_v54, %v5723_v55  ;;  %v5714_v16 = vadd.f32 %v5707_v3, %v5692_v59  ;;  %v7304_v54 = vld [vmem:[%s11980_s0 + $0x118] sm:$0x1] }
 0x3b2   :  { %v7289_v1 = vld [vmem:[%s11980_s0 + $0x148] sm:$0xfe]  ;;  %v5715_v17 = vadd.f32 %v5708_v4, %v5693_v58  ;;  %v5725_v18 = vmul.f32 %v7288_v0, %v5723_v55  ;;  %v7306_v58 = vld [vmem:[%s11980_s0 + $0x178] sm:$0x1] }
 0x3b3   :  { %v7290_v2 = vld [vmem:[%s11980_s0 + $0x1a8] sm:$0xfe]  ;;  %v5726_v19 = vmul.f32 %v7289_v1, %v5723_v55  ;;  %v5738_v28 = vrot.slane %v5724_v7, 1 }
 0x3b4   :  { %v7291_v8 = vld [vmem:[%s11980_s0 + $0x208] sm:$0xfe]  ;;  %v5727_v20 = vmul.f32 %v7290_v2, %v5723_v55  ;;  %v5739_v27 = vrot.slane %v5725_v18, 1  ;;  %v7308_v2 = vld [vmem:[%s11980_s0 + $0x1d8] sm:$0x1] }
 0x3b5   :  { %v7292_v5 = vld [vmem:[%s11980_s0 + $0x268] sm:$0xfe]  ;;  %v5728_v21 = vmul.f32 %v7291_v8, %v5723_v55  ;;  %v5740_v29 = vrot.slane %v5726_v19, 1  ;;  %v5752_v36 = vadd.f32 %v5738_v28, %v5709_v6  ;;  %v5820_v19 = vmul.f32 %v7304_v54, %v5816_v42 }
 0x3b6   :  { %v7293_v10 = vld [vmem:[%s11980_s0 + $0x2c8] sm:$0xfe]  ;;  %v5729_v22 = vmul.f32 %v7292_v5, %v5723_v55  ;;  %v5741_v32 = vrot.slane %v5727_v20, 1  ;;  %v5753_v39 = vadd.f32 %v5739_v27, %v5710_v9  ;;  %v7310_v5 = vld [vmem:[%s11980_s0 + $0x238] sm:$0x1] }
 0x3b7   :  { %v7294_v14 = vld [vmem:[%s11980_s0 + $0x3e8] sm:$0xfe]  ;;  %v5730_v23 = vmul.f32 %v7293_v10, %v5723_v55  ;;  %v5742_v33 = vrot.slane %v5728_v21, 1  ;;  %v5754_v41 = vadd.f32 %v5740_v29, %v5711_v12  ;;  %v5818_v10 = vmul.f32 %v7302_v48, %v5816_v42 }
 0x3b8   :  { %v7295_v24 = vld [vmem:[%s11980_s0 + $0x448] sm:$0xfe]  ;;  %v5767_v31 = vmul.f32 %v7294_v14, %v5766_v15  ;;  %v5743_v34 = vrot.slane %v5729_v22, 1  ;;  %v5755_v45 = vadd.f32 %v5741_v32, %v5712_v11  ;;  %v7312_v14 = vld [vmem:[%s11980_s0 + $0x298] sm:$0x1]  ;;  %v5822_v21 = vmul.f32 %v7306_v58, %v5816_v42 }
 0x3b9   :  { %v7296_v26 = vld [vmem:[%s11980_s0 + $0x4a8] sm:$0xfe]  ;;  %v5744_v35 = vrot.slane %v5730_v23, 1  ;;  %v5768_v44 = vmul.f32 %v7295_v24, %v5766_v15  ;;  %v5756_v43 = vadd.f32 %v5742_v33, %v5713_v13  ;;  %v5824_v23 = vmul.f32 %v7308_v2, %v5816_v42  ;;  %v5909_v2 = vld [vmem:[%s11981_s1 + $0x88] ss:$0 sm:$0xff] }
 0x3ba   :  { %v7297_v25 = vld [vmem:[%s11980_s0 + $0x508] sm:$0xfe]  ;;  %v5757_v46 = vadd.f32 %v5743_v34, %v5714_v16  ;;  %v5769_v49 = vmul.f32 %v7296_v26, %v5766_v15  ;;  %v5781_v57 = vrot.slane %v5767_v31, 1  ;;  %v5826_v26 = vmul.f32 %v7310_v5, %v5816_v42 }
 0x3bb   :  { %v7298_v30 = vld [vmem:[%s11980_s0 + $0x568] sm:$0xfe]  ;;  %v5758_v47 = vadd.f32 %v5744_v35, %v5715_v17  ;;  %v5770_v52 = vmul.f32 %v7297_v25, %v5766_v15  ;;  %v5782_v59 = vrot.slane %v5768_v44, 1  ;;  %v7314_v17 = vld [vmem:[%s11980_s0 + $0x2f8] sm:$0x1]  ;;  %v5828_v28 = vmul.f32 %v7312_v14, %v5816_v42 }
 0x3bc   :  { %v7299_v37 = vld [vmem:[%s11980_s0 + $0x5c8] sm:$0xfe]  ;;  %v5771_v50 = vmul.f32 %v7298_v30, %v5766_v15  ;;  %v5783_v62 = vrot.slane %v5769_v49, 1  ;;  %v5795_v4 = vadd.f32 %v5781_v57, %v5752_v36  ;;  %v5830_v29 = vmul.f32 %v7314_v17, %v5816_v42 }
 0x3bd   :  { %v7300_v38 = vld [vmem:[%s11980_s0 + $0x628] sm:$0xfe]  ;;  %v5772_v51 = vmul.f32 %v7299_v37, %v5766_v15  ;;  %v5784_v63 = vrot.slane %v5770_v52, 1  ;;  %v5796_v6 = vadd.f32 %v5782_v59, %v5753_v39  ;;  %v5846_v31 = vrot.slane %v5818_v10, 2 }
 0x3be   :  { %v7301_v40 = vld [vmem:[%s11980_s0 + $0x88] sm:$0xfc]  ;;  %v5773_v56 = vmul.f32 %v7300_v38, %v5766_v15  ;;  %v5785_v0 = vrot.slane %v5771_v50, 1  ;;  %v5797_v7 = vadd.f32 %v5783_v62, %v5754_v41  ;;  %v5849_v33 = vrot.slane %v5820_v19, 2 }
 0x3bf   :  { %v7303_v53 = vld [vmem:[%s11980_s0 + $0xe8] sm:$0xfc]  ;;  %v5817_v60 = vmul.f32 %v7301_v40, %v5816_v42  ;;  %v5786_v1 = vrot.slane %v5772_v51, 1  ;;  %v5798_v9 = vadd.f32 %v5784_v63, %v5755_v45  ;;  %v5852_v35 = vrot.slane %v5822_v21, 2 }
 0x3c0   :  { %v7305_v55 = vld [vmem:[%s11980_s0 + $0x148] sm:$0xfc]  ;;  %v5787_v3 = vrot.slane %v5773_v56, 1  ;;  %v5799_v12 = vadd.f32 %v5785_v0, %v5756_v43  ;;  %v5819_v18 = vmul.f32 %v7303_v53, %v5816_v42  ;;  %v5855_v39 = vrot.slane %v5824_v23, 2  ;;  %v5887_v53 = vld [vmem:[%s11981_s1 + $0x5f] ss:$0 sm:$0xff] }
 0x3c1   :  { %v7307_v61 = vld [vmem:[%s11980_s0 + $0x1a8] sm:$0xfc]  ;;  %v5800_v11 = vadd.f32 %v5786_v1, %v5757_v46  ;;  %v5821_v20 = vmul.f32 %v7305_v55, %v5816_v42  ;;  %v5845_v30 = vrot.slane %v5817_v60, 2  ;;  %v5858_v38 = vrot.slane %v5826_v26, 2 }
 0x3c2   :  { %v7309_v8 = vld [vmem:[%s11980_s0 + $0x208] sm:$0xfc]  ;;  %v5801_v16 = vadd.f32 %v5787_v3, %v5758_v47  ;;  %v5823_v22 = vmul.f32 %v7307_v61, %v5816_v42  ;;  %v5848_v32 = vrot.slane %v5819_v18, 2  ;;  %v5861_v43 = vrot.slane %v5828_v28, 2 }
 0x3c3   :  { %v7311_v13 = vld [vmem:[%s11980_s0 + $0x268] sm:$0xfc]  ;;  %v5825_v24 = vmul.f32 %v7309_v8, %v5816_v42  ;;  %v5851_v34 = vrot.slane %v5821_v20, 2  ;;  %v5847_v36 = vsel %vm185_vm0, %v5845_v30, %v5846_v31  ;;  %v5864_v50 = vrot.slane %v5830_v29, 2 }
 0x3c4   :  { %v7313_v15 = vld [vmem:[%s11980_s0 + $0x2c8] sm:$0xfc]  ;;  %v5827_v25 = vmul.f32 %v7311_v13, %v5816_v42  ;;  %v5854_v37 = vrot.slane %v5823_v22, 2  ;;  %v5850_v40 = vsel %vm185_vm0, %v5848_v32, %v5849_v33  ;;  %v5873_v55 = vadd.f32 %v5847_v36, %v5795_v4  ;;  %v5931_v22 = vld [vmem:[%s11981_s1 + $0x89] ss:$0 sm:$0xff] }
 0x3c5   :  { %v5829_v27 = vmul.f32 %v7313_v15, %v5816_v42  ;;  %v5857_v41 = vrot.slane %v5825_v24, 2  ;;  %v7315_v44 = vld [vmem:[%s11980_s0 + $0x748] sm:$0x7f]  ;;  %v5853_v42 = vsel %vm185_vm0, %v5851_v34, %v5852_v35  ;;  %v5874_v56 = vadd.f32 %v5850_v40, %v5796_v6 }
 0x3c6   :  { %v5860_v45 = vrot.slane %v5827_v25, 2  ;;  %v7316_v46 = vld [vmem:[%s11980_s0 + $0x7a8] sm:$0x7f]  ;;  %v5856_v48 = vsel %vm185_vm0, %v5854_v37, %v5855_v39  ;;  %v5875_v57 = vadd.f32 %v5853_v42, %v5797_v7  ;;  %v5888_v4 = vmul.f32 %v7315_v44, %v5887_v53 }
 0x3c7   :  { %v7317_v47 = vld [vmem:[%s11980_s0 + $0x808] sm:$0x7f]  ;;  %v5859_v49 = vsel %vm185_vm0, %v5857_v41, %v5858_v38  ;;  %v5863_v52 = vrot.slane %v5829_v27, 2  ;;  %v5876_v62 = vadd.f32 %v5856_v48, %v5798_v9  ;;  %v5889_v6 = vmul.f32 %v7316_v46, %v5887_v53 }
 0x3c8   :  { %v7318_v51 = vld [vmem:[%s11980_s0 + $0x868] sm:$0x7f]  ;;  %v5862_v54 = vsel %vm185_vm0, %v5860_v45, %v5861_v43  ;;  %v5877_v63 = vadd.f32 %v5859_v49, %v5799_v12  ;;  %v5890_v8 = vmul.f32 %v7317_v47, %v5887_v53 }
 0x3c9   :  { %v7319_v59 = vld [vmem:[%s11980_s0 + $0x8c8] sm:$0x7f]  ;;  %v5865_v60 = vsel %vm185_vm0, %v5863_v52, %v5864_v50  ;;  %v5878_v0 = vadd.f32 %v5862_v54, %v5800_v11  ;;  %v5891_v7 = vmul.f32 %v7318_v51, %v5887_v53  ;;  %v5896_v17 = vadd.f32 %v5889_v6, %v5874_v56 }
 0x3ca   :  { %v7320_v58 = vld [vmem:[%s11980_s0 + $0x928] sm:$0x7f]  ;;  %v5879_v3 = vadd.f32 %v5865_v60, %v5801_v16  ;;  %v5892_v9 = vmul.f32 %v7319_v59, %v5887_v53  ;;  %v5895_v16 = vadd.f32 %v5888_v4, %v5873_v55  ;;  %v5897_v18 = vadd.f32 %v5890_v8, %v5875_v57 }
 0x3cb   :  { %v7321_v61 = vld [vmem:[%s11980_s0 + $0x988] sm:$0x7f]  ;;  %v5893_v12 = vmul.f32 %v7320_v58, %v5887_v53  ;;  %v5898_v23 = vadd.f32 %v5891_v7, %v5876_v62 }
 0x3cc   :  { %v7322_v1 = vld [vmem:[%s11980_s0 + $0xaa8] sm:$0x7f]  ;;  %v5894_v11 = vmul.f32 %v7321_v61, %v5887_v53  ;;  %v5899_v24 = vadd.f32 %v5892_v9, %v5877_v63 }
 0x3cd   :  { %v7323_v5 = vld [vmem:[%s11980_s0 + $0xb08] sm:$0x7f]  ;;  %v5910_v20 = vmul.f32 %v7322_v1, %v5909_v2  ;;  %v5900_v26 = vadd.f32 %v5893_v12, %v5878_v0 }
 0x3ce   :  { %v7324_v10 = vld [vmem:[%s11980_s0 + $0xb68] sm:$0x7f]  ;;  %v5901_v25 = vadd.f32 %v5894_v11, %v5879_v3  ;;  %v5911_v28 = vmul.f32 %v7323_v5, %v5909_v2 }
 0x3cf   :  { %v7325_v13 = vld [vmem:[%s11980_s0 + $0xbc8] sm:$0x7f]  ;;  %v5912_v27 = vmul.f32 %v7324_v10, %v5909_v2  ;;  %v5917_v37 = vadd.f32 %v5910_v20, %v5895_v16 }
 0x3d0   :  { %v7326_v14 = vld [vmem:[%s11980_s0 + $0xc28] sm:$0x7f]  ;;  %v5913_v29 = vmul.f32 %v7325_v13, %v5909_v2  ;;  %v5918_v44 = vadd.f32 %v5911_v28, %v5896_v17 }
 0x3d1   :  { %v7327_v15 = vld [vmem:[%s11980_s0 + $0xc88] sm:$0x7f]  ;;  %v5914_v30 = vmul.f32 %v7326_v14, %v5909_v2  ;;  %v5919_v40 = vadd.f32 %v5912_v27, %v5897_v18 }
 0x3d2   :  { %v7328_v19 = vld [vmem:[%s11980_s0 + $0xce8] sm:$0x7f]  ;;  %v5915_v34 = vmul.f32 %v7327_v15, %v5909_v2  ;;  %v5920_v42 = vadd.f32 %v5913_v29, %v5898_v23  ;;  %v7344_v15 = vld [vmem:[%s11980_s0 + $0x778] sm:$0x1] }
 0x3d3   :  { %v7329_v21 = vld [vmem:[%s11980_s0 + $0x748] sm:$0xfe]  ;;  %v5916_v35 = vmul.f32 %v7328_v19, %v5909_v2  ;;  %v5921_v45 = vadd.f32 %v5914_v30, %v5899_v24 }
 0x3d4   :  { %v7330_v31 = vld [vmem:[%s11980_s0 + $0x7a8] sm:$0xfe]  ;;  %v5932_v38 = vmul.f32 %v7329_v21, %v5931_v22  ;;  %v5922_v47 = vadd.f32 %v5915_v34, %v5900_v26  ;;  %v7346_v21 = vld [vmem:[%s11980_s0 + $0x7d8] sm:$0x1] }
 0x3d5   :  { %v7331_v32 = vld [vmem:[%s11980_s0 + $0x808] sm:$0xfe]  ;;  %v5923_v48 = vadd.f32 %v5916_v35, %v5901_v25  ;;  %v5933_v49 = vmul.f32 %v7330_v31, %v5931_v22  ;;  %v7348_v25 = vld [vmem:[%s11980_s0 + $0x838] sm:$0x1] }
 0x3d6   :  { %v7332_v33 = vld [vmem:[%s11980_s0 + $0x868] sm:$0xfe]  ;;  %v5934_v52 = vmul.f32 %v7331_v32, %v5931_v22  ;;  %v5946_v59 = vrot.slane %v5932_v38, 1 }
 0x3d7   :  { %v7333_v36 = vld [vmem:[%s11980_s0 + $0x8c8] sm:$0xfe]  ;;  %v5935_v50 = vmul.f32 %v7332_v33, %v5931_v22  ;;  %v5947_v58 = vrot.slane %v5933_v49, 1  ;;  %v7350_v33 = vld [vmem:[%s11980_s0 + $0x898] sm:$0x1] }
 0x3d8   :  { %v7334_v39 = vld [vmem:[%s11980_s0 + $0x928] sm:$0xfe]  ;;  %v5936_v51 = vmul.f32 %v7333_v36, %v5931_v22  ;;  %v5948_v61 = vrot.slane %v5934_v52, 1  ;;  %v5960_v4 = vadd.f32 %v5946_v59, %v5917_v37 }
 0x3d9   :  { %v7335_v41 = vld [vmem:[%s11980_s0 + $0x988] sm:$0xfe]  ;;  %v5937_v53 = vmul.f32 %v7334_v39, %v5931_v22  ;;  %v5949_v63 = vrot.slane %v5935_v50, 1  ;;  %v5961_v6 = vadd.f32 %v5947_v58, %v5918_v44  ;;  %v7352_v39 = vld [vmem:[%s11980_s0 + $0x8f8] sm:$0x1] }
 0x3da   :  { %v7336_v43 = vld [vmem:[%s11980_s0 + $0xaa8] sm:$0xfe]  ;;  %v5938_v54 = vmul.f32 %v7335_v41, %v5931_v22  ;;  %v5950_v0 = vrot.slane %v5936_v51, 1  ;;  %v5962_v8 = vadd.f32 %v5948_v61, %v5919_v40 }
 0x3db   :  { %v5974_v46 = vld [vmem:[%s11981_s1 + $0x8a] ss:$0 sm:$0xff]  ;;  %v5951_v1 = vrot.slane %v5937_v53, 1  ;;  %v6024_v9 = vld [vmem:[%s11981_s1 + $0x8b] ss:$0 sm:$0xff]  ;;  %v5963_v12 = vadd.f32 %v5949_v63, %v5920_v42 }
 0x3dc   :  { %v7337_v55 = vld [vmem:[%s11980_s0 + $0xb08] sm:$0xfe]  ;;  %v5975_v62 = vmul.f32 %v7336_v43, %v5974_v46  ;;  %v5952_v2 = vrot.slane %v5938_v54, 1  ;;  %v5964_v11 = vadd.f32 %v5950_v0, %v5921_v45  ;;  %v6026_v41 = vmul.f32 %v7344_v15, %v6024_v9  ;;  %v7354_v43 = vld [vmem:[%s11980_s0 + $0x958] sm:$0x1] }
 0x3dd   :  { %v7338_v56 = vld [vmem:[%s11980_s0 + $0xb68] sm:$0xfe]  ;;  %v5976_v10 = vmul.f32 %v7337_v55, %v5974_v46  ;;  %v5965_v13 = vadd.f32 %v5951_v1, %v5922_v47  ;;  %v6028_v52 = vmul.f32 %v7346_v21, %v6024_v9  ;;  %v6030_v51 = vmul.f32 %v7348_v25, %v6024_v9 }
 0x3de   :  { %v7339_v57 = vld [vmem:[%s11980_s0 + $0xbc8] sm:$0xfe]  ;;  %v5966_v14 = vadd.f32 %v5952_v2, %v5923_v48  ;;  %v5977_v16 = vmul.f32 %v7338_v56, %v5974_v46  ;;  %v5989_v24 = vrot.slane %v5975_v62, 1  ;;  %v7356_v48 = vld [vmem:[%s11980_s0 + $0x9b8] sm:$0x1]  ;;  %v6032_v54 = vmul.f32 %v7350_v33, %v6024_v9 }
 0x3df   :  { %v7340_v60 = vld [vmem:[%s11980_s0 + $0xc28] sm:$0xfe]  ;;  %v5978_v17 = vmul.f32 %v7339_v57, %v5974_v46  ;;  %v5990_v26 = vrot.slane %v5976_v10, 1  ;;  %v6034_v56 = vmul.f32 %v7352_v39, %v6024_v9  ;;  %v6036_v59 = vmul.f32 %v7354_v43, %v6024_v9 }
 0x3e0   :  { %v7341_v3 = vld [vmem:[%s11980_s0 + $0xc88] sm:$0xfe]  ;;  %v5979_v18 = vmul.f32 %v7340_v60, %v5974_v46  ;;  %v5991_v29 = vrot.slane %v5977_v16, 1  ;;  %v6003_v35 = vadd.f32 %v5989_v24, %v5960_v4  ;;  %v6038_v61 = vmul.f32 %v7356_v48, %v6024_v9 }
 0x3e1   :  { %v7342_v5 = vld [vmem:[%s11980_s0 + $0xce8] sm:$0xfe]  ;;  %v5980_v19 = vmul.f32 %v7341_v3, %v5974_v46  ;;  %v5992_v30 = vrot.slane %v5978_v17, 1  ;;  %v6004_v37 = vadd.f32 %v5990_v26, %v5961_v6  ;;  %v6054_v62 = vrot.slane %v6026_v41, 2 }
 0x3e2   :  { %v7343_v7 = vld [vmem:[%s11980_s0 + $0x748] sm:$0xfc]  ;;  %v5981_v23 = vmul.f32 %v7342_v5, %v5974_v46  ;;  %v5993_v31 = vrot.slane %v5979_v18, 1  ;;  %v6005_v38 = vadd.f32 %v5991_v29, %v5962_v8  ;;  %v6057_v0 = vrot.slane %v6028_v52, 2 }
 0x3e3   :  { %v7345_v20 = vld [vmem:[%s11980_s0 + $0x7a8] sm:$0xfc]  ;;  %v6025_v27 = vmul.f32 %v7343_v7, %v6024_v9  ;;  %v5994_v32 = vrot.slane %v5980_v19, 1  ;;  %v6006_v44 = vadd.f32 %v5992_v30, %v5963_v12  ;;  %v6060_v2 = vrot.slane %v6030_v51, 2 }
 0x3e4   :  { %v7347_v22 = vld [vmem:[%s11980_s0 + $0x808] sm:$0xfc]  ;;  %v5995_v34 = vrot.slane %v5981_v23, 1  ;;  %v6007_v40 = vadd.f32 %v5993_v31, %v5964_v11  ;;  %v6027_v49 = vmul.f32 %v7345_v20, %v6024_v9  ;;  %v6063_v6 = vrot.slane %v6032_v54, 2 }
 0x3e5   :  { %v7349_v28 = vld [vmem:[%s11980_s0 + $0x868] sm:$0xfc]  ;;  %v6008_v42 = vadd.f32 %v5994_v32, %v5965_v13  ;;  %v6029_v50 = vmul.f32 %v7347_v22, %v6024_v9  ;;  %v6053_v60 = vrot.slane %v6025_v27, 2  ;;  %v6066_v5 = vrot.slane %v6034_v56, 2 }
 0x3e6   :  { %v7351_v36 = vld [vmem:[%s11980_s0 + $0x8c8] sm:$0xfc]  ;;  %v6009_v47 = vadd.f32 %v5995_v34, %v5966_v14  ;;  %v6031_v53 = vmul.f32 %v7349_v28, %v6024_v9  ;;  %v6056_v63 = vrot.slane %v6027_v49, 2  ;;  %v6069_v11 = vrot.slane %v6036_v59, 2 }
 0x3e7   :  { %v7353_v45 = vld [vmem:[%s11980_s0 + $0x928] sm:$0xfc]  ;;  %v6033_v55 = vmul.f32 %v7351_v36, %v6024_v9  ;;  %v6059_v1 = vrot.slane %v6029_v50, 2  ;;  %v6055_v4 = vsel %vm185_vm0, %v6053_v60, %v6054_v62  ;;  %v6072_v18 = vrot.slane %v6038_v61, 2 }
 0x3e8   :  { %v7355_v46 = vld [vmem:[%s11980_s0 + $0x988] sm:$0xfc]  ;;  %v6035_v57 = vmul.f32 %v7353_v45, %v6024_v9  ;;  %v6062_v3 = vrot.slane %v6031_v53, 2  ;;  %v6058_v7 = vsel %vm185_vm0, %v6056_v63, %v6057_v0  ;;  %v6081_v22 = vadd.f32 %v6055_v4, %v6003_v35 }
 0x3e9   :  { %v6037_v58 = vmul.f32 %v7355_v46, %v6024_v9  ;;  %v6065_v8 = vrot.slane %v6033_v55, 2  ;;  %v7357_v10 = vld [vmem:[%s11980_s0 + $0xe8] sm:$0x7f]  ;;  %v6061_v9 = vsel %vm185_vm0, %v6059_v1, %v6060_v2  ;;  %v6082_v23 = vadd.f32 %v6058_v7, %v6004_v37 }
 0x3ea   :  { %v6068_v12 = vrot.slane %v6035_v57, 2  ;;  %v7358_v13 = vld [vmem:[%s11980_s0 + $0x148] sm:$0x7f]  ;;  %v6064_v15 = vsel %vm185_vm0, %v6062_v3, %v6063_v6  ;;  %v6083_v24 = vadd.f32 %v6061_v9, %v6005_v38 }
 0x3eb   :  { %v7359_v14 = vld [vmem:[%s11980_s0 + $0x1a8] sm:$0x7f]  ;;  %v6067_v16 = vsel %vm185_vm0, %v6065_v8, %v6066_v5  ;;  %v6071_v17 = vrot.slane %v6037_v58, 2  ;;  %v6084_v29 = vadd.f32 %v6064_v15, %v6006_v44 }
 0x3ec   :  { %v7360_v19 = vld [vmem:[%s11980_s0 + $0x208] sm:$0x7f]  ;;  %v6070_v21 = vsel %vm185_vm0, %v6068_v12, %v6069_v11  ;;  %v6085_v30 = vadd.f32 %v6067_v16, %v6007_v40 }
 0x3ed   :  { %v6095_v20 = vld [vmem:[%s11981_s1 + $0x8c] ss:$0 sm:$0xff]  ;;  %v6073_v27 = vsel %vm185_vm0, %v6071_v17, %v6072_v18  ;;  %v6086_v31 = vadd.f32 %v6070_v21, %v6008_v42  ;;  %v6117_v33 = vld [vmem:[%s11981_s1 + $0x8d] ss:$0 sm:$0xff]  ;;  %v6139_v53 = vld [vmem:[%s11981_s1 + $0x8e] ss:$0 sm:$0xff] }
 0x3ee   :  { %v7361_v26 = vld [vmem:[%s11980_s0 + $0x268] sm:$0x7f]  ;;  %v6087_v34 = vadd.f32 %v6073_v27, %v6009_v47  ;;  %v6096_v35 = vmul.f32 %v7357_v10, %v6095_v20  ;;  %v6097_v37 = vmul.f32 %v7358_v13, %v6095_v20  ;;  %v6098_v36 = vmul.f32 %v7359_v14, %v6095_v20  ;;  %v6182_v13 = vld [vmem:[%s11981_s1 + $0x8f] ss:$0 sm:$0xff] }
 0x3ef   :  { %v7362_v25 = vld [vmem:[%s11980_s0 + $0x2c8] sm:$0x7f]  ;;  %v6099_v38 = vmul.f32 %v7360_v19, %v6095_v20  ;;  %v6100_v44 = vmul.f32 %v7361_v26, %v6095_v20 }
 0x3f0   :  { %v7363_v28 = vld [vmem:[%s11980_s0 + $0x328] sm:$0x7f]  ;;  %v6101_v40 = vmul.f32 %v7362_v25, %v6095_v20  ;;  %v6103_v47 = vadd.f32 %v6096_v35, %v6081_v22  ;;  %v6104_v48 = vadd.f32 %v6097_v37, %v6082_v23  ;;  %v6105_v49 = vadd.f32 %v6098_v36, %v6083_v24 }
 0x3f1   :  { %v7364_v32 = vld [vmem:[%s11980_s0 + $0x448] sm:$0x7f]  ;;  %v6102_v42 = vmul.f32 %v7363_v28, %v6095_v20  ;;  %v6106_v54 = vadd.f32 %v6099_v38, %v6084_v29  ;;  %v6107_v55 = vadd.f32 %v6100_v44, %v6085_v30  ;;  %v6232_v44 = vld [vmem:[%s11981_s1 + $0xb8] ss:$0 sm:$0xff] }
 0x3f2   :  { %v7365_v39 = vld [vmem:[%s11980_s0 + $0x4a8] sm:$0x7f]  ;;  %v6118_v50 = vmul.f32 %v7364_v32, %v6117_v33  ;;  %v6108_v56 = vadd.f32 %v6101_v40, %v6086_v31 }
 0x3f3   :  { %v7366_v41 = vld [vmem:[%s11980_s0 + $0x508] sm:$0x7f]  ;;  %v6109_v57 = vadd.f32 %v6102_v42, %v6087_v34  ;;  %v6119_v59 = vmul.f32 %v7365_v39, %v6117_v33 }
 0x3f4   :  { %v7367_v45 = vld [vmem:[%s11980_s0 + $0x568] sm:$0x7f]  ;;  %v6120_v58 = vmul.f32 %v7366_v41, %v6117_v33  ;;  %v6125_v3 = vadd.f32 %v6118_v50, %v6103_v47 }
 0x3f5   :  { %v7368_v43 = vld [vmem:[%s11980_s0 + $0x5c8] sm:$0x7f]  ;;  %v6121_v61 = vmul.f32 %v7367_v45, %v6117_v33  ;;  %v6126_v10 = vadd.f32 %v6119_v59, %v6104_v48 }
 0x3f6   :  { %v7369_v46 = vld [vmem:[%s11980_s0 + $0x628] sm:$0x7f]  ;;  %v6122_v60 = vmul.f32 %v7368_v43, %v6117_v33  ;;  %v6127_v7 = vadd.f32 %v6120_v58, %v6105_v49 }
 0x3f7   :  { %v7370_v52 = vld [vmem:[%s11980_s0 + $0x688] sm:$0x7f]  ;;  %v6123_v1 = vmul.f32 %v7369_v46, %v6117_v33  ;;  %v6128_v9 = vadd.f32 %v6121_v61, %v6106_v54  ;;  %v7386_v46 = vld [vmem:[%s11980_s0 + $0x118] sm:$0x1] }
 0x3f8   :  { %v7371_v51 = vld [vmem:[%s11980_s0 + $0xe8] sm:$0xfe]  ;;  %v6124_v2 = vmul.f32 %v7370_v52, %v6117_v33  ;;  %v6129_v12 = vadd.f32 %v6122_v60, %v6107_v55 }
 0x3f9   :  { %v7372_v62 = vld [vmem:[%s11980_s0 + $0x148] sm:$0xfe]  ;;  %v6140_v5 = vmul.f32 %v7371_v51, %v6139_v53  ;;  %v6130_v14 = vadd.f32 %v6123_v1, %v6108_v56  ;;  %v7388_v51 = vld [vmem:[%s11980_s0 + $0x178] sm:$0x1] }
 0x3fa   :  { %v7373_v63 = vld [vmem:[%s11980_s0 + $0x1a8] sm:$0xfe]  ;;  %v6131_v15 = vadd.f32 %v6124_v2, %v6109_v57  ;;  %v6141_v16 = vmul.f32 %v7372_v62, %v6139_v53  ;;  %v7390_v57 = vld [vmem:[%s11980_s0 + $0x1d8] sm:$0x1] }
 0x3fb   :  { %v7374_v0 = vld [vmem:[%s11980_s0 + $0x208] sm:$0xfe]  ;;  %v6142_v17 = vmul.f32 %v7373_v63, %v6139_v53  ;;  %v6154_v26 = vrot.slane %v6140_v5, 1 }
 0x3fc   :  { %v7375_v4 = vld [vmem:[%s11980_s0 + $0x268] sm:$0xfe]  ;;  %v6143_v18 = vmul.f32 %v7374_v0, %v6139_v53  ;;  %v6155_v25 = vrot.slane %v6141_v16, 1  ;;  %v7392_v0 = vld [vmem:[%s11980_s0 + $0x238] sm:$0x1] }
 0x3fd   :  { %v7376_v6 = vld [vmem:[%s11980_s0 + $0x2c8] sm:$0xfe]  ;;  %v6144_v19 = vmul.f32 %v7375_v4, %v6139_v53  ;;  %v6156_v28 = vrot.slane %v6142_v17, 1  ;;  %v6168_v35 = vadd.f32 %v6154_v26, %v6125_v3  ;;  %v6236_v17 = vmul.f32 %v7388_v51, %v6232_v44 }
 0x3fe   :  { %v7377_v8 = vld [vmem:[%s11980_s0 + $0x328] sm:$0xfe]  ;;  %v6145_v20 = vmul.f32 %v7376_v6, %v6139_v53  ;;  %v6157_v30 = vrot.slane %v6143_v18, 1  ;;  %v6169_v37 = vadd.f32 %v6155_v25, %v6126_v10  ;;  %v7394_v6 = vld [vmem:[%s11980_s0 + $0x298] sm:$0x1] }
 0x3ff   :  { %v7378_v11 = vld [vmem:[%s11980_s0 + $0x448] sm:$0xfe]  ;;  %v6146_v21 = vmul.f32 %v7377_v8, %v6139_v53  ;;  %v6158_v31 = vrot.slane %v6144_v19, 1  ;;  %v6170_v36 = vadd.f32 %v6156_v28, %v6127_v7  ;;  %v6234_v8 = vmul.f32 %v7386_v46, %v6232_v44 }
 0x400   :  { %v7379_v22 = vld [vmem:[%s11980_s0 + $0x4a8] sm:$0xfe]  ;;  %v6183_v29 = vmul.f32 %v7378_v11, %v6182_v13  ;;  %v6159_v32 = vrot.slane %v6145_v20, 1  ;;  %v6171_v40 = vadd.f32 %v6157_v30, %v6128_v9  ;;  %v7396_v11 = vld [vmem:[%s11980_s0 + $0x2f8] sm:$0x1]  ;;  %v6238_v19 = vmul.f32 %v7390_v57, %v6232_v44 }
 0x401   :  { %v7380_v23 = vld [vmem:[%s11980_s0 + $0x508] sm:$0xfe]  ;;  %v6160_v33 = vrot.slane %v6146_v21, 1  ;;  %v6184_v41 = vmul.f32 %v7379_v22, %v6182_v13  ;;  %v6172_v42 = vadd.f32 %v6158_v31, %v6129_v12  ;;  %v6240_v21 = vmul.f32 %v7392_v0, %v6232_v44 }
 0x402   :  { %v7381_v24 = vld [vmem:[%s11980_s0 + $0x568] sm:$0xfe]  ;;  %v6173_v45 = vadd.f32 %v6159_v32, %v6130_v14  ;;  %v6185_v47 = vmul.f32 %v7380_v23, %v6182_v13  ;;  %v6197_v55 = vrot.slane %v6183_v29, 1  ;;  %v6242_v23 = vmul.f32 %v7394_v6, %v6232_v44 }
 0x403   :  { %v7382_v27 = vld [vmem:[%s11980_s0 + $0x5c8] sm:$0xfe]  ;;  %v6174_v43 = vadd.f32 %v6160_v33, %v6131_v15  ;;  %v6186_v48 = vmul.f32 %v7381_v24, %v6182_v13  ;;  %v6198_v56 = vrot.slane %v6184_v41, 1  ;;  %v7398_v15 = vld [vmem:[%s11980_s0 + $0x358] sm:$0x1]  ;;  %v6244_v26 = vmul.f32 %v7396_v11, %v6232_v44 }
 0x404   :  { %v7383_v34 = vld [vmem:[%s11980_s0 + $0x628] sm:$0xfe]  ;;  %v6187_v49 = vmul.f32 %v7382_v27, %v6182_v13  ;;  %v6199_v61 = vrot.slane %v6185_v47, 1  ;;  %v6211_v2 = vadd.f32 %v6197_v55, %v6168_v35  ;;  %v6246_v28 = vmul.f32 %v7398_v15, %v6232_v44 }
 0x405   :  { %v7384_v39 = vld [vmem:[%s11980_s0 + $0x688] sm:$0xfe]  ;;  %v6188_v52 = vmul.f32 %v7383_v34, %v6182_v13  ;;  %v6200_v60 = vrot.slane %v6186_v48, 1  ;;  %v6212_v3 = vadd.f32 %v6198_v56, %v6169_v37  ;;  %v6262_v29 = vrot.slane %v6234_v8, 2 }
 0x406   :  { %v7385_v38 = vld [vmem:[%s11980_s0 + $0xe8] sm:$0xfc]  ;;  %v6189_v54 = vmul.f32 %v7384_v39, %v6182_v13  ;;  %v6201_v62 = vrot.slane %v6187_v49, 1  ;;  %v6213_v5 = vadd.f32 %v6199_v61, %v6170_v36  ;;  %v6265_v31 = vrot.slane %v6236_v17, 2 }
 0x407   :  { %v7387_v50 = vld [vmem:[%s11980_s0 + $0x148] sm:$0xfc]  ;;  %v6233_v58 = vmul.f32 %v7385_v38, %v6232_v44  ;;  %v6202_v63 = vrot.slane %v6188_v52, 1  ;;  %v6214_v10 = vadd.f32 %v6200_v60, %v6171_v40  ;;  %v6268_v33 = vrot.slane %v6238_v19, 2 }
 0x408   :  { %v7389_v53 = vld [vmem:[%s11980_s0 + $0x1a8] sm:$0xfc]  ;;  %v6203_v1 = vrot.slane %v6189_v54, 1  ;;  %v6215_v7 = vadd.f32 %v6201_v62, %v6172_v42  ;;  %v6235_v16 = vmul.f32 %v7387_v50, %v6232_v44  ;;  %v6271_v37 = vrot.slane %v6240_v21, 2 }
 0x409   :  { %v7391_v59 = vld [vmem:[%s11980_s0 + $0x208] sm:$0xfc]  ;;  %v6216_v9 = vadd.f32 %v6202_v63, %v6173_v45  ;;  %v6237_v18 = vmul.f32 %v7389_v53, %v6232_v44  ;;  %v6261_v27 = vrot.slane %v6233_v58, 2  ;;  %v6274_v39 = vrot.slane %v6242_v23, 2 }
 0x40a   :  { %v7393_v4 = vld [vmem:[%s11980_s0 + $0x268] sm:$0xfc]  ;;  %v6217_v14 = vadd.f32 %v6203_v1, %v6174_v43  ;;  %v6239_v20 = vmul.f32 %v7391_v59, %v6232_v44  ;;  %v6264_v30 = vrot.slane %v6235_v16, 2  ;;  %v6277_v42 = vrot.slane %v6244_v26, 2 }
 0x40b   :  { %v7395_v12 = vld [vmem:[%s11980_s0 + $0x2c8] sm:$0xfc]  ;;  %v6241_v22 = vmul.f32 %v7393_v4, %v6232_v44  ;;  %v6267_v32 = vrot.slane %v6237_v18, 2  ;;  %v6263_v35 = vsel %vm185_vm0, %v6261_v27, %v6262_v29  ;;  %v6280_v46 = vrot.slane %v6246_v28, 2 }
 0x40c   :  { %v7397_v13 = vld [vmem:[%s11980_s0 + $0x328] sm:$0xfc]  ;;  %v6243_v24 = vmul.f32 %v7395_v12, %v6232_v44  ;;  %v6270_v34 = vrot.slane %v6239_v20, 2  ;;  %v6266_v41 = vsel %vm185_vm0, %v6264_v30, %v6265_v31  ;;  %v6289_v48 = vadd.f32 %v6263_v35, %v6211_v2 }
 0x40d   :  { %v6245_v25 = vmul.f32 %v7397_v13, %v6232_v44  ;;  %v6273_v36 = vrot.slane %v6241_v22, 2  ;;  %v6269_v38 = vsel %vm185_vm0, %v6267_v32, %v6268_v33  ;;  %v6290_v49 = vadd.f32 %v6266_v41, %v6212_v3 }
 0x40e   :  { %v6276_v40 = vrot.slane %v6243_v24, 2  ;;  %v6272_v44 = vsel %vm185_vm0, %v6270_v34, %v6271_v37  ;;  %v6291_v52 = vadd.f32 %v6269_v38, %v6213_v5  ;;  %6296 = vst [vmem:[%s11982_s2 + $0x28] sm:$0x7f] %v6289_v48 }
 0x40f   :  { %v6275_v45 = vsel %vm185_vm0, %v6273_v36, %v6274_v39  ;;  %v6279_v43 = vrot.slane %v6245_v25, 2  ;;  %v6292_v51 = vadd.f32 %v6272_v44, %v6214_v10  ;;  %6297 = vst [vmem:[%s11982_s2 + $0x58] sm:$0x7f] %v6290_v49 }
 0x410   :  { %v6278_v47 = vsel %vm185_vm0, %v6276_v40, %v6277_v42  ;;  %v6293_v53 = vadd.f32 %v6275_v45, %v6215_v7  ;;  %6298 = vst [vmem:[%s11982_s2 + $0x88] sm:$0x7f] %v6291_v52 }
 0x411   :  { %v6281_v50 = vsel %vm185_vm0, %v6279_v43, %v6280_v46  ;;  %v6294_v54 = vadd.f32 %v6278_v47, %v6216_v9  ;;  %6299 = vst [vmem:[%s11982_s2 + $0xb8] sm:$0x7f] %v6292_v51 }
 0x412   :  { %v6295_v55 = vadd.f32 %v6281_v50, %v6217_v14  ;;  %6300 = vst [vmem:[%s11982_s2 + $0xe8] sm:$0x7f] %v6293_v53 }
 0x413   :  { %6301 = vst [vmem:[%s11982_s2 + $0x118] sm:$0x7f] %v6294_v54 }
 0x414   :  { %6302 = vst [vmem:[%s11982_s2 + $0x148] sm:$0x7f] %v6295_v55 }

</bundles_post_ra>
